<compile_context>
chip_gen: v7x
topology: tpu7x:2x2x1
jax: 0.10.0
libtpu: 0.0.40
codegen_flags: <defaults>
</compile_context>

<pallas_src>
import functools

import jax
import jax.numpy as jnp
from jax.experimental import pallas as pl
from jax.experimental.pallas import tpu as pltpu

# ---- toy stand-in dims (real Longformer: S<=4096, H=768, NH=12, out=384) ----
B = 2              # batch
S = 128            # sequence length
H = 256            # hidden size (multiple of 128 -> full-lane slabs)
NH = 2             # attention heads
DH = H // NH       # head dim = 128 -> every head block is a full lane tile
FFN = 512          # FFN intermediate size (toy; real model uses 4*H)
D_OUT = 384        # fc output_dim (matches the module; 3*128 -> lane dense)
VOCAB = 100        # toy vocab
BS = B * S


def _layer_norm(z, g, b, eps=1e-5):
    mu = jnp.mean(z, axis=-1, keepdims=True)
    var = jnp.mean((z - mu) ** 2, axis=-1, keepdims=True)
    return (z - mu) * jax.lax.rsqrt(var + eps) * g + b


def encoder_kernel(mask_ref, x_ref,
                   wqkv_ref, bqkv_ref, wo_ref, bo_ref, ln1g_ref, ln1b_ref,
                   w1_ref, b1_ref, w2_ref, b2_ref, ln2g_ref, ln2b_ref,
                   wfc_ref, bfc_ref,
                   vdn_ref,
                   scores_scr, ctx_scr,
                   *, exp_dtype):
    # One grid step == one batch element: activations are an (S, H) slab.
    x_bf = x_ref[...]                                        # (S, H) bf16

    # --- fused QKV projection: one (S,H)@(H,3H) MXU pass, one bias add ---
    qkv = jnp.dot(x_bf, wqkv_ref[...],
                  preferred_element_type=jnp.float32) + bqkv_ref[...]   # (S, 3H) f32
    scale = 1.0 / (DH ** 0.5)
    q = (qkv[:, 0:H] * scale).astype(jnp.bfloat16)           # fold 1/sqrt(d) into q
    k = qkv[:, H:2 * H].astype(jnp.bfloat16)
    v = qkv[:, 2 * H:3 * H].astype(jnp.bfloat16)

    # --- additive key mask as a (1, S) row: no (S, S) materialization ---
    neg = (1.0 - mask_ref[0]) * (-1e9)                       # (1, S) f32

    # --- per-head scores (full 128-lane head tiles) written into scratch ---
    for h in range(NH):                                       # static, tiny unroll
        lanes = slice(h * DH, (h + 1) * DH)
        sc = jnp.einsum('qd,kd->qk', q[:, lanes], k[:, lanes],
                        preferred_element_type=jnp.float32)   # (S, S), K=128
        scores_scr[h * S:(h + 1) * S, :] = sc + neg            # sublane-broadcast add

    # --- ONE masked softmax pass over the stacked (NH*S, S) slab ---
    s = scores_scr[...]
    s = s - jnp.max(s, axis=-1, keepdims=True)
    p = jnp.exp(s.astype(exp_dtype))                          # bf16 EUP on v6e/v7x
    row_sum = jnp.sum(p, axis=-1, keepdims=True, dtype=jnp.float32)
    inv = pl.reciprocal(row_sum, approx=True)
    p = (p * inv.astype(p.dtype)).astype(jnp.bfloat16)        # (NH*S, S) bf16

    # --- per-head context (PV, N=128) written straight into the ctx scratch ---
    for h in range(NH):
        lanes = slice(h * DH, (h + 1) * DH)
        ctx_scr[:, lanes] = jnp.dot(
            p[h * S:(h + 1) * S, :], v[:, lanes],
            preferred_element_type=jnp.float32).astype(jnp.bfloat16)

    # --- output projection + residual + LayerNorm (f32 math) ---
    attn = jnp.dot(ctx_scr[...], wo_ref[...],
                   preferred_element_type=jnp.float32) + bo_ref[...]
    x1 = _layer_norm(x_bf.astype(jnp.float32) + attn, ln1g_ref[...], ln1b_ref[...])

    # --- FFN (tanh-approx GELU; see TODO above) ---
    hmid = jax.nn.gelu(jnp.dot(x1.astype(jnp.bfloat16), w1_ref[...],
                               preferred_element_type=jnp.float32) + b1_ref[...])
    ffn = jnp.dot(hmid.astype(jnp.bfloat16), w2_ref[...],
                  preferred_element_type=jnp.float32) + b2_ref[...]
    hs = _layer_norm(x1 + ffn, ln2g_ref[...], ln2b_ref[...])  # last_hidden_state

    # --- fc head: lane-dense (S, 384) bf16 store; cls is derived in the wrapper ---
    v_dn = jnp.dot(hs.astype(jnp.bfloat16), wfc_ref[...],
                   preferred_element_type=jnp.float32) + bfc_ref[...]
    vdn_ref[...] = v_dn.astype(vdn_ref.dtype)


# Parameter ordering must match the kernel signature.
WKEYS = ('wqkv', 'bqkv', 'wo', 'bo', 'ln1g', 'ln1b',
         'w1', 'b1', 'w2', 'b2', 'ln2g', 'ln2b', 'wfc', 'bfc')


def init_params(key):
    ks = jax.random.split(key, 8)
    n = lambda kk, shape: (0.02 * jax.random.normal(kk, shape)).astype(jnp.float32)
    bf = lambda a: a.astype(jnp.bfloat16)          # MXU weights stored in bf16
    params = {
        'emb': n(ks[0], (VOCAB, H)),
        'pos': n(ks[1], (S, H)),
        'wqkv': bf(n(ks[2], (H, 3 * H))), 'bqkv': jnp.zeros((1, 3 * H), jnp.float32),
        'wo': bf(n(ks[3], (H, H))),       'bo': jnp.zeros((1, H), jnp.float32),
        'ln1g': jnp.ones((1, H), jnp.float32), 'ln1b': jnp.zeros((1, H), jnp.float32),
        'w1': bf(n(ks[4], (H, FFN))),     'b1': jnp.zeros((1, FFN), jnp.float32),
        'w2': bf(n(ks[5], (FFN, H))),     'b2': jnp.zeros((1, H), jnp.float32),
        'ln2g': jnp.ones((1, H), jnp.float32), 'ln2b': jnp.zeros((1, H), jnp.float32),
        'wfc': bf(n(ks[6], (H, D_OUT))),  'bfc': jnp.zeros((1, D_OUT), jnp.float32),
    }
    return params


def dn_encoder_forward(input_ids, attention_mask, params):
    """Returns (v_dn: [B, S, D_OUT], cls: [B, D_OUT]) like the PyTorch forward."""
    # Glue (embedding lookup + positions) in plain JAX.
    x = params['emb'][input_ids] + params['pos'][None, :, :]        # (B, S, H) f32
    x = x.reshape(BS, H).astype(jnp.bfloat16)                       # token-major slab
    mask = attention_mask.astype(jnp.float32).reshape(B, 1, S)      # (B, 1, S)

    # bf16 EUP for the softmax exp on v6e/v7x; f32 path on v5e (no bf16 EUP).
    kind = jax.devices()[0].device_kind.lower()
    exp_dtype = jnp.bfloat16 if ('v6' in kind or 'v7' in kind) else jnp.float32
    kernel = functools.partial(encoder_kernel, exp_dtype=exp_dtype)

    weight_args = [params[kk] for kk in WKEYS]

    def full_spec(arr):
        # Whole (2-D) array as one grid-invariant block (index_map constant).
        return pl.BlockSpec(arr.shape, lambda i: (0, 0))

    in_specs = ([pl.BlockSpec((1, 1, S), lambda i: (i, 0, 0)),       # mask row
                 pl.BlockSpec((S, H), lambda i: (i, 0))]             # x row slab
                + [full_spec(a) for a in weight_args])
    out_specs = pl.BlockSpec((S, D_OUT), lambda i: (i, 0))

    v_dn = pl.pallas_call(
        kernel,
        grid=(B,),
        in_specs=in_specs,
        out_specs=out_specs,
        out_shape=jax.ShapeDtypeStruct((BS, D_OUT), jnp.bfloat16),
        scratch_shapes=[pltpu.VMEM((NH * S, S), jnp.float32),   # stacked scores
                        pltpu.VMEM((S, H), jnp.bfloat16)],      # context slab
        compiler_params=pltpu.CompilerParams(
            dimension_semantics=("parallel",)),
    )(mask, x, *weight_args)

    v_dn = v_dn.reshape(B, S, D_OUT)
    # fc is a per-token linear map, so cls == v_dn[:, 0, :] — no extra kernel output.
    cls = v_dn[:, 0, :]
    return v_dn, cls


if __name__ == "__main__":
    root = jax.random.PRNGKey(0)
    k_params, k_ids = jax.random.split(root, 2)

    params = init_params(k_params)

    # Deterministic toy "tokenized notes": ids in [0, VOCAB), token 0 acts as CLS.
    input_ids = jax.random.randint(k_ids, (B, S), 0, VOCAB, dtype=jnp.int32)
    input_ids = input_ids.at[:, 0].set(0)
    # Batch 0 fully valid; batch 1 has 16 padded tokens at the end.
    attention_mask = jnp.ones((B, S), jnp.int32)
    attention_mask = attention_mask.at[1, S - 16:].set(0)

    v_dn, cls = dn_encoder_forward(input_ids, attention_mask, params)
    jax.block_until_ready((v_dn, cls))

    assert v_dn.shape == (B, S, D_OUT) and cls.shape == (B, D_OUT)
    print("KERNEL_OK")
</pallas_src>

<mosaic_0001>
module attributes {stable_mosaic.version = 11 : i64} {
  func.func @encoder_kernel(%arg0: i32, %arg1: memref<1x1x128xf32, #tpu.memory_space<vmem>>, %arg2: memref<128x256xbf16, #tpu.memory_space<vmem>>, %arg3: memref<256x768xbf16, #tpu.memory_space<vmem>>, %arg4: memref<1x768xf32, #tpu.memory_space<vmem>>, %arg5: memref<256x256xbf16, #tpu.memory_space<vmem>>, %arg6: memref<1x256xf32, #tpu.memory_space<vmem>>, %arg7: memref<1x256xf32, #tpu.memory_space<vmem>>, %arg8: memref<1x256xf32, #tpu.memory_space<vmem>>, %arg9: memref<256x512xbf16, #tpu.memory_space<vmem>>, %arg10: memref<1x512xf32, #tpu.memory_space<vmem>>, %arg11: memref<512x256xbf16, #tpu.memory_space<vmem>>, %arg12: memref<1x256xf32, #tpu.memory_space<vmem>>, %arg13: memref<1x256xf32, #tpu.memory_space<vmem>>, %arg14: memref<1x256xf32, #tpu.memory_space<vmem>>, %arg15: memref<256x384xbf16, #tpu.memory_space<vmem>>, %arg16: memref<1x384xf32, #tpu.memory_space<vmem>>, %arg17: memref<128x384xbf16, #tpu.memory_space<vmem>>, %arg18: memref<256x128xf32, #tpu.memory_space<vmem>>, %arg19: memref<128x256xbf16, #tpu.memory_space<vmem>>) attributes {dimension_semantics = [#tpu.dimension_semantics<parallel>], iteration_bounds = array<i64: 2>, scalar_prefetch = 0 : i64, scratch_operands = 2 : i64, tpu.core_type = #tpu.core_type<tc>, window_params = [{transform_indices = @transform_0, window_bounds = array<i64: 1, 1, 128>}, {transform_indices = @transform_1, window_bounds = array<i64: 128, 256>}, {pipeline_mode = #tpu.pipeline_mode<synchronous>, transform_indices = @transform_2, window_bounds = array<i64: 256, 768>}, {pipeline_mode = #tpu.pipeline_mode<synchronous>, transform_indices = @transform_3, window_bounds = array<i64: 1, 768>}, {pipeline_mode = #tpu.pipeline_mode<synchronous>, transform_indices = @transform_4, window_bounds = array<i64: 256, 256>}, {pipeline_mode = #tpu.pipeline_mode<synchronous>, transform_indices = @transform_5, window_bounds = array<i64: 1, 256>}, {pipeline_mode = #tpu.pipeline_mode<synchronous>, transform_indices = @transform_6, window_bounds = array<i64: 1, 256>}, {pipeline_mode = #tpu.pipeline_mode<synchronous>, transform_indices = @transform_7, window_bounds = array<i64: 1, 256>}, {pipeline_mode = #tpu.pipeline_mode<synchronous>, transform_indices = @transform_8, window_bounds = array<i64: 256, 512>}, {pipeline_mode = #tpu.pipeline_mode<synchronous>, transform_indices = @transform_9, window_bounds = array<i64: 1, 512>}, {pipeline_mode = #tpu.pipeline_mode<synchronous>, transform_indices = @transform_10, window_bounds = array<i64: 512, 256>}, {pipeline_mode = #tpu.pipeline_mode<synchronous>, transform_indices = @transform_11, window_bounds = array<i64: 1, 256>}, {pipeline_mode = #tpu.pipeline_mode<synchronous>, transform_indices = @transform_12, window_bounds = array<i64: 1, 256>}, {pipeline_mode = #tpu.pipeline_mode<synchronous>, transform_indices = @transform_13, window_bounds = array<i64: 1, 256>}, {pipeline_mode = #tpu.pipeline_mode<synchronous>, transform_indices = @transform_14, window_bounds = array<i64: 256, 384>}, {pipeline_mode = #tpu.pipeline_mode<synchronous>, transform_indices = @transform_15, window_bounds = array<i64: 1, 384>}, {transform_indices = @transform_16, window_bounds = array<i64: 128, 384>}]} {
    %c0 = arith.constant 0 : index
    %c0_0 = arith.constant 0 : index
    %0 = vector.load %arg2[%c0, %c0_0] : memref<128x256xbf16, #tpu.memory_space<vmem>>, vector<128x256xbf16>
    %c0_1 = arith.constant 0 : index
    %c0_2 = arith.constant 0 : index
    %1 = vector.load %arg3[%c0_1, %c0_2] : memref<256x768xbf16, #tpu.memory_space<vmem>>, vector<256x768xbf16>
    %cst = arith.constant dense<0.000000e+00> : vector<128x768xf32>
    %2 = tpu.matmul %0, %1, %cst {dimension_numbers = #tpu.dot_dimension_numbers<[1], [0], [0], [1], [0, 0, 1, 1], [], []>} : vector<128x256xbf16>, vector<256x768xbf16>, vector<128x768xf32> -> vector<128x768xf32>
    %c0_3 = arith.constant 0 : index
    %c0_4 = arith.constant 0 : index
    %3 = vector.load %arg4[%c0_3, %c0_4] : memref<1x768xf32, #tpu.memory_space<vmem>>, vector<1x768xf32>
    %4 = vector.broadcast %3 : vector<1x768xf32> to vector<128x768xf32>
    %5 = arith.addf %2, %4 : vector<128x768xf32>
    %6 = vector.extract_strided_slice %5 {offsets = [0, 0], sizes = [128, 256], strides = [1, 1]} : vector<128x768xf32> to vector<128x256xf32>
    %cst_5 = arith.constant 0.0883883461 : f32
    %7 = vector.broadcast %cst_5 : f32 to vector<128x256xf32>
    %8 = arith.mulf %6, %7 : vector<128x256xf32>
    %9 = arith.truncf %8 : vector<128x256xf32> to vector<128x256xbf16>
    %10 = vector.extract_strided_slice %5 {offsets = [0, 256], sizes = [128, 256], strides = [1, 1]} : vector<128x768xf32> to vector<128x256xf32>
    %11 = arith.truncf %10 : vector<128x256xf32> to vector<128x256xbf16>
    %12 = vector.extract_strided_slice %5 {offsets = [0, 512], sizes = [128, 256], strides = [1, 1]} : vector<128x768xf32> to vector<128x256xf32>
    %13 = arith.truncf %12 : vector<128x256xf32> to vector<128x256xbf16>
    %c0_6 = arith.constant 0 : index
    %c0_7 = arith.constant 0 : index
    %c0_8 = arith.constant 0 : index
    %14 = vector.load %arg1[%c0_6, %c0_7, %c0_8] : memref<1x1x128xf32, #tpu.memory_space<vmem>>, vector<1x1x128xf32>
    %15 = vector.shape_cast %14 : vector<1x1x128xf32> to vector<1x128xf32>
    %cst_9 = arith.constant 1.000000e+00 : f32
    %16 = vector.broadcast %cst_9 : f32 to vector<1x128xf32>
    %17 = arith.subf %16, %15 : vector<1x128xf32>
    %cst_10 = arith.constant -1.000000e+09 : f32
    %18 = vector.broadcast %cst_10 : f32 to vector<1x128xf32>
    %19 = arith.mulf %17, %18 : vector<1x128xf32>
    %20 = vector.extract_strided_slice %9 {offsets = [0, 0], sizes = [128, 128], strides = [1, 1]} : vector<128x256xbf16> to vector<128x128xbf16>
    %21 = vector.extract_strided_slice %11 {offsets = [0, 0], sizes = [128, 128], strides = [1, 1]} : vector<128x256xbf16> to vector<128x128xbf16>
    "tpu.trace_start"() <{level = 10 : i32, message = "qd,kd->qk"}> : () -> ()
    %cst_11 = arith.constant dense<0.000000e+00> : vector<128x128xf32>
    %22 = tpu.matmul %20, %21, %cst_11 {dimension_numbers = #tpu.dot_dimension_numbers<[1], [1], [0], [0], [0, 0, 1, 0], [], []>} : vector<128x128xbf16>, vector<128x128xbf16>, vector<128x128xf32> -> vector<128x128xf32>
    "tpu.trace_stop"() : () -> ()
    %23 = vector.broadcast %19 : vector<1x128xf32> to vector<128x128xf32>
    %24 = arith.addf %22, %23 : vector<128x128xf32>
    %c0_12 = arith.constant 0 : index
    %c0_13 = arith.constant 0 : index
    %25 = vector.load %arg18[%c0_12, %c0_13] : memref<256x128xf32, #tpu.memory_space<vmem>>, vector<128x128xf32>
    tpu.vector_store %arg18[%c0_12, %c0_13], %24 {strides = array<i32>} : memref<256x128xf32, #tpu.memory_space<vmem>>, vector<128x128xf32>,
    %26 = vector.extract_strided_slice %9 {offsets = [0, 128], sizes = [128, 128], strides = [1, 1]} : vector<128x256xbf16> to vector<128x128xbf16>
    %27 = vector.extract_strided_slice %11 {offsets = [0, 128], sizes = [128, 128], strides = [1, 1]} : vector<128x256xbf16> to vector<128x128xbf16>
    "tpu.trace_start"() <{level = 10 : i32, message = "qd,kd->qk"}> : () -> ()
    %cst_14 = arith.constant dense<0.000000e+00> : vector<128x128xf32>
    %28 = tpu.matmul %26, %27, %cst_14 {dimension_numbers = #tpu.dot_dimension_numbers<[1], [1], [0], [0], [0, 0, 1, 0], [], []>} : vector<128x128xbf16>, vector<128x128xbf16>, vector<128x128xf32> -> vector<128x128xf32>
    "tpu.trace_stop"() : () -> ()
    %29 = vector.broadcast %19 : vector<1x128xf32> to vector<128x128xf32>
    %30 = arith.addf %28, %29 : vector<128x128xf32>
    %c128 = arith.constant 128 : index
    %c0_15 = arith.constant 0 : index
    %31 = vector.load %arg18[%c128, %c0_15] : memref<256x128xf32, #tpu.memory_space<vmem>>, vector<128x128xf32>
    tpu.vector_store %arg18[%c128, %c0_15], %30 {strides = array<i32>} : memref<256x128xf32, #tpu.memory_space<vmem>>, vector<128x128xf32>,
    %c0_16 = arith.constant 0 : index
    %c0_17 = arith.constant 0 : index
    %32 = vector.load %arg18[%c0_16, %c0_17] : memref<256x128xf32, #tpu.memory_space<vmem>>, vector<256x128xf32>
    %cst_18 = arith.constant dense<0xFF800000> : vector<256xf32>
    %33 = vector.multi_reduction <maximumf>, %32, %cst_18 [1] : vector<256x128xf32> to vector<256xf32>
    %34 = vector.shape_cast %33 : vector<256xf32> to vector<256x1xf32>
    %35 = vector.broadcast %34 : vector<256x1xf32> to vector<256x128xf32>
    %36 = arith.subf %32, %35 : vector<256x128xf32>
    %37 = math.exp %36 : vector<256x128xf32>
    %cst_19 = arith.constant dense<0.000000e+00> : vector<256xf32>
    %38 = vector.multi_reduction <add>, %37, %cst_19 [1] : vector<256x128xf32> to vector<256xf32>
    %39 = vector.shape_cast %38 : vector<256xf32> to vector<256x1xf32>
    %40 = tpu.reciprocal %39 {approx = true} : vector<256x1xf32> -> vector<256x1xf32>
    %41 = vector.broadcast %40 : vector<256x1xf32> to vector<256x128xf32>
    %42 = arith.mulf %37, %41 : vector<256x128xf32>
    %43 = arith.truncf %42 : vector<256x128xf32> to vector<256x128xbf16>
    %44 = vector.extract_strided_slice %43 {offsets = [0, 0], sizes = [128, 128], strides = [1, 1]} : vector<256x128xbf16> to vector<128x128xbf16>
    %45 = vector.extract_strided_slice %13 {offsets = [0, 0], sizes = [128, 128], strides = [1, 1]} : vector<128x256xbf16> to vector<128x128xbf16>
    %cst_20 = arith.constant dense<0.000000e+00> : vector<128x128xf32>
    %46 = tpu.matmul %44, %45, %cst_20 {dimension_numbers = #tpu.dot_dimension_numbers<[1], [0], [0], [1], [0, 0, 1, 1], [], []>} : vector<128x128xbf16>, vector<128x128xbf16>, vector<128x128xf32> -> vector<128x128xf32>
    %47 = arith.truncf %46 : vector<128x128xf32> to vector<128x128xbf16>
    %c0_21 = arith.constant 0 : index
    %c0_22 = arith.constant 0 : index
    %48 = vector.load %arg19[%c0_21, %c0_22] : memref<128x256xbf16, #tpu.memory_space<vmem>>, vector<128x128xbf16>
    tpu.vector_store %arg19[%c0_21, %c0_22], %47 {strides = array<i32>} : memref<128x256xbf16, #tpu.memory_space<vmem>>, vector<128x128xbf16>,
    %49 = vector.extract_strided_slice %43 {offsets = [128, 0], sizes = [128, 128], strides = [1, 1]} : vector<256x128xbf16> to vector<128x128xbf16>
    %50 = vector.extract_strided_slice %13 {offsets = [0, 128], sizes = [128, 128], strides = [1, 1]} : vector<128x256xbf16> to vector<128x128xbf16>
    %cst_23 = arith.constant dense<0.000000e+00> : vector<128x128xf32>
    %51 = tpu.matmul %49, %50, %cst_23 {dimension_numbers = #tpu.dot_dimension_numbers<[1], [0], [0], [1], [0, 0, 1, 1], [], []>} : vector<128x128xbf16>, vector<128x128xbf16>, vector<128x128xf32> -> vector<128x128xf32>
    %52 = arith.truncf %51 : vector<128x128xf32> to vector<128x128xbf16>
    %c0_24 = arith.constant 0 : index
    %c128_25 = arith.constant 128 : index
    %53 = vector.load %arg19[%c0_24, %c128_25] : memref<128x256xbf16, #tpu.memory_space<vmem>>, vector<128x128xbf16>
    tpu.vector_store %arg19[%c0_24, %c128_25], %52 {strides = array<i32>} : memref<128x256xbf16, #tpu.memory_space<vmem>>, vector<128x128xbf16>,
    %c0_26 = arith.constant 0 : index
    %c0_27 = arith.constant 0 : index
    %54 = vector.load %arg19[%c0_26, %c0_27] : memref<128x256xbf16, #tpu.memory_space<vmem>>, vector<128x256xbf16>
    %c0_28 = arith.constant 0 : index
    %c0_29 = arith.constant 0 : index
    %55 = vector.load %arg5[%c0_28, %c0_29] : memref<256x256xbf16, #tpu.memory_space<vmem>>, vector<256x256xbf16>
    %cst_30 = arith.constant dense<0.000000e+00> : vector<128x256xf32>
    %56 = tpu.matmul %54, %55, %cst_30 {dimension_numbers = #tpu.dot_dimension_numbers<[1], [0], [0], [1], [0, 0, 1, 1], [], []>} : vector<128x256xbf16>, vector<256x256xbf16>, vector<128x256xf32> -> vector<128x256xf32>
    %c0_31 = arith.constant 0 : index
    %c0_32 = arith.constant 0 : index
    %57 = vector.load %arg6[%c0_31, %c0_32] : memref<1x256xf32, #tpu.memory_space<vmem>>, vector<1x256xf32>
    %58 = vector.broadcast %57 : vector<1x256xf32> to vector<128x256xf32>
    %59 = arith.addf %56, %58 : vector<128x256xf32>
    %60 = arith.extf %0 : vector<128x256xbf16> to vector<128x256xf32>
    %61 = arith.addf %60, %59 : vector<128x256xf32>
    %c0_33 = arith.constant 0 : index
    %c0_34 = arith.constant 0 : index
    %62 = vector.load %arg7[%c0_33, %c0_34] : memref<1x256xf32, #tpu.memory_space<vmem>>, vector<1x256xf32>
    %c0_35 = arith.constant 0 : index
    %c0_36 = arith.constant 0 : index
    %63 = vector.load %arg8[%c0_35, %c0_36] : memref<1x256xf32, #tpu.memory_space<vmem>>, vector<1x256xf32>
    %cst_37 = arith.constant dense<0.000000e+00> : vector<128xf32>
    %64 = vector.multi_reduction <add>, %61, %cst_37 [1] : vector<128x256xf32> to vector<128xf32>
    %65 = vector.shape_cast %64 : vector<128xf32> to vector<128x1xf32>
    %cst_38 = arith.constant 2.560000e+02 : f32
    %66 = vector.broadcast %cst_38 : f32 to vector<128x1xf32>
    %67 = arith.divf %65, %66 : vector<128x1xf32>
    %68 = vector.broadcast %67 : vector<128x1xf32> to vector<128x256xf32>
    %69 = arith.subf %61, %68 : vector<128x256xf32>
    %70 = arith.mulf %69, %69 : vector<128x256xf32>
    %cst_39 = arith.constant dense<0.000000e+00> : vector<128xf32>
    %71 = vector.multi_reduction <add>, %70, %cst_39 [1] : vector<128x256xf32> to vector<128xf32>
    %72 = vector.shape_cast %71 : vector<128xf32> to vector<128x1xf32>
    %cst_40 = arith.constant 2.560000e+02 : f32
    %73 = vector.broadcast %cst_40 : f32 to vector<128x1xf32>
    %74 = arith.divf %72, %73 : vector<128x1xf32>
    %75 = vector.broadcast %67 : vector<128x1xf32> to vector<128x256xf32>
    %76 = arith.subf %61, %75 : vector<128x256xf32>
    %cst_41 = arith.constant 9.99999974E-6 : f32
    %77 = vector.broadcast %cst_41 : f32 to vector<128x1xf32>
    %78 = arith.addf %74, %77 : vector<128x1xf32>
    %79 = math.rsqrt %78 : vector<128x1xf32>
    %80 = vector.broadcast %79 : vector<128x1xf32> to vector<128x256xf32>
    %81 = arith.mulf %76, %80 : vector<128x256xf32>
    %82 = vector.broadcast %62 : vector<1x256xf32> to vector<128x256xf32>
    %83 = arith.mulf %81, %82 : vector<128x256xf32>
    %84 = vector.broadcast %63 : vector<1x256xf32> to vector<128x256xf32>
    %85 = arith.addf %83, %84 : vector<128x256xf32>
    %86 = arith.truncf %85 : vector<128x256xf32> to vector<128x256xbf16>
    %c0_42 = arith.constant 0 : index
    %c0_43 = arith.constant 0 : index
    %87 = vector.load %arg9[%c0_42, %c0_43] : memref<256x512xbf16, #tpu.memory_space<vmem>>, vector<256x512xbf16>
    %cst_44 = arith.constant dense<0.000000e+00> : vector<128x512xf32>
    %88 = tpu.matmul %86, %87, %cst_44 {dimension_numbers = #tpu.dot_dimension_numbers<[1], [0], [0], [1], [0, 0, 1, 1], [], []>} : vector<128x256xbf16>, vector<256x512xbf16>, vector<128x512xf32> -> vector<128x512xf32>
    %c0_45 = arith.constant 0 : index
    %c0_46 = arith.constant 0 : index
    %89 = vector.load %arg10[%c0_45, %c0_46] : memref<1x512xf32, #tpu.memory_space<vmem>>, vector<1x512xf32>
    %90 = vector.broadcast %89 : vector<1x512xf32> to vector<128x512xf32>
    %91 = arith.addf %88, %90 : vector<128x512xf32>
    %92 = arith.mulf %91, %91 : vector<128x512xf32>
    %93 = arith.mulf %91, %92 : vector<128x512xf32>
    %cst_47 = arith.constant 4.471500e-02 : f32
    %94 = vector.broadcast %cst_47 : f32 to vector<128x512xf32>
    %95 = arith.mulf %94, %93 : vector<128x512xf32>
    %96 = arith.addf %91, %95 : vector<128x512xf32>
    %cst_48 = arith.constant 0.797884583 : f32
    %97 = vector.broadcast %cst_48 : f32 to vector<128x512xf32>
    %98 = arith.mulf %97, %96 : vector<128x512xf32>
    %99 = math.tanh %98 : vector<128x512xf32>
    %cst_49 = arith.constant 1.000000e+00 : f32
    %100 = vector.broadcast %cst_49 : f32 to vector<128x512xf32>
    %101 = arith.addf %100, %99 : vector<128x512xf32>
    %cst_50 = arith.constant 5.000000e-01 : f32
    %102 = vector.broadcast %cst_50 : f32 to vector<128x512xf32>
    %103 = arith.mulf %102, %101 : vector<128x512xf32>
    %104 = arith.mulf %91, %103 : vector<128x512xf32>
    %105 = arith.truncf %104 : vector<128x512xf32> to vector<128x512xbf16>
    %c0_51 = arith.constant 0 : index
    %c0_52 = arith.constant 0 : index
    %106 = vector.load %arg11[%c0_51, %c0_52] : memref<512x256xbf16, #tpu.memory_space<vmem>>, vector<512x256xbf16>
    %cst_53 = arith.constant dense<0.000000e+00> : vector<128x256xf32>
    %107 = tpu.matmul %105, %106, %cst_53 {dimension_numbers = #tpu.dot_dimension_numbers<[1], [0], [0], [1], [0, 0, 1, 1], [], []>} : vector<128x512xbf16>, vector<512x256xbf16>, vector<128x256xf32> -> vector<128x256xf32>
    %c0_54 = arith.constant 0 : index
    %c0_55 = arith.constant 0 : index
    %108 = vector.load %arg12[%c0_54, %c0_55] : memref<1x256xf32, #tpu.memory_space<vmem>>, vector<1x256xf32>
    %109 = vector.broadcast %108 : vector<1x256xf32> to vector<128x256xf32>
    %110 = arith.addf %107, %109 : vector<128x256xf32>
    %111 = arith.addf %85, %110 : vector<128x256xf32>
    %c0_56 = arith.constant 0 : index
    %c0_57 = arith.constant 0 : index
    %112 = vector.load %arg13[%c0_56, %c0_57] : memref<1x256xf32, #tpu.memory_space<vmem>>, vector<1x256xf32>
    %c0_58 = arith.constant 0 : index
    %c0_59 = arith.constant 0 : index
    %113 = vector.load %arg14[%c0_58, %c0_59] : memref<1x256xf32, #tpu.memory_space<vmem>>, vector<1x256xf32>
    %cst_60 = arith.constant dense<0.000000e+00> : vector<128xf32>
    %114 = vector.multi_reduction <add>, %111, %cst_60 [1] : vector<128x256xf32> to vector<128xf32>
    %115 = vector.shape_cast %114 : vector<128xf32> to vector<128x1xf32>
    %cst_61 = arith.constant 2.560000e+02 : f32
    %116 = vector.broadcast %cst_61 : f32 to vector<128x1xf32>
    %117 = arith.divf %115, %116 : vector<128x1xf32>
    %118 = vector.broadcast %117 : vector<128x1xf32> to vector<128x256xf32>
    %119 = arith.subf %111, %118 : vector<128x256xf32>
    %120 = arith.mulf %119, %119 : vector<128x256xf32>
    %cst_62 = arith.constant dense<0.000000e+00> : vector<128xf32>
    %121 = vector.multi_reduction <add>, %120, %cst_62 [1] : vector<128x256xf32> to vector<128xf32>
    %122 = vector.shape_cast %121 : vector<128xf32> to vector<128x1xf32>
    %cst_63 = arith.constant 2.560000e+02 : f32
    %123 = vector.broadcast %cst_63 : f32 to vector<128x1xf32>
    %124 = arith.divf %122, %123 : vector<128x1xf32>
    %125 = vector.broadcast %117 : vector<128x1xf32> to vector<128x256xf32>
    %126 = arith.subf %111, %125 : vector<128x256xf32>
    %cst_64 = arith.constant 9.99999974E-6 : f32
    %127 = vector.broadcast %cst_64 : f32 to vector<128x1xf32>
    %128 = arith.addf %124, %127 : vector<128x1xf32>
    %129 = math.rsqrt %128 : vector<128x1xf32>
    %130 = vector.broadcast %129 : vector<128x1xf32> to vector<128x256xf32>
    %131 = arith.mulf %126, %130 : vector<128x256xf32>
    %132 = vector.broadcast %112 : vector<1x256xf32> to vector<128x256xf32>
    %133 = arith.mulf %131, %132 : vector<128x256xf32>
    %134 = vector.broadcast %113 : vector<1x256xf32> to vector<128x256xf32>
    %135 = arith.addf %133, %134 : vector<128x256xf32>
    %136 = arith.truncf %135 : vector<128x256xf32> to vector<128x256xbf16>
    %c0_65 = arith.constant 0 : index
    %c0_66 = arith.constant 0 : index
    %137 = vector.load %arg15[%c0_65, %c0_66] : memref<256x384xbf16, #tpu.memory_space<vmem>>, vector<256x384xbf16>
    %cst_67 = arith.constant dense<0.000000e+00> : vector<128x384xf32>
    %138 = tpu.matmul %136, %137, %cst_67 {dimension_numbers = #tpu.dot_dimension_numbers<[1], [0], [0], [1], [0, 0, 1, 1], [], []>} : vector<128x256xbf16>, vector<256x384xbf16>, vector<128x384xf32> -> vector<128x384xf32>
    %c0_68 = arith.constant 0 : index
    %c0_69 = arith.constant 0 : index
    %139 = vector.load %arg16[%c0_68, %c0_69] : memref<1x384xf32, #tpu.memory_space<vmem>>, vector<1x384xf32>
    %140 = vector.broadcast %139 : vector<1x384xf32> to vector<128x384xf32>
    %141 = arith.addf %138, %140 : vector<128x384xf32>
    %142 = arith.truncf %141 : vector<128x384xf32> to vector<128x384xbf16>
    %c0_70 = arith.constant 0 : index
    %c0_71 = arith.constant 0 : index
    %143 = vector.load %arg17[%c0_70, %c0_71] : memref<128x384xbf16, #tpu.memory_space<vmem>>, vector<128x384xbf16>
    tpu.vector_store %arg17[%c0_70, %c0_71], %142 {strides = array<i32>} : memref<128x384xbf16, #tpu.memory_space<vmem>>, vector<128x384xbf16>,
    return
  }
  func.func @transform_0(%arg0: i32) -> (i32, i32, i32) {
    %c0_i32 = arith.constant 0 : i32
    %c0_i32_0 = arith.constant 0 : i32
    %c0_i32_1 = arith.constant 0 : i32
    return %arg0, %c0_i32, %c0_i32_0 : i32, i32, i32
  }
  func.func @transform_1(%arg0: i32) -> (i32, i32) {
    %c0_i32 = arith.constant 0 : i32
    %c0_i32_0 = arith.constant 0 : i32
    return %arg0, %c0_i32 : i32, i32
  }
  func.func @transform_2(%arg0: i32) -> (i32, i32) {
    %c0_i32 = arith.constant 0 : i32
    %c0_i32_0 = arith.constant 0 : i32
    %c0_i32_1 = arith.constant 0 : i32
    return %c0_i32, %c0_i32_0 : i32, i32
  }
  func.func @transform_3(%arg0: i32) -> (i32, i32) {
    %c0_i32 = arith.constant 0 : i32
    %c0_i32_0 = arith.constant 0 : i32
    %c0_i32_1 = arith.constant 0 : i32
    return %c0_i32, %c0_i32_0 : i32, i32
  }
  func.func @transform_4(%arg0: i32) -> (i32, i32) {
    %c0_i32 = arith.constant 0 : i32
    %c0_i32_0 = arith.constant 0 : i32
    %c0_i32_1 = arith.constant 0 : i32
    return %c0_i32, %c0_i32_0 : i32, i32
  }
  func.func @transform_5(%arg0: i32) -> (i32, i32) {
    %c0_i32 = arith.constant 0 : i32
    %c0_i32_0 = arith.constant 0 : i32
    %c0_i32_1 = arith.constant 0 : i32
    return %c0_i32, %c0_i32_0 : i32, i32
  }
  func.func @transform_6(%arg0: i32) -> (i32, i32) {
    %c0_i32 = arith.constant 0 : i32
    %c0_i32_0 = arith.constant 0 : i32
    %c0_i32_1 = arith.constant 0 : i32
    return %c0_i32, %c0_i32_0 : i32, i32
  }
  func.func @transform_7(%arg0: i32) -> (i32, i32) {
    %c0_i32 = arith.constant 0 : i32
    %c0_i32_0 = arith.constant 0 : i32
    %c0_i32_1 = arith.constant 0 : i32
    return %c0_i32, %c0_i32_0 : i32, i32
  }
  func.func @transform_8(%arg0: i32) -> (i32, i32) {
    %c0_i32 = arith.constant 0 : i32
    %c0_i32_0 = arith.constant 0 : i32
    %c0_i32_1 = arith.constant 0 : i32
    return %c0_i32, %c0_i32_0 : i32, i32
  }
  func.func @transform_9(%arg0: i32) -> (i32, i32) {
    %c0_i32 = arith.constant 0 : i32
    %c0_i32_0 = arith.constant 0 : i32
    %c0_i32_1 = arith.constant 0 : i32
    return %c0_i32, %c0_i32_0 : i32, i32
  }
  func.func @transform_10(%arg0: i32) -> (i32, i32) {
    %c0_i32 = arith.constant 0 : i32
    %c0_i32_0 = arith.constant 0 : i32
    %c0_i32_1 = arith.constant 0 : i32
    return %c0_i32, %c0_i32_0 : i32, i32
  }
  func.func @transform_11(%arg0: i32) -> (i32, i32) {
    %c0_i32 = arith.constant 0 : i32
    %c0_i32_0 = arith.constant 0 : i32
    %c0_i32_1 = arith.constant 0 : i32
    return %c0_i32, %c0_i32_0 : i32, i32
  }
  func.func @transform_12(%arg0: i32) -> (i32, i32) {
    %c0_i32 = arith.constant 0 : i32
    %c0_i32_0 = arith.constant 0 : i32
    %c0_i32_1 = arith.constant 0 : i32
    return %c0_i32, %c0_i32_0 : i32, i32
  }
  func.func @transform_13(%arg0: i32) -> (i32, i32) {
    %c0_i32 = arith.constant 0 : i32
    %c0_i32_0 = arith.constant 0 : i32
    %c0_i32_1 = arith.constant 0 : i32
    return %c0_i32, %c0_i32_0 : i32, i32
  }
  func.func @transform_14(%arg0: i32) -> (i32, i32) {
    %c0_i32 = arith.constant 0 : i32
    %c0_i32_0 = arith.constant 0 : i32
    %c0_i32_1 = arith.constant 0 : i32
    return %c0_i32, %c0_i32_0 : i32, i32
  }
  func.func @transform_15(%arg0: i32) -> (i32, i32) {
    %c0_i32 = arith.constant 0 : i32
    %c0_i32_0 = arith.constant 0 : i32
    %c0_i32_1 = arith.constant 0 : i32
    return %c0_i32, %c0_i32_0 : i32, i32
  }
  func.func @transform_16(%arg0: i32) -> (i32, i32) {
    %c0_i32 = arith.constant 0 : i32
    %c0_i32_0 = arith.constant 0 : i32
    return %arg0, %c0_i32 : i32, i32
  }
}

</mosaic_0001>

<bundles_post_ra>
// kernel: tpu_custom_call.1
= control target key start
LH: loop header
LB: loop body
LE: loop exit
PB: predicated region body
PF: predicated region fallthrough
CT: control target
= control target key end

     0   :  { %s11575_s0 = inlined_call_operand.hbm [shape: f32[2,1,128], index: 0, kind: input, shape index: {}]   ;;  %s11576_s1 = inlined_call_operand.hbm [shape: bf16[256,256], index: 1, kind: input, shape index: {}]   ;;  %s11577_s2 = inlined_call_operand.hbm [shape: bf16[256,768], index: 2, kind: input, shape index: {}]   ;;  %s11578_s3 = inlined_call_operand.vmem [shape: f32[1,768], index: 3, kind: input, shape index: {}]   ;;  %s11579_s4 = inlined_call_operand.hbm [shape: bf16[256,256], index: 4, kind: input, shape index: {}]   ;;  %s11580_s5 = inlined_call_operand.vmem [shape: f32[1,256], index: 5, kind: input, shape index: {}]   ;;  %s11581_s6 = inlined_call_operand.vmem [shape: f32[1,256], index: 6, kind: input, shape index: {}]   ;;  %s11582_s7 = inlined_call_operand.vmem [shape: f32[1,256], index: 7, kind: input, shape index: {}]   ;;  %s11583_s8 = inlined_call_operand.hbm [shape: bf16[256,512], index: 8, kind: input, shape index: {}]   ;;  %s11584_s9 = inlined_call_operand.vmem [shape: f32[1,512], index: 9, kind: input, shape index: {}]   ;;  %s11585_s10 = inlined_call_operand.hbm [shape: bf16[512,256], index: 10, kind: input, shape index: {}]   ;;  %s11586_s11 = inlined_call_operand.vmem [shape: f32[1,256], index: 11, kind: input, shape index: {}]   ;;  %s11587_s12 = inlined_call_operand.vmem [shape: f32[1,256], index: 12, kind: input, shape index: {}]   ;;  %s11588_s13 = inlined_call_operand.vmem [shape: f32[1,256], index: 13, kind: input, shape index: {}]   ;;  %s11589_s14 = inlined_call_operand.hbm [shape: bf16[256,384], index: 14, kind: input, shape index: {}]   ;;  %s11590_s15 = inlined_call_operand.vmem [shape: f32[1,384], index: 15, kind: input, shape index: {}]   ;;  %s11591_s16 = inlined_call_operand.hbm [shape: bf16[256,384], index: 16, kind: output, shape index: {}]  }
   0x1   :  { %11674 = sst [smem:[#allocation118_spill]] %s11575_s0 }
   0x2   :  { %11675 = sst [smem:[#allocation119_spill]] %s11577_s2 }
   0x3   :  { %11676 = sst [smem:[#allocation120_spill]] %s11579_s4 }
   0x4   :  { %11677 = sst [smem:[#allocation121_spill]] %s11582_s7 }
   0x5   :  { %11678 = sst [smem:[#allocation122_spill]] %s11583_s8 }
   0x6   :  { %11679 = sst [smem:[#allocation123_spill]] %s11584_s9 }
   0x7   :  { %11680 = sst [smem:[#allocation124_spill]] %s11585_s10 }
   0x8   :  { %11681 = sst [smem:[#allocation125_spill]] %s11586_s11 }
   0x9   :  { %11682 = sst [smem:[#allocation126_spill]] %s11587_s12 }
   0xa   :  { %11683 = sst [smem:[#allocation127_spill]] %s11588_s13 }
   0xb   :  { %11684 = sst [smem:[#allocation128_spill]] %s11589_s14 }
   0xc   :  { %11685 = sst [smem:[#allocation129_spill]] %s11590_s15 }
   0xd   :  { %11686 = sst [smem:[#allocation130_spill]] %s11591_s16 }
   0xe   :  { %21 = vsyncpa [#allocation5], 0 }
   0xf   :  { %23 = vsyncpa [#allocation5 + $0x1], 0 }
  0x10   :  { %24 = vsyncpa [#allocation8], 0 }
  0x11   :  { %26 = vsyncpa [#allocation8 + $0x1], 0 }
  0x12   :  { %27 = vsyncpa [#allocation11], 0 }
  0x13   :  { %28 = vsyncpa [#allocation14], 0 }
  0x14   :  { %29 = vsyncpa [#allocation6], 0 }
  0x15   :  { %31 = vsyncpa [#allocation6 + $0x1], 0  ;;  %s8540_s21 = smov 0   ;;  %s8542_s22 = smov 0  }
  0x16   :  { %s8544_s23 = smov 0   ;;  %s8546_s24 = smov 0  }
  0x17 LB: > { %s8437_s25 = smov [#allocation9]   ;;  %s8561_s27 = sadd.s32 4294967295, %s8435_s24   ;;  %s8435_s24 = sphi %s8546_s24, %s11920_s24   ;;  %s8431_s23 = sphi %s8544_s23, %s11919_s23   ;;  %s8427_s22 = sphi %s8542_s22, %s11918_s22   ;;  %s8423_s21 = sphi %s8540_s21, %s11917_s21  }
  0x18   : > { %s426_s26 = sshll.u32 %s8437_s25, 4  ;;  %p6477_p0 = scmp.ge.s32.totalorder %s8435_s24, 1  ;;  %s8566_s26 = int_to_ptr.vmem [resolvable:$true] %s426_s26 }
  0x19   : > { %p11594_p1 = scmp.eq.s32.totalorder %s8561_s27, 0  ;;  %p414_p2 = scmp.lt.s32.totalorder %s8435_s24, 3 }
  0x1a   : > { %s8438_s29 = smov [#allocation10]   ;;  %s8439_s17 = smov [#allocation13]  }
  0x1b   : > { %p8568_p3 = pnand %p6477_p0, %p414_p2  ;;  %s442_s30 = sshll.u32 %s8438_s29, 4  ;;  %s8581_s30 = int_to_ptr.vmem [resolvable:$true] %s442_s30 }
  0x1c   : > { %s8583_s18 = sshll.u32 %s8439_s17, 4  ;;  %s11689_s2 = sld [smem:[#allocation119_spill]]  ;;  %s481_s18 = int_to_ptr.vmem [resolvable:$true] %s8583_s18 }
  0x1d   : > { %s11687_s28 = scalar_select %p8568_p3, 1, 0 }
  0x1e   : > { %p7267_p5 = pneg %p8568_p3 }
  0x20   : > { %p8577_p6 = pnand %p7267_p5, %p11594_p1 }
  0x22   : > { %s8153_s25 = scalar_lea.hbm %s11689_s2, 12288  ;;  %p8593_p8 = pneg %p8577_p6 }
  0x23   : > { %p8154_p7 = scmp.ne.s32.totalorder %s11689_s2, %s8153_s25  ;;  %p8160_p11 = scmp.lt.u32.totalorder %s8153_s25, %s11689_s2 }
  0x25   : > { %p8156_p9 = pnand %p8593_p8, %p8154_p7 }
  0x27   : > { %p8157_p10 = pneg %p8156_p9 }
  0x29   : > { %p8162_p12 = pnand %p8160_p11, %p8157_p10 }
  0x2b   : > { %8165 = shalt.err (!%p8162_p12)
}
  0x2c   : > { %s8166_s15 = scalar_lea.vmem %s8566_s26, 12288  ;;  %p8174_p5 = scmp.lt.s32.totalorder %s8566_s26, %s8566_s26 }
  0x2d   : > { %p8167_p13 = scmp.ne.s32.totalorder %s8566_s26, %s8166_s15  ;;  %p8175_p4 = scmp.lt.s32.totalorder %s8166_s15, %s8166_s15 }
  0x2f   : > { %p8169_p0 = pnand %p8167_p13, %p8593_p8  ;;  %p8176_p7 = por %p8175_p4, %p8174_p5 }
  0x31   : > { %p8170_p2 = pneg %p8169_p0 }
  0x33   : > { %p8177_p9 = pnand %p8176_p7, %p8170_p2 }
  0x35   : > { %8180 = shalt.err (!%p8177_p9)
}
  0x36   : > { %s8440_s16 = smov 384   ;;  %s8441_s13 = smov 24  }
  0x37   : > { %7270 = dma.hbm_to_vmem [thread:$0]  (!%p8577_p6), %s11689_s2, 12288, %s8566_s26, [#allocation8], %s8440_s16, %s8440_s16, %s8441_s13  }
  0x38   : > { %s11691_s4 = sld [smem:[#allocation120_spill]] }
  0x3e   : > { %s8181_s12 = scalar_lea.hbm %s11691_s4, 4096 }
  0x3f   : > { %p8182_p4 = scmp.ne.s32.totalorder %s11691_s4, %s8181_s12  ;;  %p8188_p12 = scmp.lt.u32.totalorder %s8181_s12, %s11691_s4 }
  0x41   : > { %p8184_p10 = pnand %p8182_p4, %p8593_p8 }
  0x43   : > { %p8185_p11 = pneg %p8184_p10 }
  0x45   : > { %p8190_p13 = pnand %p8188_p12, %p8185_p11 }
  0x47   : > { %8193 = shalt.err (!%p8190_p13)
}
  0x48   : > { %s8194_s26 = scalar_lea.vmem %s8581_s30, 4096  ;;  %p8202_p7 = scmp.lt.s32.totalorder %s8581_s30, %s8581_s30 }
  0x49   : > { %p8195_p0 = scmp.ne.s32.totalorder %s8581_s30, %s8194_s26  ;;  %p8203_p9 = scmp.lt.s32.totalorder %s8194_s26, %s8194_s26 }
  0x4b   : > { %p8197_p2 = pnand %p8195_p0, %p8593_p8  ;;  %p8204_p4 = por %p8203_p9, %p8202_p7 }
  0x4d   : > { %p8198_p5 = pneg %p8197_p2 }
  0x4f   : > { %p8205_p10 = pnand %p8204_p4, %p8198_p5 }
  0x51   : > { %8208 = shalt.err (!%p8205_p10)
}
  0x52   : > { %s11596_s9 = smov 128   ;;  %s11597_s7 = smov 8  }
  0x53   : > { %7273 = dma.hbm_to_vmem [thread:$0]  (!%p8577_p6), %s11691_s4, 4096, %s8581_s30, [#allocation11], %s11596_s9, %s11596_s9, %s11597_s7  }
  0x54   : > { %s11692_s10 = sld [smem:[#allocation124_spill]] }
  0x5a   : > { %s8209_s19 = scalar_lea.hbm %s11692_s10, 8192 }
  0x5b   : > { %p8210_p11 = scmp.ne.s32.totalorder %s11692_s10, %s8209_s19  ;;  %p8216_p0 = scmp.lt.u32.totalorder %s8209_s19, %s11692_s10 }
  0x5d   : > { %p8212_p12 = pnand %p8210_p11, %p8593_p8 }
  0x5f   : > { %p8213_p13 = pneg %p8212_p12 }
  0x61   : > { %p8218_p2 = pnand %p8216_p0, %p8213_p13 }
  0x63   : > { %8221 = shalt.err (!%p8218_p2)
}
  0x64   : > { %s8222_s26 = scalar_lea.vmem %s481_s18, 8192  ;;  %p8230_p4 = scmp.lt.s32.totalorder %s481_s18, %s481_s18 }
  0x65   : > { %p8223_p5 = scmp.ne.s32.totalorder %s481_s18, %s8222_s26  ;;  %p8231_p10 = scmp.lt.s32.totalorder %s8222_s26, %s8222_s26 }
  0x67   : > { %p8225_p7 = pnand %p8223_p5, %p8593_p8  ;;  %p8232_p1 = por %p8231_p10, %p8230_p4 }
  0x69   : > { %p8226_p9 = pneg %p8225_p7 }
  0x6b   : > { %p8233_p3 = pnand %p8232_p1, %p8226_p9 }
  0x6d   : > { %8236 = shalt.err (!%p8233_p3)
}
  0x6e   : > { %7279 = dma.hbm_to_vmem [thread:$0]  (!%p8577_p6), %s11692_s10, 8192, %s481_s18, [#allocation14], %s11596_s9, %s11596_s9, %s11597_s7  }
  0x6f   : > { %s8444_s12 = smov [#allocation12]   ;;  %s11693_s8 = sld [smem:[#allocation122_spill]] }
  0x70   : > { %s464_s16 = sshll.u32 %s8444_s12, 4  ;;  %s465_s16 = int_to_ptr.vmem [resolvable:$true] %s464_s16 }
  0x75   : > { %s8237_s20 = scalar_lea.hbm %s11693_s8, 8192 }
  0x76   : > { %p8238_p1 = scmp.ne.s32.totalorder %s11693_s8, %s8237_s20  ;;  %p8244_p12 = scmp.lt.u32.totalorder %s8237_s20, %s11693_s8 }
  0x78   : > { %p8240_p3 = pnand %p8238_p1, %p8593_p8 }
  0x7a   : > { %p8241_p11 = pneg %p8240_p3 }
  0x7c   : > { %p8246_p13 = pnand %p8244_p12, %p8241_p11 }
  0x7e   : > { %8249 = shalt.err (!%p8246_p13)
}
  0x7f   : > { %s8250_s18 = scalar_lea.vmem %s465_s16, 8192  ;;  %p8258_p7 = scmp.lt.s32.totalorder %s465_s16, %s465_s16 }
  0x80   : > { %p8251_p0 = scmp.ne.s32.totalorder %s465_s16, %s8250_s18  ;;  %p8259_p9 = scmp.lt.s32.totalorder %s8250_s18, %s8250_s18 }
  0x82   : > { %p8253_p2 = pnand %p8251_p0, %p8593_p8  ;;  %p8260_p4 = por %p8259_p9, %p8258_p7 }
  0x84   : > { %p8254_p5 = pneg %p8253_p2 }
  0x86   : > { %p8261_p10 = pnand %p8260_p4, %p8254_p5 }
  0x88   : > { %8264 = shalt.err (!%p8261_p10)
}
  0x89   : > { %s8445_s30 = smov 256   ;;  %s8446_s11 = smov 16  }
  0x8a   : > { %7276 = dma.hbm_to_vmem [thread:$0]  (!%p8577_p6), %s11693_s8, 8192, %s465_s16, [#allocation11], %s8445_s30, %s8445_s30, %s8446_s11  }
  0x8b   : > { %s8447_s19 = smov [#allocation15]   ;;  %s11694_s14 = sld [smem:[#allocation128_spill]] }
  0x8c   : > { %s502_s20 = sshll.u32 %s8447_s19, 4  ;;  %s503_s20 = int_to_ptr.vmem [resolvable:$true] %s502_s20 }
  0x91   : > { %s8265_s15 = scalar_lea.hbm %s11694_s14, 6144 }
  0x92   : > { %p8266_p1 = scmp.ne.s32.totalorder %s11694_s14, %s8265_s15  ;;  %p8272_p12 = scmp.lt.u32.totalorder %s8265_s15, %s11694_s14 }
  0x94   : > { %p8268_p3 = pnand %p8266_p1, %p8593_p8 }
  0x96   : > { %p8269_p11 = pneg %p8268_p3 }
  0x98   : > { %p8274_p13 = pnand %p8272_p12, %p8269_p11 }
  0x9a   : > { %8277 = shalt.err (!%p8274_p13)
}
  0x9b   : > { %s8278_s16 = scalar_lea.vmem %s503_s20, 6144  ;;  %p8286_p7 = scmp.lt.s32.totalorder %s503_s20, %s503_s20 }
  0x9c   : > { %p8279_p0 = scmp.ne.s32.totalorder %s503_s20, %s8278_s16  ;;  %p8287_p9 = scmp.lt.s32.totalorder %s8278_s16, %s8278_s16 }
  0x9e   : > { %p8281_p2 = pnand %p8279_p0, %p8593_p8  ;;  %p8288_p4 = por %p8287_p9, %p8286_p7 }
  0xa0   : > { %p8282_p5 = pneg %p8281_p2 }
  0xa2   : > { %p8289_p10 = pnand %p8288_p4, %p8282_p5 }
  0xa4   : > { %8292 = shalt.err (!%p8289_p10)
}
  0xa5   : > { %s8448_s30 = smov 192   ;;  %s8449_s29 = smov 12  }
  0xa6   : > { %7282 = dma.hbm_to_vmem [thread:$0]  (!%p8577_p6), %s11694_s14, 6144, %s503_s20, [#allocation14], %s8448_s30, %s8448_s30, %s8449_s29  }
  0xa7   : > { %s6476_s11 = sadd.s32 4294967294, %s8435_s24   ;;  %s8700_s12 = sadd.s32 1, %s8435_s24  }
  0xa8   : > { %s44_s13 = sadd.s32 1, %s8431_s23  ;;  %s41_s19 = ssub.s32 %s8435_s24, %s8700_s12 }
  0xa9   : > { %p51_p8 = scmp.ne.s32.totalorder %s8431_s23, %s8427_s22  ;;  %p42_p1 = scmp.eq.s32.totalorder %s41_s19, 0 }
  0xaa   : > { %p52_p3 = scmp.eq.s32.totalorder %s8435_s24, 0  ;;  %p57_p11 = scmp.ne.s32.totalorder %s8427_s22, %s8423_s21 }
  0xab   : > { %p401_p12 = scmp.eq.s32.totalorder %s8561_s27, 1  ;;  %p11695_p0 = scmp.eq.s32.totalorder %s8561_s27, 0 }
  0xac   : > { %s8712_s0 = scalar_select %p42_p1, %s8431_s23, %s44_s13  }
  0xad   : > { %p53_p13 = por %p52_p3, %p51_p8  ;;  %p8716_p2 = por %p11695_p0, %p57_p11 }
  0xae   : > { %p8720_p6 = por %p401_p12, %p51_p8  ;;  %p407_p5 = scmp.eq.s32.totalorder %s6476_s11, 1 }
  0xaf   : > { %p7299_p7 = scmp.lt.s32.totalorder %s8435_s24, 2  ;;  %s8726_s17 = sand.u32 1, %s8431_s23  }
  0xb0   : > { %s11697_s25 = scalar_select %p8720_p6, 1, 0 }
  0xb1   : > { %p8728_p9 = por %p407_p5, %p57_p11  ;;  %s6484_s26 = sshll.u32 %s8435_s24, 4 }
  0xb2   : > { %s11699_s30 = sld [smem:[#allocation118_spill]]  ;;  %s522_s9 = scalar_lea.vmem [#allocation4], %s8726_s17 }
  0xb3   : > { %s11698_s15 = scalar_select %p8728_p9, 1, 0 }
  0xb4   : > { %s529_s7 = sshll.u32 %s522_s9, 4  ;;  %p8741_p4 = pnand %p7299_p7, %p53_p13  ;;  %s8739_s7 = int_to_ptr.vmem [resolvable:$true] %s529_s7 }
  0xb5   : > { %s6485_s13 = sshll.u32 %s8726_s17, 7  ;;  %s520_s2 = scalar_lea.sflag [#allocation5], %s8726_s17 }
  0xb6   : > { %p8295_p8 = pneg %p8741_p4 }
  0xb8   : > { %s8736_s29 = scalar_lea.hbm %s11699_s30, %s6484_s26  ;;  %s8298_s9 = scalar_lea.hbm %s11699_s30, 32 }
  0xb9   : > { %s8293_s18 = scalar_lea.hbm %s8736_s29, 16  ;;  %p8299_p11 = scmp.lt.u32.totalorder %s8736_s29, %s11699_s30 }
  0xba   : > { %p8294_p10 = scmp.ne.s32.totalorder %s8736_s29, %s8293_s18  ;;  %p8300_p12 = scmp.lt.u32.totalorder %s8298_s9, %s8293_s18 }
  0xbb   : > { %p8302_p0 = scmp.lt.u32.totalorder %s8293_s18, %s8736_s29 }
  0xbc   : > { %p8296_p1 = pnand %p8295_p8, %p8294_p10  ;;  %p8301_p13 = por %p8300_p12, %p8299_p11 }
  0xbe   : > { %p8297_p3 = pneg %p8296_p1  ;;  %p8303_p5 = por %p8302_p0, %p8301_p13 }
  0xc0   : > { %p8304_p7 = pnand %p8303_p5, %p8297_p3 }
  0xc2   : > { %8307 = shalt.err (!%p8304_p7)
}
  0xc3   : > { %s8308_s19 = scalar_lea.vmem %s8739_s7, 16  ;;  %s8450_s26 = smov [#allocation4]  }
  0xc4   : > { %p8309_p10 = scmp.ne.s32.totalorder %s8739_s7, %s8308_s19  ;;  %s8313_s16 = sshll.u32 %s8450_s26, 4  ;;  %s8314_s16 = int_to_ptr.vmem [resolvable:$false] %s8313_s16 }
  0xc5   : > { %s8315_s4 = scalar_lea.vmem %s8314_s16, 32  ;;  %p8316_p6 = scmp.lt.s32.totalorder %s8739_s7, %s8314_s16 }
  0xc6   : > { %p8311_p1 = pnand %p8309_p10, %p8295_p8  ;;  %p8317_p11 = scmp.lt.s32.totalorder %s8315_s4, %s8308_s19 }
  0xc8   : > { %p8312_p9 = pneg %p8311_p1  ;;  %p8318_p12 = por %p8317_p11, %p8316_p6 }
  0xca   : > { %p8319_p13 = pnand %p8318_p12, %p8312_p9 }
  0xcc   : > { %8322 = shalt.err (!%p8319_p13)
}
  0xcd   : > { %7286 = dma.hbm_to_vmem [thread:$0]  (!%p8741_p4), %s8736_s29, 16, %s8739_s7, %s520_s2  }
  0xce   : > { %s540_s8 = scalar_lea.vmem [#allocation7], %s6485_s13  ;;  %s6854_s9 = sshll.u32 %s8435_s24, 11 }
  0xcf   : > { %s548_s18 = sshll.u32 %s540_s8, 4  ;;  %s8781_s16 = scalar_lea.hbm %s11576_s1, %s6854_s9  ;;  %s8775_s18 = int_to_ptr.vmem [resolvable:$true] %s548_s18 }
  0xd0   : > { %s11701_s4 = sand.u32 1, %s8435_s24   ;;  %s8323_s14 = scalar_lea.hbm %s8781_s16, 2048 }
  0xd1   : > { %s8785_s10 = scalar_lea.sflag [#allocation8], %s11701_s4  ;;  %p8324_p6 = scmp.ne.s32.totalorder %s8781_s16, %s8323_s14 }
  0xd2   : > { %s8328_s29 = scalar_lea.hbm %s11576_s1, 4096  ;;  %p8329_p0 = scmp.lt.u32.totalorder %s8781_s16, %s11576_s1 }
  0xd3   : > { %p8326_p9 = pnand %p8324_p6, %p8295_p8  ;;  %p8330_p5 = scmp.lt.u32.totalorder %s8328_s29, %s8323_s14 }
  0xd4   : > { %p8332_p10 = scmp.lt.u32.totalorder %s8323_s14, %s8781_s16 }
  0xd5   : > { %p8327_p3 = pneg %p8326_p9  ;;  %p8331_p7 = por %p8330_p5, %p8329_p0 }
  0xd7   : > { %p8333_p1 = por %p8332_p10, %p8331_p7 }
  0xd9   : > { %p8334_p11 = pnand %p8333_p1, %p8327_p3 }
  0xdb   : > { %8337 = shalt.err (!%p8334_p11)
}
  0xdc   : > { %s8338_s8 = scalar_lea.vmem %s8775_s18, 2048  ;;  %s8451_s9 = smov [#allocation7]  }
  0xdd   : > { %p8339_p12 = scmp.ne.s32.totalorder %s8775_s18, %s8338_s8  ;;  %s8343_s26 = sshll.u32 %s8451_s9, 4  ;;  %s8344_s26 = int_to_ptr.vmem [resolvable:$false] %s8343_s26 }
  0xde   : > { %s8345_s19 = scalar_lea.vmem %s8344_s26, 4096  ;;  %p8346_p9 = scmp.lt.s32.totalorder %s8775_s18, %s8344_s26 }
  0xdf   : > { %p8341_p13 = pnand %p8339_p12, %p8295_p8  ;;  %p8347_p0 = scmp.lt.s32.totalorder %s8345_s19, %s8338_s8 }
  0xe1   : > { %p8342_p6 = pneg %p8341_p13  ;;  %p8348_p5 = por %p8347_p0, %p8346_p9 }
  0xe3   : > { %p8349_p7 = pnand %p8348_p5, %p8342_p6 }
  0xe5   : > { %8352 = shalt.err (!%p8349_p7)
}
  0xe6   : > { %s11702_s14 = smov 8   ;;  %s11703_s4 = smov 128  }
  0xe7   : > { %7289 = dma.hbm_to_vmem [thread:$0]  (!%p8741_p4), %s8781_s16, 2048, %s8775_s18, %s8785_s10, %s11703_s4, %s11703_s4, %s11702_s14  }
  0xe8   : > { %p11704_p8 = scmp.ne.s32.totalorder %s11687_s28, 0 }
  0xea   : > { %560 = sbr.rel (%p11704_p8) target bundleno = 3242 (0xcaa), region = 84 }
  0xf1   : > { %s8817_s2 = sand.u32 1, %s8427_s22  }
  0xf2   : > { %s563_s17 = scalar_lea.sflag [#allocation5], %s8817_s2  ;;  %s565_s29 = scalar_lea.vmem [#allocation4], %s8817_s2 }
  0xf3   : > { %8398 = dma.done.wait (%p8716_p2), %s563_s17, 16  }
  0xf4   : > { %8400 = vsyncadd (%p8716_p2), %s563_s17, 4294967280  ;;  %s570_s10 = sand.u32 1, %s8561_s27   ;;  %s6490_s11 = sshll.u32 %s8817_s2, 7 }
  0xf5   : > { %s571_s28 = scalar_lea.sflag [#allocation8], %s570_s10  ;;  %s8827_s18 = scalar_lea.vmem [#allocation7], %s6490_s11 }
  0xf6   : > { %8402 = dma.done.wait (%p8716_p2), %s571_s28, 2048  }
  0xf7   : > { %8404 = vsyncadd (%p8716_p2), %s571_s28, 4294965248  ;;  %p11705_p4 = scmp.eq.s32.totalorder %s8561_s27, 0 }
  0xf9   : > { %8406 = dma.done.wait (%p11705_p4), [#allocation8], 12288   ;;  %p11706_p3 = pmov %p11705_p4 }
  0xfb   : > { %8408 = vsyncadd (%p11706_p3), [#allocation8], 4294955008  ;;  %p11707_p10 = pmov %p11706_p3 }
  0xfc   : > { %p11708_p1 = pmov %p11706_p3 }
  0xfd   : > { %8410 = dma.done.wait (%p11707_p10), [#allocation11], 12288  }
  0xfe   : > { %8412 = vsyncadd (%p11708_p1), [#allocation11], 4294955008  ;;  %p11709_p11 = pmov %p11708_p1 }
  0xff   : > { %p11710_p12 = pmov %p11708_p1 }
 0x100   : > { %8414 = dma.done.wait (%p11709_p11), [#allocation14], 14336  }
 0x101   : > { %8416 = vsyncadd (%p11710_p12), [#allocation14], 4294952960  ;;  %v7353_v0 = vld [vmem:[#allocation9 + $0xc] ss:$24 sps:$4 sm:$0xff]   ;;  %v7355_v1 = vld [vmem:[#allocation9 + $0x8] ss:$24 sps:$4 sm:$0xff]  }
 0x102   : > { %1467 = vmatprep.subr.bf16.mxu1 %v7353_v0  ;;  %v7356_v2 = vld [vmem:[#allocation9 + $0x3c] ss:$24 sps:$4 sm:$0xff]   ;;  %v7358_v3 = vld [vmem:[#allocation9 + $0x38] ss:$24 sps:$4 sm:$0xff]   ;;  %v7359_v4 = vld [vmem:[#allocation9 + $0x6c] ss:$24 sps:$4 sm:$0xff]  }
 0x103   : > { %1468 = vmatpush1.bf16.msra.mxu1 %v7355_v1  ;;  %v7361_v5 = vld [vmem:[#allocation9 + $0x68] ss:$24 sps:$4 sm:$0xff]   ;;  %v7362_v6 = vld [vmem:[#allocation9 + $0x9c] ss:$24 sps:$4 sm:$0xff]   ;;  %v7364_v7 = vld [vmem:[#allocation9 + $0x98] ss:$24 sps:$4 sm:$0xff]  }
 0x104   : > { %1469 = vmatprep.subr.bf16.mxu1 %v7356_v2  ;;  %v7377_v8 = vld [vmem:[#allocation9 + $0x4] ss:$24 sps:$4 sm:$0xff]   ;;  %v7379_v9 = vld [vmem:[#allocation9] ss:$24 sps:$4 sm:$0xff]   ;;  %v7383_v11 = vld [vmem:[#allocation9 + $0x34] ss:$24 sps:$4 sm:$0xff]  }
 0x105   : > { %v7365_v10 = vld [vmem:[#allocation9 + $0xcc] ss:$24 sps:$4 sm:$0xff]   ;;  %1354 = vmatprep.subr.bf16.mxu0 %v7377_v8  ;;  %v7385_v12 = vld [vmem:[#allocation9 + $0x30] ss:$24 sps:$4 sm:$0xff]   ;;  %v7368_v14 = vld [vmem:[#allocation9 + $0xfc] ss:$24 sps:$4 sm:$0xff]  }
 0x106   : > { %1355 = vmatpush1.bf16.msra.mxu0 %v7379_v9  ;;  %v7367_v13 = vld [vmem:[#allocation9 + $0xc8] ss:$24 sps:$4 sm:$0xff]   ;;  %v7389_v15 = vld [vmem:[#allocation9 + $0x64] ss:$24 sps:$4 sm:$0xff]   ;;  %v7370_v17 = vld [vmem:[#allocation9 + $0xf8] ss:$24 sps:$4 sm:$0xff]  }
 0x107   : > { %1470 = vmatpush1.bf16.msra.mxu1 %v7358_v3  ;;  %1356 = vmatprep.subr.bf16.mxu0 %v7383_v11  ;;  %v7391_v16 = vld [vmem:[#allocation9 + $0x60] ss:$24 sps:$4 sm:$0xff]   ;;  %v7395_v18 = vld [vmem:[#allocation9 + $0x94] ss:$24 sps:$4 sm:$0xff]   ;;  %v7397_v20 = vld [vmem:[#allocation9 + $0x90] ss:$24 sps:$4 sm:$0xff]  }
 0x108   : > { %1471 = vmatprep.subr.bf16.mxu1 %v7359_v4  ;;  %v7371_v19 = vld [vmem:[#allocation9 + $0x12c] ss:$24 sps:$4 sm:$0xff]   ;;  %v7373_v21 = vld [vmem:[#allocation9 + $0x128] ss:$24 sps:$4 sm:$0xff]   ;;  %v7374_v23 = vld [vmem:[#allocation9 + $0x15c] ss:$24 sps:$4 sm:$0xff]  }
 0x109   : > { %v7401_v22 = vld [vmem:[#allocation9 + $0xc4] ss:$24 sps:$4 sm:$0xff]   ;;  %v7403_v24 = vld [vmem:[#allocation9 + $0xc0] ss:$24 sps:$4 sm:$0xff]   ;;  %v7407_v26 = vld [vmem:[#allocation9 + $0xf4] ss:$24 sps:$4 sm:$0xff]  }
 0x10a   : > { %1357 = vmatpush1.bf16.msra.mxu0 %v7385_v12  ;;  %v7376_v25 = vld [vmem:[#allocation9 + $0x158] ss:$24 sps:$4 sm:$0xff]   ;;  %v7380_v27 = vld [vmem:[#allocation9 + $0x18c] ss:$24 sps:$4 sm:$0xff]   ;;  %v7382_v29 = vld [vmem:[#allocation9 + $0x188] ss:$24 sps:$4 sm:$0xff]  }
 0x10b   : > { %1472 = vmatpush1.bf16.msra.mxu1 %v7361_v5  ;;  %1358 = vmatprep.subr.bf16.mxu0 %v7389_v15  ;;  %v7409_v28 = vld [vmem:[#allocation9 + $0xf0] ss:$24 sps:$4 sm:$0xff]   ;;  %v7413_v30 = vld [vmem:[#allocation9 + $0x124] ss:$24 sps:$4 sm:$0xff]   ;;  %v7415_v35 = vld [vmem:[#allocation9 + $0x120] ss:$24 sps:$4 sm:$0xff]  }
 0x10c   : > { %1473 = vmatprep.subr.bf16.mxu1 %v7362_v6  ;;  %v7386_v31 = vld [vmem:[#allocation9 + $0x1bc] ss:$24 sps:$4 sm:$0xff]   ;;  %v7388_v32 = vld [vmem:[#allocation9 + $0x1b8] ss:$24 sps:$4 sm:$0xff]   ;;  %v650_v33 = vld [vmem:[%s8827_s18] sm:$0xff]  ;;  %s11714_s14 = sld [smem:[#allocation121_spill]] }
 0x10d   : > { %v651_v34 = vld [vmem:[%s8827_s18 + $0x8] sm:$0xff]  ;;  %v7425_v41 = vld [vmem:[#allocation9 + $0x184] ss:$24 sps:$4 sm:$0xff]   ;;  %v7427_v43 = vld [vmem:[#allocation9 + $0x180] ss:$24 sps:$4 sm:$0xff]   ;;  %s11874_s28 = sld [smem:[#allocation125_spill]] }
 0x10e   : > { %1359 = vmatpush1.bf16.msra.mxu0 %v7391_v16  ;;  %v8847_v36 = vcombine.high %v650_v33, %v651_v34  ;;  %v7419_v37 = vld [vmem:[#allocation9 + $0x154] ss:$24 sps:$4 sm:$0xff]   ;;  %v7421_v39 = vld [vmem:[#allocation9 + $0x150] ss:$24 sps:$4 sm:$0xff]   ;;  %v7433_v49 = vld [vmem:[#allocation9 + $0x1e4] ss:$24 sps:$4 sm:$0xff]   ;;  %v8853_v0 = vcombine.low %v650_v33, %v651_v34 }
 0x10f   : > { %1474 = vmatpush1.bf16.msra.mxu1 %v7364_v7  ;;  %1360 = vmatprep.subr.bf16.mxu0 %v7395_v18  ;;  %v7392_v38 = vld [vmem:[#allocation9 + $0x1ec] ss:$24 sps:$4 sm:$0xff]   ;;  %v7394_v40 = vld [vmem:[#allocation9 + $0x1e8] ss:$24 sps:$4 sm:$0xff]   ;;  %v7398_v42 = vld [vmem:[#allocation9 + $0x21c] ss:$24 sps:$4 sm:$0xff]  }
 0x110   : > { %1475 = vmatprep.subr.bf16.mxu1 %v7365_v10  ;;  %1499 = vmatprep.mubr.bf16.mxu1 %v8847_v36  ;;  %v7400_v44 = vld [vmem:[#allocation9 + $0x218] ss:$24 sps:$4 sm:$0xff]   ;;  %v7430_v45 = vld [vmem:[#allocation9 + $0x1b4] ss:$24 sps:$4 sm:$0xff]   ;;  %v7406_v48 = vld [vmem:[#allocation9 + $0x248] ss:$24 sps:$4 sm:$0xff]  }
 0x111   : > { %1386 = vmatprep.mubr.bf16.mxu0 %v8847_v36  ;;  %v7404_v46 = vld [vmem:[#allocation9 + $0x24c] ss:$24 sps:$4 sm:$0xff]   ;;  %v7432_v47 = vld [vmem:[#allocation9 + $0x1b0] ss:$24 sps:$4 sm:$0xff]   ;;  %v7410_v50 = vld [vmem:[#allocation9 + $0x27c] ss:$24 sps:$4 sm:$0xff]  }
 0x112   : > { %1361 = vmatpush1.bf16.msra.mxu0 %v7397_v20  ;;  %v7435_v51 = vld [vmem:[#allocation9 + $0x1e0] ss:$24 sps:$4 sm:$0xff]   ;;  %v7438_v53 = vld [vmem:[#allocation9 + $0x214] ss:$24 sps:$4 sm:$0xff]   ;;  %v7440_v55 = vld [vmem:[#allocation9 + $0x210] ss:$24 sps:$4 sm:$0xff]  }
 0x113   : > { %1476 = vmatpush1.bf16.msra.mxu1 %v7367_v13  ;;  %1362 = vmatprep.subr.bf16.mxu0 %v7401_v22  ;;  %v7412_v52 = vld [vmem:[#allocation9 + $0x278] ss:$24 sps:$4 sm:$0xff]   ;;  %v7416_v54 = vld [vmem:[#allocation9 + $0x2ac] ss:$24 sps:$4 sm:$0xff]   ;;  %v7418_v56 = vld [vmem:[#allocation9 + $0x2a8] ss:$24 sps:$4 sm:$0xff]  }
 0x114   : > { %1477 = vmatprep.subr.bf16.mxu1 %v7368_v14  ;;  %v7441_v57 = vld [vmem:[#allocation9 + $0x244] ss:$24 sps:$4 sm:$0xff]   ;;  %v7424_v59 = vld [vmem:[#allocation9 + $0x2d8] ss:$24 sps:$4 sm:$0xff]   ;;  %v7446_v62 = vld [vmem:[#allocation9 + $0x274] ss:$24 sps:$4 sm:$0xff]  }
 0x115   : > { %v7422_v58 = vld [vmem:[#allocation9 + $0x2dc] ss:$24 sps:$4 sm:$0xff]   ;;  %v7443_v60 = vld [vmem:[#allocation9 + $0x240] ss:$24 sps:$4 sm:$0xff]   ;;  %v7448_v1 = vld [vmem:[#allocation9 + $0x270] ss:$24 sps:$4 sm:$0xff]  }
 0x116   : > { %1363 = vmatpush1.bf16.msra.mxu0 %v7403_v24  ;;  %v652_v61 = vld [vmem:[%s8827_s18 + $0x10] sm:$0xff]  ;;  %v653_v63 = vld [vmem:[%s8827_s18 + $0x18] sm:$0xff]  ;;  %v654_v5 = vld [vmem:[%s8827_s18 + $0x20] sm:$0xff]  ;;  %s11909_s16 = sld [smem:[#allocation126_spill]]  ;;  %s11910_s8 = sld [smem:[#allocation127_spill]] }
 0x117   : > { %1478 = vmatpush1.bf16.msra.mxu1 %v7370_v17  ;;  %1364 = vmatprep.subr.bf16.mxu0 %v7407_v26  ;;  %v8855_v2 = vcombine.high %v652_v61, %v653_v63  ;;  %v7449_v3 = vld [vmem:[#allocation9 + $0x2a4] ss:$24 sps:$4 sm:$0xff]   ;;  %v7451_v4 = vld [vmem:[#allocation9 + $0x2a0] ss:$24 sps:$4 sm:$0xff]   ;;  %v7454_v6 = vld [vmem:[#allocation9 + $0x2d4] ss:$24 sps:$4 sm:$0xff]   ;;  %v8861_v10 = vcombine.low %v652_v61, %v653_v63 }
 0x118   : > { %1479 = vmatprep.subr.bf16.mxu1 %v7371_v19  ;;  %v655_v7 = vld [vmem:[%s8827_s18 + $0x28] sm:$0xff]  ;;  %v7470_v13 = vld [vmem:[#allocation9 + $0x44] ss:$24 sps:$4 sm:$0xff]   ;;  %v656_v14 = vld [vmem:[%s8827_s18 + $0x30] sm:$0xff]  ;;  %s11911_s19 = sld [smem:[#allocation129_spill]]  ;;  %s7240_s17 = smul.u32 3072, %s8561_s27 }
 0x119   : > { %v7456_v8 = vld [vmem:[#allocation9 + $0x2d0] ss:$24 sps:$4 sm:$0xff]   ;;  %v7467_v9 = vld [vmem:[#allocation9 + $0x14] ss:$24 sps:$4 sm:$0xff]   ;;  %v8863_v11 = vcombine.high %v654_v5, %v655_v7  ;;  %v657_v15 = vld [vmem:[%s8827_s18 + $0x38] sm:$0xff]  ;;  %v8870_v18 = vcombine.low %v654_v5, %v655_v7  ;;  %s6322_s27 = scalar_lea.sflag [#allocation6], %s8817_s2 }
 0x11a   : > { %1365 = vmatpush1.bf16.msra.mxu0 %v7409_v28  ;;  %v7465_v12 = vld [vmem:[#allocation9 + $0x10] ss:$24 sps:$4 sm:$0xff]   ;;  %v7468_v16 = vld [vmem:[#allocation9 + $0x40] ss:$24 sps:$4 sm:$0xff]   ;;  %v7473_v17 = vld [vmem:[#allocation9 + $0x74] ss:$24 sps:$4 sm:$0xff]   ;;  %v8873_v19 = vcombine.high %v656_v14, %v657_v15  ;;  %v8880_v26 = vcombine.low %v656_v14, %v657_v15 }
 0x11b   : > { %1480 = vmatpush1.bf16.msra.mxu1 %v7373_v21  ;;  %1366 = vmatprep.subr.bf16.mxu0 %v7413_v30  ;;  %v7471_v20 = vld [vmem:[#allocation9 + $0x70] ss:$24 sps:$4 sm:$0xff]   ;;  %v7476_v21 = vld [vmem:[#allocation9 + $0xa4] ss:$24 sps:$4 sm:$0xff]   ;;  %v7474_v24 = vld [vmem:[#allocation9 + $0xa0] ss:$24 sps:$4 sm:$0xff]  }
 0x11c   : > { %1481 = vmatprep.subr.bf16.mxu1 %v7374_v23  ;;  %v658_v22 = vld [vmem:[%s8827_s18 + $0x40] sm:$0xff]  ;;  %v659_v23 = vld [vmem:[%s8827_s18 + $0x48] sm:$0xff]  ;;  %v660_v30 = vld [vmem:[%s8827_s18 + $0x50] sm:$0xff]  ;;  %p11914_p13 = scmp.ne.s32.totalorder %s11697_s25, 0 }
 0x11d   : > { %v7477_v28 = vld [vmem:[#allocation9 + $0xd0] ss:$24 sps:$4 sm:$0xff]   ;;  %v7485_v33 = vld [vmem:[#allocation9 + $0x134] ss:$24 sps:$4 sm:$0xff]   ;;  %v8890_v34 = vcombine.low %v658_v22, %v659_v23  ;;  %v7512_v63 = vld [vmem:[#allocation9 + $0x2e4] ss:$24 sps:$4 sm:$0xff]  }
 0x11e   : > { %1367 = vmatpush1.bf16.msra.mxu0 %v7415_v35  ;;  %v7509_v61 = vld [vmem:[#allocation9 + $0x2b4] ss:$24 sps:$4 sm:$0xff]  }
 0x11f   : > { %1482 = vmatpush1.bf16.msra.mxu1 %v7376_v25  ;;  %1368 = vmatprep.subr.bf16.mxu0 %v7419_v37  ;;  %v7479_v25 = vld [vmem:[#allocation9 + $0xd4] ss:$24 sps:$4 sm:$0xff]   ;;  %v7483_v37 = vld [vmem:[#allocation9 + $0x130] ss:$24 sps:$4 sm:$0xff]  }
 0x120   : > { %1483 = vmatprep.subr.bf16.mxu1 %v7380_v27  ;;  %v8883_v27 = vcombine.high %v658_v22, %v659_v23 }
 0x122   : > { %1369 = vmatpush1.bf16.msra.mxu0 %v7421_v39  ;;  %v662_v39 = vld [vmem:[%s8827_s18 + $0x60] sm:$0xff] }
 0x123   : > { %1484 = vmatpush1.bf16.msra.mxu1 %v7382_v29  ;;  %1370 = vmatprep.subr.bf16.mxu0 %v7425_v41  ;;  %v7482_v29 = vld [vmem:[#allocation9 + $0x104] ss:$24 sps:$4 sm:$0xff]   ;;  %v7486_v41 = vld [vmem:[#allocation9 + $0x160] ss:$24 sps:$4 sm:$0xff]  }
 0x124   : > { %1485 = vmatprep.subr.bf16.mxu1 %v7386_v31  ;;  %v661_v31 = vld [vmem:[%s8827_s18 + $0x58] sm:$0xff] }
 0x125   : > { %v8893_v35 = vcombine.high %v660_v30, %v661_v31 }
 0x126   : > { %1371 = vmatpush1.bf16.msra.mxu0 %v7427_v43  ;;  %v8900_v43 = vcombine.low %v660_v30, %v661_v31 }
 0x127   : > { %1486 = vmatpush1.bf16.msra.mxu1 %v7388_v32  ;;  %1372 = vmatprep.subr.bf16.mxu0 %v7430_v45  ;;  %v7480_v32 = vld [vmem:[#allocation9 + $0x100] ss:$24 sps:$4 sm:$0xff]   ;;  %v7489_v45 = vld [vmem:[#allocation9 + $0x190] ss:$24 sps:$4 sm:$0xff]  }
 0x128   : > { %1487 = vmatprep.subr.bf16.mxu1 %v7392_v38  ;;  %v7488_v38 = vld [vmem:[#allocation9 + $0x164] ss:$24 sps:$4 sm:$0xff]  }
 0x12a   : > { %1373 = vmatpush1.bf16.msra.mxu0 %v7432_v47  ;;  %v664_v47 = vld [vmem:[%s8827_s18 + $0x70] sm:$0xff] }
 0x12b   : > { %1488 = vmatpush1.bf16.msra.mxu1 %v7394_v40  ;;  %1374 = vmatprep.subr.bf16.mxu0 %v7433_v49  ;;  %v663_v40 = vld [vmem:[%s8827_s18 + $0x68] sm:$0xff]  ;;  %v7492_v49 = vld [vmem:[#allocation9 + $0x1c0] ss:$24 sps:$4 sm:$0xff]  }
 0x12c   : > { %1489 = vmatprep.subr.bf16.mxu1 %v7398_v42  ;;  %v7491_v42 = vld [vmem:[#allocation9 + $0x194] ss:$24 sps:$4 sm:$0xff]  }
 0x12e   : > { %1375 = vmatpush1.bf16.msra.mxu0 %v7435_v51  ;;  %v6508_v51 = vcombine.low %v662_v39, %v663_v40 }
 0x12f   : > { %1490 = vmatpush1.bf16.msra.mxu1 %v7400_v44  ;;  %1376 = vmatprep.subr.bf16.mxu0 %v7438_v53  ;;  %v6509_v44 = vcombine.high %v662_v39, %v663_v40  ;;  %v7495_v53 = vld [vmem:[#allocation9 + $0x1f0] ss:$24 sps:$4 sm:$0xff]  }
 0x130   : > { %1491 = vmatprep.subr.bf16.mxu1 %v7404_v46  ;;  %v7494_v46 = vld [vmem:[#allocation9 + $0x1c4] ss:$24 sps:$4 sm:$0xff]  }
 0x132   : > { %1377 = vmatpush1.bf16.msra.mxu0 %v7440_v55  ;;  %v7498_v55 = vld [vmem:[#allocation9 + $0x220] ss:$24 sps:$4 sm:$0xff]  }
 0x133   : > { %1492 = vmatpush1.bf16.msra.mxu1 %v7406_v48  ;;  %1378 = vmatprep.subr.bf16.mxu0 %v7441_v57  ;;  %v665_v48 = vld [vmem:[%s8827_s18 + $0x78] sm:$0xff] }
 0x134   : > { %1493 = vmatprep.subr.bf16.mxu1 %v7410_v50  ;;  %v7497_v50 = vld [vmem:[#allocation9 + $0x1f4] ss:$24 sps:$4 sm:$0xff]   ;;  %v6510_v57 = vcombine.low %v664_v47, %v665_v48 }
 0x136   : > { %1379 = vmatpush1.bf16.msra.mxu0 %v7443_v60  ;;  %v7504_v60 = vld [vmem:[#allocation9 + $0x280] ss:$24 sps:$4 sm:$0xff]  }
 0x137   : > { %1494 = vmatpush1.bf16.msra.mxu1 %v7412_v52  ;;  %1380 = vmatprep.subr.bf16.mxu0 %v7446_v62  ;;  %v6511_v52 = vcombine.high %v664_v47, %v665_v48  ;;  %v7507_v62 = vld [vmem:[#allocation9 + $0x2b0] ss:$24 sps:$4 sm:$0xff]  }
 0x138   : > { %1495 = vmatprep.subr.bf16.mxu1 %v7416_v54  ;;  %v7500_v54 = vld [vmem:[#allocation9 + $0x224] ss:$24 sps:$4 sm:$0xff]  }
 0x13a   : > { %1381 = vmatpush1.bf16.msra.mxu0 %v7448_v1  ;;  %v7510_v1 = vld [vmem:[#allocation9 + $0x2e0] ss:$24 sps:$4 sm:$0xff]  }
 0x13b   : > { %1496 = vmatpush1.bf16.msra.mxu1 %v7418_v56  ;;  %1382 = vmatprep.subr.bf16.mxu0 %v7449_v3  ;;  %v7503_v56 = vld [vmem:[#allocation9 + $0x254] ss:$24 sps:$4 sm:$0xff]   ;;  %v8929_v3 = vld [vmem:[%s11578_s3] sm:$0x3f] }
 0x13c   : > { %1497 = vmatprep.subr.bf16.mxu1 %v7422_v58  ;;  %v7501_v58 = vld [vmem:[#allocation9 + $0x250] ss:$24 sps:$4 sm:$0xff]  }
 0x13e   : > { %1383 = vmatpush1.bf16.msra.mxu0 %v7451_v4 }
 0x13f   : > { %1498 = vmatpush1.bf16.msra.mxu1 %v7424_v59  ;;  %1384 = vmatprep.subr.bf16.mxu0 %v7454_v6  ;;  %v7506_v59 = vld [vmem:[#allocation9 + $0x284] ss:$24 sps:$4 sm:$0xff]  }
 0x142   : > { %1500 = vmatmul.mubr.bf16.vlgmr.msra.gmra.mrb[0].mxu1 %v8853_v0  ;;  %1385 = vmatpush1.bf16.msra.mxu0 %v7456_v8 }
 0x143   : > { %1509 = vmatprep.mubr.bf16.mxu1 %v8855_v2  ;;  %1580 = vmatprep.subr.bf16.mxu0 %v7467_v9 }
 0x145   : > { %1387 = vmatmul.mubr.bf16.vlgmr.msra.gmra.mrb[0].mxu0 %v8853_v0 }
 0x146   : > { %1396 = vmatprep.mubr.bf16.mxu0 %v8855_v2  ;;  %1581 = vmatpush1.bf16.msra.mxu0 %v7465_v12 }
 0x147   : > { %1582 = vmatprep.subr.bf16.mxu0 %v7470_v13 }
 0x14a   : > { %1510 = vmatmul.mubr.bf16.gmra.mrb[4].mxu1 %v8861_v10  ;;  %1583 = vmatpush1.bf16.msra.mxu0 %v7468_v16 }
 0x14b   : > { %1519 = vmatprep.mubr.bf16.mxu1 %v8863_v11  ;;  %1584 = vmatprep.subr.bf16.mxu0 %v7473_v17 }
 0x14d   : > { %1397 = vmatmul.mubr.bf16.gmra.mrb[4].mxu0 %v8861_v10 }
 0x14e   : > { %1406 = vmatprep.mubr.bf16.mxu0 %v8863_v11  ;;  %1585 = vmatpush1.bf16.msra.mxu0 %v7471_v20 }
 0x14f   : > { %1586 = vmatprep.subr.bf16.mxu0 %v7476_v21 }
 0x152   : > { %1520 = vmatmul.mubr.bf16.gmra.mrb[8].mxu1 %v8870_v18  ;;  %1587 = vmatpush1.bf16.msra.mxu0 %v7474_v24 }
 0x153   : > { %1529 = vmatprep.mubr.bf16.mxu1 %v8873_v19  ;;  %1588 = vmatprep.subr.bf16.mxu0 %v7479_v25 }
 0x155   : > { %1407 = vmatmul.mubr.bf16.gmra.mrb[8].mxu0 %v8870_v18 }
 0x156   : > { %1416 = vmatprep.mubr.bf16.mxu0 %v8873_v19  ;;  %1589 = vmatpush1.bf16.msra.mxu0 %v7477_v28 }
 0x157   : > { %1590 = vmatprep.subr.bf16.mxu0 %v7482_v29 }
 0x15a   : > { %1530 = vmatmul.mubr.bf16.gmra.mrb[12].mxu1 %v8880_v26  ;;  %1591 = vmatpush1.bf16.msra.mxu0 %v7480_v32 }
 0x15b   : > { %1539 = vmatprep.mubr.bf16.mxu1 %v8883_v27  ;;  %1592 = vmatprep.subr.bf16.mxu0 %v7485_v33 }
 0x15d   : > { %1417 = vmatmul.mubr.bf16.gmra.mrb[12].mxu0 %v8880_v26 }
 0x15e   : > { %1426 = vmatprep.mubr.bf16.mxu0 %v8883_v27  ;;  %1593 = vmatpush1.bf16.msra.mxu0 %v7483_v37 }
 0x15f   : > { %1594 = vmatprep.subr.bf16.mxu0 %v7488_v38 }
 0x162   : > { %1540 = vmatmul.mubr.bf16.gmra.mrb[16].mxu1 %v8890_v34  ;;  %1595 = vmatpush1.bf16.msra.mxu0 %v7486_v41 }
 0x163   : > { %1549 = vmatprep.mubr.bf16.mxu1 %v8893_v35  ;;  %1596 = vmatprep.subr.bf16.mxu0 %v7491_v42 }
 0x165   : > { %1427 = vmatmul.mubr.bf16.gmra.mrb[16].mxu0 %v8890_v34 }
 0x166   : > { %1436 = vmatprep.mubr.bf16.mxu0 %v8893_v35  ;;  %1597 = vmatpush1.bf16.msra.mxu0 %v7489_v45 }
 0x167   : > { %1598 = vmatprep.subr.bf16.mxu0 %v7494_v46 }
 0x16a   : > { %1550 = vmatmul.mubr.bf16.gmra.mrb[20].mxu1 %v8900_v43  ;;  %1599 = vmatpush1.bf16.msra.mxu0 %v7492_v49 }
 0x16b   : > { %1559 = vmatprep.mubr.bf16.mxu1 %v6509_v44  ;;  %1600 = vmatprep.subr.bf16.mxu0 %v7497_v50 }
 0x16d   : > { %1437 = vmatmul.mubr.bf16.gmra.mrb[20].mxu0 %v8900_v43 }
 0x16e   : > { %1446 = vmatprep.mubr.bf16.mxu0 %v6509_v44  ;;  %1601 = vmatpush1.bf16.msra.mxu0 %v7495_v53 }
 0x16f   : > { %1602 = vmatprep.subr.bf16.mxu0 %v7500_v54 }
 0x172   : > { %1560 = vmatmul.mubr.bf16.gmra.mrb[24].mxu1 %v6508_v51  ;;  %1603 = vmatpush1.bf16.msra.mxu0 %v7498_v55 }
 0x173   : > { %1569 = vmatprep.mubr.bf16.mxu1 %v6511_v52  ;;  %1604 = vmatprep.subr.bf16.mxu0 %v7503_v56 }
 0x175   : > { %1447 = vmatmul.mubr.bf16.gmra.mrb[24].mxu0 %v6508_v51 }
 0x176   : > { %1456 = vmatprep.mubr.bf16.mxu0 %v6511_v52  ;;  %1605 = vmatpush1.bf16.msra.mxu0 %v7501_v58 }
 0x177   : > { %1606 = vmatprep.subr.bf16.mxu0 %v7506_v59 }
 0x17a   : > { %1570 = vmatmul.mubr.bf16.gmra.mrb[28].mxu1 %v6510_v57  ;;  %1607 = vmatpush1.bf16.msra.mxu0 %v7504_v60 }
 0x17b   : > { %1608 = vmatprep.subr.bf16.mxu0 %v7509_v61 }
 0x17d   : > { %1457 = vmatmul.mubr.bf16.gmra.mrb[28].mxu0 %v6510_v57 }
 0x17e   : > { %1609 = vmatpush1.bf16.msra.mxu0 %v7507_v62  ;;  %1612 = vmatprep.mubr.bf16.mxu0 %v8847_v36  ;;  %v764_v36 = vlaneseq }
 0x17f   : > { %1610 = vmatprep.subr.bf16.mxu0 %v7512_v63 }
 0x182   : > { %1611 = vmatpush1.bf16.msra.mxu0 %v7510_v1 }
 0x185   : > { %1613 = vmatmul.mubr.bf16.vlgmr.msra.gmra.mrb[32].mxu0 %v8853_v0  ;;  %v8921_v0 = vshrl.u32 %v764_v36, 7 }
 0x186   : > { %1622 = vmatprep.mubr.bf16.mxu0 %v8855_v2 }
 0x187   : > { %v8924_v2 = vsub.s32 2, %v8921_v0  ;;  %v778_v4 = vsub.s32 3, %v8921_v0  ;;  %v8945_v14 = vsub.s32 0, %v8921_v0  ;;  %v8949_v17 = vsub.s32 1, %v8921_v0 }
 0x189   : > { %11711 = vst [vmem:[#allocation23_spill] sm:$0xff] %v8924_v2  ;;  %v8934_v5 = vrot.slane %v8929_v3, %v8924_v2  ;;  %v8939_v7 = vrot.slane %v8929_v3, %v778_v4  ;;  %11712 = vst [vmem:[#allocation24_spill] sm:$0xff] %v8945_v14  ;;  %v8953_v20 = vrot.slane %v8929_v3, %v8945_v14 }
 0x18a   : > { %11713 = vst [vmem:[#allocation25_spill] sm:$0xff] %v8949_v17  ;;  %v8957_v22 = vrot.slane %v8929_v3, %v8949_v17 }
 0x18d   : > { %1623 = vmatmul.mubr.bf16.gmra.mrb[36].mxu0 %v8861_v10 }
 0x18e   : > { %1632 = vmatprep.mubr.bf16.mxu0 %v8863_v11 }
 0x195   : > { %1633 = vmatmul.mubr.bf16.gmra.mrb[40].mxu0 %v8870_v18 }
 0x196   : > { %1642 = vmatprep.mubr.bf16.mxu0 %v8873_v19 }
 0x19d   : > { %1643 = vmatmul.mubr.bf16.gmra.mrb[44].mxu0 %v8880_v26 }
 0x19e   : > { %1652 = vmatprep.mubr.bf16.mxu0 %v8883_v27 }
 0x1a5   : > { %1653 = vmatmul.mubr.bf16.gmra.mrb[48].mxu0 %v8890_v34 }
 0x1a6   : > { %1662 = vmatprep.mubr.bf16.mxu0 %v8893_v35 }
 0x1ad   : > { %1663 = vmatmul.mubr.bf16.gmra.mrb[52].mxu0 %v8900_v43 }
 0x1ae   : > { %1672 = vmatprep.mubr.bf16.mxu0 %v6509_v44 }
 0x1b5   : > { %1673 = vmatmul.mubr.bf16.gmra.mrb[56].mxu0 %v6508_v51 }
 0x1b6   : > { %1682 = vmatprep.mubr.bf16.mxu0 %v6511_v52 }
 0x1bd   : > { %1683 = vmatmul.mubr.bf16.gmra.mrb[60].mxu0 %v6510_v57 }
 0x215   : > { %v1501_v6 = vpop.f32.mrb[0].mxu1 }
 0x216   : > { %v1503_v8 = vpop.f32.mrb[1].mxu1  ;;  %v1502_v10 = vadd.f32 %v1501_v6, %v8934_v5 }
 0x217   : > { %v1505_v9 = vpop.f32.mrb[2].mxu1  ;;  %v1504_v13 = vadd.f32 %v1503_v8, %v8939_v7 }
 0x218   : > { %v1506_v11 = vadd.f32 %v1505_v9, %v8934_v5  ;;  %v1507_v12 = vpop.f32.mrb[3].mxu1  ;;  %v1388_v27 = vpop.f32.mrb[0].mxu0 }
 0x219   : > { %v1508_v15 = vadd.f32 %v1507_v12, %v8939_v7  ;;  %v1389_v30 = vadd.f32 %v1388_v27, %v8953_v20  ;;  %v1390_v31 = vpop.f32.mrb[1].mxu0 }
 0x21a   : > { %v1741_v16 = vpack.c.bf16 %v1506_v11, %v1502_v10  ;;  %v1391_v33 = vadd.f32 %v1390_v31, %v8957_v22  ;;  %v1392_v34 = vpop.f32.mrb[2].mxu0 }
 0x21b   : > { %v1742_v18 = vpack.c.bf16 %v1508_v15, %v1504_v13  ;;  %v1693_v37 = vmul.f32 0.088388346, %v1389_v30  ;;  %v1393_v38 = vadd.f32 %v1392_v34, %v8953_v20  ;;  %v1394_v39 = vpop.f32.mrb[3].mxu0 }
 0x21c   : > { %7015 = vmatprep.subr.bf16.mxu1 %v1741_v16  ;;  %v1694_v40 = vmul.f32 0.088388346, %v1391_v33  ;;  %v1395_v41 = vadd.f32 %v1394_v39, %v8957_v22 }
 0x21d   : > { %v1511_v19 = vpop.f32.mrb[4].mxu1  ;;  %7016 = vmatpush3.bf16.xpose.msra.mxu1 %v1741_v16  ;;  %7047 = vmatprep.subr.bf16.mxu0 %v1742_v18  ;;  %v1695_v43 = vmul.f32 0.088388346, %v1393_v38 }
 0x21e   : > { %v1513_v21 = vpop.f32.mrb[5].mxu1  ;;  %7048 = vmatpush3.bf16.xpose.msra.mxu0 %v1742_v18  ;;  %v1512_v24 = vadd.f32 %v1511_v19, %v8934_v5  ;;  %v1696_v45 = vmul.f32 0.088388346, %v1395_v41 }
 0x21f   : > { %v1515_v23 = vpop.f32.mrb[6].mxu1  ;;  %v1514_v28 = vadd.f32 %v1513_v21, %v8939_v7  ;;  %v1725_v47 = vpack.c.bf16 %v1695_v43, %v1693_v37 }
 0x220   : > { %v1516_v25 = vadd.f32 %v1515_v23, %v8934_v5  ;;  %v1517_v26 = vpop.f32.mrb[7].mxu1  ;;  %v1726_v51 = vpack.c.bf16 %v1696_v45, %v1694_v40  ;;  %v1398_v52 = vpop.f32.mrb[4].mxu0 }
 0x221   : > { %v1518_v29 = vadd.f32 %v1517_v26, %v8939_v7  ;;  %v1399_v55 = vadd.f32 %v1398_v52, %v8953_v20  ;;  %v1400_v56 = vpop.f32.mrb[5].mxu0  ;;  %7031 = vmatprep.mubr.bf16.mxu1 %v1725_v47 }
 0x222   : > { %v1743_v32 = vpack.c.bf16 %v1516_v25, %v1512_v24  ;;  %v1401_v58 = vadd.f32 %v1400_v56, %v8957_v22  ;;  %v1402_v59 = vpop.f32.mrb[6].mxu0  ;;  %7063 = vmatprep.mubr.bf16.mxu0 %v1726_v51 }
 0x223   : > { %v1744_v35 = vpack.c.bf16 %v1518_v29, %v1514_v28  ;;  %v8973_v61 = vmul.f32 0.088388346, %v1399_v55  ;;  %v1403_v62 = vadd.f32 %v1402_v59, %v8953_v20  ;;  %v1404_v63 = vpop.f32.mrb[7].mxu0 }
 0x224   : > { %7017 = vmatprep.subr.bf16.mxu1 %v1743_v32  ;;  %v8976_v1 = vmul.f32 0.088388346, %v1401_v58  ;;  %v1405_v36 = vadd.f32 %v1404_v63, %v8957_v22 }
 0x225   : > { %v1521_v42 = vpop.f32.mrb[8].mxu1  ;;  %7018 = vmatpush3.bf16.xpose.msra.mxu1 %v1743_v32  ;;  %7049 = vmatprep.subr.bf16.mxu0 %v1744_v35  ;;  %v8979_v8 = vmul.f32 0.088388346, %v1403_v62 }
 0x226   : > { %v1523_v44 = vpop.f32.mrb[9].mxu1  ;;  %7050 = vmatpush3.bf16.xpose.msra.mxu0 %v1744_v35  ;;  %v1522_v48 = vadd.f32 %v1521_v42, %v8934_v5  ;;  %v8981_v10 = vmul.f32 0.088388346, %v1405_v36 }
 0x227   : > { %v1525_v46 = vpop.f32.mrb[10].mxu1  ;;  %v1524_v53 = vadd.f32 %v1523_v44, %v8939_v7  ;;  %v1727_v12 = vpack.c.bf16 %v8979_v8, %v8973_v61 }
 0x228   : > { %v1526_v49 = vadd.f32 %v1525_v46, %v8934_v5  ;;  %v1527_v50 = vpop.f32.mrb[11].mxu1  ;;  %v1728_v18 = vpack.c.bf16 %v8981_v10, %v8976_v1  ;;  %v1408_v19 = vpop.f32.mrb[8].mxu0 }
 0x229   : > { %v1528_v54 = vadd.f32 %v1527_v50, %v8939_v7  ;;  %v1409_v24 = vadd.f32 %v1408_v19, %v8953_v20  ;;  %v1410_v25 = vpop.f32.mrb[9].mxu0 }
 0x22a   : > { %v1745_v57 = vpack.c.bf16 %v1526_v49, %v1522_v48  ;;  %v1411_v27 = vadd.f32 %v1410_v25, %v8957_v22  ;;  %v1412_v28 = vpop.f32.mrb[10].mxu0 }
 0x22b   : > { %v1746_v60 = vpack.c.bf16 %v1528_v54, %v1524_v53  ;;  %v8993_v30 = vmul.f32 0.088388346, %v1409_v24  ;;  %v1413_v31 = vadd.f32 %v1412_v28, %v8953_v20  ;;  %v1414_v32 = vpop.f32.mrb[11].mxu0 }
 0x22c   : > { %7019 = vmatprep.subr.bf16.mxu1 %v1745_v57  ;;  %v8996_v33 = vmul.f32 0.088388346, %v1411_v27  ;;  %v1415_v34 = vadd.f32 %v1414_v32, %v8957_v22 }
 0x22d   : > { %v1531_v6 = vpop.f32.mrb[12].mxu1  ;;  %7020 = vmatpush3.bf16.xpose.msra.mxu1 %v1745_v57  ;;  %7051 = vmatprep.subr.bf16.mxu0 %v1746_v60  ;;  %v8999_v37 = vmul.f32 0.088388346, %v1413_v31 }
 0x22e   : > { %v1533_v9 = vpop.f32.mrb[13].mxu1  ;;  %7052 = vmatpush3.bf16.xpose.msra.mxu0 %v1746_v60  ;;  %v1532_v13 = vadd.f32 %v1531_v6, %v8934_v5  ;;  %v9001_v39 = vmul.f32 0.088388346, %v1415_v34 }
 0x22f   : > { %v1535_v11 = vpop.f32.mrb[14].mxu1  ;;  %v1534_v21 = vadd.f32 %v1533_v9, %v8939_v7  ;;  %v1729_v41 = vpack.c.bf16 %v8999_v37, %v8993_v30 }
 0x230   : > { %v1536_v15 = vadd.f32 %v1535_v11, %v8934_v5  ;;  %v1537_v16 = vpop.f32.mrb[15].mxu1  ;;  %v1730_v45 = vpack.c.bf16 %v9001_v39, %v8996_v33  ;;  %v1418_v46 = vpop.f32.mrb[12].mxu0 }
 0x231   : > { %v1538_v23 = vadd.f32 %v1537_v16, %v8939_v7  ;;  %v1419_v49 = vadd.f32 %v1418_v46, %v8953_v20  ;;  %v1420_v50 = vpop.f32.mrb[13].mxu0 }
 0x232   : > { %v1747_v26 = vpack.c.bf16 %v1536_v15, %v1532_v13  ;;  %v1421_v52 = vadd.f32 %v1420_v50, %v8957_v22  ;;  %v1422_v53 = vpop.f32.mrb[14].mxu0 }
 0x233   : > { %v1748_v29 = vpack.c.bf16 %v1538_v23, %v1534_v21  ;;  %v9013_v55 = vmul.f32 0.088388346, %v1419_v49  ;;  %v1423_v56 = vadd.f32 %v1422_v53, %v8953_v20  ;;  %v1424_v57 = vpop.f32.mrb[15].mxu0 }
 0x234   : > { %7021 = vmatprep.subr.bf16.mxu1 %v1747_v26  ;;  %v9016_v58 = vmul.f32 0.088388346, %v1421_v52  ;;  %v1425_v59 = vadd.f32 %v1424_v57, %v8957_v22 }
 0x235   : > { %v1541_v35 = vpop.f32.mrb[16].mxu1  ;;  %7022 = vmatpush3.bf16.xpose.msra.mxu1 %v1747_v26  ;;  %7053 = vmatprep.subr.bf16.mxu0 %v1748_v29  ;;  %v9019_v62 = vmul.f32 0.088388346, %v1423_v56 }
 0x236   : > { %v1543_v38 = vpop.f32.mrb[17].mxu1  ;;  %7054 = vmatpush3.bf16.xpose.msra.mxu0 %v1748_v29  ;;  %v1542_v42 = vadd.f32 %v1541_v35, %v8934_v5  ;;  %v9021_v36 = vmul.f32 0.088388346, %v1425_v59 }
 0x237   : > { %v1545_v40 = vpop.f32.mrb[18].mxu1  ;;  %v1544_v47 = vadd.f32 %v1543_v38, %v8939_v7  ;;  %v1731_v9 = vpack.c.bf16 %v9019_v62, %v9013_v55 }
 0x238   : > { %v1546_v43 = vadd.f32 %v1545_v40, %v8934_v5  ;;  %v1547_v44 = vpop.f32.mrb[19].mxu1  ;;  %v1732_v16 = vpack.c.bf16 %v9021_v36, %v9016_v58  ;;  %v1428_v19 = vpop.f32.mrb[16].mxu0 }
 0x239   : > { %v1548_v48 = vadd.f32 %v1547_v44, %v8939_v7  ;;  %v1429_v24 = vadd.f32 %v1428_v19, %v8953_v20  ;;  %v1430_v25 = vpop.f32.mrb[17].mxu0 }
 0x23a   : > { %v1749_v51 = vpack.c.bf16 %v1546_v43, %v1542_v42  ;;  %v1431_v27 = vadd.f32 %v1430_v25, %v8957_v22  ;;  %v1432_v28 = vpop.f32.mrb[18].mxu0 }
 0x23b   : > { %v1750_v54 = vpack.c.bf16 %v1548_v48, %v1544_v47  ;;  %v9033_v31 = vmul.f32 0.088388346, %v1429_v24  ;;  %v1433_v32 = vadd.f32 %v1432_v28, %v8953_v20  ;;  %v1434_v34 = vpop.f32.mrb[19].mxu0 }
 0x23c   : > { %7023 = vmatprep.subr.bf16.mxu1 %v1749_v51  ;;  %v9036_v35 = vmul.f32 0.088388346, %v1431_v27  ;;  %v1435_v38 = vadd.f32 %v1434_v34, %v8957_v22 }
 0x23d   : > { %v1551_v60 = vpop.f32.mrb[20].mxu1  ;;  %7024 = vmatpush3.bf16.xpose.msra.mxu1 %v1749_v51  ;;  %7055 = vmatprep.subr.bf16.mxu0 %v1750_v54  ;;  %v9039_v42 = vmul.f32 0.088388346, %v1433_v32 }
 0x23e   : > { %v1553_v63 = vpop.f32.mrb[21].mxu1  ;;  %7056 = vmatpush3.bf16.xpose.msra.mxu0 %v1750_v54  ;;  %v1552_v11 = vadd.f32 %v1551_v60, %v8934_v5  ;;  %v9041_v44 = vmul.f32 0.088388346, %v1435_v38 }
 0x23f   : > { %v1555_v6 = vpop.f32.mrb[22].mxu1  ;;  %v1554_v21 = vadd.f32 %v1553_v63, %v8939_v7  ;;  %v1733_v47 = vpack.c.bf16 %v9039_v42, %v9033_v31 }
 0x240   : > { %v1556_v13 = vadd.f32 %v1555_v6, %v8934_v5  ;;  %v1557_v15 = vpop.f32.mrb[23].mxu1  ;;  %v1734_v51 = vpack.c.bf16 %v9041_v44, %v9036_v35  ;;  %v1438_v52 = vpop.f32.mrb[20].mxu0 }
 0x241   : > { %v1558_v23 = vadd.f32 %v1557_v15, %v8939_v7  ;;  %v1439_v56 = vadd.f32 %v1438_v52, %v8953_v20  ;;  %v1440_v57 = vpop.f32.mrb[21].mxu0 }
 0x242   : > { %v1751_v26 = vpack.c.bf16 %v1556_v13, %v1552_v11  ;;  %v1441_v60 = vadd.f32 %v1440_v57, %v8957_v22  ;;  %v1442_v63 = vpop.f32.mrb[22].mxu0 }
 0x243   : > { %v1752_v29 = vpack.c.bf16 %v1558_v23, %v1554_v21  ;;  %v9053_v11 = vmul.f32 0.088388346, %v1439_v56  ;;  %v1443_v13 = vadd.f32 %v1442_v63, %v8953_v20  ;;  %v1444_v15 = vpop.f32.mrb[23].mxu0 }
 0x244   : > { %7025 = vmatprep.subr.bf16.mxu1 %v1751_v26  ;;  %v9056_v19 = vmul.f32 0.088388346, %v1441_v60  ;;  %v1445_v21 = vadd.f32 %v1444_v15, %v8957_v22 }
 0x245   : > { %v1561_v40 = vpop.f32.mrb[24].mxu1  ;;  %7026 = vmatpush3.bf16.xpose.msra.mxu1 %v1751_v26  ;;  %7057 = vmatprep.subr.bf16.mxu0 %v1752_v29  ;;  %v9059_v24 = vmul.f32 0.088388346, %v1443_v13 }
 0x246   : > { %v1563_v43 = vpop.f32.mrb[25].mxu1  ;;  %7058 = vmatpush3.bf16.xpose.msra.mxu0 %v1752_v29  ;;  %v1562_v48 = vadd.f32 %v1561_v40, %v8934_v5  ;;  %v9061_v26 = vmul.f32 0.088388346, %v1445_v21 }
 0x247   : > { %v1565_v46 = vpop.f32.mrb[26].mxu1  ;;  %v1564_v53 = vadd.f32 %v1563_v43, %v8939_v7  ;;  %v1735_v28 = vpack.c.bf16 %v9059_v24, %v9053_v11 }
 0x248   : > { %v1566_v49 = vadd.f32 %v1565_v46, %v8934_v5  ;;  %v1567_v50 = vpop.f32.mrb[27].mxu1  ;;  %v1736_v38 = vpack.c.bf16 %v9061_v26, %v9056_v19  ;;  %v1448_v40 = vpop.f32.mrb[24].mxu0 }
 0x249   : > { %v1568_v54 = vadd.f32 %v1567_v50, %v8939_v7 }
 0x24a   : > { %v1753_v59 = vpack.c.bf16 %v1566_v49, %v1562_v48  ;;  %v1449_v48 = vadd.f32 %v1448_v40, %v8953_v20  ;;  %v1450_v49 = vpop.f32.mrb[25].mxu0 }
 0x24b   : > { %v1754_v6 = vpack.c.bf16 %v1568_v54, %v1564_v53  ;;  %v1451_v52 = vadd.f32 %v1450_v49, %v8957_v22  ;;  %v1452_v53 = vpop.f32.mrb[26].mxu0 }
 0x24c   : > { %7027 = vmatprep.subr.bf16.mxu1 %v1753_v59  ;;  %v1717_v56 = vmul.f32 0.088388346, %v1449_v48  ;;  %v1454_v57 = vpop.f32.mrb[27].mxu0 }
 0x24d   : > { %v1571_v23 = vpop.f32.mrb[28].mxu1  ;;  %7028 = vmatpush3.bf16.xpose.msra.mxu1 %v1753_v59  ;;  %7059 = vmatprep.subr.bf16.mxu0 %v1754_v6  ;;  %v1718_v59 = vmul.f32 0.088388346, %v1451_v52  ;;  %v1455_v60 = vadd.f32 %v1454_v57, %v8957_v22 }
 0x24e   : > { %v1573_v25 = vpop.f32.mrb[29].mxu1  ;;  %7060 = vmatpush3.bf16.xpose.msra.mxu0 %v1754_v6  ;;  %v1572_v29 = vadd.f32 %v1571_v23, %v8934_v5 }
 0x24f   : > { %v1575_v27 = vpop.f32.mrb[30].mxu1  ;;  %v1574_v43 = vadd.f32 %v1573_v25, %v8939_v7  ;;  %v782_v25 = vsub.s32 4, %v8921_v0 }
 0x250   : > { %v1576_v32 = vadd.f32 %v1575_v27, %v8934_v5  ;;  %v1577_v34 = vpop.f32.mrb[31].mxu1  ;;  %v1453_v5 = vadd.f32 %v1452_v53, %v8953_v20  ;;  %v1458_v15 = vpop.f32.mrb[28].mxu0 }
 0x251   : > { %v1578_v46 = vadd.f32 %v1577_v34, %v8939_v7  ;;  %v1720_v7 = vmul.f32 0.088388346, %v1455_v60  ;;  %v1459_v21 = vadd.f32 %v1458_v15, %v8953_v20  ;;  %v1460_v23 = vpop.f32.mrb[29].mxu0 }
 0x252   : > { %v1755_v50 = vpack.c.bf16 %v1576_v32, %v1572_v29  ;;  %v1719_v63 = vmul.f32 0.088388346, %v1453_v5  ;;  %v1461_v27 = vadd.f32 %v1460_v23, %v8957_v22  ;;  %v1462_v29 = vpop.f32.mrb[30].mxu0  ;;  %v786_v32 = vsub.s32 5, %v8921_v0 }
 0x253   : > { %v1756_v54 = vpack.c.bf16 %v1578_v46, %v1574_v43  ;;  %v1738_v13 = vpack.c.bf16 %v1720_v7, %v1718_v59  ;;  %v1721_v34 = vmul.f32 0.088388346, %v1459_v21  ;;  %v1463_v40 = vadd.f32 %v1462_v29, %v8953_v20  ;;  %v1464_v43 = vpop.f32.mrb[31].mxu0 }
 0x254   : > { %7029 = vmatprep.subr.bf16.mxu1 %v1755_v50  ;;  %v1737_v6 = vpack.c.bf16 %v1719_v63, %v1717_v56  ;;  %v1722_v46 = vmul.f32 0.088388346, %v1461_v27  ;;  %v1465_v48 = vadd.f32 %v1464_v43, %v8957_v22  ;;  %v9097_v61 = vrot.slane %v8929_v3, %v786_v32 }
 0x255   : > { %7030 = vmatpush3.bf16.xpose.msra.mxu1 %v1755_v50  ;;  %7061 = vmatprep.subr.bf16.mxu0 %v1756_v54  ;;  %v1723_v49 = vmul.f32 0.088388346, %v1463_v40  ;;  %v9091_v50 = vrot.slane %v8929_v3, %v782_v25 }
 0x256   : > { %7062 = vmatpush3.bf16.xpose.msra.mxu0 %v1756_v54  ;;  %v1724_v20 = vmul.f32 0.088388346, %v1465_v48 }
 0x257   : > { %v1739_v22 = vpack.c.bf16 %v1723_v49, %v1721_v34 }
 0x258   : > { %v1740_v8 = vpack.c.bf16 %v1724_v20, %v1722_v46 }
 0x25c   : > { %7032 = vmatmul.mubr.bf16.vlgmr.msra.gmra.mrb[32].mxu1 %v1727_v12  ;;  %v1614_v12 = vpop.f32.mrb[32].mxu0 }
 0x25d   : > { %7035 = vmatprep.mubr.bf16.mxu1 %v1729_v41  ;;  %7064 = vmatmul.mubr.bf16.vlgmr.msra.gmra.mrb[64].mxu0 %v1728_v18  ;;  %v1615_v30 = vadd.f32 %v1614_v12, %v9091_v50  ;;  %v1616_v37 = vpop.f32.mrb[33].mxu0 }
 0x25e   : > { %7067 = vmatprep.mubr.bf16.mxu0 %v1730_v45  ;;  %v1617_v1 = vadd.f32 %v1616_v37, %v9097_v61  ;;  %v1618_v10 = vpop.f32.mrb[34].mxu0 }
 0x25f   : > { %v1619_v18 = vadd.f32 %v1618_v10, %v9091_v50  ;;  %v1620_v41 = vpop.f32.mrb[35].mxu0 }
 0x260   : > { %v1621_v33 = vadd.f32 %v1620_v41, %v9097_v61  ;;  %v1624_v45 = vpop.f32.mrb[36].mxu0 }
 0x261   : > { %v1757_v3 = vpack.c.bf16 %v1619_v18, %v1615_v30  ;;  %v1625_v55 = vadd.f32 %v1624_v45, %v9091_v50  ;;  %v1626_v62 = vpop.f32.mrb[37].mxu0 }
 0x262   : > { %v9115_v39 = vpack.c.bf16 %v1621_v33, %v1617_v1  ;;  %v1628_v31 = vpop.f32.mrb[38].mxu0 }
 0x263   : > { %7079 = vmatprep.subr.bf16.mxu1 %v1757_v3  ;;  %v1629_v42 = vadd.f32 %v1628_v31, %v9091_v50  ;;  %v1630_v58 = vpop.f32.mrb[39].mxu0 }
 0x264   : > { %7036 = vmatmul.mubr.bf16.gmra.mrb[36].mxu1 %v1731_v9  ;;  %v1627_v9 = vadd.f32 %v1626_v62, %v9097_v61  ;;  %v1631_v36 = vadd.f32 %v1630_v58, %v9097_v61 }
 0x265   : > { %7039 = vmatprep.mubr.bf16.mxu1 %v1733_v47  ;;  %7068 = vmatmul.mubr.bf16.gmra.mrb[68].mxu0 %v1732_v16  ;;  %v1759_v16 = vpack.c.bf16 %v1629_v42, %v1625_v55 }
 0x266   : > { %7071 = vmatprep.mubr.bf16.mxu0 %v1734_v51  ;;  %7080 = vmatpush3.bf16.msra.mxu1 %v1757_v3  ;;  %v9127_v35 = vpack.c.bf16 %v1631_v36, %v1627_v9 }
 0x267   : > { %7081 = vmatprep.subr.bf16.mxu1 %v1759_v16 }
 0x268   : > { %v1634_v44 = vpop.f32.mrb[40].mxu0 }
 0x269   : > { %v1635_v47 = vadd.f32 %v1634_v44, %v9091_v50  ;;  %v1636_v51 = vpop.f32.mrb[41].mxu0 }
 0x26a   : > { %7082 = vmatpush3.bf16.msra.mxu1 %v1759_v16  ;;  %v1637_v11 = vadd.f32 %v1636_v51, %v9097_v61  ;;  %v1638_v24 = vpop.f32.mrb[42].mxu0 }
 0x26b   : > { %v1640_v52 = vpop.f32.mrb[43].mxu0 }
 0x26c   : > { %7040 = vmatmul.mubr.bf16.gmra.mrb[40].mxu1 %v1735_v28  ;;  %v1639_v28 = vadd.f32 %v1638_v24, %v9091_v50  ;;  %v1641_v19 = vadd.f32 %v1640_v52, %v9097_v61 }
 0x26d   : > { %7043 = vmatprep.mubr.bf16.mxu1 %v1737_v6  ;;  %7072 = vmatmul.mubr.bf16.gmra.mrb[72].mxu0 %v1736_v38 }
 0x26e   : > { %7075 = vmatprep.mubr.bf16.mxu0 %v1738_v13  ;;  %v1761_v26 = vpack.c.bf16 %v1639_v28, %v1635_v47  ;;  %v9133_v38 = vpack.c.bf16 %v1641_v19, %v1637_v11  ;;  %v1773_v28 = vld [vmem:[%s565_s29] sm:$0x1]  ;;  %s11747_s29 = sld [smem:[#allocation123_spill]] }
 0x26f   : > { %v1774_v52 = vsub.f32 1.0, %v1773_v28 }
 0x270   : > { %7083 = vmatprep.subr.bf16.mxu1 %v1761_v26  ;;  %v1644_v53 = vpop.f32.mrb[44].mxu0 }
 0x271   : > { %7084 = vmatpush3.bf16.msra.mxu1 %v1761_v26  ;;  %v1645_v54 = vadd.f32 %v1644_v53, %v9091_v50  ;;  %v1646_v56 = vpop.f32.mrb[45].mxu0  ;;  %v1775_v19 = vmul.f32 -1e+09, %v1774_v52 }
 0x272   : > { %v1647_v5 = vadd.f32 %v1646_v56, %v9097_v61  ;;  %v1648_v57 = vpop.f32.mrb[46].mxu0 }
 0x273   : > { %v1649_v59 = vadd.f32 %v1648_v57, %v9091_v50  ;;  %v1650_v60 = vpop.f32.mrb[47].mxu0  ;;  %v9169_v26 = vrot.slane %v1775_v19, %v8945_v14 }
 0x274   : > { %7044 = vmatmul.mubr.bf16.gmra.mrb[44].mxu1 %v1739_v22  ;;  %v1651_v63 = vadd.f32 %v1650_v60, %v9097_v61 }
 0x275   : > { %7076 = vmatmul.mubr.bf16.gmra.mrb[76].mxu0 %v1740_v8  ;;  %v1763_v7 = vpack.c.bf16 %v1649_v59, %v1645_v54 }
 0x276   : > { %v9139_v6 = vpack.c.bf16 %v1651_v63, %v1647_v5 }
 0x277   : > { %7085 = vmatprep.subr.bf16.mxu1 %v1763_v7 }
 0x278   : > { %v1654_v13 = vpop.f32.mrb[48].mxu0  ;;  %7086 = vmatpush3.bf16.msra.mxu1 %v1763_v7 }
 0x279   : > { %v1655_v15 = vadd.f32 %v1654_v13, %v9091_v50  ;;  %v1656_v21 = vpop.f32.mrb[49].mxu0 }
 0x27a   : > { %v1657_v23 = vadd.f32 %v1656_v21, %v9097_v61  ;;  %v1658_v25 = vpop.f32.mrb[50].mxu0 }
 0x27b   : > { %v1659_v27 = vadd.f32 %v1658_v25, %v9091_v50  ;;  %v1660_v29 = vpop.f32.mrb[51].mxu0 }
 0x27c   : > { %v1661_v32 = vadd.f32 %v1660_v29, %v9097_v61 }
 0x27d   : > { %v1765_v34 = vpack.c.bf16 %v1659_v27, %v1655_v15 }
 0x27e   : > { %v9145_v40 = vpack.c.bf16 %v1661_v32, %v1657_v23 }
 0x27f   : > { %7087 = vmatprep.subr.bf16.mxu1 %v1765_v34 }
 0x280   : > { %v1664_v43 = vpop.f32.mrb[52].mxu0  ;;  %7088 = vmatpush3.bf16.msra.mxu1 %v1765_v34 }
 0x281   : > { %v1665_v46 = vadd.f32 %v1664_v43, %v9091_v50  ;;  %v1666_v48 = vpop.f32.mrb[53].mxu0 }
 0x282   : > { %v1667_v49 = vadd.f32 %v1666_v48, %v9097_v61  ;;  %v1668_v20 = vpop.f32.mrb[54].mxu0 }
 0x283   : > { %v1669_v22 = vadd.f32 %v1668_v20, %v9091_v50  ;;  %v1670_v8 = vpop.f32.mrb[55].mxu0 }
 0x284   : > { %v1671_v12 = vadd.f32 %v1670_v8, %v9097_v61 }
 0x285   : > { %v1767_v30 = vpack.c.bf16 %v1669_v22, %v1665_v46 }
 0x286   : > { %v9151_v37 = vpack.c.bf16 %v1671_v12, %v1667_v49 }
 0x287   : > { %7089 = vmatprep.subr.bf16.mxu1 %v1767_v30 }
 0x288   : > { %v1674_v1 = vpop.f32.mrb[56].mxu0  ;;  %7090 = vmatpush3.bf16.msra.mxu1 %v1767_v30 }
 0x289   : > { %v1675_v10 = vadd.f32 %v1674_v1, %v9091_v50  ;;  %v1676_v18 = vpop.f32.mrb[57].mxu0 }
 0x28a   : > { %v1677_v41 = vadd.f32 %v1676_v18, %v9097_v61  ;;  %v1678_v33 = vpop.f32.mrb[58].mxu0 }
 0x28b   : > { %v1679_v3 = vadd.f32 %v1678_v33, %v9091_v50  ;;  %v1680_v45 = vpop.f32.mrb[59].mxu0 }
 0x28c   : > { %v1681_v55 = vadd.f32 %v1680_v45, %v9097_v61 }
 0x28d   : > { %v1769_v62 = vpack.c.bf16 %v1679_v3, %v1675_v10 }
 0x28e   : > { %v9157_v9 = vpack.c.bf16 %v1681_v55, %v1677_v41 }
 0x28f   : > { %7091 = vmatprep.subr.bf16.mxu1 %v1769_v62 }
 0x290   : > { %v1684_v31 = vpop.f32.mrb[60].mxu0  ;;  %7092 = vmatpush3.bf16.msra.mxu1 %v1769_v62 }
 0x291   : > { %v1685_v42 = vadd.f32 %v1684_v31, %v9091_v50  ;;  %v1686_v58 = vpop.f32.mrb[61].mxu0 }
 0x292   : > { %v1687_v36 = vadd.f32 %v1686_v58, %v9097_v61  ;;  %v1688_v16 = vpop.f32.mrb[62].mxu0 }
 0x293   : > { %v1689_v44 = vadd.f32 %v1688_v16, %v9091_v50  ;;  %v1690_v47 = vpop.f32.mrb[63].mxu0 }
 0x294   : > { %v1691_v51 = vadd.f32 %v1690_v47, %v9097_v61 }
 0x295   : > { %v1771_v11 = vpack.c.bf16 %v1689_v44, %v1685_v42 }
 0x296   : > { %v9163_v24 = vpack.c.bf16 %v1691_v51, %v1687_v36 }
 0x297   : > { %7093 = vmatprep.subr.bf16.mxu1 %v1771_v11 }
 0x298   : > { %7094 = vmatpush3.bf16.msra.mxu1 %v1771_v11 }
 0x299   : > { %7111 = vmatprep.subr.bf16.mxu1 %v9115_v39 }
 0x32f   : > { %v7033_v53 = vpop.f32.mrb[32].mxu1 }
 0x330   : > { %v9172_v50 = vadd.f32 %v7033_v53, %v9169_v26  ;;  %v1816_v54 = vpop.f32.mrb[33].mxu1  ;;  %v9174_v61 = vpop.f32.mrb[64].mxu0 }
 0x331   : > { %v9177_v56 = vadd.f32 %v1816_v54, %v9169_v26  ;;  %v7034_v5 = vpop.f32.mrb[34].mxu1  ;;  %v1929_v57 = vpop.f32.mrb[65].mxu0  ;;  %v9251_v54 = vadd.f32 %v9174_v61, %v9169_v26 }
 0x332   : > { %v9179_v59 = vpop.f32.mrb[66].mxu0  ;;  %2044 = vmax.xlane.f32.xlu1 %v9172_v50  ;;  %v1819_v60 = vpop.f32.mrb[35].mxu1  ;;  %v9184_v7 = vadd.f32 %v7034_v5, %v9169_v26  ;;  %v9242_v19 = vadd.f32 %v1929_v57, %v9169_v26 }
 0x333   : > { %v1932_v63 = vpop.f32.mrb[67].mxu0  ;;  %2040 = vmax.xlane.f32.xlu0 %v9177_v56  ;;  %v9187_v13 = vadd.f32 %v1819_v60, %v9169_v26  ;;  %v9256_v5 = vadd.f32 %v9179_v59, %v9169_v26 }
 0x334   : > { %v9246_v53 = vadd.f32 %v1932_v63, %v9169_v26 }
 0x336   : > { %2046 = vmax.xlane.f32.xlu1 %v9184_v7 }
 0x337   : > { %v7037_v15 = vpop.f32.mrb[36].mxu1  ;;  %2042 = vmax.xlane.f32.xlu0 %v9187_v13 }
 0x338   : > { %v1832_v21 = vpop.f32.mrb[37].mxu1  ;;  %v7069_v23 = vpop.f32.mrb[68].mxu0  ;;  %v9199_v48 = vadd.f32 %v7037_v15, %v9169_v26 }
 0x339   : > { %v9192_v25 = vadd.f32 %v1832_v21, %v9169_v26  ;;  %v7038_v27 = vpop.f32.mrb[38].mxu1  ;;  %v1945_v29 = vpop.f32.mrb[69].mxu0  ;;  %v9268_v61 = vadd.f32 %v7069_v23, %v9169_v26 }
 0x33a   : > { %v1835_v32 = vpop.f32.mrb[39].mxu1  ;;  %v7070_v34 = vpop.f32.mrb[70].mxu0  ;;  %v9203_v49 = vadd.f32 %v7038_v27, %v9169_v26  ;;  %v9260_v57 = vadd.f32 %v1945_v29, %v9169_v26 }
 0x33b   : > { %v9195_v43 = vadd.f32 %v1835_v32, %v9169_v26  ;;  %v1948_v46 = vpop.f32.mrb[71].mxu0  ;;  %2048 = vmax.xlane.f32.xlu0 %v9192_v25  ;;  %v9272_v59 = vadd.f32 %v7070_v34, %v9169_v26 }
 0x33c   : > { %v9264_v60 = vadd.f32 %v1948_v46, %v9169_v26 }
 0x33d   : > { %2050 = vmax.xlane.f32.xlu1 %v9195_v43 }
 0x33f   : > { %v7041_v20 = vpop.f32.mrb[40].mxu1  ;;  %2052 = vmax.xlane.f32.xlu0 %v9199_v48 }
 0x340   : > { %v1848_v22 = vpop.f32.mrb[41].mxu1  ;;  %v7073_v8 = vpop.f32.mrb[72].mxu0  ;;  %v9215_v3 = vadd.f32 %v7041_v20, %v9169_v26 }
 0x341   : > { %v9207_v12 = vadd.f32 %v1848_v22, %v9169_v26  ;;  %v7042_v30 = vpop.f32.mrb[42].mxu1  ;;  %v1961_v1 = vpop.f32.mrb[73].mxu0  ;;  %2054 = vmax.xlane.f32.xlu1 %v9203_v49  ;;  %v9284_v21 = vadd.f32 %v7073_v8, %v9169_v26 }
 0x342   : > { %v1851_v10 = vpop.f32.mrb[43].mxu1  ;;  %v7074_v18 = vpop.f32.mrb[74].mxu0  ;;  %v9219_v45 = vadd.f32 %v7042_v30, %v9169_v26  ;;  %v9276_v63 = vadd.f32 %v1961_v1, %v9169_v26 }
 0x343   : > { %v9211_v41 = vadd.f32 %v1851_v10, %v9169_v26  ;;  %v1964_v33 = vpop.f32.mrb[75].mxu0  ;;  %2056 = vmax.xlane.f32.xlu0 %v9207_v12  ;;  %v9288_v23 = vadd.f32 %v7074_v18, %v9169_v26 }
 0x344   : > { %v9280_v15 = vadd.f32 %v1964_v33, %v9169_v26 }
 0x345   : > { %2058 = vmax.xlane.f32.xlu1 %v9211_v41 }
 0x347   : > { %v7045_v55 = vpop.f32.mrb[44].mxu1  ;;  %2060 = vmax.xlane.f32.xlu0 %v9215_v3 }
 0x348   : > { %v1864_v62 = vpop.f32.mrb[45].mxu1  ;;  %v7077_v31 = vpop.f32.mrb[76].mxu0  ;;  %v9234_v28 = vadd.f32 %v7045_v55, %v9169_v26 }
 0x349   : > { %v9223_v42 = vadd.f32 %v1864_v62, %v9169_v26  ;;  %v7046_v58 = vpop.f32.mrb[46].mxu1  ;;  %v1977_v36 = vpop.f32.mrb[77].mxu0  ;;  %2062 = vmax.xlane.f32.xlu1 %v9219_v45  ;;  %v9300_v32 = vadd.f32 %v7077_v31, %v9169_v26 }
 0x34a   : > { %v1867_v16 = vpop.f32.mrb[47].mxu1  ;;  %v7078_v44 = vpop.f32.mrb[78].mxu0  ;;  %v9238_v52 = vadd.f32 %v7046_v58, %v9169_v26  ;;  %v9292_v27 = vadd.f32 %v1977_v36, %v9169_v26 }
 0x34b   : > { %v9227_v47 = vadd.f32 %v1867_v16, %v9169_v26  ;;  %v1980_v51 = vpop.f32.mrb[79].mxu0  ;;  %2064 = vmax.xlane.f32.xlu0 %v9223_v42  ;;  %v9296_v29 = vadd.f32 %v7078_v44, %v9169_v26 }
 0x34c   : > { %v9231_v11 = vadd.f32 %v1980_v51, %v9169_v26 }
 0x34d   : > { %2066 = vmax.xlane.f32.xlu1 %v9227_v47 }
 0x34f   : > { %2068 = vmax.xlane.f32.xlu0 %v9234_v28 }
 0x351   : > { %2070 = vmax.xlane.f32.xlu1 %v9238_v52 }
 0x353   : > { %2072 = vmax.xlane.f32.xlu0 %v9242_v19 }
 0x355   : > { %2074 = vmax.xlane.f32.xlu1 %v9246_v53 }
 0x357   : > { %2076 = vmax.xlane.f32.xlu0 %v9251_v54 }
 0x359   : > { %2078 = vmax.xlane.f32.xlu1 %v9256_v5 }
 0x35b   : > { %2080 = vmax.xlane.f32.xlu0 %v9260_v57 }
 0x35d   : > { %2082 = vmax.xlane.f32.xlu1 %v9264_v60 }
 0x35f   : > { %2084 = vmax.xlane.f32.xlu0 %v9268_v61 }
 0x361   : > { %2086 = vmax.xlane.f32.xlu1 %v9272_v59 }
 0x363   : > { %2088 = vmax.xlane.f32.xlu0 %v9276_v63 }
 0x365   : > { %2090 = vmax.xlane.f32.xlu1 %v9280_v15 }
 0x367   : > { %2092 = vmax.xlane.f32.xlu0 %v9284_v21 }
 0x369   : > { %2094 = vmax.xlane.f32.xlu1 %v9288_v23 }
 0x36b   : > { %2096 = vmax.xlane.f32.xlu0 %v9292_v27 }
 0x36d   : > { %2102 = vmax.xlane.f32.xlu1 %v9296_v29 }
 0x36f   : > { %2100 = vmax.xlane.f32.xlu0 %v9300_v32 }
 0x371   : > { %2098 = vmax.xlane.f32.xlu1 %v9231_v11 }
 0x3bf   : > { %v2045_v34 = vpop.xlane.xlu1 %2044 }
 0x3c0   : > { %v2106_v46 = vsub.f32 %v9172_v50, %v2045_v34  ;;  %v2041_v20 = vpop.xlane.xlu0 %2040 }
 0x3c1   : > { %v2104_v22 = vsub.f32 %v9177_v56, %v2041_v20 }
 0x3c2   : > { %v2140_v1 = vmul.f32 1.442695, %v2106_v46 }
 0x3c3   : > { %v2136_v8 = vmul.f32 1.442695, %v2104_v22  ;;  %v2047_v30 = vpop.xlane.xlu1 %2046 }
 0x3c4   : > { %v2107_v10 = vsub.f32 %v9184_v7, %v2047_v30  ;;  %v2043_v18 = vpop.xlane.xlu0 %2042 }
 0x3c5   : > { %7817 = vpow2.f32 %v2136_v8  ;;  %v2105_v26 = vsub.f32 %v9187_v13, %v2043_v18 }
 0x3c6   : > { %7819 = vpow2.f32 %v2140_v1  ;;  %v2142_v55 = vmul.f32 1.442695, %v2107_v10 }
 0x3c7   : > { %v2138_v33 = vmul.f32 1.442695, %v2105_v26 }
 0x3c8   : > { %v2049_v62 = vpop.xlane.xlu0 %2048 }
 0x3c9   : > { %7821 = vpow2.f32 %v2138_v33  ;;  %v2108_v31 = vsub.f32 %v9192_v25, %v2049_v62 }
 0x3ca   : > { %v2051_v50 = vpop.xlane.xlu1 %2050  ;;  %7823 = vpow2.f32 %v2142_v55 }
 0x3cb   : > { %v2144_v58 = vmul.f32 1.442695, %v2108_v31  ;;  %v2109_v56 = vsub.f32 %v9195_v43, %v2051_v50 }
 0x3cc   : > { %v2053_v36 = vpop.xlane.xlu0 %2052 }
 0x3cd   : > { %7825 = vpow2.f32 %v2144_v58  ;;  %v2146_v16 = vmul.f32 1.442695, %v2109_v56  ;;  %v2110_v7 = vsub.f32 %v9199_v48, %v2053_v36 }
 0x3ce   : > { %v2055_v44 = vpop.xlane.xlu1 %2054 }
 0x3cf   : > { %v9312_v51 = vpop.eup %7817  ;;  %v2148_v13 = vmul.f32 1.442695, %v2110_v7  ;;  %v2111_v34 = vsub.f32 %v9203_v49, %v2055_v44  ;;  %7827 = vpow2.f32 %v2146_v16 }
 0x3d0   : > { %2200 = vadd.xlane.f32.xlu0 %v9312_v51  ;;  %v2057_v25 = vpop.xlane.xlu0 %2056  ;;  %v9317_v20 = vpop.eup %7819 }
 0x3d1   : > { %7829 = vpow2.f32 %v2148_v13  ;;  %v2150_v46 = vmul.f32 1.442695, %v2111_v34  ;;  %v2112_v43 = vsub.f32 %v9207_v12, %v2057_v25 }
 0x3d2   : > { %v2059_v22 = vpop.xlane.xlu1 %2058 }
 0x3d3   : > { %v9319_v8 = vpop.eup %7821  ;;  %v2152_v48 = vmul.f32 1.442695, %v2112_v43  ;;  %v2113_v30 = vsub.f32 %v9211_v41, %v2059_v22  ;;  %7831 = vpow2.f32 %v2150_v46 }
 0x3d4   : > { %2204 = vadd.xlane.f32.xlu0 %v9317_v20  ;;  %2202 = vadd.xlane.f32.xlu1 %v9319_v8  ;;  %v2061_v49 = vpop.xlane.xlu0 %2060  ;;  %v9325_v18 = vpop.eup %7823 }
 0x3d5   : > { %7833 = vpow2.f32 %v2152_v48  ;;  %v2154_v1 = vmul.f32 1.442695, %v2113_v30  ;;  %v2114_v10 = vsub.f32 %v9215_v3, %v2061_v49 }
 0x3d6   : > { %v2063_v12 = vpop.xlane.xlu1 %2062 }
 0x3d7   : > { %v9327_v26 = vpop.eup %7825  ;;  %v2156_v33 = vmul.f32 1.442695, %v2114_v10  ;;  %v2115_v55 = vsub.f32 %v9219_v45, %v2063_v12  ;;  %7835 = vpow2.f32 %v2154_v1 }
 0x3d8   : > { %2206 = vadd.xlane.f32.xlu1 %v9325_v18  ;;  %2208 = vadd.xlane.f32.xlu0 %v9327_v26  ;;  %v2065_v41 = vpop.xlane.xlu0 %2064 }
 0x3d9   : > { %7837 = vpow2.f32 %v2156_v33  ;;  %v2158_v62 = vmul.f32 1.442695, %v2115_v55  ;;  %v2116_v31 = vsub.f32 %v9223_v42, %v2065_v41  ;;  %v9333_v50 = vpop.eup %7827 }
 0x3da   : > { %v2067_v3 = vpop.xlane.xlu1 %2066 }
 0x3db   : > { %v9335_v58 = vpop.eup %7829  ;;  %v2160_v56 = vmul.f32 1.442695, %v2116_v31  ;;  %v2117_v36 = vsub.f32 %v9227_v47, %v2067_v3  ;;  %7839 = vpow2.f32 %v2158_v62 }
 0x3dc   : > { %2210 = vadd.xlane.f32.xlu1 %v9333_v50  ;;  %2212 = vadd.xlane.f32.xlu0 %v9335_v58  ;;  %v2069_v45 = vpop.xlane.xlu0 %2068 }
 0x3dd   : > { %7841 = vpow2.f32 %v2160_v56  ;;  %v2162_v16 = vmul.f32 1.442695, %v2117_v36  ;;  %v2118_v7 = vsub.f32 %v9234_v28, %v2069_v45  ;;  %v9341_v44 = vpop.eup %7831 }
 0x3de   : > { %v2071_v42 = vpop.xlane.xlu1 %2070 }
 0x3df   : > { %v9343_v13 = vpop.eup %7833  ;;  %v2164_v34 = vmul.f32 1.442695, %v2118_v7  ;;  %v2119_v25 = vsub.f32 %v9238_v52, %v2071_v42  ;;  %7843 = vpow2.f32 %v2162_v16 }
 0x3e0   : > { %2214 = vadd.xlane.f32.xlu1 %v9341_v44  ;;  %2216 = vadd.xlane.f32.xlu0 %v9343_v13  ;;  %v2073_v47 = vpop.xlane.xlu0 %2072 }
 0x3e1   : > { %7845 = vpow2.f32 %v2164_v34  ;;  %v2166_v46 = vmul.f32 1.442695, %v2119_v25  ;;  %v2120_v43 = vsub.f32 %v9242_v19, %v2073_v47  ;;  %v9349_v22 = vpop.eup %7835 }
 0x3e2   : > { %v2075_v28 = vpop.xlane.xlu1 %2074 }
 0x3e3   : > { %v9351_v48 = vpop.eup %7837  ;;  %v2168_v30 = vmul.f32 1.442695, %v2120_v43  ;;  %v2121_v49 = vsub.f32 %v9246_v53, %v2075_v28  ;;  %7847 = vpow2.f32 %v2166_v46 }
 0x3e4   : > { %2218 = vadd.xlane.f32.xlu1 %v9349_v22  ;;  %2220 = vadd.xlane.f32.xlu0 %v9351_v48  ;;  %v2077_v52 = vpop.xlane.xlu0 %2076 }
 0x3e5   : > { %7849 = vpow2.f32 %v2168_v30  ;;  %v2170_v1 = vmul.f32 1.442695, %v2121_v49  ;;  %v2122_v10 = vsub.f32 %v9251_v54, %v2077_v52  ;;  %v9357_v12 = vpop.eup %7839 }
 0x3e6   : > { %v2079_v19 = vpop.xlane.xlu1 %2078 }
 0x3e7   : > { %v9359_v33 = vpop.eup %7841  ;;  %v2172_v55 = vmul.f32 1.442695, %v2122_v10  ;;  %v2123_v41 = vsub.f32 %v9256_v5, %v2079_v19  ;;  %7851 = vpow2.f32 %v2170_v1 }
 0x3e8   : > { %2222 = vadd.xlane.f32.xlu1 %v9357_v12  ;;  %2224 = vadd.xlane.f32.xlu0 %v9359_v33  ;;  %v2081_v53 = vpop.xlane.xlu0 %2080 }
 0x3e9   : > { %7853 = vpow2.f32 %v2172_v55  ;;  %v2174_v62 = vmul.f32 1.442695, %v2123_v41  ;;  %v2124_v31 = vsub.f32 %v9260_v57, %v2081_v53  ;;  %v9365_v3 = vpop.eup %7843 }
 0x3ea   : > { %v2083_v54 = vpop.xlane.xlu1 %2082 }
 0x3eb   : > { %v9367_v56 = vpop.eup %7845  ;;  %v2176_v36 = vmul.f32 1.442695, %v2124_v31  ;;  %v2125_v45 = vsub.f32 %v9264_v60, %v2083_v54  ;;  %7855 = vpow2.f32 %v2174_v62 }
 0x3ec   : > { %2226 = vadd.xlane.f32.xlu1 %v9365_v3  ;;  %2228 = vadd.xlane.f32.xlu0 %v9367_v56  ;;  %v2085_v5 = vpop.xlane.xlu0 %2084 }
 0x3ed   : > { %7857 = vpow2.f32 %v2176_v36  ;;  %v2178_v16 = vmul.f32 1.442695, %v2125_v45  ;;  %v2126_v7 = vsub.f32 %v9268_v61, %v2085_v5  ;;  %v9373_v42 = vpop.eup %7847 }
 0x3ee   : > { %v2087_v57 = vpop.xlane.xlu1 %2086 }
 0x3ef   : > { %v9375_v34 = vpop.eup %7849  ;;  %v2180_v25 = vmul.f32 1.442695, %v2126_v7  ;;  %v2127_v47 = vsub.f32 %v9272_v59, %v2087_v57  ;;  %7859 = vpow2.f32 %v2178_v16 }
 0x3f0   : > { %2230 = vadd.xlane.f32.xlu1 %v9373_v42  ;;  %2232 = vadd.xlane.f32.xlu0 %v9375_v34  ;;  %v2089_v60 = vpop.xlane.xlu0 %2088 }
 0x3f1   : > { %7861 = vpow2.f32 %v2180_v25  ;;  %v2182_v46 = vmul.f32 1.442695, %v2127_v47  ;;  %v2128_v43 = vsub.f32 %v9276_v63, %v2089_v60  ;;  %v9381_v28 = vpop.eup %7851 }
 0x3f2   : > { %v2091_v61 = vpop.xlane.xlu1 %2090 }
 0x3f3   : > { %v9383_v30 = vpop.eup %7853  ;;  %v2184_v49 = vmul.f32 1.442695, %v2128_v43  ;;  %v2129_v52 = vsub.f32 %v9280_v15, %v2091_v61  ;;  %7863 = vpow2.f32 %v2182_v46 }
 0x3f4   : > { %2234 = vadd.xlane.f32.xlu1 %v9381_v28  ;;  %2236 = vadd.xlane.f32.xlu0 %v9383_v30  ;;  %v2093_v59 = vpop.xlane.xlu0 %2092 }
 0x3f5   : > { %7865 = vpow2.f32 %v2184_v49  ;;  %v2186_v1 = vmul.f32 1.442695, %v2129_v52  ;;  %v2130_v10 = vsub.f32 %v9284_v21, %v2093_v59  ;;  %v9389_v19 = vpop.eup %7855  ;;  %v7513_v59 = vld [vmem:[#allocation10] ss:$8 sps:$4 sm:$0xff]  }
 0x3f6   : > { %v2095_v63 = vpop.xlane.xlu1 %2094 }
 0x3f7   : > { %v9391_v55 = vpop.eup %7857  ;;  %v2188_v41 = vmul.f32 1.442695, %v2130_v10  ;;  %v2131_v53 = vsub.f32 %v9288_v23, %v2095_v63  ;;  %7867 = vpow2.f32 %v2186_v1  ;;  %v7515_v1 = vld [vmem:[#allocation10 + $0x4] ss:$8 sps:$4 sm:$0xff]   ;;  %v7518_v10 = vld [vmem:[#allocation10 + $0x14] ss:$8 sps:$4 sm:$0xff]  }
 0x3f8   : > { %2238 = vadd.xlane.f32.xlu1 %v9389_v19  ;;  %2240 = vadd.xlane.f32.xlu0 %v9391_v55  ;;  %v2097_v15 = vpop.xlane.xlu0 %2096  ;;  %v7516_v63 = vld [vmem:[#allocation10 + $0x10] ss:$8 sps:$4 sm:$0xff]  }
 0x3f9   : > { %7869 = vpow2.f32 %v2188_v41  ;;  %v2190_v62 = vmul.f32 1.442695, %v2131_v53  ;;  %v2132_v31 = vsub.f32 %v9292_v27, %v2097_v15  ;;  %v9397_v54 = vpop.eup %7859  ;;  %2790 = vmatprep.subr.bf16.mxu0 %v7515_v1  ;;  %v7521_v41 = vld [vmem:[#allocation10 + $0x24] ss:$8 sps:$4 sm:$0xff]   ;;  %v7519_v53 = vld [vmem:[#allocation10 + $0x20] ss:$8 sps:$4 sm:$0xff]  }
 0x3fa   : > { %v2103_v21 = vpop.xlane.xlu1 %2102  ;;  %2791 = vmatpush1.bf16.msra.mxu0 %v7513_v59  ;;  %v7524_v15 = vld [vmem:[#allocation10 + $0x34] ss:$8 sps:$4 sm:$0xff]  }
 0x3fb   : > { %v9399_v36 = vpop.eup %7861  ;;  %v2192_v45 = vmul.f32 1.442695, %v2132_v31  ;;  %7871 = vpow2.f32 %v2190_v62  ;;  %v2135_v27 = vsub.f32 %v9296_v29, %v2103_v21  ;;  %2792 = vmatprep.subr.bf16.mxu0 %v7518_v10  ;;  %v7522_v62 = vld [vmem:[#allocation10 + $0x30] ss:$8 sps:$4 sm:$0xff]   ;;  %v7527_v31 = vld [vmem:[#allocation10 + $0x44] ss:$8 sps:$4 sm:$0xff]  }
 0x3fc   : > { %2242 = vadd.xlane.f32.xlu1 %v9397_v54  ;;  %2244 = vadd.xlane.f32.xlu0 %v9399_v36  ;;  %v2101_v23 = vpop.xlane.xlu0 %2100  ;;  %v7525_v21 = vld [vmem:[#allocation10 + $0x40] ss:$8 sps:$4 sm:$0xff]  }
 0x3fd   : > { %7873 = vpow2.f32 %v2192_v45  ;;  %v2134_v5 = vsub.f32 %v9300_v32, %v2101_v23  ;;  %v9404_v16 = vpop.eup %7863  ;;  %v2198_v32 = vmul.f32 1.442695, %v2135_v27  ;;  %v7530_v45 = vld [vmem:[#allocation10 + $0x54] ss:$8 sps:$4 sm:$0xff]   ;;  %v7528_v23 = vld [vmem:[#allocation10 + $0x50] ss:$8 sps:$4 sm:$0xff]  }
 0x3fe   : > { %v2099_v7 = vpop.xlane.xlu1 %2098  ;;  %2793 = vmatpush1.bf16.msra.mxu0 %v7516_v63 }
 0x3ff   : > { %v9406_v57 = vpop.eup %7865  ;;  %v2196_v25 = vmul.f32 1.442695, %v2134_v5  ;;  %v2133_v47 = vsub.f32 %v9231_v11, %v2099_v7  ;;  %2794 = vmatprep.subr.bf16.mxu0 %v7521_v41  ;;  %v7533_v5 = vld [vmem:[#allocation10 + $0x64] ss:$8 sps:$4 sm:$0xff]   ;;  %v7531_v7 = vld [vmem:[#allocation10 + $0x60] ss:$8 sps:$4 sm:$0xff]  }
 0x400   : > { %2246 = vadd.xlane.f32.xlu1 %v9404_v16  ;;  %2248 = vadd.xlane.f32.xlu0 %v9406_v57 }
 0x401   : > { %7875 = vpow2.f32 %v2196_v25  ;;  %v2194_v60 = vmul.f32 1.442695, %v2133_v47  ;;  %v9412_v46 = vpop.eup %7867 }
 0x402   : > { %2795 = vmatpush1.bf16.msra.mxu0 %v7519_v53 }
 0x403   : > { %v9414_v43 = vpop.eup %7869  ;;  %7877 = vpow2.f32 %v2194_v60  ;;  %2796 = vmatprep.subr.bf16.mxu0 %v7524_v15 }
 0x404   : > { %2250 = vadd.xlane.f32.xlu1 %v9412_v46  ;;  %2252 = vadd.xlane.f32.xlu0 %v9414_v43  ;;  %7879 = vpow2.f32 %v2198_v32 }
 0x405   : > { %v9418_v29 = vpop.eup %7871 }
 0x406   : > { %2797 = vmatpush1.bf16.msra.mxu0 %v7522_v62 }
 0x407   : > { %v9420_v61 = vpop.eup %7873  ;;  %2798 = vmatprep.subr.bf16.mxu0 %v7527_v31 }
 0x408   : > { %2254 = vadd.xlane.f32.xlu1 %v9418_v29  ;;  %2256 = vadd.xlane.f32.xlu0 %v9420_v61 }
 0x40a   : > { %2799 = vmatpush1.bf16.msra.mxu0 %v7525_v21 }
 0x40b   : > { %v9424_v11 = vpop.eup %7875  ;;  %2800 = vmatprep.subr.bf16.mxu0 %v7530_v45 }
 0x40c   : > { %2260 = vadd.xlane.f32.xlu0 %v9424_v11 }
 0x40d   : > { %v9427_v49 = vpop.eup %7877 }
 0x40e   : > { %2258 = vadd.xlane.f32.xlu1 %v9427_v49  ;;  %v9430_v52 = vpop.eup %7879  ;;  %2801 = vmatpush1.bf16.msra.mxu0 %v7528_v23 }
 0x40f   : > { %2802 = vmatprep.subr.bf16.mxu0 %v7533_v5 }
 0x412   : > { %2262 = vadd.xlane.f32.xlu1 %v9430_v52  ;;  %2803 = vmatpush1.bf16.msra.mxu0 %v7531_v7 }
 0x45d   : > { %v2201_v27 = vpop.xlane.xlu0 %2200 }
 0x45e   : > { %7881 = vrcp.f32 %v2201_v27 }
 0x461   : > { %v2203_v25 = vpop.xlane.xlu1 %2202  ;;  %v2205_v47 = vpop.xlane.xlu0 %2204 }
 0x462   : > { %7883 = vrcp.f32 %v2203_v25 }
 0x463   : > { %7885 = vrcp.f32 %v2205_v47 }
 0x465   : > { %v2207_v60 = vpop.xlane.xlu1 %2206  ;;  %v2209_v32 = vpop.xlane.xlu0 %2208 }
 0x466   : > { %7887 = vrcp.f32 %v2207_v60 }
 0x467   : > { %7889 = vrcp.f32 %v2209_v32 }
 0x468   : > { %v7882_v10 = vpop.eup %7881 }
 0x469   : > { %v2211_v59 = vpop.xlane.xlu1 %2210  ;;  %v2213_v1 = vpop.xlane.xlu0 %2212  ;;  %v2296_v15 = vmul.f32 %v7882_v10, %v9312_v51 }
 0x46a   : > { %7891 = vrcp.f32 %v2211_v59 }
 0x46b   : > { %7893 = vrcp.f32 %v2213_v1 }
 0x46c   : > { %v7884_v63 = vpop.eup %7883 }
 0x46d   : > { %v2215_v41 = vpop.xlane.xlu1 %2214  ;;  %v2217_v53 = vpop.xlane.xlu0 %2216  ;;  %v2297_v62 = vmul.f32 %v7884_v63, %v9319_v8 }
 0x46e   : > { %v7886_v31 = vpop.eup %7885  ;;  %7895 = vrcp.f32 %v2215_v41 }
 0x46f   : > { %v2328_v21 = vpack.c.bf16 %v2297_v62, %v2296_v15  ;;  %7897 = vrcp.f32 %v2217_v53  ;;  %v2298_v23 = vmul.f32 %v7886_v31, %v9317_v20 }
 0x470   : > { %v7888_v45 = vpop.eup %7887 }
 0x471   : > { %v2299_v5 = vmul.f32 %v7888_v45, %v9325_v18  ;;  %v2219_v7 = vpop.xlane.xlu1 %2218  ;;  %7095 = vmatprep.mubr.bf16.mxu1 %v2328_v21  ;;  %v2221_v27 = vpop.xlane.xlu0 %2220 }
 0x472   : > { %v7890_v25 = vpop.eup %7889  ;;  %7899 = vrcp.f32 %v2219_v7 }
 0x473   : > { %v2329_v47 = vpack.c.bf16 %v2299_v5, %v2298_v23  ;;  %7901 = vrcp.f32 %v2221_v27  ;;  %v2300_v32 = vmul.f32 %v7890_v25, %v9327_v26 }
 0x474   : > { %v7892_v60 = vpop.eup %7891 }
 0x475   : > { %v2223_v51 = vpop.xlane.xlu1 %2222  ;;  %7096 = vmatmul.mubr.bf16.vlgmr.msra.gmra.mrb[48].mxu1 %v2329_v47  ;;  %v2225_v8 = vpop.xlane.xlu0 %2224  ;;  %v2301_v59 = vmul.f32 %v7892_v60, %v9333_v50 }
 0x476   : > { %v7894_v1 = vpop.eup %7893  ;;  %7903 = vrcp.f32 %v2223_v51  ;;  %7112 = vmatpush3.bf16.msra.mxu1 %v9115_v39 }
 0x477   : > { %7113 = vmatprep.subr.bf16.mxu1 %v9127_v35  ;;  %v2330_v20 = vpack.c.bf16 %v2301_v59, %v2300_v32  ;;  %7905 = vrcp.f32 %v2225_v8  ;;  %v2302_v41 = vmul.f32 %v7894_v1, %v9335_v58 }
 0x478   : > { %v7896_v18 = vpop.eup %7895 }
 0x479   : > { %v2227_v10 = vpop.xlane.xlu1 %2226  ;;  %7099 = vmatprep.mubr.bf16.mxu1 %v2330_v20  ;;  %v2229_v63 = vpop.xlane.xlu0 %2228  ;;  %v2303_v53 = vmul.f32 %v7896_v18, %v9341_v44 }
 0x47a   : > { %v7898_v15 = vpop.eup %7897  ;;  %7907 = vrcp.f32 %v2227_v10  ;;  %7114 = vmatpush3.bf16.msra.mxu1 %v9127_v35 }
 0x47b   : > { %7115 = vmatprep.subr.bf16.mxu1 %v9133_v38  ;;  %v2331_v26 = vpack.c.bf16 %v2303_v53, %v2302_v41  ;;  %7909 = vrcp.f32 %v2229_v63  ;;  %v2304_v31 = vmul.f32 %v7898_v15, %v9343_v13 }
 0x47c   : > { %v7900_v39 = vpop.eup %7899 }
 0x47d   : > { %v2231_v50 = vpop.xlane.xlu1 %2230  ;;  %7100 = vmatmul.mubr.bf16.gmra.mrb[52].mxu1 %v2331_v26  ;;  %v2233_v62 = vpop.xlane.xlu0 %2232  ;;  %v2305_v21 = vmul.f32 %v7900_v39, %v9349_v22 }
 0x47e   : > { %v7902_v45 = vpop.eup %7901  ;;  %7911 = vrcp.f32 %v2231_v50  ;;  %7116 = vmatpush3.bf16.msra.mxu1 %v9133_v38 }
 0x47f   : > { %7117 = vmatprep.subr.bf16.mxu1 %v9139_v6  ;;  %v2332_v58 = vpack.c.bf16 %v2305_v21, %v2304_v31  ;;  %7913 = vrcp.f32 %v2233_v62  ;;  %v2306_v5 = vmul.f32 %v7902_v45, %v9351_v48 }
 0x480   : > { %v7904_v35 = vpop.eup %7903 }
 0x481   : > { %v2235_v44 = vpop.xlane.xlu1 %2234  ;;  %7103 = vmatprep.mubr.bf16.mxu1 %v2332_v58  ;;  %v2237_v23 = vpop.xlane.xlu0 %2236  ;;  %v2307_v7 = vmul.f32 %v7904_v35, %v9357_v12 }
 0x482   : > { %v7906_v27 = vpop.eup %7905  ;;  %7915 = vrcp.f32 %v2235_v44  ;;  %7118 = vmatpush3.bf16.msra.mxu1 %v9139_v6 }
 0x483   : > { %7119 = vmatprep.subr.bf16.mxu1 %v9145_v40  ;;  %v2333_v13 = vpack.c.bf16 %v2307_v7, %v2306_v5  ;;  %7917 = vrcp.f32 %v2237_v23  ;;  %v2308_v47 = vmul.f32 %v7906_v27, %v9359_v33 }
 0x484   : > { %v7908_v38 = vpop.eup %7907 }
 0x485   : > { %v2239_v22 = vpop.xlane.xlu1 %2238  ;;  %7104 = vmatmul.mubr.bf16.gmra.mrb[56].mxu1 %v2333_v13  ;;  %v2241_v25 = vpop.xlane.xlu0 %2240  ;;  %v2309_v60 = vmul.f32 %v7908_v38, %v9365_v3 }
 0x486   : > { %v7910_v51 = vpop.eup %7909  ;;  %7919 = vrcp.f32 %v2239_v22  ;;  %7120 = vmatpush3.bf16.msra.mxu1 %v9145_v40 }
 0x487   : > { %7121 = vmatprep.subr.bf16.mxu1 %v9151_v37  ;;  %v2334_v48 = vpack.c.bf16 %v2309_v60, %v2308_v47  ;;  %7921 = vrcp.f32 %v2241_v25  ;;  %v2310_v32 = vmul.f32 %v7910_v51, %v9367_v56 }
 0x488   : > { %v7912_v6 = vpop.eup %7911 }
 0x489   : > { %v2243_v12 = vpop.xlane.xlu1 %2242  ;;  %7107 = vmatprep.mubr.bf16.mxu1 %v2334_v48  ;;  %v2245_v8 = vpop.xlane.xlu0 %2244  ;;  %v2311_v59 = vmul.f32 %v7912_v6, %v9373_v42 }
 0x48a   : > { %v7914_v1 = vpop.eup %7913  ;;  %7923 = vrcp.f32 %v2243_v12  ;;  %7122 = vmatpush3.bf16.msra.mxu1 %v9151_v37 }
 0x48b   : > { %7123 = vmatprep.subr.bf16.mxu1 %v9157_v9  ;;  %v2335_v33 = vpack.c.bf16 %v2311_v59, %v2310_v32  ;;  %7925 = vrcp.f32 %v2245_v8  ;;  %v2312_v18 = vmul.f32 %v7914_v1, %v9375_v34  ;;  %v7539_v8 = vld [vmem:[#allocation10 + $0x84] ss:$8 sps:$4 sm:$0xff]   ;;  %v7537_v32 = vld [vmem:[#allocation10 + $0x80] ss:$8 sps:$4 sm:$0xff]  }
 0x48c   : > { %v7916_v40 = vpop.eup %7915  ;;  %v7545_v59 = vld [vmem:[#allocation10 + $0xa4] ss:$8 sps:$4 sm:$0xff]   ;;  %v7543_v1 = vld [vmem:[#allocation10 + $0xa0] ss:$8 sps:$4 sm:$0xff]  }
 0x48d   : > { %v2247_v3 = vpop.xlane.xlu1 %2246  ;;  %7108 = vmatmul.mubr.bf16.gmra.mrb[60].mxu1 %v2335_v33  ;;  %v2249_v20 = vpop.xlane.xlu0 %2248  ;;  %v2313_v10 = vmul.f32 %v7916_v40, %v9381_v28  ;;  %v7551_v33 = vld [vmem:[#allocation10 + $0xc4] ss:$8 sps:$4 sm:$0xff]   ;;  %v7549_v40 = vld [vmem:[#allocation10 + $0xc0] ss:$8 sps:$4 sm:$0xff]  }
 0x48e   : > { %v7918_v63 = vpop.eup %7917  ;;  %7927 = vrcp.f32 %v2247_v3  ;;  %7124 = vmatpush3.bf16.msra.mxu1 %v9157_v9  ;;  %v7554_v3 = vld [vmem:[#allocation10 + $0xd4] ss:$8 sps:$4 sm:$0xff]  }
 0x48f   : > { %7125 = vmatprep.subr.bf16.mxu1 %v9163_v24  ;;  %v2336_v56 = vpack.c.bf16 %v2313_v10, %v2312_v18  ;;  %7929 = vrcp.f32 %v2249_v20  ;;  %v2314_v42 = vmul.f32 %v7918_v63, %v9383_v30  ;;  %v7552_v20 = vld [vmem:[#allocation10 + $0xd0] ss:$8 sps:$4 sm:$0xff]   ;;  %v7557_v18 = vld [vmem:[#allocation10 + $0xe4] ss:$8 sps:$4 sm:$0xff]   ;;  %v7555_v10 = vld [vmem:[#allocation10 + $0xe0] ss:$8 sps:$4 sm:$0xff]  }
 0x490   : > { %v7920_v37 = vpop.eup %7919  ;;  %v7560_v63 = vld [vmem:[#allocation10 + $0xf4] ss:$8 sps:$4 sm:$0xff]  }
 0x491   : > { %v2315_v41 = vmul.f32 %v7920_v37, %v9389_v19  ;;  %v2251_v53 = vpop.xlane.xlu1 %2250  ;;  %7127 = vmatprep.mubr.bf16.mxu1 %v2336_v56  ;;  %v2253_v15 = vpop.xlane.xlu0 %2252  ;;  %v7558_v56 = vld [vmem:[#allocation10 + $0xf0] ss:$8 sps:$4 sm:$0xff]  }
 0x492   : > { %v7922_v26 = vpop.eup %7921  ;;  %7931 = vrcp.f32 %v2251_v53  ;;  %7126 = vmatpush3.bf16.msra.mxu1 %v9163_v24 }
 0x493   : > { %v2337_v34 = vpack.c.bf16 %v2315_v41, %v2314_v42  ;;  %7933 = vrcp.f32 %v2253_v15  ;;  %v2316_v50 = vmul.f32 %v7922_v26, %v9391_v55 }
 0x494   : > { %v7924_v28 = vpop.eup %7923 }
 0x495   : > { %v2255_v9 = vpop.xlane.xlu1 %2254  ;;  %7128 = vmatmul.mubr.bf16.vlgmr.msra.gmra.mrb[64].mxu1 %v2337_v34  ;;  %v2257_v39 = vpop.xlane.xlu0 %2256  ;;  %v2317_v62 = vmul.f32 %v7924_v28, %v9397_v54 }
 0x496   : > { %v7926_v30 = vpop.eup %7925  ;;  %7935 = vrcp.f32 %v2255_v9 }
 0x497   : > { %v2338_v19 = vpack.c.bf16 %v2317_v62, %v2316_v50  ;;  %v2318_v21 = vmul.f32 %v7926_v30, %v9399_v36  ;;  %7937 = vrcp.f32 %v2257_v39 }
 0x498   : > { %v7928_v31 = vpop.eup %7927 }
 0x499   : > { %7131 = vmatprep.mubr.bf16.mxu1 %v2338_v19  ;;  %v2319_v45 = vmul.f32 %v7928_v31, %v9404_v16  ;;  %v7930_v24 = vpop.eup %7929  ;;  %v2261_v58 = vpop.xlane.xlu0 %2260 }
 0x49a   : > { %v2320_v55 = vmul.f32 %v7930_v24, %v9406_v57 }
 0x49b   : > { %v2259_v35 = vpop.xlane.xlu1 %2258  ;;  %v2339_v44 = vpack.c.bf16 %v2319_v45, %v2318_v21 }
 0x49c   : > { %v7932_v23 = vpop.eup %7931  ;;  %7939 = vrcp.f32 %v2259_v35 }
 0x49d   : > { %7132 = vmatmul.mubr.bf16.gmra.mrb[68].mxu1 %v2339_v44  ;;  %v2321_v54 = vmul.f32 %v7932_v23, %v9412_v46  ;;  %v7934_v5 = vpop.eup %7933  ;;  %7941 = vrcp.f32 %v2261_v58 }
 0x49e   : > { %v2322_v36 = vmul.f32 %v7934_v5, %v9414_v43  ;;  %v7536_v43 = vld [vmem:[#allocation10 + $0x74] ss:$8 sps:$4 sm:$0xff]  }
 0x49f   : > { %v2263_v7 = vpop.xlane.xlu1 %2262  ;;  %v2340_v27 = vpack.c.bf16 %v2321_v54, %v2320_v55  ;;  %2804 = vmatprep.subr.bf16.mxu0 %v7536_v43 }
 0x4a0   : > { %v7936_v13 = vpop.eup %7935  ;;  %7943 = vrcp.f32 %v2263_v7 }
 0x4a1   : > { %7135 = vmatprep.mubr.bf16.mxu1 %v2340_v27  ;;  %v2323_v16 = vmul.f32 %v7936_v13, %v9418_v29  ;;  %v7938_v22 = vpop.eup %7937  ;;  %v7534_v29 = vld [vmem:[#allocation10 + $0x70] ss:$8 sps:$4 sm:$0xff]  }
 0x4a2   : > { %v2324_v47 = vmul.f32 %v7938_v22, %v9420_v61  ;;  %2805 = vmatpush1.bf16.msra.mxu0 %v7534_v29  ;;  %v7542_v61 = vld [vmem:[#allocation10 + $0x94] ss:$8 sps:$4 sm:$0xff]  }
 0x4a3   : > { %v2341_v38 = vpack.c.bf16 %v2323_v16, %v2322_v36  ;;  %2806 = vmatprep.subr.bf16.mxu0 %v7539_v8 }
 0x4a5   : > { %7136 = vmatmul.mubr.bf16.gmra.mrb[72].mxu1 %v2341_v38 }
 0x4a6   : > { %v7940_v25 = vpop.eup %7939  ;;  %2807 = vmatpush1.bf16.msra.mxu0 %v7537_v32 }
 0x4a7   : > { %v2325_v57 = vmul.f32 %v7940_v25, %v9427_v49  ;;  %v7942_v46 = vpop.eup %7941  ;;  %v7540_v49 = vld [vmem:[#allocation10 + $0x90] ss:$8 sps:$4 sm:$0xff]   ;;  %2808 = vmatprep.subr.bf16.mxu0 %v7542_v61 }
 0x4a8   : > { %v2326_v48 = vmul.f32 %v7942_v46, %v9424_v11  ;;  %v7548_v11 = vld [vmem:[#allocation10 + $0xb4] ss:$8 sps:$4 sm:$0xff]  }
 0x4a9   : > { %v2342_v60 = vpack.c.bf16 %v2325_v57, %v2324_v47 }
 0x4aa   : > { %v7944_v51 = vpop.eup %7943  ;;  %2809 = vmatpush1.bf16.msra.mxu0 %v7540_v49 }
 0x4ab   : > { %7139 = vmatprep.mubr.bf16.mxu1 %v2342_v60  ;;  %v2327_v6 = vmul.f32 %v7944_v51, %v9430_v52  ;;  %2810 = vmatprep.subr.bf16.mxu0 %v7545_v59  ;;  %v7546_v52 = vld [vmem:[#allocation10 + $0xb0] ss:$8 sps:$4 sm:$0xff]  }
 0x4ad   : > { %v2343_v12 = vpack.c.bf16 %v2327_v6, %v2326_v48 }
 0x4ae   : > { %2811 = vmatpush1.bf16.msra.mxu0 %v7543_v1  ;;  %v2618_v1 = vld [vmem:[%s11580_s5] sm:$0x3] }
 0x4af   : > { %7140 = vmatmul.mubr.bf16.gmra.mrb[76].mxu1 %v2343_v12  ;;  %2812 = vmatprep.subr.bf16.mxu0 %v7548_v11  ;;  %v9484_v11 = vrot.slane %v2618_v1, %v8945_v14 }
 0x4b2   : > { %2813 = vmatpush1.bf16.msra.mxu0 %v7546_v52  ;;  %v9487_v52 = vrot.slane %v2618_v1, %v8949_v17 }
 0x4b3   : > { %2814 = vmatprep.subr.bf16.mxu0 %v7551_v33  ;;  %v8137_v33 = vld [vmem:[%s8827_s18] sm:$0xff] }
 0x4b6   : > { %2815 = vmatpush1.bf16.msra.mxu0 %v7549_v40  ;;  %v2903_v40 = vunpack.c.l.bf16 %v8137_v33 }
 0x4b7   : > { %2816 = vmatprep.subr.bf16.mxu0 %v7554_v3 }
 0x4ba   : > { %2817 = vmatpush1.bf16.msra.mxu0 %v7552_v20  ;;  %v2904_v20 = vunpack.c.h.bf16 %v8137_v33 }
 0x4bb   : > { %2818 = vmatprep.subr.bf16.mxu0 %v7557_v18 }
 0x4be   : > { %2819 = vmatpush1.bf16.msra.mxu0 %v7555_v10 }
 0x4bf   : > { %2820 = vmatprep.subr.bf16.mxu0 %v7560_v63  ;;  %v8138_v63 = vld [vmem:[%s8827_s18 + $0x8] sm:$0xff] }
 0x4c2   : > { %2821 = vmatpush1.bf16.msra.mxu0 %v7558_v56  ;;  %v2905_v56 = vunpack.c.l.bf16 %v8138_v63 }
 0x548   : > { %v7097_v37 = vpop.f32.mrb[48].mxu1 }
 0x549   : > { %v2378_v42 = vpop.f32.mrb[49].mxu1 }
 0x54a   : > { %v7098_v41 = vpop.f32.mrb[50].mxu1 }
 0x54b   : > { %v2442_v53 = vpack.c.bf16 %v7098_v41, %v7097_v37  ;;  %v2381_v15 = vpop.f32.mrb[51].mxu1  ;;  %v2906_v41 = vunpack.c.h.bf16 %v8138_v63 }
 0x54c   : > { %v2441_v26 = vpack.c.bf16 %v2381_v15, %v2378_v42 }
 0x550   : > { %v7101_v34 = vpop.f32.mrb[52].mxu1 }
 0x551   : > { %v2394_v28 = vpop.f32.mrb[53].mxu1 }
 0x552   : > { %v7102_v9 = vpop.f32.mrb[54].mxu1 }
 0x553   : > { %v2444_v39 = vpack.c.bf16 %v7102_v9, %v7101_v34  ;;  %v2397_v50 = vpop.f32.mrb[55].mxu1 }
 0x554   : > { %v2443_v62 = vpack.c.bf16 %v2397_v50, %v2394_v28 }
 0x558   : > { %v7105_v30 = vpop.f32.mrb[56].mxu1 }
 0x559   : > { %v2410_v19 = vpop.f32.mrb[57].mxu1 }
 0x55a   : > { %v7106_v31 = vpop.f32.mrb[58].mxu1 }
 0x55b   : > { %v2446_v21 = vpack.c.bf16 %v7106_v31, %v7105_v30  ;;  %v2413_v45 = vpop.f32.mrb[59].mxu1 }
 0x55c   : > { %v2445_v24 = vpack.c.bf16 %v2413_v45, %v2410_v19 }
 0x560   : > { %v7109_v58 = vpop.f32.mrb[60].mxu1 }
 0x561   : > { %v2426_v35 = vpop.f32.mrb[61].mxu1 }
 0x562   : > { %v7110_v44 = vpop.f32.mrb[62].mxu1 }
 0x563   : > { %v2448_v23 = vpack.c.bf16 %v7110_v44, %v7109_v58  ;;  %v2429_v55 = vpop.f32.mrb[63].mxu1  ;;  %v8140_v58 = vld [vmem:[%s8827_s18 + $0x18] sm:$0xff] }
 0x564   : > { %v2447_v54 = vpack.c.bf16 %v2429_v55, %v2426_v35  ;;  %v2909_v35 = vunpack.c.l.bf16 %v8140_v58  ;;  %v2910_v55 = vunpack.c.h.bf16 %v8140_v58  ;;  %v8145_v58 = vld [vmem:[%s8827_s18 + $0x40] sm:$0xff] }
 0x568   : > { %v7129_v5 = vpop.f32.mrb[64].mxu1 }
 0x569   : > { %v2491_v7 = vpop.f32.mrb[65].mxu1 }
 0x56a   : > { %v7130_v27 = vpop.f32.mrb[66].mxu1 }
 0x56b   : > { %v2555_v13 = vpack.c.bf16 %v7130_v27, %v7129_v5  ;;  %v2494_v36 = vpop.f32.mrb[67].mxu1 }
 0x56c   : > { %v2554_v16 = vpack.c.bf16 %v2494_v36, %v2491_v7 }
 0x56e   : > { %2822 = vmatprep.mubr.bf16.mxu0 %v2554_v16 }
 0x56f   : > { %2823 = vmatmul.mubr.bf16.vlgmr.msra.gmra.mrb[80].mxu0 %v2441_v26 }
 0x570   : > { %v7133_v38 = vpop.f32.mrb[68].mxu1  ;;  %2832 = vmatprep.mubr.bf16.mxu0 %v2555_v13 }
 0x571   : > { %v2507_v22 = vpop.f32.mrb[69].mxu1 }
 0x572   : > { %v7134_v25 = vpop.f32.mrb[70].mxu1 }
 0x573   : > { %v2557_v47 = vpack.c.bf16 %v7134_v25, %v7133_v38  ;;  %v2510_v57 = vpop.f32.mrb[71].mxu1 }
 0x574   : > { %v2556_v46 = vpack.c.bf16 %v2510_v57, %v2507_v22  ;;  %v8141_v22 = vld [vmem:[%s8827_s18 + $0x20] sm:$0xff] }
 0x575   : > { %v2911_v25 = vunpack.c.l.bf16 %v8141_v22  ;;  %v2912_v57 = vunpack.c.h.bf16 %v8141_v22 }
 0x577   : > { %2833 = vmatmul.mubr.bf16.gmra.mrb[84].mxu0 %v2442_v53 }
 0x578   : > { %v7137_v60 = vpop.f32.mrb[72].mxu1  ;;  %2842 = vmatprep.mubr.bf16.mxu0 %v2556_v46 }
 0x579   : > { %v2523_v51 = vpop.f32.mrb[73].mxu1 }
 0x57a   : > { %v7138_v48 = vpop.f32.mrb[74].mxu1 }
 0x57b   : > { %v2559_v6 = vpack.c.bf16 %v7138_v48, %v7137_v60  ;;  %v2526_v12 = vpop.f32.mrb[75].mxu1  ;;  %v8142_v48 = vld [vmem:[%s8827_s18 + $0x28] sm:$0xff] }
 0x57c   : > { %v2558_v43 = vpack.c.bf16 %v2526_v12, %v2523_v51 }
 0x57f   : > { %2843 = vmatmul.mubr.bf16.gmra.mrb[88].mxu0 %v2443_v62  ;;  %v8139_v62 = vld [vmem:[%s8827_s18 + $0x10] sm:$0xff] }
 0x580   : > { %2852 = vmatprep.mubr.bf16.mxu0 %v2557_v47  ;;  %v2907_v30 = vunpack.c.l.bf16 %v8139_v62  ;;  %v2908_v31 = vunpack.c.h.bf16 %v8139_v62 }
 0x582   : > { %v7141_v29 = vpop.f32.mrb[76].mxu1 }
 0x583   : > { %v2539_v8 = vpop.f32.mrb[77].mxu1 }
 0x584   : > { %v7142_v32 = vpop.f32.mrb[78].mxu1 }
 0x585   : > { %v2561_v61 = vpack.c.bf16 %v7142_v32, %v7141_v29  ;;  %v2542_v49 = vpop.f32.mrb[79].mxu1  ;;  %v2914_v29 = vunpack.c.h.bf16 %v8142_v48 }
 0x586   : > { %v2560_v59 = vpack.c.bf16 %v2542_v49, %v2539_v8 }
 0x587   : > { %2853 = vmatmul.mubr.bf16.gmra.mrb[92].mxu0 %v2444_v39 }
 0x588   : > { %2862 = vmatprep.mubr.bf16.mxu0 %v2558_v43 }
 0x58f   : > { %2863 = vmatmul.mubr.bf16.gmra.mrb[96].mxu0 %v2445_v24 }
 0x590   : > { %2872 = vmatprep.mubr.bf16.mxu0 %v2559_v6  ;;  %v2913_v6 = vunpack.c.l.bf16 %v8142_v48 }
 0x597   : > { %2873 = vmatmul.mubr.bf16.gmra.mrb[100].mxu0 %v2446_v21 }
 0x598   : > { %2882 = vmatprep.mubr.bf16.mxu0 %v2560_v59 }
 0x59f   : > { %2883 = vmatmul.mubr.bf16.gmra.mrb[104].mxu0 %v2447_v54 }
 0x5a0   : > { %2892 = vmatprep.mubr.bf16.mxu0 %v2561_v61 }
 0x5a7   : > { %2893 = vmatmul.mubr.bf16.gmra.mrb[108].mxu0 %v2448_v23 }
 0x642   : > { %v2824_v3 = vpop.f32.mrb[80].mxu0 }
 0x643   : > { %v2825_v18 = vadd.f32 %v2824_v3, %v9484_v11  ;;  %v2826_v10 = vpop.f32.mrb[81].mxu0  ;;  %v8143_v3 = vld [vmem:[%s8827_s18 + $0x30] sm:$0xff] }
 0x644   : > { %v2827_v37 = vadd.f32 %v2826_v10, %v9487_v52  ;;  %v2828_v42 = vpop.f32.mrb[82].mxu0  ;;  %v2916_v10 = vunpack.c.h.bf16 %v8143_v3 }
 0x645   : > { %v9493_v53 = vadd.f32 %v2903_v40, %v2825_v18  ;;  %v2829_v15 = vadd.f32 %v2828_v42, %v9484_v11  ;;  %v2830_v26 = vpop.f32.mrb[83].mxu0  ;;  %v8144_v42 = vld [vmem:[%s8827_s18 + $0x38] sm:$0xff] }
 0x646   : > { %v9496_v34 = vadd.f32 %v2904_v20, %v2827_v37  ;;  %v2831_v28 = vadd.f32 %v2830_v26, %v9487_v52  ;;  %v2915_v20 = vunpack.c.l.bf16 %v8143_v3 }
 0x647   : > { %v9499_v9 = vadd.f32 %v2905_v56, %v2829_v15 }
 0x648   : > { %v9501_v39 = vadd.f32 %v2906_v41, %v2831_v28  ;;  %v2969_v50 = vadd.f32 %v9496_v34, %v9493_v53  ;;  %v2917_v41 = vunpack.c.l.bf16 %v8144_v42  ;;  %v2918_v28 = vunpack.c.h.bf16 %v8144_v42 }
 0x64a   : > { %v2834_v19 = vpop.f32.mrb[84].mxu0  ;;  %2970 = vadd.xlane.f32.xlu0 %v2969_v50  ;;  %v2972_v21 = vadd.f32 %v9501_v39, %v9499_v9 }
 0x64b   : > { %v2835_v45 = vadd.f32 %v2834_v19, %v9484_v11  ;;  %v2836_v24 = vpop.f32.mrb[85].mxu0 }
 0x64c   : > { %v2837_v44 = vadd.f32 %v2836_v24, %v9487_v52  ;;  %v2838_v23 = vpop.f32.mrb[86].mxu0  ;;  %2973 = vadd.xlane.f32.xlu1 %v2972_v21 }
 0x64d   : > { %v9511_v54 = vadd.f32 %v2907_v30, %v2835_v45  ;;  %v2839_v5 = vadd.f32 %v2838_v23, %v9484_v11  ;;  %v2840_v7 = vpop.f32.mrb[87].mxu0  ;;  %v2920_v23 = vunpack.c.h.bf16 %v8145_v58 }
 0x64e   : > { %v9514_v27 = vadd.f32 %v2908_v31, %v2837_v44  ;;  %v2841_v13 = vadd.f32 %v2840_v7, %v9487_v52 }
 0x64f   : > { %v9517_v36 = vadd.f32 %v2909_v35, %v2839_v5  ;;  %v2919_v35 = vunpack.c.l.bf16 %v8145_v58 }
 0x650   : > { %v9519_v16 = vadd.f32 %v2910_v55, %v2841_v13  ;;  %v2975_v38 = vadd.f32 %v9514_v27, %v9511_v54  ;;  %v8146_v13 = vld [vmem:[%s8827_s18 + $0x48] sm:$0xff] }
 0x652   : > { %2976 = vadd.xlane.f32.xlu0 %v2975_v38  ;;  %v2844_v47 = vpop.f32.mrb[88].mxu0  ;;  %v2978_v46 = vadd.f32 %v9519_v16, %v9517_v36  ;;  %v2921_v38 = vunpack.c.l.bf16 %v8146_v13 }
 0x653   : > { %v2845_v60 = vadd.f32 %v2844_v47, %v9484_v11  ;;  %v2846_v51 = vpop.f32.mrb[89].mxu0  ;;  %v2922_v47 = vunpack.c.h.bf16 %v8146_v13 }
 0x654   : > { %v2847_v12 = vadd.f32 %v2846_v51, %v9487_v52  ;;  %2979 = vadd.xlane.f32.xlu1 %v2978_v46  ;;  %v2848_v43 = vpop.f32.mrb[90].mxu0 }
 0x655   : > { %v9529_v8 = vadd.f32 %v2911_v25, %v2845_v60  ;;  %v2849_v32 = vadd.f32 %v2848_v43, %v9484_v11  ;;  %v2850_v61 = vpop.f32.mrb[91].mxu0 }
 0x656   : > { %v9532_v49 = vadd.f32 %v2912_v57, %v2847_v12  ;;  %v2851_v59 = vadd.f32 %v2850_v61, %v9487_v52 }
 0x657   : > { %v9535_v1 = vadd.f32 %v2913_v6, %v2849_v32 }
 0x658   : > { %v9537_v33 = vadd.f32 %v2914_v29, %v2851_v59  ;;  %v2981_v40 = vadd.f32 %v9532_v49, %v9529_v8  ;;  %v8147_v29 = vld [vmem:[%s8827_s18 + $0x50] sm:$0xff] }
 0x659   : > { %v2923_v32 = vunpack.c.l.bf16 %v8147_v29  ;;  %v2924_v59 = vunpack.c.h.bf16 %v8147_v29 }
 0x65a   : > { %v2854_v18 = vpop.f32.mrb[92].mxu0  ;;  %2982 = vadd.xlane.f32.xlu0 %v2981_v40  ;;  %v2984_v63 = vadd.f32 %v9537_v33, %v9535_v1 }
 0x65b   : > { %v2855_v56 = vadd.f32 %v2854_v18, %v9484_v11  ;;  %v2856_v37 = vpop.f32.mrb[93].mxu0  ;;  %v8148_v18 = vld [vmem:[%s8827_s18 + $0x58] sm:$0xff] }
 0x65c   : > { %v2857_v15 = vadd.f32 %v2856_v37, %v9487_v52  ;;  %v2858_v26 = vpop.f32.mrb[94].mxu0  ;;  %2985 = vadd.xlane.f32.xlu1 %v2984_v63  ;;  %v2926_v37 = vunpack.c.h.bf16 %v8148_v18 }
 0x65d   : > { %v9547_v50 = vadd.f32 %v2915_v20, %v2855_v56  ;;  %v2859_v62 = vadd.f32 %v2858_v26, %v9484_v11  ;;  %v2860_v30 = vpop.f32.mrb[95].mxu0 }
 0x65e   : > { %v9550_v19 = vadd.f32 %v2916_v10, %v2857_v15  ;;  %v2861_v31 = vadd.f32 %v2860_v30, %v9487_v52  ;;  %v2925_v10 = vunpack.c.l.bf16 %v8148_v18 }
 0x65f   : > { %v9553_v21 = vadd.f32 %v2917_v41, %v2859_v62 }
 0x660   : > { %v9555_v45 = vadd.f32 %v2918_v28, %v2861_v31  ;;  %v2987_v24 = vadd.f32 %v9550_v19, %v9547_v50 }
 0x662   : > { %2988 = vadd.xlane.f32.xlu0 %v2987_v24  ;;  %v2864_v44 = vpop.f32.mrb[96].mxu0  ;;  %v2990_v55 = vadd.f32 %v9555_v45, %v9553_v21  ;;  %v8149_v24 = vld [vmem:[%s8827_s18 + $0x60] sm:$0xff] }
 0x663   : > { %v2865_v5 = vadd.f32 %v2864_v44, %v9484_v11  ;;  %v2866_v7 = vpop.f32.mrb[97].mxu0  ;;  %v2927_v58 = vunpack.c.l.bf16 %v8149_v24  ;;  %v2928_v44 = vunpack.c.h.bf16 %v8149_v24 }
 0x664   : > { %v2867_v22 = vadd.f32 %v2866_v7, %v9487_v52  ;;  %2991 = vadd.xlane.f32.xlu1 %v2990_v55  ;;  %v2868_v25 = vpop.f32.mrb[98].mxu0  ;;  %v8150_v7 = vld [vmem:[%s8827_s18 + $0x68] sm:$0xff] }
 0x665   : > { %v9565_v57 = vadd.f32 %v2919_v35, %v2865_v5  ;;  %v2869_v46 = vadd.f32 %v2868_v25, %v9484_v11  ;;  %v2870_v60 = vpop.f32.mrb[99].mxu0  ;;  %v2929_v13 = vunpack.c.l.bf16 %v8150_v7  ;;  %v2930_v25 = vunpack.c.h.bf16 %v8150_v7 }
 0x666   : > { %v9568_v51 = vadd.f32 %v2920_v23, %v2867_v22  ;;  %v2871_v48 = vadd.f32 %v2870_v60, %v9487_v52 }
 0x667   : > { %v9571_v6 = vadd.f32 %v2921_v38, %v2869_v46 }
 0x668   : > { %v9573_v12 = vadd.f32 %v2922_v47, %v2871_v48  ;;  %v2993_v43 = vadd.f32 %v9568_v51, %v9565_v57 }
 0x66a   : > { %v2874_v61 = vpop.f32.mrb[100].mxu0  ;;  %2994 = vadd.xlane.f32.xlu0 %v2993_v43  ;;  %v2996_v40 = vadd.f32 %v9573_v12, %v9571_v6 }
 0x66b   : > { %v2875_v3 = vadd.f32 %v2874_v61, %v9484_v11  ;;  %v2876_v20 = vpop.f32.mrb[101].mxu0 }
 0x66c   : > { %v2877_v63 = vadd.f32 %v2876_v20, %v9487_v52  ;;  %v2878_v56 = vpop.f32.mrb[102].mxu0  ;;  %2997 = vadd.xlane.f32.xlu1 %v2996_v40 }
 0x66d   : > { %v9583_v42 = vadd.f32 %v2923_v32, %v2875_v3  ;;  %v2879_v41 = vadd.f32 %v2878_v56, %v9484_v11  ;;  %v2880_v15 = vpop.f32.mrb[103].mxu0  ;;  %v8152_v56 = vld [vmem:[%s8827_s18 + $0x78] sm:$0xff] }
 0x66e   : > { %v9586_v26 = vadd.f32 %v2924_v59, %v2877_v63  ;;  %v2881_v28 = vadd.f32 %v2880_v15, %v9487_v52  ;;  %v8151_v59 = vld [vmem:[%s8827_s18 + $0x70] sm:$0xff] }
 0x66f   : > { %v9589_v62 = vadd.f32 %v2925_v10, %v2879_v41  ;;  %v2931_v40 = vunpack.c.l.bf16 %v8151_v59  ;;  %v2932_v20 = vunpack.c.h.bf16 %v8151_v59  ;;  %v7573_v59 = vld [vmem:[#allocation12 + $0x40] ss:$16 sps:$4 sm:$0xff]  }
 0x670   : > { %v9591_v30 = vadd.f32 %v2926_v37, %v2881_v28  ;;  %v2999_v31 = vadd.f32 %v9586_v26, %v9583_v42  ;;  %v2933_v37 = vunpack.c.l.bf16 %v8152_v56  ;;  %v2934_v28 = vunpack.c.h.bf16 %v8152_v56  ;;  %v7590_v56 = vld [vmem:[#allocation12 + $0x8c] ss:$16 sps:$4 sm:$0xff]  }
 0x672   : > { %3000 = vadd.xlane.f32.xlu0 %v2999_v31  ;;  %v2884_v35 = vpop.f32.mrb[104].mxu0  ;;  %v3002_v23 = vadd.f32 %v9591_v30, %v9589_v62 }
 0x673   : > { %v2885_v55 = vadd.f32 %v2884_v35, %v9484_v11  ;;  %v2886_v5 = vpop.f32.mrb[105].mxu0 }
 0x674   : > { %v2887_v38 = vadd.f32 %v2886_v5, %v9487_v52  ;;  %3003 = vadd.xlane.f32.xlu1 %v3002_v23  ;;  %v2888_v22 = vpop.f32.mrb[106].mxu0 }
 0x675   : > { %v9601_v47 = vadd.f32 %v2927_v58, %v2885_v55  ;;  %v2889_v46 = vadd.f32 %v2888_v22, %v9484_v11  ;;  %v2890_v60 = vpop.f32.mrb[107].mxu0  ;;  %v7566_v22 = vld [vmem:[#allocation12 + $0xc] ss:$16 sps:$4 sm:$0xff]  }
 0x676   : > { %v9604_v48 = vadd.f32 %v2928_v44, %v2887_v38  ;;  %v2891_v43 = vadd.f32 %v2890_v60, %v9487_v52  ;;  %v7563_v38 = vld [vmem:[#allocation12 + $0x4] ss:$16 sps:$4 sm:$0xff]   ;;  %3847 = vmatprep.subr.bf16.mxu0 %v7566_v22  ;;  %v7570_v60 = vld [vmem:[#allocation12 + $0x28] ss:$16 sps:$4 sm:$0xff]   ;;  %v7603_v22 = vld [vmem:[#allocation12 + $0xe0] ss:$16 sps:$4 sm:$0xff]  }
 0x677   : > { %v9607_v29 = vadd.f32 %v2929_v13, %v2889_v46  ;;  %v7561_v13 = vld [vmem:[#allocation12] ss:$16 sps:$4 sm:$0xff]   ;;  %3734 = vmatprep.subr.bf16.mxu1 %v7563_v38  ;;  %v7572_v46 = vld [vmem:[#allocation12 + $0x2c] ss:$16 sps:$4 sm:$0xff]   ;;  %v7605_v38 = vld [vmem:[#allocation12 + $0xe4] ss:$16 sps:$4 sm:$0xff]  }
 0x678   : > { %v9609_v32 = vadd.f32 %v2930_v25, %v2891_v43  ;;  %v3005_v61 = vadd.f32 %v9604_v48, %v9601_v47  ;;  %v7569_v25 = vld [vmem:[#allocation12 + $0x24] ss:$16 sps:$4 sm:$0xff]   ;;  %3735 = vmatpush1.bf16.msra.mxu1 %v7561_v13  ;;  %v7600_v13 = vld [vmem:[#allocation12 + $0xc8] ss:$16 sps:$4 sm:$0xff]  }
 0x679   : > { %3736 = vmatprep.subr.bf16.mxu1 %v7569_v25  ;;  %v7575_v43 = vld [vmem:[#allocation12 + $0x44] ss:$16 sps:$4 sm:$0xff]   ;;  %v7606_v25 = vld [vmem:[#allocation12 + $0xe8] ss:$16 sps:$4 sm:$0xff]  }
 0x67a   : > { %v2894_v3 = vpop.f32.mrb[108].mxu0  ;;  %3006 = vadd.xlane.f32.xlu0 %v3005_v61  ;;  %v3008_v18 = vadd.f32 %v9609_v32, %v9607_v29  ;;  %v7578_v61 = vld [vmem:[#allocation12 + $0x4c] ss:$16 sps:$4 sm:$0xff]  }
 0x67b   : > { %v2895_v10 = vadd.f32 %v2894_v3, %v9484_v11  ;;  %v2896_v63 = vpop.f32.mrb[109].mxu0  ;;  %v7581_v3 = vld [vmem:[#allocation12 + $0x64] ss:$16 sps:$4 sm:$0xff]  }
 0x67c   : > { %v2897_v41 = vadd.f32 %v2896_v63, %v9487_v52  ;;  %v2898_v15 = vpop.f32.mrb[110].mxu0  ;;  %3009 = vadd.xlane.f32.xlu1 %v3008_v18  ;;  %v7579_v18 = vld [vmem:[#allocation12 + $0x60] ss:$16 sps:$4 sm:$0xff]   ;;  %v7587_v63 = vld [vmem:[#allocation12 + $0x84] ss:$16 sps:$4 sm:$0xff]  }
 0x67d   : > { %v9619_v31 = vadd.f32 %v2931_v40, %v2895_v10  ;;  %v2899_v24 = vadd.f32 %v2898_v15, %v9484_v11  ;;  %v2900_v58 = vpop.f32.mrb[111].mxu0  ;;  %v7564_v11 = vld [vmem:[#allocation12 + $0x8] ss:$16 sps:$4 sm:$0xff]   ;;  %v7593_v15 = vld [vmem:[#allocation12 + $0xa4] ss:$16 sps:$4 sm:$0xff]  }
 0x67e   : > { %v9622_v35 = vadd.f32 %v2932_v20, %v2897_v41  ;;  %v2901_v44 = vadd.f32 %v2900_v58, %v9487_v52  ;;  %v7567_v52 = vld [vmem:[#allocation12 + $0x20] ss:$16 sps:$4 sm:$0xff]   ;;  %3848 = vmatpush1.bf16.msra.mxu0 %v7564_v11  ;;  %v7576_v40 = vld [vmem:[#allocation12 + $0x48] ss:$16 sps:$4 sm:$0xff]   ;;  %v7584_v20 = vld [vmem:[#allocation12 + $0x6c] ss:$16 sps:$4 sm:$0xff]  }
 0x67f   : > { %v9625_v23 = vadd.f32 %v2933_v37, %v2899_v24  ;;  %3849 = vmatprep.subr.bf16.mxu0 %v7572_v46  ;;  %3737 = vmatpush1.bf16.msra.mxu1 %v7567_v52  ;;  %v7582_v10 = vld [vmem:[#allocation12 + $0x68] ss:$16 sps:$4 sm:$0xff]   ;;  %v7585_v37 = vld [vmem:[#allocation12 + $0x80] ss:$16 sps:$4 sm:$0xff]   ;;  %v7608_v11 = vld [vmem:[#allocation12 + $0xec] ss:$16 sps:$4 sm:$0xff]  }
 0x680   : > { %v9627_v55 = vadd.f32 %v2934_v28, %v2901_v44  ;;  %v3011_v5 = vadd.f32 %v9622_v35, %v9619_v31  ;;  %3738 = vmatprep.subr.bf16.mxu1 %v7575_v43  ;;  %v7588_v41 = vld [vmem:[#allocation12 + $0x88] ss:$16 sps:$4 sm:$0xff]   ;;  %v7596_v28 = vld [vmem:[#allocation12 + $0xac] ss:$16 sps:$4 sm:$0xff]   ;;  %v7591_v24 = vld [vmem:[#allocation12 + $0xa0] ss:$16 sps:$4 sm:$0xff]  }
 0x681   : > { %v7594_v58 = vld [vmem:[#allocation12 + $0xa8] ss:$16 sps:$4 sm:$0xff]   ;;  %v7599_v44 = vld [vmem:[#allocation12 + $0xc4] ss:$16 sps:$4 sm:$0xff]   ;;  %v7614_v52 = vld [vmem:[#allocation12 + $0x10c] ss:$16 sps:$4 sm:$0xff]  }
 0x682   : > { %3012 = vadd.xlane.f32.xlu0 %v3011_v5  ;;  %v3014_v7 = vadd.f32 %v9627_v55, %v9625_v23  ;;  %3850 = vmatpush1.bf16.msra.mxu0 %v7570_v60  ;;  %v7602_v5 = vld [vmem:[#allocation12 + $0xcc] ss:$16 sps:$4 sm:$0xff]   ;;  %v7611_v46 = vld [vmem:[#allocation12 + $0x104] ss:$16 sps:$4 sm:$0xff]   ;;  %v7609_v60 = vld [vmem:[#allocation12 + $0x100] ss:$16 sps:$4 sm:$0xff]  }
 0x683   : > { %3851 = vmatprep.subr.bf16.mxu0 %v7578_v61  ;;  %3739 = vmatpush1.bf16.msra.mxu1 %v7573_v59  ;;  %v7612_v43 = vld [vmem:[#allocation12 + $0x108] ss:$16 sps:$4 sm:$0xff]   ;;  %v7617_v61 = vld [vmem:[#allocation12 + $0x124] ss:$16 sps:$4 sm:$0xff]   ;;  %v7620_v59 = vld [vmem:[#allocation12 + $0x12c] ss:$16 sps:$4 sm:$0xff]  }
 0x684   : > { %3015 = vadd.xlane.f32.xlu1 %v3014_v7  ;;  %3740 = vmatprep.subr.bf16.mxu1 %v7581_v3  ;;  %v7597_v7 = vld [vmem:[#allocation12 + $0xc0] ss:$16 sps:$4 sm:$0xff]   ;;  %v7618_v3 = vld [vmem:[#allocation12 + $0x128] ss:$16 sps:$4 sm:$0xff]  }
 0x686   : > { %3852 = vmatpush1.bf16.msra.mxu0 %v7576_v40  ;;  %v7615_v40 = vld [vmem:[#allocation12 + $0x120] ss:$16 sps:$4 sm:$0xff]  }
 0x687   : > { %3853 = vmatprep.subr.bf16.mxu0 %v7584_v20  ;;  %3741 = vmatpush1.bf16.msra.mxu1 %v7579_v18 }
 0x688   : > { %3742 = vmatprep.subr.bf16.mxu1 %v7587_v63 }
 0x68a   : > { %3854 = vmatpush1.bf16.msra.mxu0 %v7582_v10 }
 0x68b   : > { %3855 = vmatprep.subr.bf16.mxu0 %v7590_v56  ;;  %3743 = vmatpush1.bf16.msra.mxu1 %v7585_v37 }
 0x68c   : > { %3744 = vmatprep.subr.bf16.mxu1 %v7593_v15 }
 0x68e   : > { %3856 = vmatpush1.bf16.msra.mxu0 %v7588_v41 }
 0x68f   : > { %3857 = vmatprep.subr.bf16.mxu0 %v7596_v28  ;;  %3745 = vmatpush1.bf16.msra.mxu1 %v7591_v24 }
 0x690   : > { %3746 = vmatprep.subr.bf16.mxu1 %v7599_v44 }
 0x692   : > { %3858 = vmatpush1.bf16.msra.mxu0 %v7594_v58 }
 0x693   : > { %3859 = vmatprep.subr.bf16.mxu0 %v7602_v5  ;;  %3747 = vmatpush1.bf16.msra.mxu1 %v7597_v7 }
 0x694   : > { %3748 = vmatprep.subr.bf16.mxu1 %v7605_v38 }
 0x696   : > { %3860 = vmatpush1.bf16.msra.mxu0 %v7600_v13 }
 0x697   : > { %3861 = vmatprep.subr.bf16.mxu0 %v7608_v11  ;;  %3749 = vmatpush1.bf16.msra.mxu1 %v7603_v22 }
 0x698   : > { %3750 = vmatprep.subr.bf16.mxu1 %v7611_v46 }
 0x69a   : > { %3862 = vmatpush1.bf16.msra.mxu0 %v7606_v25 }
 0x69b   : > { %3863 = vmatprep.subr.bf16.mxu0 %v7614_v52  ;;  %3751 = vmatpush1.bf16.msra.mxu1 %v7609_v60 }
 0x69c   : > { %3752 = vmatprep.subr.bf16.mxu1 %v7617_v61 }
 0x69e   : > { %3864 = vmatpush1.bf16.msra.mxu0 %v7612_v43 }
 0x69f   : > { %3865 = vmatprep.subr.bf16.mxu0 %v7620_v59  ;;  %3753 = vmatpush1.bf16.msra.mxu1 %v7615_v40 }
 0x6a2   : > { %3866 = vmatpush1.bf16.msra.mxu0 %v7618_v3 }
 0x6d7   : > { %v2971_v20 = vpop.xlane.xlu0 %2970 }
 0x6d8   : > { %v3018_v18 = vmul.f32 0.00390625, %v2971_v20 }
 0x6d9   : > { %v2974_v10 = vpop.xlane.xlu1 %2973 }
 0x6da   : > { %v9634_v63 = vsub.f32 %v9493_v53, %v3018_v18  ;;  %v9637_v56 = vsub.f32 %v9496_v34, %v3018_v18  ;;  %v3019_v37 = vmul.f32 0.00390625, %v2974_v10 }
 0x6dc   : > { %v9640_v41 = vsub.f32 %v9499_v9, %v3019_v37  ;;  %v9643_v15 = vsub.f32 %v9501_v39, %v3019_v37  ;;  %v3066_v28 = vmul.f32 %v9634_v63, %v9634_v63  ;;  %v3067_v24 = vmul.f32 %v9637_v56, %v9637_v56 }
 0x6de   : > { %v3098_v58 = vadd.f32 %v3067_v24, %v3066_v28  ;;  %v3068_v53 = vmul.f32 %v9640_v41, %v9640_v41  ;;  %v3069_v34 = vmul.f32 %v9643_v15, %v9643_v15  ;;  %v7623_v24 = vld [vmem:[#allocation12 + $0x144] ss:$16 sps:$4 sm:$0xff]  }
 0x6df   : > { %v2977_v44 = vpop.xlane.xlu0 %2976  ;;  %3754 = vmatprep.subr.bf16.mxu1 %v7623_v24 }
 0x6e0   : > { %v3020_v5 = vmul.f32 0.00390625, %v2977_v44  ;;  %3099 = vadd.xlane.f32.xlu0 %v3098_v58  ;;  %v3101_v9 = vadd.f32 %v3069_v34, %v3068_v53  ;;  %v7621_v53 = vld [vmem:[#allocation12 + $0x140] ss:$16 sps:$4 sm:$0xff]   ;;  %v7624_v34 = vld [vmem:[#allocation12 + $0x148] ss:$16 sps:$4 sm:$0xff]  }
 0x6e1   : > { %v2980_v7 = vpop.xlane.xlu1 %2979  ;;  %3755 = vmatpush1.bf16.msra.mxu1 %v7621_v53 }
 0x6e2   : > { %v9654_v39 = vsub.f32 %v9511_v54, %v3020_v5  ;;  %v9657_v13 = vsub.f32 %v9514_v27, %v3020_v5  ;;  %v3021_v38 = vmul.f32 0.00390625, %v2980_v7  ;;  %3102 = vadd.xlane.f32.xlu1 %v3101_v9 }
 0x6e4   : > { %v9660_v11 = vsub.f32 %v9517_v36, %v3021_v38  ;;  %v9663_v22 = vsub.f32 %v9519_v16, %v3021_v38  ;;  %v3070_v25 = vmul.f32 %v9654_v39, %v9654_v39  ;;  %v3071_v46 = vmul.f32 %v9657_v13, %v9657_v13  ;;  %v7629_v38 = vld [vmem:[#allocation12 + $0x164] ss:$16 sps:$4 sm:$0xff]  }
 0x6e5   : > { %3756 = vmatprep.subr.bf16.mxu1 %v7629_v38 }
 0x6e6   : > { %v3104_v52 = vadd.f32 %v3071_v46, %v3070_v25  ;;  %v3072_v54 = vmul.f32 %v9660_v11, %v9660_v11  ;;  %v3073_v27 = vmul.f32 %v9663_v22, %v9663_v22  ;;  %v7632_v25 = vld [vmem:[#allocation12 + $0x16c] ss:$16 sps:$4 sm:$0xff]  }
 0x6e7   : > { %v2983_v60 = vpop.xlane.xlu0 %2982 }
 0x6e8   : > { %v3022_v43 = vmul.f32 0.00390625, %v2983_v60  ;;  %3105 = vadd.xlane.f32.xlu0 %v3104_v52  ;;  %v3107_v36 = vadd.f32 %v3073_v27, %v3072_v54  ;;  %v7630_v27 = vld [vmem:[#allocation12 + $0x168] ss:$16 sps:$4 sm:$0xff]  }
 0x6e9   : > { %v2986_v61 = vpop.xlane.xlu1 %2985 }
 0x6ea   : > { %v9674_v16 = vsub.f32 %v9529_v8, %v3022_v43  ;;  %v9677_v59 = vsub.f32 %v9532_v49, %v3022_v43  ;;  %v3023_v40 = vmul.f32 0.00390625, %v2986_v61  ;;  %3108 = vadd.xlane.f32.xlu1 %v3107_v36  ;;  %v7635_v36 = vld [vmem:[#allocation12 + $0x184] ss:$16 sps:$4 sm:$0xff]   ;;  %v7638_v61 = vld [vmem:[#allocation12 + $0x18c] ss:$16 sps:$4 sm:$0xff]  }
 0x6ec   : > { %v9680_v3 = vsub.f32 %v9535_v1, %v3023_v40  ;;  %v9683_v20 = vsub.f32 %v9537_v33, %v3023_v40  ;;  %v3074_v18 = vmul.f32 %v9674_v16, %v9674_v16  ;;  %v3075_v10 = vmul.f32 %v9677_v59, %v9677_v59  ;;  %v7626_v1 = vld [vmem:[#allocation12 + $0x14c] ss:$16 sps:$4 sm:$0xff]  }
 0x6ed   : > { %3867 = vmatprep.subr.bf16.mxu0 %v7626_v1  ;;  %v7641_v1 = vld [vmem:[#allocation12 + $0x1a4] ss:$16 sps:$4 sm:$0xff]  }
 0x6ee   : > { %v3110_v37 = vadd.f32 %v3075_v10, %v3074_v18  ;;  %v3076_v8 = vmul.f32 %v9680_v3, %v9680_v3  ;;  %v3077_v49 = vmul.f32 %v9683_v20, %v9683_v20  ;;  %3868 = vmatpush1.bf16.msra.mxu0 %v7624_v34  ;;  %v7633_v10 = vld [vmem:[#allocation12 + $0x180] ss:$16 sps:$4 sm:$0xff]  }
 0x6ef   : > { %v2989_v28 = vpop.xlane.xlu0 %2988  ;;  %3869 = vmatprep.subr.bf16.mxu0 %v7632_v25  ;;  %v7647_v25 = vld [vmem:[#allocation12 + $0x1c4] ss:$16 sps:$4 sm:$0xff]  }
 0x6f0   : > { %v3024_v58 = vmul.f32 0.00390625, %v2989_v28  ;;  %3111 = vadd.xlane.f32.xlu0 %v3110_v37  ;;  %v3113_v33 = vadd.f32 %v3077_v49, %v3076_v8  ;;  %v7636_v37 = vld [vmem:[#allocation12 + $0x188] ss:$16 sps:$4 sm:$0xff]  }
 0x6f1   : > { %v2992_v44 = vpop.xlane.xlu1 %2991 }
 0x6f2   : > { %v9694_v5 = vsub.f32 %v9547_v50, %v3024_v58  ;;  %v9697_v9 = vsub.f32 %v9550_v19, %v3024_v58  ;;  %v3025_v7 = vmul.f32 0.00390625, %v2992_v44  ;;  %3114 = vadd.xlane.f32.xlu1 %v3113_v33  ;;  %v7627_v19 = vld [vmem:[#allocation12 + $0x160] ss:$16 sps:$4 sm:$0xff]   ;;  %3870 = vmatpush1.bf16.msra.mxu0 %v7630_v27  ;;  %v7644_v58 = vld [vmem:[#allocation12 + $0x1ac] ss:$16 sps:$4 sm:$0xff]  }
 0x6f3   : > { %3757 = vmatpush1.bf16.msra.mxu1 %v7627_v19  ;;  %3871 = vmatprep.subr.bf16.mxu0 %v7638_v61  ;;  %v7642_v44 = vld [vmem:[#allocation12 + $0x1a8] ss:$16 sps:$4 sm:$0xff]   ;;  %v7645_v27 = vld [vmem:[#allocation12 + $0x1c0] ss:$16 sps:$4 sm:$0xff]   ;;  %v7653_v61 = vld [vmem:[#allocation12 + $0x1e4] ss:$16 sps:$4 sm:$0xff]  }
 0x6f4   : > { %v9700_v46 = vsub.f32 %v9553_v21, %v3025_v7  ;;  %v9703_v52 = vsub.f32 %v9555_v45, %v3025_v7  ;;  %v3078_v54 = vmul.f32 %v9694_v5, %v9694_v5  ;;  %v3079_v50 = vmul.f32 %v9697_v9, %v9697_v9  ;;  %3758 = vmatprep.subr.bf16.mxu1 %v7635_v36 }
 0x6f6   : > { %v3116_v60 = vadd.f32 %v3079_v50, %v3078_v54  ;;  %v3080_v43 = vmul.f32 %v9700_v46, %v9700_v46  ;;  %v3081_v21 = vmul.f32 %v9703_v52, %v9703_v52  ;;  %3872 = vmatpush1.bf16.msra.mxu0 %v7636_v37  ;;  %v7650_v54 = vld [vmem:[#allocation12 + $0x1cc] ss:$16 sps:$4 sm:$0xff]  }
 0x6f7   : > { %v2995_v45 = vpop.xlane.xlu0 %2994  ;;  %3759 = vmatpush1.bf16.msra.mxu1 %v7633_v10  ;;  %3873 = vmatprep.subr.bf16.mxu0 %v7644_v58 }
 0x6f8   : > { %v3026_v40 = vmul.f32 0.00390625, %v2995_v45  ;;  %3117 = vadd.xlane.f32.xlu0 %v3116_v60  ;;  %v3119_v18 = vadd.f32 %v3081_v21, %v3080_v43  ;;  %3760 = vmatprep.subr.bf16.mxu1 %v7641_v1  ;;  %v7648_v60 = vld [vmem:[#allocation12 + $0x1c8] ss:$16 sps:$4 sm:$0xff]  }
 0x6f9   : > { %v2998_v8 = vpop.xlane.xlu1 %2997 }
 0x6fa   : > { %v9714_v49 = vsub.f32 %v9565_v57, %v3026_v40  ;;  %v9717_v28 = vsub.f32 %v9568_v51, %v3026_v40  ;;  %v3027_v24 = vmul.f32 0.00390625, %v2998_v8  ;;  %3120 = vadd.xlane.f32.xlu1 %v3119_v18  ;;  %v7639_v51 = vld [vmem:[#allocation12 + $0x1a0] ss:$16 sps:$4 sm:$0xff]   ;;  %3874 = vmatpush1.bf16.msra.mxu0 %v7642_v44  ;;  %v7656_v40 = vld [vmem:[#allocation12 + $0x1ec] ss:$16 sps:$4 sm:$0xff]  }
 0x6fb   : > { %3761 = vmatpush1.bf16.msra.mxu1 %v7639_v51  ;;  %3875 = vmatprep.subr.bf16.mxu0 %v7650_v54  ;;  %v7654_v8 = vld [vmem:[#allocation12 + $0x1e8] ss:$16 sps:$4 sm:$0xff]  }
 0x6fc   : > { %v9720_v33 = vsub.f32 %v9571_v6, %v3027_v24  ;;  %v9723_v53 = vsub.f32 %v9573_v12, %v3027_v24  ;;  %v3082_v34 = vmul.f32 %v9714_v49, %v9714_v49  ;;  %v3083_v57 = vmul.f32 %v9717_v28, %v9717_v28  ;;  %3762 = vmatprep.subr.bf16.mxu1 %v7647_v25 }
 0x6fe   : > { %v3122_v7 = vadd.f32 %v3083_v57, %v3082_v34  ;;  %v3084_v38 = vmul.f32 %v9720_v33, %v9720_v33  ;;  %v3085_v6 = vmul.f32 %v9723_v53, %v9723_v53  ;;  %3876 = vmatpush1.bf16.msra.mxu0 %v7648_v60 }
 0x6ff   : > { %v3001_v12 = vpop.xlane.xlu0 %3000  ;;  %3763 = vmatpush1.bf16.msra.mxu1 %v7645_v27  ;;  %3877 = vmatprep.subr.bf16.mxu0 %v7656_v40 }
 0x700   : > { %v3028_v50 = vmul.f32 0.00390625, %v3001_v12  ;;  %3123 = vadd.xlane.f32.xlu0 %v3122_v7  ;;  %v3125_v19 = vadd.f32 %v3085_v6, %v3084_v38  ;;  %3764 = vmatprep.subr.bf16.mxu1 %v7653_v61 }
 0x701   : > { %v3004_v43 = vpop.xlane.xlu1 %3003 }
 0x702   : > { %v9734_v21 = vsub.f32 %v9583_v42, %v3028_v50  ;;  %v9737_v45 = vsub.f32 %v9586_v26, %v3028_v50  ;;  %v3029_v36 = vmul.f32 0.00390625, %v3004_v43  ;;  %3126 = vadd.xlane.f32.xlu1 %v3125_v19  ;;  %v7651_v26 = vld [vmem:[#allocation12 + $0x1e0] ss:$16 sps:$4 sm:$0xff]   ;;  %3878 = vmatpush1.bf16.msra.mxu0 %v7654_v8 }
 0x703   : > { %3765 = vmatpush1.bf16.msra.mxu1 %v7651_v26 }
 0x704   : > { %v9740_v18 = vsub.f32 %v9589_v62, %v3029_v36  ;;  %v9743_v10 = vsub.f32 %v9591_v30, %v3029_v36  ;;  %v3086_v37 = vmul.f32 %v9734_v21, %v9734_v21  ;;  %v3087_v42 = vmul.f32 %v9737_v45, %v9737_v45 }
 0x706   : > { %v3128_v24 = vadd.f32 %v3087_v42, %v3086_v37  ;;  %v3088_v1 = vmul.f32 %v9740_v18, %v9740_v18  ;;  %v3089_v62 = vmul.f32 %v9743_v10, %v9743_v10 }
 0x707   : > { %v3007_v30 = vpop.xlane.xlu0 %3006 }
 0x708   : > { %v3030_v58 = vmul.f32 0.00390625, %v3007_v30  ;;  %3129 = vadd.xlane.f32.xlu0 %v3128_v24  ;;  %v3131_v34 = vadd.f32 %v3089_v62, %v3088_v1 }
 0x709   : > { %v3010_v57 = vpop.xlane.xlu1 %3009 }
 0x70a   : > { %v9754_v51 = vsub.f32 %v9601_v47, %v3030_v58  ;;  %v9757_v44 = vsub.f32 %v9604_v48, %v3030_v58  ;;  %v3031_v7 = vmul.f32 0.00390625, %v3010_v57  ;;  %3132 = vadd.xlane.f32.xlu1 %v3131_v34 }
 0x70c   : > { %v9760_v38 = vsub.f32 %v9607_v29, %v3031_v7  ;;  %v9763_v6 = vsub.f32 %v9609_v32, %v3031_v7  ;;  %v3090_v12 = vmul.f32 %v9754_v51, %v9754_v51  ;;  %v3091_v25 = vmul.f32 %v9757_v44, %v9757_v44  ;;  %v2967_v7 = vld [vmem:[%s11581_s6] sm:$0x3] }
 0x70e   : > { %v3134_v54 = vadd.f32 %v3091_v25, %v3090_v12  ;;  %v3092_v47 = vmul.f32 %v9760_v38, %v9760_v38  ;;  %v3093_v48 = vmul.f32 %v9763_v6, %v9763_v6 }
 0x70f   : > { %v3013_v50 = vpop.xlane.xlu0 %3012 }
 0x710   : > { %v3032_v19 = vmul.f32 0.00390625, %v3013_v50  ;;  %3135 = vadd.xlane.f32.xlu0 %v3134_v54  ;;  %v3137_v29 = vadd.f32 %v3093_v48, %v3092_v47  ;;  %v9797_v47 = vrot.slane %v2967_v7, %v8945_v14  ;;  %v2968_v48 = vld [vmem:[%s11714_s14] sm:$0x3]  ;;  %v9803_v50 = vrot.slane %v2967_v7, %v8949_v17  ;;  %s7239_s14 = smul.u32 192, %s8817_s2 }
 0x711   : > { %v3016_v27 = vpop.xlane.xlu1 %3015 }
 0x712   : > { %v9774_v32 = vsub.f32 %v9619_v31, %v3032_v19  ;;  %v9777_v60 = vsub.f32 %v9622_v35, %v3032_v19  ;;  %v3033_v43 = vmul.f32 0.00390625, %v3016_v27  ;;  %3138 = vadd.xlane.f32.xlu1 %v3137_v29  ;;  %s11443_s4 = scalar_lea.vmem [#allocation16], %s7239_s14 }
 0x714   : > { %v9780_v36 = vsub.f32 %v9625_v23, %v3033_v43  ;;  %v9783_v61 = vsub.f32 %v9627_v55, %v3033_v43  ;;  %v3094_v40 = vmul.f32 %v9774_v32, %v9774_v32  ;;  %v3095_v37 = vmul.f32 %v9777_v60, %v9777_v60  ;;  %v7659_v23 = vld [vmem:[#allocation13 + $0x4] ss:$8 sps:$4 sm:$0xff]  }
 0x715   : > { %4964 = vmatprep.subr.bf16.mxu1 %v7659_v23 }
 0x716   : > { %v3140_v42 = vadd.f32 %v3095_v37, %v3094_v40  ;;  %v3096_v31 = vmul.f32 %v9780_v36, %v9780_v36  ;;  %v3097_v35 = vmul.f32 %v9783_v61, %v9783_v61 }
 0x718   : > { %3141 = vadd.xlane.f32.xlu0 %v3140_v42  ;;  %v3143_v26 = vadd.f32 %v3097_v35, %v3096_v31  ;;  %v9808_v42 = vrot.slane %v2968_v48, %v8945_v14  ;;  %v9811_v31 = vrot.slane %v2968_v48, %v8949_v17  ;;  %v7657_v48 = vld [vmem:[#allocation13] ss:$8 sps:$4 sm:$0xff]  }
 0x71a   : > { %3144 = vadd.xlane.f32.xlu1 %v3143_v26 }
 0x76d   : > { %v3100_v55 = vpop.xlane.xlu0 %3099 }
 0x76e   : > { %v3146_v8 = vmul.f32 0.00390625, %v3100_v55 }
 0x76f   : > { %v3103_v24 = vpop.xlane.xlu1 %3102 }
 0x770   : > { %v3162_v1 = vadd.f32 1e-05, %v3146_v8  ;;  %v3147_v62 = vmul.f32 0.00390625, %v3103_v24 }
 0x772   : > { %7945 = vrsqrt.f32 %v3162_v1  ;;  %v3163_v30 = vadd.f32 1e-05, %v3147_v62 }
 0x774   : > { %7947 = vrsqrt.f32 %v3163_v30 }
 0x775   : > { %v3106_v58 = vpop.xlane.xlu0 %3105 }
 0x776   : > { %v3148_v34 = vmul.f32 0.00390625, %v3106_v58 }
 0x777   : > { %v3109_v57 = vpop.xlane.xlu1 %3108 }
 0x778   : > { %v3164_v12 = vadd.f32 1e-05, %v3148_v34  ;;  %v3149_v25 = vmul.f32 0.00390625, %v3109_v57 }
 0x77a   : > { %7949 = vrsqrt.f32 %v3164_v12  ;;  %v3165_v54 = vadd.f32 1e-05, %v3149_v25 }
 0x77c   : > { %v7946_v19 = vpop.eup %7945  ;;  %7951 = vrsqrt.f32 %v3165_v54 }
 0x77d   : > { %v3194_v29 = vmul.f32 %v7946_v19, %v9634_v63  ;;  %v3112_v27 = vpop.xlane.xlu0 %3111  ;;  %v3195_v43 = vmul.f32 %v7946_v19, %v9637_v56 }
 0x77e   : > { %v7948_v40 = vpop.eup %7947  ;;  %v3150_v37 = vmul.f32 0.00390625, %v3112_v27  ;;  %v7662_v27 = vld [vmem:[#allocation13 + $0x14] ss:$8 sps:$4 sm:$0xff]  }
 0x77f   : > { %v3237_v35 = vmul.f32 %v9797_v47, %v3194_v29  ;;  %v3196_v26 = vmul.f32 %v7948_v40, %v9640_v41  ;;  %v3115_v23 = vpop.xlane.xlu1 %3114  ;;  %v3197_v55 = vmul.f32 %v7948_v40, %v9643_v15  ;;  %v3238_v63 = vmul.f32 %v9803_v50, %v3195_v43 }
 0x780   : > { %v3166_v8 = vadd.f32 1e-05, %v3150_v37  ;;  %v3151_v24 = vmul.f32 0.00390625, %v3115_v23 }
 0x781   : > { %v3239_v56 = vmul.f32 %v9797_v47, %v3196_v26  ;;  %v3240_v1 = vmul.f32 %v9803_v50, %v3197_v55  ;;  %v9820_v30 = vadd.f32 %v9811_v31, %v3238_v63  ;;  %v9826_v41 = vadd.f32 %v9808_v42, %v3237_v35  ;;  %v7660_v63 = vld [vmem:[#allocation13 + $0x10] ss:$8 sps:$4 sm:$0xff]  }
 0x782   : > { %7953 = vrsqrt.f32 %v3166_v8  ;;  %v3167_v62 = vadd.f32 1e-05, %v3151_v24 }
 0x783   : > { %11715 = vst [vmem:[#allocation26_spill] sm:$0xff] %v9820_v30  ;;  %v9823_v58 = vadd.f32 %v9811_v31, %v3240_v1  ;;  %11717 = vst [vmem:[#allocation28_spill] sm:$0xff] %v9826_v41  ;;  %v9829_v15 = vadd.f32 %v9808_v42, %v3239_v56 }
 0x784   : > { %v7950_v34 = vpop.eup %7949  ;;  %7955 = vrsqrt.f32 %v3167_v62 }
 0x785   : > { %11716 = vst [vmem:[#allocation27_spill] sm:$0xff] %v9823_v58  ;;  %11718 = vst [vmem:[#allocation29_spill] sm:$0xff] %v9829_v15  ;;  %v3118_v57 = vpop.xlane.xlu0 %3117  ;;  %v3313_v7 = vpack.c.bf16 %v9823_v58, %v9820_v30  ;;  %v3312_v12 = vpack.c.bf16 %v9829_v15, %v9826_v41  ;;  %v3199_v25 = vmul.f32 %v7950_v34, %v9657_v13 }
 0x786   : > { %v3198_v54 = vmul.f32 %v7950_v34, %v9654_v39  ;;  %v7952_v19 = vpop.eup %7951  ;;  %v3152_v29 = vmul.f32 0.00390625, %v3118_v57 }
 0x787   : > { %v3121_v43 = vpop.xlane.xlu1 %3120  ;;  %3766 = vmatprep.mubr.bf16.mxu1 %v3313_v7  ;;  %3879 = vmatprep.mubr.bf16.mxu0 %v3313_v7  ;;  %v3201_v40 = vmul.f32 %v7952_v19, %v9663_v22  ;;  %v3242_v37 = vmul.f32 %v9803_v50, %v3199_v25  ;;  %v3200_v35 = vmul.f32 %v7952_v19, %v9660_v11  ;;  %v7665_v22 = vld [vmem:[#allocation13 + $0x24] ss:$8 sps:$4 sm:$0xff]  }
 0x788   : > { %v3168_v26 = vadd.f32 1e-05, %v3152_v29  ;;  %v3153_v23 = vmul.f32 0.00390625, %v3121_v43  ;;  %3767 = vmatmul.mubr.bf16.vlgmr.msra.gmra.mrb[80].mxu1 %v3312_v12  ;;  %3880 = vmatmul.mubr.bf16.vlgmr.msra.gmra.mrb[112].mxu0 %v3312_v12  ;;  %v3241_v13 = vmul.f32 %v9797_v47, %v3198_v54  ;;  %v7663_v54 = vld [vmem:[#allocation13 + $0x20] ss:$8 sps:$4 sm:$0xff]  }
 0x789   : > { %v3244_v39 = vmul.f32 %v9803_v50, %v3201_v40  ;;  %v3243_v55 = vmul.f32 %v9797_v47, %v3200_v35  ;;  %4965 = vmatpush1.bf16.msra.mxu1 %v7657_v48  ;;  %v9844_v24 = vadd.f32 %v9811_v31, %v3242_v37  ;;  %v7668_v29 = vld [vmem:[#allocation13 + $0x34] ss:$8 sps:$4 sm:$0xff]  }
 0x78a   : > { %7957 = vrsqrt.f32 %v3168_v26  ;;  %v3169_v8 = vadd.f32 1e-05, %v3153_v23  ;;  %4966 = vmatprep.subr.bf16.mxu1 %v7662_v27  ;;  %v9850_v56 = vadd.f32 %v9808_v42, %v3241_v13  ;;  %v7666_v13 = vld [vmem:[#allocation13 + $0x30] ss:$8 sps:$4 sm:$0xff]  }
 0x78b   : > { %11719 = vst [vmem:[#allocation30_spill] sm:$0xff] %v9844_v24  ;;  %v9847_v11 = vadd.f32 %v9811_v31, %v3244_v39  ;;  %v9853_v1 = vadd.f32 %v9808_v42, %v3243_v55 }
 0x78c   : > { %11721 = vst [vmem:[#allocation32_spill] sm:$0xff] %v9850_v56  ;;  %v7954_v62 = vpop.eup %7953  ;;  %7959 = vrsqrt.f32 %v3169_v8 }
 0x78d   : > { %11720 = vst [vmem:[#allocation31_spill] sm:$0xff] %v9847_v11  ;;  %11722 = vst [vmem:[#allocation33_spill] sm:$0xff] %v9853_v1  ;;  %v3124_v34 = vpop.xlane.xlu0 %3123  ;;  %v3315_v57 = vpack.c.bf16 %v9847_v11, %v9844_v24  ;;  %v3314_v7 = vpack.c.bf16 %v9853_v1, %v9850_v56  ;;  %v3203_v12 = vmul.f32 %v7954_v62, %v9677_v59  ;;  %4967 = vmatpush1.bf16.msra.mxu1 %v7660_v63 }
 0x78e   : > { %v3202_v25 = vmul.f32 %v7954_v62, %v9674_v16  ;;  %v7956_v48 = vpop.eup %7955  ;;  %v3154_v19 = vmul.f32 0.00390625, %v3124_v34  ;;  %4968 = vmatprep.subr.bf16.mxu1 %v7665_v22 }
 0x78f   : > { %v3127_v27 = vpop.xlane.xlu1 %3126  ;;  %3776 = vmatprep.mubr.bf16.mxu1 %v3315_v57  ;;  %3889 = vmatprep.mubr.bf16.mxu0 %v3315_v57  ;;  %v3205_v43 = vmul.f32 %v7956_v48, %v9683_v20  ;;  %v3246_v40 = vmul.f32 %v9803_v50, %v3203_v12  ;;  %v3204_v37 = vmul.f32 %v7956_v48, %v9680_v3  ;;  %v7671_v20 = vld [vmem:[#allocation13 + $0x44] ss:$8 sps:$4 sm:$0xff]  }
 0x790   : > { %v3170_v35 = vadd.f32 1e-05, %v3154_v19  ;;  %v3155_v26 = vmul.f32 0.00390625, %v3127_v27  ;;  %3777 = vmatmul.mubr.bf16.gmra.mrb[84].mxu1 %v3314_v7  ;;  %3890 = vmatmul.mubr.bf16.gmra.mrb[116].mxu0 %v3314_v7  ;;  %v3245_v16 = vmul.f32 %v9797_v47, %v3202_v25  ;;  %v7669_v25 = vld [vmem:[#allocation13 + $0x40] ss:$8 sps:$4 sm:$0xff]  }
 0x791   : > { %v3248_v59 = vmul.f32 %v9803_v50, %v3205_v43  ;;  %v3247_v23 = vmul.f32 %v9797_v47, %v3204_v37  ;;  %4969 = vmatpush1.bf16.msra.mxu1 %v7663_v54  ;;  %v9868_v55 = vadd.f32 %v9811_v31, %v3246_v40  ;;  %v7674_v19 = vld [vmem:[#allocation13 + $0x54] ss:$8 sps:$4 sm:$0xff]  }
 0x792   : > { %7961 = vrsqrt.f32 %v3170_v35  ;;  %v3171_v39 = vadd.f32 1e-05, %v3155_v26  ;;  %4970 = vmatprep.subr.bf16.mxu1 %v7668_v29  ;;  %v9874_v63 = vadd.f32 %v9808_v42, %v3245_v16  ;;  %v7672_v16 = vld [vmem:[#allocation13 + $0x50] ss:$8 sps:$4 sm:$0xff]  }
 0x793   : > { %11723 = vst [vmem:[#allocation34_spill] sm:$0xff] %v9868_v55  ;;  %v9871_v3 = vadd.f32 %v9811_v31, %v3248_v59  ;;  %v9877_v8 = vadd.f32 %v9808_v42, %v3247_v23 }
 0x794   : > { %11725 = vst [vmem:[#allocation36_spill] sm:$0xff] %v9874_v63  ;;  %v7958_v22 = vpop.eup %7957  ;;  %7963 = vrsqrt.f32 %v3171_v39 }
 0x795   : > { %11724 = vst [vmem:[#allocation35_spill] sm:$0xff] %v9871_v3  ;;  %11726 = vst [vmem:[#allocation37_spill] sm:$0xff] %v9877_v8  ;;  %v3130_v62 = vpop.xlane.xlu0 %3129  ;;  %v3317_v34 = vpack.c.bf16 %v9871_v3, %v9868_v55  ;;  %v3316_v57 = vpack.c.bf16 %v9877_v8, %v9874_v63  ;;  %v3207_v7 = vmul.f32 %v7958_v22, %v9697_v9  ;;  %4971 = vmatpush1.bf16.msra.mxu1 %v7666_v13 }
 0x796   : > { %v3206_v12 = vmul.f32 %v7958_v22, %v9694_v5  ;;  %v7960_v54 = vpop.eup %7959  ;;  %v3156_v48 = vmul.f32 0.00390625, %v3130_v62  ;;  %4972 = vmatprep.subr.bf16.mxu1 %v7671_v20 }
 0x797   : > { %v3133_v29 = vpop.xlane.xlu1 %3132  ;;  %3786 = vmatprep.mubr.bf16.mxu1 %v3317_v34  ;;  %3899 = vmatprep.mubr.bf16.mxu0 %v3317_v34  ;;  %v3209_v27 = vmul.f32 %v7960_v54, %v9703_v52  ;;  %v3250_v43 = vmul.f32 %v9803_v50, %v3207_v7  ;;  %v3208_v40 = vmul.f32 %v7960_v54, %v9700_v46  ;;  %v7677_v52 = vld [vmem:[#allocation13 + $0x64] ss:$8 sps:$4 sm:$0xff]  }
 0x798   : > { %v3172_v37 = vadd.f32 1e-05, %v3156_v48  ;;  %v3157_v35 = vmul.f32 0.00390625, %v3133_v29  ;;  %3787 = vmatmul.mubr.bf16.gmra.mrb[88].mxu1 %v3316_v57  ;;  %3900 = vmatmul.mubr.bf16.gmra.mrb[120].mxu0 %v3316_v57  ;;  %v3249_v5 = vmul.f32 %v9797_v47, %v3206_v12  ;;  %v7675_v12 = vld [vmem:[#allocation13 + $0x60] ss:$8 sps:$4 sm:$0xff]  }
 0x799   : > { %v3252_v9 = vmul.f32 %v9803_v50, %v3209_v27  ;;  %v3251_v26 = vmul.f32 %v9797_v47, %v3208_v40  ;;  %4973 = vmatpush1.bf16.msra.mxu1 %v7669_v25  ;;  %v9892_v23 = vadd.f32 %v9811_v31, %v3250_v43 }
 0x79a   : > { %7965 = vrsqrt.f32 %v3172_v37  ;;  %v3173_v59 = vadd.f32 1e-05, %v3157_v35  ;;  %4974 = vmatprep.subr.bf16.mxu1 %v7674_v19  ;;  %v9898_v13 = vadd.f32 %v9808_v42, %v3249_v5 }
 0x79b   : > { %11727 = vst [vmem:[#allocation38_spill] sm:$0xff] %v9892_v23  ;;  %v9895_v46 = vadd.f32 %v9811_v31, %v3252_v9  ;;  %v9901_v39 = vadd.f32 %v9808_v42, %v3251_v26 }
 0x79c   : > { %11729 = vst [vmem:[#allocation40_spill] sm:$0xff] %v9898_v13  ;;  %v7962_v20 = vpop.eup %7961  ;;  %7967 = vrsqrt.f32 %v3173_v59 }
 0x79d   : > { %11728 = vst [vmem:[#allocation39_spill] sm:$0xff] %v9895_v46  ;;  %11730 = vst [vmem:[#allocation41_spill] sm:$0xff] %v9901_v39  ;;  %v3136_v22 = vpop.xlane.xlu0 %3135  ;;  %v3319_v62 = vpack.c.bf16 %v9895_v46, %v9892_v23  ;;  %v3318_v34 = vpack.c.bf16 %v9901_v39, %v9898_v13  ;;  %v3211_v57 = vmul.f32 %v7962_v20, %v9717_v28  ;;  %4975 = vmatpush1.bf16.msra.mxu1 %v7672_v16 }
 0x79e   : > { %v3210_v7 = vmul.f32 %v7962_v20, %v9714_v49  ;;  %v7964_v25 = vpop.eup %7963  ;;  %v3158_v54 = vmul.f32 0.00390625, %v3136_v22  ;;  %4976 = vmatprep.subr.bf16.mxu1 %v7677_v52 }
 0x79f   : > { %v3139_v48 = vpop.xlane.xlu1 %3138  ;;  %3796 = vmatprep.mubr.bf16.mxu1 %v3319_v62  ;;  %3909 = vmatprep.mubr.bf16.mxu0 %v3319_v62  ;;  %v3213_v19 = vmul.f32 %v7964_v25, %v9723_v53  ;;  %v3254_v29 = vmul.f32 %v9803_v50, %v3211_v57  ;;  %v3212_v27 = vmul.f32 %v7964_v25, %v9720_v33 }
 0x7a0   : > { %v3174_v43 = vadd.f32 1e-05, %v3158_v54  ;;  %v3159_v40 = vmul.f32 0.00390625, %v3139_v48  ;;  %3797 = vmatmul.mubr.bf16.gmra.mrb[92].mxu1 %v3318_v34  ;;  %3910 = vmatmul.mubr.bf16.gmra.mrb[124].mxu0 %v3318_v34  ;;  %v3253_v49 = vmul.f32 %v9797_v47, %v3210_v7 }
 0x7a1   : > { %v3256_v28 = vmul.f32 %v9803_v50, %v3213_v19  ;;  %v3255_v37 = vmul.f32 %v9797_v47, %v3212_v27  ;;  %4977 = vmatpush1.bf16.msra.mxu1 %v7675_v12  ;;  %v9916_v5 = vadd.f32 %v9811_v31, %v3254_v29 }
 0x7a2   : > { %7969 = vrsqrt.f32 %v3174_v43  ;;  %v3175_v35 = vadd.f32 1e-05, %v3159_v40  ;;  %v9922_v33 = vadd.f32 %v9808_v42, %v3253_v49 }
 0x7a3   : > { %11731 = vst [vmem:[#allocation42_spill] sm:$0xff] %v9916_v5  ;;  %v9919_v53 = vadd.f32 %v9811_v31, %v3256_v28  ;;  %v9925_v9 = vadd.f32 %v9808_v42, %v3255_v37 }
 0x7a4   : > { %11733 = vst [vmem:[#allocation44_spill] sm:$0xff] %v9922_v33  ;;  %v7966_v26 = vpop.eup %7965  ;;  %7971 = vrsqrt.f32 %v3175_v35 }
 0x7a5   : > { %11732 = vst [vmem:[#allocation43_spill] sm:$0xff] %v9919_v53  ;;  %11734 = vst [vmem:[#allocation45_spill] sm:$0xff] %v9925_v9  ;;  %v3142_v16 = vpop.xlane.xlu0 %3141  ;;  %v3321_v59 = vpack.c.bf16 %v9919_v53, %v9916_v5  ;;  %v3320_v52 = vpack.c.bf16 %v9925_v9, %v9922_v33  ;;  %v3215_v20 = vmul.f32 %v7966_v26, %v9737_v45 }
 0x7a6   : > { %v3214_v22 = vmul.f32 %v7966_v26, %v9734_v21  ;;  %v7968_v62 = vpop.eup %7967  ;;  %v3160_v34 = vmul.f32 0.00390625, %v3142_v16 }
 0x7a7   : > { %v3145_v57 = vpop.xlane.xlu1 %3144  ;;  %3806 = vmatprep.mubr.bf16.mxu1 %v3321_v59  ;;  %3919 = vmatprep.mubr.bf16.mxu0 %v3321_v59  ;;  %v3217_v7 = vmul.f32 %v7968_v62, %v9743_v10  ;;  %v3258_v12 = vmul.f32 %v9803_v50, %v3215_v20  ;;  %v3216_v25 = vmul.f32 %v7968_v62, %v9740_v18 }
 0x7a8   : > { %v3176_v54 = vadd.f32 1e-05, %v3160_v34  ;;  %v3161_v48 = vmul.f32 0.00390625, %v3145_v57  ;;  %3807 = vmatmul.mubr.bf16.gmra.mrb[96].mxu1 %v3320_v52  ;;  %3920 = vmatmul.mubr.bf16.gmra.mrb[128].mxu0 %v3320_v52  ;;  %v3257_v19 = vmul.f32 %v9797_v47, %v3214_v22 }
 0x7a9   : > { %v3260_v45 = vmul.f32 %v9803_v50, %v3217_v7  ;;  %v3259_v21 = vmul.f32 %v9797_v47, %v3216_v25  ;;  %v9940_v27 = vadd.f32 %v9811_v31, %v3258_v12 }
 0x7aa   : > { %7973 = vrsqrt.f32 %v3176_v54  ;;  %v3177_v29 = vadd.f32 1e-05, %v3161_v48  ;;  %v9946_v18 = vadd.f32 %v9808_v42, %v3257_v19 }
 0x7ab   : > { %11735 = vst [vmem:[#allocation46_spill] sm:$0xff] %v9940_v27  ;;  %v9943_v10 = vadd.f32 %v9811_v31, %v3260_v45  ;;  %v9949_v43 = vadd.f32 %v9808_v42, %v3259_v21 }
 0x7ac   : > { %11737 = vst [vmem:[#allocation48_spill] sm:$0xff] %v9946_v18  ;;  %v7970_v40 = vpop.eup %7969  ;;  %7975 = vrsqrt.f32 %v3177_v29 }
 0x7ad   : > { %11736 = vst [vmem:[#allocation47_spill] sm:$0xff] %v9943_v10  ;;  %11738 = vst [vmem:[#allocation49_spill] sm:$0xff] %v9949_v43  ;;  %v3323_v49 = vpack.c.bf16 %v9943_v10, %v9940_v27  ;;  %v3322_v28 = vpack.c.bf16 %v9949_v43, %v9946_v18  ;;  %v3219_v37 = vmul.f32 %v7970_v40, %v9757_v44 }
 0x7ae   : > { %v3218_v35 = vmul.f32 %v7970_v40, %v9754_v51  ;;  %v7972_v26 = vpop.eup %7971 }
 0x7af   : > { %3816 = vmatprep.mubr.bf16.mxu1 %v3323_v49  ;;  %3929 = vmatprep.mubr.bf16.mxu0 %v3323_v49  ;;  %v3221_v16 = vmul.f32 %v7972_v26, %v9763_v6  ;;  %v3262_v59 = vmul.f32 %v9803_v50, %v3219_v37  ;;  %v3220_v52 = vmul.f32 %v7972_v26, %v9760_v38  ;;  %v7681_v37 = vld [vmem:[#allocation13 + $0x80] ss:$8 sps:$4 sm:$0xff]   ;;  %v7689_v26 = vld [vmem:[#allocation13 + $0xa4] ss:$8 sps:$4 sm:$0xff]  }
 0x7b0   : > { %3817 = vmatmul.mubr.bf16.gmra.mrb[100].mxu1 %v3322_v28  ;;  %3930 = vmatmul.mubr.bf16.gmra.mrb[132].mxu0 %v3322_v28  ;;  %v3261_v20 = vmul.f32 %v9797_v47, %v3218_v35  ;;  %v7678_v28 = vld [vmem:[#allocation13 + $0x70] ss:$8 sps:$4 sm:$0xff]  }
 0x7b1   : > { %v3264_v22 = vmul.f32 %v9803_v50, %v3221_v16  ;;  %v3263_v62 = vmul.f32 %v9797_v47, %v3220_v52  ;;  %v9964_v44 = vadd.f32 %v9811_v31, %v3262_v59  ;;  %v7684_v35 = vld [vmem:[#allocation13 + $0x90] ss:$8 sps:$4 sm:$0xff]   ;;  %v7687_v16 = vld [vmem:[#allocation13 + $0xa0] ss:$8 sps:$4 sm:$0xff]   ;;  %v7692_v59 = vld [vmem:[#allocation13 + $0xb4] ss:$8 sps:$4 sm:$0xff]  }
 0x7b2   : > { %v9970_v6 = vadd.f32 %v9808_v42, %v3261_v20  ;;  %v7690_v52 = vld [vmem:[#allocation13 + $0xb0] ss:$8 sps:$4 sm:$0xff]   ;;  %v7695_v20 = vld [vmem:[#allocation13 + $0xc4] ss:$8 sps:$4 sm:$0xff]  }
 0x7b3   : > { %11739 = vst [vmem:[#allocation50_spill] sm:$0xff] %v9964_v44  ;;  %v9967_v51 = vadd.f32 %v9811_v31, %v3264_v22  ;;  %v9973_v34 = vadd.f32 %v9808_v42, %v3263_v62  ;;  %v7693_v22 = vld [vmem:[#allocation13 + $0xc0] ss:$8 sps:$4 sm:$0xff]   ;;  %v7698_v62 = vld [vmem:[#allocation13 + $0xd4] ss:$8 sps:$4 sm:$0xff]  }
 0x7b4   : > { %11741 = vst [vmem:[#allocation52_spill] sm:$0xff] %v9970_v6  ;;  %v7974_v38 = vpop.eup %7973 }
 0x7b5   : > { %11740 = vst [vmem:[#allocation51_spill] sm:$0xff] %v9967_v51  ;;  %11742 = vst [vmem:[#allocation53_spill] sm:$0xff] %v9973_v34  ;;  %v3325_v57 = vpack.c.bf16 %v9967_v51, %v9964_v44  ;;  %v3324_v7 = vpack.c.bf16 %v9973_v34, %v9970_v6  ;;  %v3223_v12 = vmul.f32 %v7974_v38, %v9777_v60 }
 0x7b6   : > { %v3222_v25 = vmul.f32 %v7974_v38, %v9774_v32  ;;  %v7976_v54 = vpop.eup %7975  ;;  %v7696_v38 = vld [vmem:[#allocation13 + $0xd0] ss:$8 sps:$4 sm:$0xff]  }
 0x7b7   : > { %3826 = vmatprep.mubr.bf16.mxu1 %v3325_v57  ;;  %3939 = vmatprep.mubr.bf16.mxu0 %v3325_v57  ;;  %v3225_v48 = vmul.f32 %v7976_v54, %v9783_v61  ;;  %v3266_v19 = vmul.f32 %v9803_v50, %v3223_v12  ;;  %v3224_v45 = vmul.f32 %v7976_v54, %v9780_v36  ;;  %v7701_v57 = vld [vmem:[#allocation13 + $0xe4] ss:$8 sps:$4 sm:$0xff]   ;;  %v7704_v12 = vld [vmem:[#allocation13 + $0xf4] ss:$8 sps:$4 sm:$0xff]  }
 0x7b8   : > { %3827 = vmatmul.mubr.bf16.gmra.mrb[104].mxu1 %v3324_v7  ;;  %3940 = vmatmul.mubr.bf16.gmra.mrb[136].mxu0 %v3324_v7  ;;  %v3265_v21 = vmul.f32 %v9797_v47, %v3222_v25  ;;  %v7699_v7 = vld [vmem:[#allocation13 + $0xe0] ss:$8 sps:$4 sm:$0xff]   ;;  %v7702_v25 = vld [vmem:[#allocation13 + $0xf0] ss:$8 sps:$4 sm:$0xff]   ;;  %v7707_v54 = vld [vmem:[#allocation13 + $0x104] ss:$8 sps:$4 sm:$0xff]  }
 0x7b9   : > { %v3268_v29 = vmul.f32 %v9803_v50, %v3225_v48  ;;  %v3267_v40 = vmul.f32 %v9797_v47, %v3224_v45  ;;  %v9988_v60 = vadd.f32 %v9811_v31, %v3266_v19  ;;  %v7680_v47 = vld [vmem:[#allocation13 + $0x74] ss:$8 sps:$4 sm:$0xff]   ;;  %v3392_v48 = vld [vmem:[%s11747_s29] sm:$0xf]  ;;  %s6336_s29 = sshll.u32 %s11443_s4, 4  ;;  %s11530_s29 = int_to_ptr.vmem [resolvable:$true] %s6336_s29 }
 0x7ba   : > { %v9994_v61 = vadd.f32 %v9808_v42, %v3265_v21  ;;  %4978 = vmatprep.subr.bf16.mxu1 %v7680_v47  ;;  %v10007_v19 = vrot.slane %v3392_v48, %v8945_v14  ;;  %v10010_v45 = vrot.slane %v3392_v48, %v8924_v2  ;;  %v10013_v21 = vrot.slane %v3392_v48, %v8949_v17  ;;  %s8353_s20 = scalar_lea.vmem %s11530_s29, 3072 }
 0x7bb   : > { %11743 = vst [vmem:[#allocation54_spill] sm:$0xff] %v9988_v60  ;;  %v9991_v32 = vadd.f32 %v9811_v31, %v3268_v29  ;;  %v9997_v49 = vadd.f32 %v9808_v42, %v3267_v40  ;;  %4979 = vmatpush1.bf16.msra.mxu1 %v7678_v28  ;;  %v7683_v31 = vld [vmem:[#allocation13 + $0x84] ss:$8 sps:$4 sm:$0xff]   ;;  %v7686_v42 = vld [vmem:[#allocation13 + $0x94] ss:$8 sps:$4 sm:$0xff]   ;;  %v10017_v29 = vrot.slane %v3392_v48, %v778_v4  ;;  %p8354_p2 = scmp.ne.s32.totalorder %s11530_s29, %s8353_s20 }
 0x7bc   : > { %11745 = vst [vmem:[#allocation56_spill] sm:$0xff] %v9994_v61  ;;  %4980 = vmatprep.subr.bf16.mxu1 %v7683_v31 }
 0x7bd   : > { %11744 = vst [vmem:[#allocation55_spill] sm:$0xff] %v9991_v32  ;;  %11746 = vst [vmem:[#allocation57_spill] sm:$0xff] %v9997_v49  ;;  %v3327_v36 = vpack.c.bf16 %v9991_v32, %v9988_v60  ;;  %v3326_v50 = vpack.c.bf16 %v9997_v49, %v9994_v61  ;;  %p8355_p6 = pnand %p8354_p2, %p11914_p13 }
 0x7bf   : > { %3836 = vmatprep.mubr.bf16.mxu1 %v3327_v36  ;;  %3949 = vmatprep.mubr.bf16.mxu0 %v3327_v36  ;;  %p8356_p9 = pneg %p8355_p6 }
 0x7c0   : > { %3837 = vmatmul.mubr.bf16.gmra.mrb[108].mxu1 %v3326_v50  ;;  %3950 = vmatmul.mubr.bf16.gmra.mrb[140].mxu0 %v3326_v50 }
 0x7c1   : > { %4981 = vmatpush1.bf16.msra.mxu1 %v7681_v37 }
 0x7c2   : > { %4982 = vmatprep.subr.bf16.mxu1 %v7686_v42 }
 0x7c5   : > { %4983 = vmatpush1.bf16.msra.mxu1 %v7684_v35 }
 0x7c6   : > { %4984 = vmatprep.subr.bf16.mxu1 %v7689_v26 }
 0x7c9   : > { %4985 = vmatpush1.bf16.msra.mxu1 %v7687_v16 }
 0x7ca   : > { %4986 = vmatprep.subr.bf16.mxu1 %v7692_v59 }
 0x7cd   : > { %4987 = vmatpush1.bf16.msra.mxu1 %v7690_v52 }
 0x7ce   : > { %4988 = vmatprep.subr.bf16.mxu1 %v7695_v20 }
 0x7d1   : > { %4989 = vmatpush1.bf16.msra.mxu1 %v7693_v22 }
 0x7d2   : > { %4990 = vmatprep.subr.bf16.mxu1 %v7698_v62 }
 0x7d5   : > { %4991 = vmatpush1.bf16.msra.mxu1 %v7696_v38 }
 0x7d6   : > { %4992 = vmatprep.subr.bf16.mxu1 %v7701_v57 }
 0x7d9   : > { %4993 = vmatpush1.bf16.msra.mxu1 %v7699_v7 }
 0x7da   : > { %4994 = vmatprep.subr.bf16.mxu1 %v7704_v12 }
 0x7dd   : > { %4995 = vmatpush1.bf16.msra.mxu1 %v7702_v25 }
 0x7de   : > { %5077 = vmatprep.subr.bf16.mxu1 %v7707_v54 }
 0x85b   : > { %v3768_v40 = vpop.f32.mrb[80].mxu1  ;;  %v3881_v36 = vpop.f32.mrb[112].mxu0 }
 0x85c   : > { %v10020_v50 = vadd.f32 %v3768_v40, %v10007_v19  ;;  %v10023_v47 = vadd.f32 %v3881_v36, %v10010_v45  ;;  %v3770_v28 = vpop.f32.mrb[81].mxu1  ;;  %v3883_v31 = vpop.f32.mrb[113].mxu0 }
 0x85d   : > { %v10026_v37 = vadd.f32 %v3770_v28, %v10013_v21  ;;  %v10029_v42 = vadd.f32 %v3883_v31, %v10017_v29  ;;  %v3772_v35 = vpop.f32.mrb[82].mxu1  ;;  %v3885_v0 = vpop.f32.mrb[114].mxu0 }
 0x85e   : > { %v3960_v4 = vmul.f32 %v10020_v50, %v10020_v50  ;;  %v3962_v26 = vmul.f32 %v10023_v47, %v10023_v47  ;;  %v10036_v16 = vadd.f32 %v3772_v35, %v10007_v19  ;;  %v10039_v59 = vadd.f32 %v3885_v0, %v10010_v45  ;;  %v3774_v52 = vpop.f32.mrb[83].mxu1  ;;  %v3887_v20 = vpop.f32.mrb[115].mxu0 }
 0x85f   : > { %11748 = vst [vmem:[#allocation58_spill] sm:$0xff] %v10029_v42  ;;  %v3961_v22 = vmul.f32 %v10026_v37, %v10026_v37  ;;  %v3963_v62 = vmul.f32 %v10029_v42, %v10029_v42  ;;  %v10046_v38 = vadd.f32 %v3774_v52, %v10013_v21  ;;  %v10049_v57 = vadd.f32 %v3887_v20, %v10017_v29 }
 0x860   : > { %v4024_v7 = vmul.f32 %v3960_v4, %v10020_v50  ;;  %v4026_v12 = vmul.f32 %v3962_v26, %v10023_v47  ;;  %v3964_v25 = vmul.f32 %v10036_v16, %v10036_v16  ;;  %v3966_v54 = vmul.f32 %v10039_v59, %v10039_v59 }
 0x861   : > { %11749 = vst [vmem:[#allocation59_spill] sm:$0xff] %v10049_v57  ;;  %v4025_v48 = vmul.f32 %v3961_v22, %v10026_v37  ;;  %v4027_v40 = vmul.f32 %v3963_v62, %v10029_v42  ;;  %v3965_v36 = vmul.f32 %v10046_v38, %v10046_v38  ;;  %v3967_v28 = vmul.f32 %v10049_v57, %v10049_v57 }
 0x862   : > { %v4088_v31 = vmul.f32 0.044715, %v4024_v7  ;;  %v4090_v35 = vmul.f32 0.044715, %v4026_v12  ;;  %v4028_v0 = vmul.f32 %v3964_v25, %v10036_v16  ;;  %v4030_v4 = vmul.f32 %v3966_v54, %v10039_v59 }
 0x863   : > { %v4089_v26 = vmul.f32 0.044715, %v4025_v48  ;;  %v4091_v52 = vmul.f32 0.044715, %v4027_v40  ;;  %v4029_v20 = vmul.f32 %v3965_v36, %v10046_v38  ;;  %v4031_v22 = vmul.f32 %v3967_v28, %v10049_v57  ;;  %v3778_v2 = vpop.f32.mrb[84].mxu1  ;;  %v3891_v62 = vpop.f32.mrb[116].mxu0 }
 0x864   : > { %v4152_v32 = vadd.f32 %v4088_v31, %v10020_v50  ;;  %v4154_v49 = vadd.f32 %v4090_v35, %v10023_v47  ;;  %v4092_v60 = vmul.f32 0.044715, %v4028_v0  ;;  %v4094_v61 = vmul.f32 0.044715, %v4030_v4  ;;  %v3780_v7 = vpop.f32.mrb[85].mxu1  ;;  %v3893_v12 = vpop.f32.mrb[117].mxu0 }
 0x865   : > { %v4153_v25 = vadd.f32 %v4089_v26, %v10026_v37  ;;  %v4155_v54 = vadd.f32 %v4091_v52, %v10029_v42  ;;  %v4093_v48 = vmul.f32 0.044715, %v4029_v20  ;;  %v4095_v40 = vmul.f32 0.044715, %v4031_v22  ;;  %v3782_v51 = vpop.f32.mrb[86].mxu1  ;;  %v3895_v36 = vpop.f32.mrb[118].mxu0 }
 0x866   : > { %v4216_v34 = vmul.f32 0.7978846, %v4152_v32  ;;  %v4218_v28 = vmul.f32 0.7978846, %v4154_v49  ;;  %v4156_v44 = vadd.f32 %v4092_v60, %v10036_v16  ;;  %v4158_v31 = vadd.f32 %v4094_v61, %v10039_v59  ;;  %v3784_v6 = vpop.f32.mrb[87].mxu1  ;;  %v3897_v35 = vpop.f32.mrb[119].mxu0 }
 0x867   : > { %v4217_v0 = vmul.f32 0.7978846, %v4153_v25  ;;  %v4219_v4 = vmul.f32 0.7978846, %v4155_v54  ;;  %v4157_v10 = vadd.f32 %v4093_v48, %v10046_v38  ;;  %v4159_v26 = vadd.f32 %v4095_v40, %v10049_v57 }
 0x868   : > { %7977 = vtanh.f32 %v4216_v34  ;;  %v4220_v52 = vmul.f32 0.7978846, %v4156_v44  ;;  %v4222_v20 = vmul.f32 0.7978846, %v4158_v31  ;;  %v10076_v22 = vadd.f32 %v3778_v2, %v10007_v19 }
 0x869   : > { %7979 = vtanh.f32 %v4218_v28  ;;  %v4221_v32 = vmul.f32 0.7978846, %v4157_v10  ;;  %v4223_v49 = vmul.f32 0.7978846, %v4159_v26  ;;  %v10079_v60 = vadd.f32 %v3891_v62, %v10010_v45 }
 0x86a   : > { %7981 = vtanh.f32 %v4217_v0  ;;  %v3968_v61 = vmul.f32 %v10076_v22, %v10076_v22  ;;  %v10084_v25 = vadd.f32 %v3780_v7, %v10013_v21  ;;  %v10087_v34 = vadd.f32 %v3893_v12, %v10017_v29 }
 0x86b   : > { %11750 = vst [vmem:[#allocation60_spill] sm:$0xff] %v10079_v60  ;;  %7983 = vtanh.f32 %v4219_v4  ;;  %v3970_v2 = vmul.f32 %v10079_v60, %v10079_v60  ;;  %v10092_v10 = vadd.f32 %v3782_v51, %v10007_v19  ;;  %v10095_v44 = vadd.f32 %v3895_v36, %v10010_v45  ;;  %v10097_v62 = vpop.f32.mrb[88].mxu1  ;;  %v10099_v54 = vpop.f32.mrb[120].mxu0 }
 0x86c   : > { %11751 = vst [vmem:[#allocation61_spill] sm:$0xff] %v10087_v34  ;;  %7985 = vtanh.f32 %v4220_v52  ;;  %v4032_v7 = vmul.f32 %v3968_v61, %v10076_v22  ;;  %v3969_v12 = vmul.f32 %v10084_v25, %v10084_v25  ;;  %v3971_v48 = vmul.f32 %v10087_v34, %v10087_v34  ;;  %v10106_v40 = vpop.f32.mrb[89].mxu1  ;;  %v10108_v51 = vpop.f32.mrb[121].mxu0 }
 0x86d   : > { %11752 = vst [vmem:[#allocation62_spill] sm:$0xff] %v10095_v44  ;;  %7987 = vtanh.f32 %v4222_v20  ;;  %v4034_v36 = vmul.f32 %v3970_v2, %v10079_v60  ;;  %v3972_v28 = vmul.f32 %v10092_v10, %v10092_v10  ;;  %v3974_v31 = vmul.f32 %v10095_v44, %v10095_v44  ;;  %v10115_v0 = vpop.f32.mrb[90].mxu1  ;;  %v10117_v4 = vpop.f32.mrb[122].mxu0 }
 0x86e   : > { %7989 = vtanh.f32 %v4221_v32  ;;  %v4096_v26 = vmul.f32 0.044715, %v4032_v7  ;;  %v4033_v52 = vmul.f32 %v3969_v12, %v10084_v25  ;;  %v4035_v61 = vmul.f32 %v3971_v48, %v10087_v34  ;;  %v10121_v43 = vpop.f32.mrb[91].mxu1  ;;  %v10123_v20 = vpop.f32.mrb[123].mxu0 }
 0x86f   : > { %7991 = vtanh.f32 %v4223_v49  ;;  %v4098_v2 = vmul.f32 0.044715, %v4034_v36  ;;  %v4036_v27 = vmul.f32 %v3972_v28, %v10092_v10  ;;  %v4038_v18 = vmul.f32 %v3974_v31, %v10095_v44 }
 0x870   : > { %v4160_v53 = vadd.f32 %v4096_v26, %v10076_v22  ;;  %v4097_v9 = vmul.f32 0.044715, %v4033_v52  ;;  %v4099_v5 = vmul.f32 0.044715, %v4035_v61  ;;  %v10129_v32 = vadd.f32 %v3784_v6, %v10013_v21 }
 0x871   : > { %v4162_v7 = vadd.f32 %v4098_v2, %v10079_v60  ;;  %v4100_v12 = vmul.f32 0.044715, %v4036_v27  ;;  %v4102_v48 = vmul.f32 0.044715, %v4038_v18  ;;  %v10133_v33 = vadd.f32 %v3897_v35, %v10017_v29 }
 0x872   : > { %v7978_v49 = vpop.eup %7977  ;;  %v4224_v36 = vmul.f32 0.7978846, %v4160_v53  ;;  %v4161_v28 = vadd.f32 %v4097_v9, %v10084_v25  ;;  %v4163_v31 = vadd.f32 %v4099_v5, %v10087_v34  ;;  %v3973_v26 = vmul.f32 %v10129_v32, %v10129_v32 }
 0x873   : > { %11753 = vst [vmem:[#allocation63_spill] sm:$0xff] %v10133_v33  ;;  %v7980_v52 = vpop.eup %7979  ;;  %v4344_v61 = vadd.f32 1.0, %v7978_v49  ;;  %v4226_v6 = vmul.f32 0.7978846, %v4162_v7  ;;  %v4164_v46 = vadd.f32 %v4100_v12, %v10092_v10  ;;  %v4166_v27 = vadd.f32 %v4102_v48, %v10095_v44  ;;  %v10141_v18 = vpop.f32.mrb[92].mxu1 }
 0x874   : > { %v10143_v35 = vpop.f32.mrb[124].mxu0  ;;  %v10145_v2 = vpop.eup %7981  ;;  %v4346_v53 = vadd.f32 1.0, %v7980_v52  ;;  %7993 = vtanh.f32 %v4224_v36  ;;  %v4225_v9 = vmul.f32 0.7978846, %v4161_v28  ;;  %v4227_v5 = vmul.f32 0.7978846, %v4163_v31 }
 0x875   : > { %v10147_v39 = vpop.f32.mrb[93].mxu1  ;;  %v10149_v23 = vpop.eup %7983  ;;  %v4408_v49 = vmul.f32 0.5, %v4344_v61  ;;  %7995 = vtanh.f32 %v4226_v6  ;;  %v4228_v7 = vmul.f32 0.7978846, %v4164_v46  ;;  %v4230_v12 = vmul.f32 0.7978846, %v4166_v27 }
 0x876   : > { %11754 = vst [vmem:[#allocation64_spill] sm:$0xff] %v10149_v23  ;;  %v10151_v13 = vpop.f32.mrb[125].mxu0  ;;  %v7986_v48 = vpop.eup %7985  ;;  %v4410_v3 = vmul.f32 0.5, %v4346_v53  ;;  %7997 = vtanh.f32 %v4225_v9  ;;  %v4037_v8 = vmul.f32 %v3973_v26, %v10129_v32  ;;  %v3975_v36 = vmul.f32 %v10133_v33, %v10133_v33 }
 0x877   : > { %v10156_v28 = vpop.f32.mrb[94].mxu1  ;;  %v10158_v31 = vpop.f32.mrb[126].mxu0  ;;  %v10161_v61 = vmul.f32 %v4408_v49, %v10020_v50  ;;  %v4348_v46 = vadd.f32 1.0, %v7986_v48  ;;  %7999 = vtanh.f32 %v4227_v5  ;;  %v10165_v6 = vadd.f32 %v10097_v62, %v10007_v19 }
 0x878   : > { %v7988_v52 = vpop.eup %7987  ;;  %v10167_v27 = vpop.f32.mrb[95].mxu1  ;;  %v10174_v9 = vmul.f32 %v4410_v3, %v10023_v47  ;;  %8001 = vtanh.f32 %v4228_v7  ;;  %v4101_v63 = vmul.f32 0.044715, %v4037_v8  ;;  %v4039_v5 = vmul.f32 %v3975_v36, %v10133_v33 }
 0x879   : > { %11755 = vst [vmem:[#allocation65_spill] sm:$0xff] %v10165_v6  ;;  %v10169_v26 = vpop.f32.mrb[127].mxu0  ;;  %v10171_v53 = vpop.eup %7989  ;;  %v4350_v55 = vadd.f32 1.0, %v7988_v52  ;;  %v4412_v49 = vmul.f32 0.5, %v4348_v46  ;;  %8003 = vtanh.f32 %v4230_v12  ;;  %v3976_v62 = vmul.f32 %v10165_v6, %v10165_v6 }
 0x87a   : > { %11756 = vst [vmem:[#allocation66_spill] sm:$0xff] %v10174_v9  ;;  %v10176_v50 = vpop.eup %7991  ;;  %v4165_v11 = vadd.f32 %v4101_v63, %v10129_v32  ;;  %v10184_v1 = vadd.f32 %v10099_v54, %v10010_v45  ;;  %v10188_v3 = vadd.f32 %v10106_v40, %v10013_v21  ;;  %v4103_v47 = vmul.f32 0.044715, %v4039_v5 }
 0x87b   : > { %11757 = vst [vmem:[#allocation67_spill] sm:$0xff] %v10176_v50  ;;  %v4414_v48 = vmul.f32 0.5, %v4350_v55  ;;  %v10191_v8 = vmul.f32 %v4412_v49, %v10036_v16  ;;  %v4040_v7 = vmul.f32 %v3976_v62, %v10165_v6  ;;  %v10196_v12 = vadd.f32 %v10108_v51, %v10017_v29  ;;  %v10198_v55 = vpop.f32.mrb[96].mxu1  ;;  %v10200_v63 = vpop.f32.mrb[128].mxu0 }
 0x87c   : > { %11758 = vst [vmem:[#allocation68_spill] sm:$0xff] %v10184_v1  ;;  %11759 = vst [vmem:[#allocation69_spill] sm:$0xff] %v10188_v3  ;;  %v4229_v36 = vmul.f32 0.7978846, %v4165_v11  ;;  %v3978_v40 = vmul.f32 %v10184_v1, %v10184_v1  ;;  %v3977_v16 = vmul.f32 %v10188_v3, %v10188_v3  ;;  %v10209_v52 = vpop.f32.mrb[97].mxu1  ;;  %v10211_v46 = vpop.f32.mrb[129].mxu0  ;;  %v4167_v49 = vadd.f32 %v4103_v47, %v10133_v33 }
 0x87d   : > { %11760 = vst [vmem:[#allocation70_spill] sm:$0xff] %v10196_v12  ;;  %v10203_v54 = vmul.f32 %v4414_v48, %v10039_v59  ;;  %v4104_v5 = vmul.f32 0.044715, %v4040_v7  ;;  %v3979_v59 = vmul.f32 %v10196_v12, %v10196_v12  ;;  %v10218_v11 = vpop.f32.mrb[98].mxu1  ;;  %v10220_v62 = vpop.f32.mrb[130].mxu0  ;;  %v10238_v17 = vadd.f32 %v10115_v0, %v10007_v19 }
 0x87e   : > { %v10222_v48 = vpop.eup %7993  ;;  %8005 = vtanh.f32 %v4229_v36  ;;  %v4042_v56 = vmul.f32 %v3978_v40, %v10184_v1  ;;  %v4041_v51 = vmul.f32 %v3977_v16, %v10188_v3  ;;  %v10228_v58 = vpop.f32.mrb[99].mxu1  ;;  %v4231_v15 = vmul.f32 0.7978846, %v4167_v49 }
 0x87f   : > { %11761 = vst [vmem:[#allocation71_spill] sm:$0xff] %v10203_v54  ;;  %v10230_v47 = vpop.f32.mrb[131].mxu0  ;;  %v10232_v7 = vpop.eup %7995  ;;  %v4168_v30 = vadd.f32 %v4104_v5, %v10165_v6  ;;  %v4043_v41 = vmul.f32 %v3979_v59, %v10196_v12  ;;  %11763 = vst [vmem:[#allocation73_spill] sm:$0xff] %v10238_v17  ;;  %v10244_v16 = vadd.f32 %v10117_v4, %v10010_v45 }
 0x880   : > { %11762 = vst [vmem:[#allocation72_spill] sm:$0xff] %v10232_v7  ;;  %v10240_v36 = vpop.eup %7997  ;;  %v4106_v40 = vmul.f32 0.044715, %v4042_v56  ;;  %v4105_v24 = vmul.f32 0.044715, %v4041_v51  ;;  %v10248_v14 = vadd.f32 %v10121_v43, %v10013_v21  ;;  %8007 = vtanh.f32 %v4231_v15 }
 0x881   : > { %11764 = vst [vmem:[#allocation74_spill] sm:$0xff] %v10244_v16  ;;  %v10250_v49 = vpop.eup %7999  ;;  %v4232_v5 = vmul.f32 0.7978846, %v4168_v30  ;;  %v4107_v59 = vmul.f32 0.044715, %v4043_v41  ;;  %v3980_v0 = vmul.f32 %v10238_v17, %v10238_v17  ;;  %v3982_v4 = vmul.f32 %v10244_v16, %v10244_v16 }
 0x882   : > { %11765 = vst [vmem:[#allocation75_spill] sm:$0xff] %v10248_v14  ;;  %11766 = vst [vmem:[#allocation76_spill] sm:$0xff] %v10250_v49  ;;  %v10254_v9 = vpop.eup %8001  ;;  %v4170_v56 = vadd.f32 %v4106_v40, %v10184_v1  ;;  %v4169_v51 = vadd.f32 %v4105_v24, %v10188_v3  ;;  %v3981_v43 = vmul.f32 %v10248_v14, %v10248_v14 }
 0x883   : > { %v10262_v54 = vpop.eup %8003  ;;  %8009 = vtanh.f32 %v4232_v5  ;;  %v4171_v30 = vadd.f32 %v4107_v59, %v10196_v12  ;;  %v4044_v41 = vmul.f32 %v3980_v0, %v10238_v17  ;;  %v10268_v15 = vadd.f32 %v10123_v20, %v10017_v29  ;;  %v10270_v40 = vpop.f32.mrb[100].mxu1 }
 0x884   : > { %11767 = vst [vmem:[#allocation77_spill] sm:$0xff] %v10262_v54  ;;  %v10272_v24 = vpop.f32.mrb[132].mxu0  ;;  %v4234_v1 = vmul.f32 0.7978846, %v4170_v56  ;;  %v4233_v44 = vmul.f32 0.7978846, %v4169_v51  ;;  %v4046_v60 = vmul.f32 %v3982_v4, %v10244_v16  ;;  %v4045_v33 = vmul.f32 %v3981_v43, %v10248_v14 }
 0x885   : > { %11768 = vst [vmem:[#allocation78_spill] sm:$0xff] %v10268_v15  ;;  %v10276_v34 = vpop.f32.mrb[101].mxu1  ;;  %v10278_v5 = vpop.f32.mrb[133].mxu0  ;;  %v4235_v59 = vmul.f32 0.7978846, %v4171_v30  ;;  %v3983_v20 = vmul.f32 %v10268_v15, %v10268_v15  ;;  %v10284_v12 = vadd.f32 %v10141_v18, %v10007_v19  ;;  %v10292_v43 = vadd.f32 %v10143_v35, %v10010_v45 }
 0x886   : > { %v4108_v0 = vmul.f32 0.044715, %v4044_v41  ;;  %v10286_v57 = vpop.f32.mrb[102].mxu1  ;;  %v10288_v56 = vpop.f32.mrb[134].mxu0  ;;  %8011 = vtanh.f32 %v4234_v1  ;;  %v4110_v51 = vmul.f32 0.044715, %v4046_v60  ;;  %v10351_v6 = vadd.f32 %v10158_v31, %v10010_v45 }
 0x887   : > { %11769 = vst [vmem:[#allocation79_spill] sm:$0xff] %v10284_v12  ;;  %v4109_v4 = vmul.f32 0.044715, %v4045_v33  ;;  %11770 = vst [vmem:[#allocation80_spill] sm:$0xff] %v10292_v43  ;;  %v10294_v30 = vpop.f32.mrb[103].mxu1  ;;  %v10296_v41 = vpop.f32.mrb[135].mxu0  ;;  %8013 = vtanh.f32 %v4233_v44  ;;  %v4047_v18 = vmul.f32 %v3983_v20, %v10268_v15  ;;  %v3984_v42 = vmul.f32 %v10284_v12, %v10284_v12 }
 0x888   : > { %v4172_v54 = vadd.f32 %v4108_v0, %v10238_v17  ;;  %v10302_v7 = vpop.eup %8005  ;;  %8015 = vtanh.f32 %v4235_v59  ;;  %v4174_v1 = vadd.f32 %v4110_v51, %v10244_v16  ;;  %v3986_v60 = vmul.f32 %v10292_v43, %v10292_v43  ;;  %11776 = vst [vmem:[#allocation86_spill] sm:$0xff] %v10351_v6 }
 0x889   : > { %v4173_v33 = vadd.f32 %v4109_v4, %v10248_v14  ;;  %v4111_v49 = vmul.f32 0.044715, %v4047_v18  ;;  %v4048_v44 = vmul.f32 %v3984_v42, %v10284_v12  ;;  %v10311_v0 = vadd.f32 %v10147_v39, %v10013_v21 }
 0x88a   : > { %v4236_v35 = vmul.f32 0.7978846, %v4172_v54  ;;  %v4238_v20 = vmul.f32 0.7978846, %v4174_v1  ;;  %v4050_v23 = vmul.f32 %v3986_v60, %v10292_v43  ;;  %v10316_v59 = vadd.f32 %v10151_v13, %v10017_v29  ;;  %v10318_v51 = vpop.eup %8007 }
 0x88b   : > { %11771 = vst [vmem:[#allocation81_spill] sm:$0xff] %v10311_v0  ;;  %v4237_v50 = vmul.f32 0.7978846, %v4173_v33  ;;  %11773 = vst [vmem:[#allocation83_spill] sm:$0xff] %v10318_v51  ;;  %v4175_v54 = vadd.f32 %v4111_v49, %v10268_v15  ;;  %v4112_v4 = vmul.f32 0.044715, %v4048_v44  ;;  %v3985_v42 = vmul.f32 %v10311_v0, %v10311_v0 }
 0x88c   : > { %11772 = vst [vmem:[#allocation82_spill] sm:$0xff] %v10316_v59  ;;  %8017 = vtanh.f32 %v4236_v35  ;;  %v10323_v18 = vpop.f32.mrb[104].mxu1  ;;  %v10325_v39 = vpop.f32.mrb[136].mxu0  ;;  %v4114_v1 = vmul.f32 0.044715, %v4050_v23  ;;  %v3987_v33 = vmul.f32 %v10316_v59, %v10316_v59  ;;  %v10331_v13 = vadd.f32 %v10156_v28, %v10007_v19 }
 0x88d   : > { %8019 = vtanh.f32 %v4238_v20  ;;  %v10333_v60 = vpop.f32.mrb[105].mxu1  ;;  %v10335_v49 = vpop.f32.mrb[137].mxu0  ;;  %v4239_v44 = vmul.f32 0.7978846, %v4175_v54  ;;  %v4176_v16 = vadd.f32 %v4112_v4, %v10284_v12  ;;  %v4049_v20 = vmul.f32 %v3985_v42, %v10311_v0 }
 0x88e   : > { %11774 = vst [vmem:[#allocation84_spill] sm:$0xff] %v10331_v13  ;;  %v10337_v35 = vpop.eup %8009  ;;  %8021 = vtanh.f32 %v4237_v50  ;;  %v10341_v23 = vpop.f32.mrb[106].mxu1  ;;  %v4178_v51 = vadd.f32 %v4114_v1, %v10292_v43  ;;  %v4051_v28 = vmul.f32 %v3987_v33, %v10316_v59  ;;  %v3988_v17 = vmul.f32 %v10331_v13, %v10331_v13 }
 0x88f   : > { %11775 = vst [vmem:[#allocation85_spill] sm:$0xff] %v10337_v35  ;;  %v10343_v15 = vpop.f32.mrb[138].mxu0  ;;  %v10353_v50 = vpop.f32.mrb[107].mxu1  ;;  %8023 = vtanh.f32 %v4239_v44  ;;  %v4240_v4 = vmul.f32 0.7978846, %v4176_v16  ;;  %v10359_v12 = vadd.f32 %v10167_v27, %v10013_v21  ;;  %v3990_v31 = vmul.f32 %v10351_v6, %v10351_v6 }
 0x890   : > { %v10355_v54 = vpop.f32.mrb[139].mxu0  ;;  %v4113_v42 = vmul.f32 0.044715, %v4049_v20  ;;  %v10361_v1 = vpop.eup %8011  ;;  %v4242_v33 = vmul.f32 0.7978846, %v4178_v51  ;;  %v4052_v14 = vmul.f32 %v3988_v17, %v10331_v13  ;;  %v10373_v27 = vadd.f32 %v10169_v26, %v10017_v29 }
 0x891   : > { %11777 = vst [vmem:[#allocation87_spill] sm:$0xff] %v10359_v12  ;;  %11778 = vst [vmem:[#allocation88_spill] sm:$0xff] %v10361_v1  ;;  %v4115_v43 = vmul.f32 0.044715, %v4051_v28  ;;  %v10366_v3 = vpop.eup %8013  ;;  %8025 = vtanh.f32 %v4240_v4  ;;  %v3989_v16 = vmul.f32 %v10359_v12, %v10359_v12  ;;  %v4054_v28 = vmul.f32 %v3990_v31, %v10351_v6 }
 0x892   : > { %v4177_v44 = vadd.f32 %v4113_v42, %v10311_v0  ;;  %11779 = vst [vmem:[#allocation89_spill] sm:$0xff] %v10373_v27  ;;  %v10375_v20 = vpop.eup %8015  ;;  %8027 = vtanh.f32 %v4242_v33  ;;  %v4116_v51 = vmul.f32 0.044715, %v4052_v14  ;;  %v3991_v42 = vmul.f32 %v10373_v27, %v10373_v27 }
 0x893   : > { %11780 = vst [vmem:[#allocation90_spill] sm:$0xff] %v10375_v20  ;;  %v4179_v17 = vadd.f32 %v4115_v43, %v10316_v59  ;;  %v4053_v4 = vmul.f32 %v3989_v16, %v10359_v12  ;;  %v10384_v0 = vadd.f32 %v10198_v55, %v10007_v19  ;;  %v10386_v26 = vpop.f32.mrb[108].mxu1  ;;  %v10388_v35 = vpop.f32.mrb[140].mxu0  ;;  %v4118_v14 = vmul.f32 0.044715, %v4054_v28 }
 0x894   : > { %v4241_v1 = vmul.f32 0.7978846, %v4177_v44  ;;  %11782 = vst [vmem:[#allocation92_spill] sm:$0xff] %v10388_v35  ;;  %v4180_v43 = vadd.f32 %v4116_v51, %v10331_v13  ;;  %v10393_v31 = vadd.f32 %v10200_v63, %v10010_v45  ;;  %v10395_v44 = vpop.f32.mrb[109].mxu1  ;;  %v10397_v16 = vpop.f32.mrb[141].mxu0  ;;  %v4055_v20 = vmul.f32 %v3991_v42, %v10373_v27 }
 0x895   : > { %11781 = vst [vmem:[#allocation91_spill] sm:$0xff] %v10384_v0  ;;  %v4243_v33 = vmul.f32 0.7978846, %v4179_v17  ;;  %11784 = vst [vmem:[#allocation94_spill] sm:$0xff] %v10395_v44  ;;  %v4117_v55 = vmul.f32 0.044715, %v4053_v4  ;;  %v3992_v17 = vmul.f32 %v10384_v0, %v10384_v0  ;;  %v4182_v13 = vadd.f32 %v4118_v14, %v10351_v6 }
 0x896   : > { %11783 = vst [vmem:[#allocation93_spill] sm:$0xff] %v10393_v31  ;;  %11785 = vst [vmem:[#allocation95_spill] sm:$0xff] %v10397_v16  ;;  %v10399_v59 = vpop.eup %8017  ;;  %8029 = vtanh.f32 %v4241_v1  ;;  %v10404_v35 = vpop.f32.mrb[110].mxu1  ;;  %v4244_v63 = vmul.f32 0.7978846, %v4180_v43  ;;  %v3994_v16 = vmul.f32 %v10393_v31, %v10393_v31  ;;  %v10428_v6 = vadd.f32 %v10211_v46, %v10017_v29 }
 0x897   : > { %11786 = vst [vmem:[#allocation96_spill] sm:$0xff] %v10404_v35  ;;  %v10406_v51 = vpop.f32.mrb[142].mxu0  ;;  %v10408_v28 = vpop.eup %8019  ;;  %8031 = vtanh.f32 %v4243_v33  ;;  %v4181_v44 = vadd.f32 %v4117_v55, %v10359_v12  ;;  %v4119_v35 = vmul.f32 0.044715, %v4055_v20  ;;  %v10423_v33 = vadd.f32 %v10209_v52, %v10013_v21 }
 0x898   : > { %11787 = vst [vmem:[#allocation97_spill] sm:$0xff] %v10406_v51  ;;  %11788 = vst [vmem:[#allocation98_spill] sm:$0xff] %v10408_v28  ;;  %v10413_v1 = vpop.f32.mrb[111].mxu1  ;;  %v10415_v4 = vpop.f32.mrb[143].mxu0  ;;  %v4056_v51 = vmul.f32 %v3992_v17, %v10384_v0  ;;  %8033 = vtanh.f32 %v4244_v63  ;;  %v4246_v43 = vmul.f32 0.7978846, %v4182_v13  ;;  %v4058_v14 = vmul.f32 %v3994_v16, %v10393_v31 }
 0x899   : > { %11789 = vst [vmem:[#allocation99_spill] sm:$0xff] %v10415_v4  ;;  %v10417_v42 = vpop.eup %8021  ;;  %11790 = vst [vmem:[#allocation100_spill] sm:$0xff] %v10423_v33  ;;  %v4245_v4 = vmul.f32 0.7978846, %v4181_v44  ;;  %v4183_v55 = vadd.f32 %v4119_v35, %v10373_v27  ;;  %v3993_v17 = vmul.f32 %v10423_v33, %v10423_v33  ;;  %v3995_v13 = vmul.f32 %v10428_v6, %v10428_v6 }
 0x89a   : > { %11791 = vst [vmem:[#allocation101_spill] sm:$0xff] %v10428_v6  ;;  %v10430_v28 = vpop.eup %8023  ;;  %v4120_v20 = vmul.f32 0.044715, %v4056_v51  ;;  %8035 = vtanh.f32 %v4246_v43  ;;  %v4122_v52 = vmul.f32 0.044715, %v4058_v14  ;;  %v10439_v16 = vadd.f32 %v10218_v11, %v10007_v19 }
 0x89b   : > { %11792 = vst [vmem:[#allocation102_spill] sm:$0xff] %v10430_v28  ;;  %v10441_v46 = vpop.eup %8025  ;;  %8037 = vtanh.f32 %v4245_v4  ;;  %v4247_v63 = vmul.f32 0.7978846, %v4183_v55  ;;  %v4057_v35 = vmul.f32 %v3993_v17, %v10423_v33  ;;  %v4059_v14 = vmul.f32 %v3995_v13, %v10428_v6 }
 0x89c   : > { %v4184_v44 = vadd.f32 %v4120_v20, %v10384_v0  ;;  %v10445_v51 = vpop.eup %8027  ;;  %v4186_v43 = vadd.f32 %v4122_v52, %v10393_v31  ;;  %v3996_v27 = vmul.f32 %v10439_v16, %v10439_v16  ;;  %v10453_v11 = vadd.f32 %v10220_v62, %v10010_v45 }
 0x89d   : > { %11793 = vst [vmem:[#allocation103_spill] sm:$0xff] %v10445_v51  ;;  %8039 = vtanh.f32 %v4247_v63  ;;  %v4121_v55 = vmul.f32 0.044715, %v4057_v35  ;;  %v10457_v20 = vadd.f32 %v10228_v58, %v10013_v21  ;;  %v4123_v51 = vmul.f32 0.044715, %v4059_v14 }
 0x89e   : > { %11794 = vst [vmem:[#allocation104_spill] sm:$0xff] %v10453_v11  ;;  %v4248_v4 = vmul.f32 0.7978846, %v4184_v44  ;;  %v4250_v17 = vmul.f32 0.7978846, %v4186_v43  ;;  %v4060_v52 = vmul.f32 %v3996_v27, %v10439_v16  ;;  %v3998_v13 = vmul.f32 %v10453_v11, %v10453_v11 }
 0x89f   : > { %v4185_v62 = vadd.f32 %v4121_v55, %v10423_v33  ;;  %v3997_v63 = vmul.f32 %v10457_v20, %v10457_v20  ;;  %v10469_v44 = vadd.f32 %v10230_v47, %v10017_v29  ;;  %v4187_v27 = vadd.f32 %v4123_v51, %v10428_v6 }
 0x8a0   : > { %v10462_v31 = vpop.eup %8029  ;;  %8041 = vtanh.f32 %v4248_v4  ;;  %v4124_v35 = vmul.f32 0.044715, %v4060_v52  ;;  %v4062_v43 = vmul.f32 %v3998_v13, %v10453_v11  ;;  %v4345_v28 = vadd.f32 1.0, %v10145_v2 }
 0x8a1   : > { %11795 = vst [vmem:[#allocation105_spill] sm:$0xff] %v10469_v44  ;;  %v10471_v58 = vpop.eup %8031  ;;  %8043 = vtanh.f32 %v4250_v17  ;;  %v4249_v14 = vmul.f32 0.7978846, %v4185_v62  ;;  %v4061_v4 = vmul.f32 %v3997_v63, %v10457_v20  ;;  %v3999_v55 = vmul.f32 %v10469_v44, %v10469_v44 }
 0x8a2   : > { %11796 = vst [vmem:[#allocation106_spill] sm:$0xff] %v10471_v58  ;;  %v10479_v0 = vpop.eup %8033  ;;  %v4251_v47 = vmul.f32 0.7978846, %v4187_v27  ;;  %v4188_v33 = vadd.f32 %v4124_v35, %v10439_v16  ;;  %v4126_v58 = vmul.f32 0.044715, %v4062_v43  ;;  %v4349_v17 = vadd.f32 1.0, %v10171_v53 }
 0x8a3   : > { %8045 = vtanh.f32 %v4249_v14  ;;  %v4125_v51 = vmul.f32 0.044715, %v4061_v4  ;;  %v4063_v52 = vmul.f32 %v3999_v55, %v10469_v44  ;;  %v4409_v13 = vmul.f32 0.5, %v4345_v28 }
 0x8a4   : > { %v10484_v62 = vpop.eup %8035  ;;  %8047 = vtanh.f32 %v4251_v47  ;;  %v4252_v63 = vmul.f32 0.7978846, %v4188_v33  ;;  %v4190_v6 = vadd.f32 %v4126_v58, %v10453_v11  ;;  %v4413_v2 = vmul.f32 0.5, %v4349_v17  ;;  %v7705_v47 = vld [vmem:[#allocation13 + $0x100] ss:$8 sps:$4 sm:$0xff]  }
 0x8a5   : > { %11797 = vst [vmem:[#allocation107_spill] sm:$0xff] %v10484_v62  ;;  %v10487_v12 = vpop.eup %8037  ;;  %v4189_v27 = vadd.f32 %v4125_v51, %v10457_v20  ;;  %v4127_v35 = vmul.f32 0.044715, %v4063_v52  ;;  %v4473_v43 = vmul.f32 %v4409_v13, %v10026_v37  ;;  %v10493_v53 = vadd.f32 %v10270_v40, %v10007_v19  ;;  %v7710_v13 = vld [vmem:[#allocation13 + $0x114] ss:$8 sps:$4 sm:$0xff]  }
 0x8a6   : > { %8049 = vtanh.f32 %v4252_v63  ;;  %v4254_v28 = vmul.f32 0.7978846, %v4190_v6  ;;  %v4477_v14 = vmul.f32 %v4413_v2, %v10046_v38  ;;  %v10498_v33 = vadd.f32 %v10272_v24, %v10010_v45 }
 0x8a7   : > { %v10500_v58 = vpop.eup %8039  ;;  %v4253_v4 = vmul.f32 0.7978846, %v4189_v27  ;;  %v4191_v55 = vadd.f32 %v4127_v35, %v10469_v44  ;;  %v4000_v37 = vmul.f32 %v10493_v53, %v10493_v53  ;;  %v10507_v40 = vadd.f32 %v10276_v34, %v10013_v21 }
 0x8a8   : > { %11798 = vst [vmem:[#allocation108_spill] sm:$0xff] %v10498_v33  ;;  %11799 = vst [vmem:[#allocation109_spill] sm:$0xff] %v10500_v58  ;;  %8051 = vtanh.f32 %v4254_v28  ;;  %v4537_v6 = vpack.c.bf16 %v4477_v14, %v4473_v43  ;;  %v4002_v38 = vmul.f32 %v10498_v33, %v10498_v33  ;;  %v10513_v24 = vadd.f32 %v10278_v5, %v10017_v29 }
 0x8a9   : > { %8053 = vtanh.f32 %v4253_v4  ;;  %v4255_v51 = vmul.f32 0.7978846, %v4191_v55  ;;  %v4064_v52 = vmul.f32 %v4000_v37, %v10493_v53  ;;  %v4001_v34 = vmul.f32 %v10507_v40, %v10507_v40 }
 0x8aa   : > { %v10515_v17 = vpop.eup %8041  ;;  %4996 = vmatprep.mubr.bf16.mxu1 %v4537_v6  ;;  %v4066_v2 = vmul.f32 %v4002_v38, %v10498_v33  ;;  %v4003_v27 = vmul.f32 %v10513_v24, %v10513_v24  ;;  %v10527_v5 = vadd.f32 %v10286_v57, %v10007_v19  ;;  %v10531_v35 = vadd.f32 %v10288_v56, %v10010_v45  ;;  %v7708_v57 = vld [vmem:[#allocation13 + $0x110] ss:$8 sps:$4 sm:$0xff]  }
 0x8ab   : > { %v10520_v63 = vpop.eup %8043  ;;  %8055 = vtanh.f32 %v4255_v51  ;;  %v11802_v43 = vpack.c.bf16 %v10191_v8, %v10161_v61  ;;  %v4128_v28 = vmul.f32 0.044715, %v4064_v52  ;;  %v4065_v14 = vmul.f32 %v4001_v34, %v10507_v40  ;;  %v7713_v51 = vld [vmem:[#allocation13 + $0x124] ss:$8 sps:$4 sm:$0xff]  }
 0x8ac   : > { %11800 = vst [vmem:[#allocation110_spill] sm:$0xff] %v10520_v63  ;;  %11801 = vst [vmem:[#allocation111_spill] sm:$0xff] %v10531_v35  ;;  %v10539_v4 = vadd.f32 %v10294_v30, %v10013_v21  ;;  %v4130_v55 = vmul.f32 0.044715, %v4066_v2  ;;  %v4067_v37 = vmul.f32 %v4003_v27, %v10513_v24  ;;  %v4004_v56 = vmul.f32 %v10527_v5, %v10527_v5 }
 0x8ad   : > { %4997 = vmatmul.mubr.bf16.vlgmr.msra.gmra.mrb[112].mxu1 %v11802_v43  ;;  %v4006_v6 = vmul.f32 %v10531_v35, %v10531_v35  ;;  %v10546_v61 = vpop.eup %8045  ;;  %v4192_v8 = vadd.f32 %v4128_v28, %v10493_v53  ;;  %v4129_v38 = vmul.f32 0.044715, %v4065_v14 }
 0x8ae   : > { %5078 = vmatpush1.bf16.msra.mxu1 %v7705_v47  ;;  %v4005_v30 = vmul.f32 %v10539_v4, %v10539_v4  ;;  %v10553_v47 = vadd.f32 %v10296_v41, %v10017_v29  ;;  %v10555_v52 = vpop.eup %8047  ;;  %v4194_v34 = vadd.f32 %v4130_v55, %v10498_v33  ;;  %v4131_v2 = vmul.f32 0.044715, %v4067_v37  ;;  %v7711_v41 = vld [vmem:[#allocation13 + $0x120] ss:$8 sps:$4 sm:$0xff]  }
 0x8af   : > { %5079 = vmatprep.subr.bf16.mxu1 %v7710_v13  ;;  %11804 = vst [vmem:[#allocation113_spill] sm:$0xff] %v10555_v52  ;;  %v4068_v27 = vmul.f32 %v4004_v56, %v10527_v5  ;;  %v4070_v43 = vmul.f32 %v4006_v6, %v10531_v35  ;;  %v4256_v28 = vmul.f32 0.7978846, %v4192_v8  ;;  %v4193_v13 = vadd.f32 %v4129_v38, %v10507_v40  ;;  %v7716_v38 = vld [vmem:[#allocation13 + $0x134] ss:$8 sps:$4 sm:$0xff]  }
 0x8b0   : > { %11803 = vst [vmem:[#allocation112_spill] sm:$0xff] %v10553_v47  ;;  %v4069_v14 = vmul.f32 %v4005_v30, %v10539_v4  ;;  %v4007_v11 = vmul.f32 %v10553_v47, %v10553_v47  ;;  %v10564_v44 = vpop.eup %8049  ;;  %v4258_v63 = vmul.f32 0.7978846, %v4194_v34  ;;  %v4195_v52 = vadd.f32 %v4131_v2, %v10513_v24 }
 0x8b1   : > { %v4132_v55 = vmul.f32 0.044715, %v4068_v27  ;;  %v4134_v37 = vmul.f32 0.044715, %v4070_v43  ;;  %8057 = vtanh.f32 %v4256_v28  ;;  %v4257_v56 = vmul.f32 0.7978846, %v4193_v13 }
 0x8b2   : > { %5080 = vmatpush1.bf16.msra.mxu1 %v7708_v57  ;;  %v4133_v6 = vmul.f32 0.044715, %v4069_v14  ;;  %v4071_v8 = vmul.f32 %v4007_v11, %v10553_v47  ;;  %v10568_v30 = vpop.eup %8051  ;;  %8059 = vtanh.f32 %v4258_v63  ;;  %v4259_v33 = vmul.f32 0.7978846, %v4195_v52  ;;  %v7714_v43 = vld [vmem:[#allocation13 + $0x130] ss:$8 sps:$4 sm:$0xff]  }
 0x8b3   : > { %5081 = vmatprep.subr.bf16.mxu1 %v7713_v51  ;;  %v4196_v62 = vadd.f32 %v4132_v55, %v10527_v5  ;;  %v4198_v34 = vadd.f32 %v4134_v37, %v10531_v35  ;;  %v10572_v58 = vpop.eup %8053  ;;  %8061 = vtanh.f32 %v4257_v56  ;;  %v4353_v27 = vadd.f32 1.0, %v10240_v36  ;;  %v7719_v37 = vld [vmem:[#allocation13 + $0x144] ss:$8 sps:$4 sm:$0xff]  }
 0x8b4   : > { %v4197_v57 = vadd.f32 %v4133_v6, %v10539_v4  ;;  %v4135_v2 = vmul.f32 0.044715, %v4071_v8  ;;  %8063 = vtanh.f32 %v4259_v33  ;;  %v4357_v28 = vadd.f32 1.0, %v10302_v7 }
 0x8b5   : > { %v4260_v11 = vmul.f32 0.7978846, %v4196_v62  ;;  %v4262_v51 = vmul.f32 0.7978846, %v4198_v34  ;;  %v10577_v63 = vpop.eup %8055  ;;  %v4417_v14 = vmul.f32 0.5, %v4353_v27  ;;  %v4352_v55 = vadd.f32 1.0, %v10222_v48 }
 0x8b6   : > { %5082 = vmatpush1.bf16.msra.mxu1 %v7711_v41  ;;  %v4261_v52 = vmul.f32 0.7978846, %v4197_v57  ;;  %v4199_v13 = vadd.f32 %v4135_v2, %v10553_v47  ;;  %v4421_v56 = vmul.f32 0.5, %v4357_v28  ;;  %v4356_v36 = vadd.f32 1.0, %v10254_v9  ;;  %v7722_v34 = vld [vmem:[#allocation13 + $0x154] ss:$8 sps:$4 sm:$0xff]  }
 0x8b7   : > { %5083 = vmatprep.subr.bf16.mxu1 %v7716_v38  ;;  %8065 = vtanh.f32 %v4260_v11  ;;  %v10584_v62 = vadd.f32 %v10323_v18, %v10007_v19  ;;  %v4481_v33 = vmul.f32 %v4417_v14, %v10084_v25  ;;  %v4416_v41 = vmul.f32 0.5, %v4352_v55  ;;  %v7717_v38 = vld [vmem:[#allocation13 + $0x140] ss:$8 sps:$4 sm:$0xff]  }
 0x8b8   : > { %8067 = vtanh.f32 %v4262_v51  ;;  %v4263_v7 = vmul.f32 0.7978846, %v4199_v13  ;;  %v4485_v6 = vmul.f32 %v4421_v56, %v10129_v32  ;;  %v4420_v8 = vmul.f32 0.5, %v4356_v36  ;;  %v7720_v13 = vld [vmem:[#allocation13 + $0x150] ss:$8 sps:$4 sm:$0xff]  }
 0x8b9   : > { %8069 = vtanh.f32 %v4261_v52  ;;  %v4008_v48 = vmul.f32 %v10584_v62, %v10584_v62  ;;  %v4480_v9 = vmul.f32 %v4416_v41, %v10076_v22  ;;  %v10593_v18 = vadd.f32 %v10325_v39, %v10010_v45  ;;  %v7725_v56 = vld [vmem:[#allocation13 + $0x164] ss:$8 sps:$4 sm:$0xff]  }
 0x8ba   : > { %5084 = vmatpush1.bf16.msra.mxu1 %v7714_v43  ;;  %8071 = vtanh.f32 %v4263_v7  ;;  %v10597_v25 = vadd.f32 %v10333_v60, %v10013_v21  ;;  %v4541_v32 = vpack.c.bf16 %v4485_v6, %v4481_v33  ;;  %v4484_v57 = vmul.f32 %v4420_v8, %v10092_v10 }
 0x8bb   : > { %11805 = vst [vmem:[#allocation114_spill] sm:$0xff] %v10593_v18  ;;  %5085 = vmatprep.subr.bf16.mxu1 %v7719_v37  ;;  %v4072_v2 = vmul.f32 %v4008_v48, %v10584_v62  ;;  %v10603_v27 = vadd.f32 %v10335_v49, %v10017_v29  ;;  %v10605_v22 = vpop.eup %8057  ;;  %v4010_v39 = vmul.f32 %v10593_v18, %v10593_v18 }
 0x8bc   : > { %v4009_v60 = vmul.f32 %v10597_v25, %v10597_v25  ;;  %v10613_v43 = vadd.f32 %v10341_v23, %v10007_v19  ;;  %v10617_v10 = vadd.f32 %v10343_v15, %v10010_v45  ;;  %v10619_v11 = vpop.eup %8059  ;;  %5006 = vmatprep.mubr.bf16.mxu1 %v4541_v32  ;;  %v4540_v49 = vpack.c.bf16 %v4484_v57, %v4480_v9 }
 0x8bd   : > { %11806 = vst [vmem:[#allocation115_spill] sm:$0xff] %v10603_v27  ;;  %v4136_v51 = vmul.f32 0.044715, %v4072_v2  ;;  %v4011_v28 = vmul.f32 %v10603_v27, %v10603_v27  ;;  %v10625_v52 = vadd.f32 %v10353_v50, %v10013_v21  ;;  %v10627_v23 = vpop.eup %8061  ;;  %v4074_v14 = vmul.f32 %v4010_v39, %v10593_v18  ;;  %v7723_v39 = vld [vmem:[#allocation13 + $0x160] ss:$8 sps:$4 sm:$0xff]  }
 0x8be   : > { %11807 = vst [vmem:[#allocation116_spill] sm:$0xff] %v10617_v10  ;;  %5086 = vmatpush1.bf16.msra.mxu1 %v7717_v38  ;;  %v4073_v15 = vmul.f32 %v4009_v60, %v10597_v25  ;;  %v4012_v55 = vmul.f32 %v10613_v43, %v10613_v43  ;;  %v4014_v37 = vmul.f32 %v10617_v10, %v10617_v10  ;;  %v10635_v36 = vpop.eup %8063 }
 0x8bf   : > { %5087 = vmatprep.subr.bf16.mxu1 %v7722_v34  ;;  %5007 = vmatmul.mubr.bf16.gmra.mrb[116].mxu1 %v4540_v49  ;;  %v4200_v50 = vadd.f32 %v4136_v51, %v10584_v62  ;;  %v4075_v7 = vmul.f32 %v4011_v28, %v10603_v27  ;;  %v4013_v33 = vmul.f32 %v10625_v52, %v10625_v52  ;;  %v4138_v6 = vmul.f32 0.044715, %v4074_v14  ;;  %v7728_v14 = vld [vmem:[#allocation13 + $0x174] ss:$8 sps:$4 sm:$0xff]  }
 0x8c0   : > { %v10643_v41 = vadd.f32 %v10355_v54, %v10017_v29  ;;  %v4137_v8 = vmul.f32 0.044715, %v4073_v15  ;;  %v4076_v48 = vmul.f32 %v4012_v55, %v10613_v43  ;;  %v4078_v38 = vmul.f32 %v4014_v37, %v10617_v10 }
 0x8c1   : > { %v10647_v9 = vpop.eup %8065  ;;  %v4264_v34 = vmul.f32 0.7978846, %v4200_v50  ;;  %v4139_v32 = vmul.f32 0.044715, %v4075_v7  ;;  %v4077_v57 = vmul.f32 %v4013_v33, %v10625_v52  ;;  %v4202_v54 = vadd.f32 %v4138_v6, %v10593_v18 }
 0x8c2   : > { %11808 = vst [vmem:[#allocation117_spill] sm:$0xff] %v10643_v41  ;;  %v4015_v2 = vmul.f32 %v10643_v41, %v10643_v41  ;;  %5088 = vmatpush1.bf16.msra.mxu1 %v7720_v13  ;;  %v10652_v60 = vpop.eup %8067  ;;  %v4201_v49 = vadd.f32 %v4137_v8, %v10597_v25  ;;  %v4140_v51 = vmul.f32 0.044715, %v4076_v48  ;;  %v4142_v28 = vmul.f32 0.044715, %v4078_v38 }
 0x8c3   : > { %5089 = vmatprep.subr.bf16.mxu1 %v7725_v56  ;;  %v10656_v15 = vpop.eup %8069  ;;  %8073 = vtanh.f32 %v4264_v34  ;;  %v4203_v55 = vadd.f32 %v4139_v32, %v10603_v27  ;;  %v4141_v37 = vmul.f32 0.044715, %v4077_v57  ;;  %v7726_v13 = vld [vmem:[#allocation13 + $0x170] ss:$8 sps:$4 sm:$0xff]   ;;  %v4266_v33 = vmul.f32 0.7978846, %v4202_v54 }
 0x8c4   : > { %v4079_v50 = vmul.f32 %v4015_v2, %v10643_v41  ;;  %v10660_v7 = vpop.eup %8071  ;;  %v4265_v35 = vmul.f32 0.7978846, %v4201_v49  ;;  %v4204_v6 = vadd.f32 %v4140_v51, %v10613_v43  ;;  %v4206_v8 = vadd.f32 %v4142_v28, %v10617_v10  ;;  %v7731_v48 = vld [vmem:[#allocation13 + $0x184] ss:$8 sps:$4 sm:$0xff]  }
 0x8c5   : > { %v4267_v56 = vmul.f32 0.7978846, %v4203_v55  ;;  %v4205_v38 = vadd.f32 %v4141_v37, %v10625_v52  ;;  %v4361_v34 = vadd.f32 1.0, %v10366_v3  ;;  %8075 = vtanh.f32 %v4266_v33  ;;  %v11809_v55 = vld [vmem:[#allocation85_spill] sm:$0xff] }
 0x8c6   : > { %v4143_v18 = vmul.f32 0.044715, %v4079_v50  ;;  %5090 = vmatpush1.bf16.msra.mxu1 %v7723_v39  ;;  %v4268_v32 = vmul.f32 0.7978846, %v4204_v6  ;;  %v4270_v57 = vmul.f32 0.7978846, %v4206_v8  ;;  %8077 = vtanh.f32 %v4265_v35 }
 0x8c7   : > { %v4365_v2 = vadd.f32 1.0, %v10417_v42  ;;  %5091 = vmatprep.subr.bf16.mxu1 %v7728_v14  ;;  %v4269_v54 = vmul.f32 0.7978846, %v4205_v38  ;;  %v4425_v51 = vmul.f32 0.5, %v4361_v34  ;;  %8079 = vtanh.f32 %v4267_v56  ;;  %v11810_v39 = vld [vmem:[#allocation69_spill] sm:$0xff]  ;;  %v11811_v35 = vld [vmem:[#allocation75_spill] sm:$0xff] }
 0x8c8   : > { %v4207_v49 = vadd.f32 %v4143_v18, %v10643_v41  ;;  %v4360_v10 = vadd.f32 1.0, %v11809_v55  ;;  %v4364_v37 = vadd.f32 1.0, %v10399_v59  ;;  %8081 = vtanh.f32 %v4268_v32  ;;  %v7729_v42 = vld [vmem:[#allocation13 + $0x180] ss:$8 sps:$4 sm:$0xff]   ;;  %v11814_v38 = vld [vmem:[#allocation94_spill] sm:$0xff]  ;;  %v11815_v32 = vld [vmem:[#allocation65_spill] sm:$0xff] }
 0x8c9   : > { %v4429_v28 = vmul.f32 0.5, %v4365_v2  ;;  %v4489_v50 = vmul.f32 %v4425_v51, %v11810_v39  ;;  %v10673_v33 = vadd.f32 %v10386_v26, %v10007_v19  ;;  %8083 = vtanh.f32 %v4270_v57  ;;  %v11812_v8 = vld [vmem:[#allocation92_spill] sm:$0xff] }
 0x8ca   : > { %v4271_v3 = vmul.f32 0.7978846, %v4207_v49  ;;  %5092 = vmatpush1.bf16.msra.mxu1 %v7726_v13  ;;  %v4424_v14 = vmul.f32 0.5, %v4360_v10  ;;  %v4428_v6 = vmul.f32 0.5, %v4364_v37  ;;  %8085 = vtanh.f32 %v4269_v54  ;;  %v7734_v13 = vld [vmem:[#allocation13 + $0x194] ss:$8 sps:$4 sm:$0xff]  }
 0x8cb   : > { %v4493_v18 = vmul.f32 %v4429_v28, %v11811_v35  ;;  %5093 = vmatprep.subr.bf16.mxu1 %v7731_v48  ;;  %v4016_v59 = vmul.f32 %v10673_v33, %v10673_v33  ;;  %v10680_v56 = vadd.f32 %v11812_v8, %v10010_v45  ;;  %v10684_v26 = vadd.f32 %v11814_v38, %v10013_v21  ;;  %v11816_v10 = vld [vmem:[#allocation73_spill] sm:$0xff]  ;;  %v11817_v28 = vld [vmem:[#allocation95_spill] sm:$0xff]  ;;  %v11818_v39 = vld [vmem:[#allocation96_spill] sm:$0xff] }
 0x8cc   : > { %8087 = vtanh.f32 %v4271_v3  ;;  %v4488_v57 = vmul.f32 %v4424_v14, %v11815_v32  ;;  %v4492_v2 = vmul.f32 %v4428_v6, %v11816_v10  ;;  %v10697_v55 = vadd.f32 %v11817_v28, %v10017_v29  ;;  %v7732_v37 = vld [vmem:[#allocation13 + $0x190] ss:$8 sps:$4 sm:$0xff]   ;;  %v7737_v6 = vld [vmem:[#allocation13 + $0x1a4] ss:$8 sps:$4 sm:$0xff]  }
 0x8cd   : > { %11813 = vst [vmem:[#allocation85_spill] sm:$0xff] %v10680_v56  ;;  %v4545_v34 = vpack.c.bf16 %v4493_v18, %v4489_v50  ;;  %v10688_v48 = vpop.eup %8073  ;;  %v4080_v54 = vmul.f32 %v4016_v59, %v10673_v33  ;;  %v4018_v49 = vmul.f32 %v10680_v56, %v10680_v56  ;;  %v4017_v51 = vmul.f32 %v10684_v26, %v10684_v26  ;;  %v11819_v35 = vld [vmem:[#allocation97_spill] sm:$0xff] }
 0x8ce   : > { %5094 = vmatpush1.bf16.msra.mxu1 %v7729_v42  ;;  %v4544_v3 = vpack.c.bf16 %v4492_v2, %v4488_v57  ;;  %v10701_v50 = vadd.f32 %v11818_v39, %v10007_v19  ;;  %v10705_v18 = vadd.f32 %v11819_v35, %v10010_v45  ;;  %v10709_v14 = vadd.f32 %v10413_v1, %v10013_v21  ;;  %v7740_v35 = vld [vmem:[#allocation13 + $0x1b4] ss:$8 sps:$4 sm:$0xff]  }
 0x8cf   : > { %5016 = vmatprep.mubr.bf16.mxu1 %v4545_v34  ;;  %v4144_v59 = vmul.f32 0.044715, %v4080_v54  ;;  %v4082_v8 = vmul.f32 %v4018_v49, %v10680_v56  ;;  %v4081_v42 = vmul.f32 %v4017_v51, %v10684_v26  ;;  %v4019_v38 = vmul.f32 %v10697_v55, %v10697_v55  ;;  %5095 = vmatprep.subr.bf16.mxu1 %v7734_v13  ;;  %v10715_v19 = vpop.eup %8075  ;;  %v11821_v34 = vld [vmem:[#allocation99_spill] sm:$0xff] }
 0x8d0   : > { %11820 = vst [vmem:[#allocation69_spill] sm:$0xff] %v10715_v19  ;;  %5017 = vmatmul.mubr.bf16.gmra.mrb[120].mxu1 %v4544_v3  ;;  %v4020_v45 = vmul.f32 %v10701_v50, %v10701_v50  ;;  %v4022_v21 = vmul.f32 %v10705_v18, %v10705_v18  ;;  %v4021_v1 = vmul.f32 %v10709_v14, %v10709_v14  ;;  %v10727_v57 = vpop.eup %8077  ;;  %v7735_v49 = vld [vmem:[#allocation13 + $0x1a0] ss:$8 sps:$4 sm:$0xff]  }
 0x8d1   : > { %v10725_v32 = vadd.f32 %v11821_v34, %v10017_v29  ;;  %v4208_v13 = vadd.f32 %v4144_v59, %v10673_v33  ;;  %v4146_v10 = vmul.f32 0.044715, %v4082_v8  ;;  %v4145_v2 = vmul.f32 0.044715, %v4081_v42  ;;  %v10731_v51 = vpop.eup %8079 }
 0x8d2   : > { %v4083_v54 = vmul.f32 %v4019_v38, %v10697_v55  ;;  %5096 = vmatpush1.bf16.msra.mxu1 %v7732_v37  ;;  %v4084_v28 = vmul.f32 %v4020_v45, %v10701_v50  ;;  %v4086_v3 = vmul.f32 %v4022_v21, %v10705_v18  ;;  %v4085_v39 = vmul.f32 %v4021_v1, %v10709_v14  ;;  %v10738_v59 = vpop.eup %8081 }
 0x8d3   : > { %v4023_v29 = vmul.f32 %v10725_v32, %v10725_v32  ;;  %5097 = vmatprep.subr.bf16.mxu1 %v7737_v6  ;;  %v4272_v8 = vmul.f32 0.7978846, %v4208_v13  ;;  %v4210_v42 = vadd.f32 %v4146_v10, %v10680_v56  ;;  %v4209_v37 = vadd.f32 %v4145_v2, %v10684_v26  ;;  %v10742_v34 = vpop.eup %8083  ;;  %v7738_v13 = vld [vmem:[#allocation13 + $0x1b0] ss:$8 sps:$4 sm:$0xff]  }
 0x8d4   : > { %v4147_v38 = vmul.f32 0.044715, %v4083_v54  ;;  %v4148_v45 = vmul.f32 0.044715, %v4084_v28  ;;  %v4150_v41 = vmul.f32 0.044715, %v4086_v3  ;;  %v10745_v27 = vpop.eup %8085 }
 0x8d5   : > { %v4149_v21 = vmul.f32 0.044715, %v4085_v39  ;;  %v4087_v1 = vmul.f32 %v4023_v29, %v10725_v32  ;;  %8089 = vtanh.f32 %v4272_v8  ;;  %v4274_v6 = vmul.f32 0.7978846, %v4210_v42  ;;  %v7743_v39 = vld [vmem:[#allocation13 + $0x1c4] ss:$8 sps:$4 sm:$0xff]  }
 0x8d6   : > { %v4273_v19 = vmul.f32 0.7978846, %v4209_v37  ;;  %v4211_v47 = vadd.f32 %v4147_v38, %v10697_v55  ;;  %5098 = vmatpush1.bf16.msra.mxu1 %v7735_v49  ;;  %v10748_v10 = vpop.eup %8087  ;;  %v4212_v2 = vadd.f32 %v4148_v45, %v10701_v50  ;;  %v4214_v54 = vadd.f32 %v4150_v41, %v10705_v18 }
 0x8d7   : > { %v4213_v28 = vadd.f32 %v4149_v21, %v10709_v14  ;;  %v4151_v3 = vmul.f32 0.044715, %v4087_v1  ;;  %5099 = vmatprep.subr.bf16.mxu1 %v7740_v35  ;;  %8091 = vtanh.f32 %v4274_v6  ;;  %v4369_v8 = vadd.f32 1.0, %v10462_v31  ;;  %v7741_v21 = vld [vmem:[#allocation13 + $0x1c0] ss:$8 sps:$4 sm:$0xff]   ;;  %v11822_v1 = vld [vmem:[#allocation81_spill] sm:$0xff] }
 0x8d8   : > { %v4275_v29 = vmul.f32 0.7978846, %v4211_v47  ;;  %v4373_v42 = vadd.f32 1.0, %v10487_v12  ;;  %8093 = vtanh.f32 %v4273_v19  ;;  %v4276_v49 = vmul.f32 0.7978846, %v4212_v2  ;;  %v11823_v2 = vld [vmem:[#allocation87_spill] sm:$0xff] }
 0x8d9   : > { %v4278_v37 = vmul.f32 0.7978846, %v4214_v54  ;;  %v4277_v38 = vmul.f32 0.7978846, %v4213_v28  ;;  %v4215_v45 = vadd.f32 %v4151_v3, %v10725_v32  ;;  %v4433_v56 = vmul.f32 0.5, %v4369_v8 }
 0x8da   : > { %8095 = vtanh.f32 %v4275_v29  ;;  %v4437_v41 = vmul.f32 0.5, %v4373_v42  ;;  %5100 = vmatpush1.bf16.msra.mxu1 %v7738_v13  ;;  %v4368_v35 = vadd.f32 1.0, %v10441_v46  ;;  %v4372_v47 = vadd.f32 1.0, %v10479_v0  ;;  %v7746_v12 = vld [vmem:[#allocation13 + $0x1d4] ss:$8 sps:$4 sm:$0xff]   ;;  %v11825_v42 = vld [vmem:[#allocation84_spill] sm:$0xff] }
 0x8db   : > { %8097 = vtanh.f32 %v4276_v49  ;;  %v4377_v31 = vadd.f32 1.0, %v10546_v61  ;;  %5101 = vmatprep.subr.bf16.mxu1 %v7743_v39  ;;  %v4279_v19 = vmul.f32 0.7978846, %v4215_v45  ;;  %v4497_v6 = vmul.f32 %v4433_v56, %v11822_v1  ;;  %v7744_v61 = vld [vmem:[#allocation13 + $0x1d0] ss:$8 sps:$4 sm:$0xff]   ;;  %v11824_v39 = vld [vmem:[#allocation79_spill] sm:$0xff] }
 0x8dc   : > { %8099 = vtanh.f32 %v4278_v37  ;;  %v4501_v54 = vmul.f32 %v4437_v41, %v11823_v2  ;;  %v4432_v28 = vmul.f32 0.5, %v4368_v35  ;;  %v4436_v3 = vmul.f32 0.5, %v4372_v47  ;;  %v11826_v41 = vld [vmem:[#allocation100_spill] sm:$0xff] }
 0x8dd   : > { %8101 = vtanh.f32 %v4277_v38  ;;  %v4381_v13 = vadd.f32 1.0, %v10572_v58  ;;  %v4441_v46 = vmul.f32 0.5, %v4377_v31  ;;  %v4376_v0 = vadd.f32 1.0, %v10515_v17  ;;  %v7749_v38 = vld [vmem:[#allocation13 + $0x1e4] ss:$8 sps:$4 sm:$0xff]  }
 0x8de   : > { %8103 = vtanh.f32 %v4279_v19  ;;  %v4549_v29 = vpack.c.bf16 %v4501_v54, %v4497_v6  ;;  %5102 = vmatpush1.bf16.msra.mxu1 %v7741_v21  ;;  %v4496_v8 = vmul.f32 %v4432_v28, %v11824_v39  ;;  %v4500_v49 = vmul.f32 %v4436_v3, %v11825_v42  ;;  %v7747_v3 = vld [vmem:[#allocation13 + $0x1e0] ss:$8 sps:$4 sm:$0xff]  }
 0x8df   : > { %v4445_v37 = vmul.f32 0.5, %v4381_v13  ;;  %v4380_v56 = vadd.f32 1.0, %v10564_v44  ;;  %5103 = vmatprep.subr.bf16.mxu1 %v7746_v12  ;;  %v8090_v45 = vpop.eup %8089  ;;  %v4505_v58 = vmul.f32 %v4441_v46, %v11826_v41  ;;  %v4440_v35 = vmul.f32 0.5, %v4376_v0  ;;  %v11827_v44 = vld [vmem:[#allocation91_spill] sm:$0xff]  ;;  %v7750_v41 = vld [vmem:[#allocation13 + $0x1f0] ss:$8 sps:$4 sm:$0xff]  }
 0x8e0   : > { %5026 = vmatprep.mubr.bf16.mxu1 %v4549_v29  ;;  %v4385_v47 = vadd.f32 1.0, %v10627_v23  ;;  %v4389_v17 = vadd.f32 1.0, %v10656_v15  ;;  %v4548_v21 = vpack.c.bf16 %v4500_v49, %v4496_v8  ;;  %v4384_v1 = vadd.f32 1.0, %v10605_v22  ;;  %v7752_v22 = vld [vmem:[#allocation13 + $0x1f4] ss:$8 sps:$4 sm:$0xff]  }
 0x8e1   : > { %v4509_v31 = vmul.f32 %v4445_v37, %v10457_v20  ;;  %v4444_v19 = vmul.f32 0.5, %v4380_v56  ;;  %v10771_v6 = vpop.eup %8091  ;;  %v4504_v12 = vmul.f32 %v4440_v35, %v11827_v44  ;;  %v4388_v28 = vadd.f32 1.0, %v10647_v9 }
 0x8e2   : > { %v4449_v2 = vmul.f32 0.5, %v4385_v47  ;;  %v4453_v54 = vmul.f32 0.5, %v4389_v17  ;;  %5104 = vmatpush1.bf16.msra.mxu1 %v7744_v61  ;;  %v8094_v13 = vpop.eup %8093  ;;  %v4448_v29 = vmul.f32 0.5, %v4384_v1  ;;  %v4393_v20 = vadd.f32 1.0, %v10727_v57 }
 0x8e3   : > { %5027 = vmatmul.mubr.bf16.gmra.mrb[124].mxu1 %v4548_v21  ;;  %v4553_v23 = vpack.c.bf16 %v4509_v31, %v4505_v58  ;;  %v4508_v15 = vmul.f32 %v4444_v19, %v10439_v16  ;;  %5105 = vmatprep.subr.bf16.mxu1 %v7749_v38  ;;  %v4452_v8 = vmul.f32 0.5, %v4388_v28  ;;  %v4397_v9 = vadd.f32 1.0, %v10745_v27 }
 0x8e4   : > { %v10777_v46 = vpop.eup %8095  ;;  %v4513_v0 = vmul.f32 %v4449_v2, %v10507_v40  ;;  %v4517_v39 = vmul.f32 %v4453_v54, %v10539_v4  ;;  %v10783_v49 = vmul.f32 %v4448_v29, %v10493_v53  ;;  %v4457_v16 = vmul.f32 0.5, %v4393_v20  ;;  %v11828_v2 = vld [vmem:[#allocation64_spill] sm:$0xff] }
 0x8e5   : > { %v8098_v61 = vpop.eup %8097  ;;  %5036 = vmatprep.mubr.bf16.mxu1 %v4553_v23  ;;  %v4552_v42 = vpack.c.bf16 %v4508_v15, %v4504_v12  ;;  %v4392_v57 = vadd.f32 1.0, %v10688_v48  ;;  %v4516_v38 = vmul.f32 %v4452_v8, %v10527_v5  ;;  %v4461_v40 = vmul.f32 0.5, %v4397_v9  ;;  %v11830_v29 = vld [vmem:[#allocation76_spill] sm:$0xff] }
 0x8e6   : > { %v10786_v37 = vpop.eup %8099  ;;  %v4557_v56 = vpack.c.bf16 %v4517_v39, %v4513_v0  ;;  %v4396_v4 = vadd.f32 1.0, %v10738_v59  ;;  %5106 = vmatpush1.bf16.msra.mxu1 %v7747_v3  ;;  %v4521_v58 = vmul.f32 %v4457_v16, %v10597_v25  ;;  %v4401_v47 = vadd.f32 1.0, %v8094_v13  ;;  %v11831_v0 = vld [vmem:[#allocation83_spill] sm:$0xff] }
 0x8e7   : > { %v8102_v27 = vpop.eup %8101  ;;  %v4456_v35 = vmul.f32 0.5, %v4392_v57  ;;  %v4400_v53 = vadd.f32 1.0, %v8090_v45  ;;  %5107 = vmatprep.subr.bf16.mxu1 %v7752_v22  ;;  %v4556_v48 = vpack.c.bf16 %v4516_v38, %v10783_v49  ;;  %v4525_v21 = vmul.f32 %v4461_v40, %v10625_v52 }
 0x8e8   : > { %v10791_v17 = vpop.eup %8103  ;;  %v4460_v31 = vmul.f32 0.5, %v4396_v4  ;;  %v4405_v5 = vadd.f32 1.0, %v8102_v27  ;;  %v4465_v59 = vmul.f32 0.5, %v4401_v47  ;;  %v4404_v1 = vadd.f32 1.0, %v8098_v61  ;;  %v11833_v61 = vld [vmem:[#allocation58_spill] sm:$0xff]  ;;  %v11836_v4 = vld [vmem:[#allocation61_spill] sm:$0xff] }
 0x8e9   : > { %v10796_v19 = vmul.f32 %v4456_v35, %v10584_v62  ;;  %v4464_v44 = vmul.f32 0.5, %v4400_v53  ;;  %v4561_v12 = vpack.c.bf16 %v4525_v21, %v4521_v58  ;;  %v4347_v54 = vadd.f32 1.0, %v11828_v2  ;;  %v11829_v62 = vld [vmem:[#allocation67_spill] sm:$0xff]  ;;  %v11837_v58 = vld [vmem:[#allocation90_spill] sm:$0xff] }
 0x8ea   : > { %v10799_v25 = vmul.f32 %v4460_v31, %v10613_v43  ;;  %v4469_v45 = vmul.f32 0.5, %v4405_v5  ;;  %5108 = vmatpush1.bf16.msra.mxu1 %v7750_v41  ;;  %v10803_v28 = vmul.f32 %v4465_v59, %v10684_v26  ;;  %v4468_v52 = vmul.f32 0.5, %v4404_v1  ;;  %v11838_v47 = vld [vmem:[#allocation102_spill] sm:$0xff]  ;;  %v11839_v31 = vld [vmem:[#allocation63_spill] sm:$0xff]  ;;  %v11841_v1 = vld [vmem:[#allocation88_spill] sm:$0xff] }
 0x8eb   : > { %5037 = vmatmul.mubr.bf16.gmra.mrb[128].mxu1 %v4552_v42  ;;  %v10806_v3 = vmul.f32 %v4464_v44, %v10673_v33  ;;  %v4351_v13 = vadd.f32 1.0, %v11829_v62  ;;  %v4411_v15 = vmul.f32 0.5, %v4347_v54  ;;  %v4355_v20 = vadd.f32 1.0, %v11830_v29  ;;  %v11832_v33 = vld [vmem:[#allocation72_spill] sm:$0xff]  ;;  %v11845_v29 = vld [vmem:[#allocation109_spill] sm:$0xff] }
 0x8ec   : > { %5046 = vmatprep.mubr.bf16.mxu1 %v4557_v56  ;;  %v4560_v23 = vpack.c.bf16 %v10799_v25, %v10796_v19  ;;  %v10812_v43 = vmul.f32 %v4469_v45, %v10709_v14  ;;  %v10816_v22 = vmul.f32 %v4468_v52, %v10701_v50  ;;  %v4359_v39 = vadd.f32 1.0, %v11831_v0  ;;  %v11834_v14 = vld [vmem:[#allocation77_spill] sm:$0xff]  ;;  %v11835_v56 = vld [vmem:[#allocation59_spill] sm:$0xff]  ;;  %v11840_v19 = vld [vmem:[#allocation60_spill] sm:$0xff] }
 0x8ed   : > { %v4415_v26 = vmul.f32 0.5, %v4351_v13  ;;  %v4354_v8 = vadd.f32 1.0, %v11832_v33  ;;  %v10823_v42 = vmul.f32 %v4411_v15, %v11833_v61  ;;  %v4419_v49 = vmul.f32 0.5, %v4355_v20  ;;  %v11842_v25 = vld [vmem:[#allocation62_spill] sm:$0xff] }
 0x8ee   : > { %v4565_v9 = vpack.c.bf16 %v10812_v43, %v10803_v28  ;;  %v4358_v16 = vadd.f32 1.0, %v11834_v14  ;;  %v4564_v57 = vpack.c.bf16 %v10816_v22, %v10806_v3  ;;  %v4423_v38 = vmul.f32 0.5, %v4359_v39  ;;  %v11843_v28 = vld [vmem:[#allocation98_spill] sm:$0xff] }
 0x8ef   : > { %v10829_v50 = vmul.f32 %v4415_v26, %v11835_v56  ;;  %v4418_v40 = vmul.f32 0.5, %v4354_v8  ;;  %v10832_v41 = vmul.f32 %v4419_v49, %v11836_v4  ;;  %v4363_v35 = vadd.f32 1.0, %v11837_v58  ;;  %v11844_v43 = vld [vmem:[#allocation106_spill] sm:$0xff]  ;;  %v11849_v56 = vld [vmem:[#allocation103_spill] sm:$0xff] }
 0x8f0   : > { %v4422_v27 = vmul.f32 0.5, %v4358_v16  ;;  %v4367_v53 = vadd.f32 1.0, %v11838_v47  ;;  %v10839_v5 = vmul.f32 %v4423_v38, %v11839_v31  ;;  %v4362_v44 = vadd.f32 1.0, %v11841_v1  ;;  %v11846_v0 = vld [vmem:[#allocation70_spill] sm:$0xff] }
 0x8f1   : > { %v4539_v21 = vpack.c.bf16 %v10829_v50, %v10823_v42  ;;  %v10842_v59 = vmul.f32 %v4418_v40, %v11840_v19  ;;  %v4427_v2 = vmul.f32 0.5, %v4363_v35  ;;  %v4366_v52 = vadd.f32 1.0, %v11843_v28  ;;  %v11847_v33 = vld [vmem:[#allocation78_spill] sm:$0xff]  ;;  %v11852_v35 = vld [vmem:[#allocation113_spill] sm:$0xff] }
 0x8f2   : > { %v10846_v45 = vmul.f32 %v4422_v27, %v11842_v25  ;;  %v4431_v54 = vmul.f32 0.5, %v4367_v53  ;;  %v4543_v62 = vpack.c.bf16 %v10839_v5, %v10832_v41  ;;  %v4426_v13 = vmul.f32 0.5, %v4362_v44  ;;  %v11850_v40 = vld [vmem:[#allocation74_spill] sm:$0xff]  ;;  %v11851_v27 = vld [vmem:[#allocation107_spill] sm:$0xff]  ;;  %v11854_v19 = vld [vmem:[#allocation89_spill] sm:$0xff] }
 0x8f3   : > { %5047 = vmatmul.mubr.bf16.gmra.mrb[132].mxu1 %v4556_v48  ;;  %v4371_v15 = vadd.f32 1.0, %v11844_v43  ;;  %v4375_v20 = vadd.f32 1.0, %v11845_v29  ;;  %v10856_v39 = vmul.f32 %v4427_v2, %v11846_v0  ;;  %v4430_v61 = vmul.f32 0.5, %v4366_v52  ;;  %v11848_v48 = vld [vmem:[#allocation68_spill] sm:$0xff]  ;;  %v11853_v53 = vld [vmem:[#allocation82_spill] sm:$0xff] }
 0x8f4   : > { %5056 = vmatprep.mubr.bf16.mxu1 %v4561_v12  ;;  %v4542_v26 = vpack.c.bf16 %v10846_v45, %v10842_v59  ;;  %v10859_v8 = vmul.f32 %v4431_v54, %v11847_v33  ;;  %v10862_v49 = vmul.f32 %v4426_v13, %v11848_v48  ;;  %v4370_v38 = vadd.f32 1.0, %v11849_v56  ;;  %v11855_v52 = vld [vmem:[#allocation110_spill] sm:$0xff]  ;;  %v11858_v48 = vld [vmem:[#allocation101_spill] sm:$0xff] }
 0x8f5   : > { %v4435_v14 = vmul.f32 0.5, %v4371_v15  ;;  %v4439_v16 = vmul.f32 0.5, %v4375_v20  ;;  %v10868_v4 = vmul.f32 %v4430_v61, %v11850_v40  ;;  %v4374_v58 = vadd.f32 1.0, %v11851_v27  ;;  %v11856_v15 = vld [vmem:[#allocation80_spill] sm:$0xff]  ;;  %v11857_v33 = vld [vmem:[#allocation86_spill] sm:$0xff]  ;;  %v11859_v56 = vld [vmem:[#allocation105_spill] sm:$0xff] }
 0x8f6   : > { %v4547_v12 = vpack.c.bf16 %v10859_v8, %v10856_v39  ;;  %v4379_v47 = vadd.f32 1.0, %v11852_v35  ;;  %v4434_v44 = vmul.f32 0.5, %v4370_v38  ;;  %v4383_v25 = vadd.f32 1.0, %v10577_v63  ;;  %v11877_v39 = vld [vmem:[#allocation28_spill] sm:$0xff] }
 0x8f7   : > { %v10873_v31 = vmul.f32 %v4435_v14, %v11853_v53  ;;  %v10876_v1 = vmul.f32 %v4439_v16, %v11854_v19  ;;  %v4546_v2 = vpack.c.bf16 %v10868_v4, %v10862_v49  ;;  %v4438_v54 = vmul.f32 0.5, %v4374_v58  ;;  %v11878_v4 = vld [vmem:[#allocation26_spill] sm:$0xff] }
 0x8f8   : > { %v4443_v28 = vmul.f32 0.5, %v4379_v47  ;;  %v4378_v13 = vadd.f32 1.0, %v11855_v52  ;;  %v10885_v29 = vmul.f32 %v4434_v44, %v11856_v15  ;;  %v4447_v20 = vmul.f32 0.5, %v4383_v25  ;;  %v11860_v47 = vld [vmem:[#allocation93_spill] sm:$0xff]  ;;  %v11861_v25 = vld [vmem:[#allocation104_spill] sm:$0xff] }
 0x8f9   : > { %v4551_v43 = vpack.c.bf16 %v10876_v1, %v10873_v31  ;;  %v4382_v0 = vadd.f32 1.0, %v10568_v30  ;;  %v4502_v61 = vmul.f32 %v4438_v54, %v11857_v33  ;;  %v4387_v16 = vadd.f32 1.0, %v10635_v36 }
 0x8fa   : > { %v4507_v63 = vmul.f32 %v4443_v28, %v11858_v48  ;;  %v4442_v14 = vmul.f32 0.5, %v4378_v13  ;;  %v4511_v38 = vmul.f32 %v4447_v20, %v11859_v56  ;;  %v4391_v27 = vadd.f32 1.0, %v10660_v7  ;;  %v11862_v13 = vld [vmem:[#allocation112_spill] sm:$0xff] }
 0x8fb   : > { %5057 = vmatmul.mubr.bf16.gmra.mrb[136].mxu1 %v4560_v23  ;;  %v4446_v40 = vmul.f32 0.5, %v4382_v0  ;;  %v4386_v58 = vadd.f32 1.0, %v10619_v11  ;;  %v4550_v35 = vpack.c.bf16 %v4502_v61, %v10885_v29  ;;  %v4451_v53 = vmul.f32 0.5, %v4387_v16  ;;  %v11863_v29 = vld [vmem:[#allocation108_spill] sm:$0xff]  ;;  %v11864_v0 = vld [vmem:[#allocation69_spill] sm:$0xff] }
 0x8fc   : > { %5066 = vmatprep.mubr.bf16.mxu1 %v4565_v9  ;;  %v4506_v30 = vmul.f32 %v4442_v14, %v11860_v47  ;;  %v4390_v19 = vadd.f32 1.0, %v10652_v60  ;;  %v4555_v44 = vpack.c.bf16 %v4511_v38, %v4507_v63  ;;  %v4455_v36 = vmul.f32 0.5, %v4391_v27  ;;  %v11865_v60 = vld [vmem:[#allocation111_spill] sm:$0xff]  ;;  %v11867_v27 = vld [vmem:[#allocation117_spill] sm:$0xff] }
 0x8fd   : > { %v4510_v54 = vmul.f32 %v4446_v40, %v11861_v25  ;;  %v4450_v23 = vmul.f32 0.5, %v4386_v58  ;;  %v4515_v28 = vmul.f32 %v4451_v53, %v10513_v24  ;;  %v4395_v7 = vadd.f32 1.0, %v10731_v51  ;;  %v11866_v38 = vld [vmem:[#allocation115_spill] sm:$0xff]  ;;  %v11869_v25 = vld [vmem:[#allocation116_spill] sm:$0xff] }
 0x8fe   : > { %v4454_v52 = vmul.f32 0.5, %v4390_v19  ;;  %v4399_v11 = vadd.f32 1.0, %v10748_v10  ;;  %v4519_v15 = vmul.f32 %v4455_v36, %v11862_v13  ;;  %v4394_v33 = vadd.f32 1.0, %v11864_v0 }
 0x8ff   : > { %v4554_v9 = vpack.c.bf16 %v4510_v54, %v4506_v30  ;;  %v4514_v20 = vmul.f32 %v4450_v23, %v11863_v29  ;;  %v4459_v48 = vmul.f32 0.5, %v4395_v7  ;;  %v4398_v14 = vadd.f32 1.0, %v10742_v34 }
 0x900   : > { %v4518_v61 = vmul.f32 %v4454_v52, %v11865_v60  ;;  %v4463_v63 = vmul.f32 0.5, %v4399_v11  ;;  %v4559_v16 = vpack.c.bf16 %v4519_v15, %v4515_v28  ;;  %v4458_v24 = vmul.f32 0.5, %v4394_v33  ;;  %v11872_v11 = vld [vmem:[#allocation66_spill] sm:$0xff] }
 0x901   : > { %v4403_v56 = vadd.f32 1.0, %v10777_v46  ;;  %v4407_v51 = vadd.f32 1.0, %v10791_v17  ;;  %v4523_v40 = vmul.f32 %v4459_v48, %v11866_v38  ;;  %v4462_v47 = vmul.f32 0.5, %v4398_v14  ;;  %v11868_v17 = vld [vmem:[#allocation114_spill] sm:$0xff]  ;;  %v11884_v38 = vld [vmem:[#allocation31_spill] sm:$0xff] }
 0x902   : > { %v4558_v10 = vpack.c.bf16 %v4518_v61, %v4514_v20  ;;  %v4527_v58 = vmul.f32 %v4463_v63, %v11867_v27  ;;  %v4402_v34 = vadd.f32 1.0, %v10771_v6  ;;  %v4522_v19 = vmul.f32 %v4458_v24, %v11868_v17  ;;  %v11870_v6 = vld [vmem:[#allocation85_spill] sm:$0xff]  ;;  %v11881_v61 = vld [vmem:[#allocation32_spill] sm:$0xff] }
 0x903   : > { %5067 = vmatmul.mubr.bf16.gmra.mrb[140].mxu1 %v4564_v57  ;;  %v4467_v30 = vmul.f32 0.5, %v4403_v56  ;;  %v4471_v53 = vmul.f32 0.5, %v4407_v51  ;;  %v4526_v54 = vmul.f32 %v4462_v47, %v11869_v25  ;;  %v4406_v36 = vadd.f32 1.0, %v10786_v37  ;;  %v11876_v37 = vld [vmem:[#allocation25_spill] sm:$0xff]  ;;  %v11885_v17 = vld [vmem:[#allocation36_spill] sm:$0xff] }
 0x904   : > { %5109 = vmatprep.mubr.bf16.mxu1 %v4539_v21  ;;  %v4563_v46 = vpack.c.bf16 %v4527_v58, %v4523_v40  ;;  %v4466_v22 = vmul.f32 0.5, %v4402_v34  ;;  %v11871_v21 = vld [vmem:[#allocation71_spill] sm:$0xff]  ;;  %v11883_v51 = vld [vmem:[#allocation33_spill] sm:$0xff] }
 0x905   : > { %v4531_v23 = vmul.f32 %v4467_v30, %v10697_v55  ;;  %v4535_v3 = vmul.f32 %v4471_v53, %v10725_v32  ;;  %v4562_v57 = vpack.c.bf16 %v4526_v54, %v4522_v19  ;;  %v4470_v28 = vmul.f32 0.5, %v4406_v36  ;;  %v4632_v55 = vld [vmem:[%s11874_s28] sm:$0x3]  ;;  %v11886_v36 = vld [vmem:[#allocation34_spill] sm:$0xff]  ;;  %s11913_s28 = sld [smem:[#allocation130_spill]] }
 0x906   : > { %v4530_v7 = vmul.f32 %v4466_v22, %v11870_v6  ;;  %v11873_v13 = vpack.c.bf16 %v11871_v21, %v11872_v11  ;;  %v10949_v41 = vrot.slane %v4632_v55, %v11876_v37  ;;  %v11887_v22 = vld [vmem:[#allocation37_spill] sm:$0xff] }
 0x907   : > { %v4567_v52 = vpack.c.bf16 %v4535_v3, %v4531_v23  ;;  %v4534_v42 = vmul.f32 %v4470_v28, %v10705_v18  ;;  %v11875_v18 = vld [vmem:[#allocation24_spill] sm:$0xff]  ;;  %v11888_v28 = vld [vmem:[#allocation35_spill] sm:$0xff] }
 0x908   : > { %v10946_v32 = vrot.slane %v4632_v55, %v11875_v18  ;;  %v11889_v55 = vld [vmem:[#allocation40_spill] sm:$0xff] }
 0x909   : > { %v4566_v50 = vpack.c.bf16 %v4534_v42, %v4530_v7 }
 0x90b   : > { %5110 = vmatmul.mubr.bf16.vlgmr.msra.gmra.mrb[112].mxu1 %v11873_v13  ;;  %s11526_s18 = scalar_lea.hbm %s11913_s28, %s7240_s17 }
 0x90c   : > { %5119 = vmatprep.mubr.bf16.mxu1 %v4543_v62 }
 0x913   : > { %5120 = vmatmul.mubr.bf16.gmra.mrb[116].mxu1 %v4542_v26 }
 0x914   : > { %5129 = vmatprep.mubr.bf16.mxu1 %v4547_v12 }
 0x91b   : > { %5130 = vmatmul.mubr.bf16.gmra.mrb[120].mxu1 %v4546_v2  ;;  %v11879_v2 = vld [vmem:[#allocation29_spill] sm:$0xff] }
 0x91c   : > { %5139 = vmatprep.mubr.bf16.mxu1 %v4551_v43 }
 0x923   : > { %5140 = vmatmul.mubr.bf16.gmra.mrb[124].mxu1 %v4550_v35  ;;  %v11880_v35 = vld [vmem:[#allocation27_spill] sm:$0xff] }
 0x924   : > { %5149 = vmatprep.mubr.bf16.mxu1 %v4555_v44 }
 0x92b   : > { %5150 = vmatmul.mubr.bf16.gmra.mrb[128].mxu1 %v4554_v9 }
 0x92c   : > { %5159 = vmatprep.mubr.bf16.mxu1 %v4559_v16  ;;  %v11882_v16 = vld [vmem:[#allocation30_spill] sm:$0xff] }
 0x933   : > { %5160 = vmatmul.mubr.bf16.gmra.mrb[132].mxu1 %v4558_v10 }
 0x934   : > { %5169 = vmatprep.mubr.bf16.mxu1 %v4563_v46 }
 0x93b   : > { %5170 = vmatmul.mubr.bf16.gmra.mrb[136].mxu1 %v4562_v57 }
 0x93c   : > { %5179 = vmatprep.mubr.bf16.mxu1 %v4567_v52 }
 0x943   : > { %5180 = vmatmul.mubr.bf16.gmra.mrb[140].mxu1 %v4566_v50 }
 0x9de   : > { %v5111_v5 = vpop.f32.mrb[112].mxu1 }
 0x9df   : > { %v7175_v59 = vadd.f32 %v5111_v5, %v10946_v32  ;;  %v5113_v45 = vpop.f32.mrb[113].mxu1 }
 0x9e0   : > { %v7176_v62 = vadd.f32 %v5113_v45, %v10949_v41  ;;  %v5115_v26 = vpop.f32.mrb[114].mxu1 }
 0x9e1   : > { %v10954_v8 = vadd.f32 %v7175_v59, %v11877_v39  ;;  %v7177_v49 = vadd.f32 %v5115_v26, %v10946_v32  ;;  %v5117_v12 = vpop.f32.mrb[115].mxu1 }
 0x9e2   : > { %v10958_v31 = vadd.f32 %v7176_v62, %v11878_v4  ;;  %v7178_v1 = vadd.f32 %v5117_v12, %v10949_v41  ;;  %v11890_v62 = vld [vmem:[#allocation38_spill] sm:$0xff]  ;;  %v11892_v4 = vld [vmem:[#allocation39_spill] sm:$0xff] }
 0x9e3   : > { %v10962_v43 = vadd.f32 %v7177_v49, %v11879_v2  ;;  %v11891_v49 = vld [vmem:[#allocation41_spill] sm:$0xff] }
 0x9e4   : > { %v10965_v44 = vadd.f32 %v7178_v1, %v11880_v35  ;;  %v5224_v9 = vadd.f32 %v10958_v31, %v10954_v8 }
 0x9e6   : > { %v5121_v15 = vpop.f32.mrb[116].mxu1  ;;  %5225 = vadd.xlane.f32.xlu0 %v5224_v9  ;;  %v5227_v29 = vadd.f32 %v10965_v44, %v10962_v43 }
 0x9e7   : > { %v7179_v20 = vadd.f32 %v5121_v15, %v10946_v32  ;;  %v5123_v0 = vpop.f32.mrb[117].mxu1 }
 0x9e8   : > { %v7180_v33 = vadd.f32 %v5123_v0, %v10949_v41  ;;  %v5125_v60 = vpop.f32.mrb[118].mxu1  ;;  %5228 = vadd.xlane.f32.xlu1 %v5227_v29 }
 0x9e9   : > { %v10974_v48 = vadd.f32 %v7179_v20, %v11881_v61  ;;  %v7181_v63 = vadd.f32 %v5125_v60, %v10946_v32  ;;  %v5127_v14 = vpop.f32.mrb[119].mxu1 }
 0x9ea   : > { %v10978_v24 = vadd.f32 %v7180_v33, %v11882_v16  ;;  %v7182_v56 = vadd.f32 %v5127_v14, %v10949_v41  ;;  %v11893_v33 = vld [vmem:[#allocation44_spill] sm:$0xff]  ;;  %v11894_v14 = vld [vmem:[#allocation42_spill] sm:$0xff] }
 0x9eb   : > { %v10982_v10 = vadd.f32 %v7181_v63, %v11883_v51  ;;  %v11895_v51 = vld [vmem:[#allocation45_spill] sm:$0xff] }
 0x9ec   : > { %v10985_v40 = vadd.f32 %v7182_v56, %v11884_v38  ;;  %v5230_v27 = vadd.f32 %v10978_v24, %v10974_v48 }
 0x9ee   : > { %v5131_v58 = vpop.f32.mrb[120].mxu1  ;;  %5231 = vadd.xlane.f32.xlu0 %v5230_v27  ;;  %v5233_v47 = vadd.f32 %v10985_v40, %v10982_v10  ;;  %v11896_v27 = vld [vmem:[#allocation43_spill] sm:$0xff] }
 0x9ef   : > { %v7183_v30 = vadd.f32 %v5131_v58, %v10946_v32  ;;  %v5133_v53 = vpop.f32.mrb[121].mxu1 }
 0x9f0   : > { %v7184_v34 = vadd.f32 %v5133_v53, %v10949_v41  ;;  %v5135_v46 = vpop.f32.mrb[122].mxu1  ;;  %5234 = vadd.xlane.f32.xlu1 %v5233_v47 }
 0x9f1   : > { %v10994_v19 = vadd.f32 %v7183_v30, %v11885_v17  ;;  %v7185_v25 = vadd.f32 %v5135_v46, %v10946_v32  ;;  %v5137_v54 = vpop.f32.mrb[123].mxu1 }
 0x9f2   : > { %v10998_v23 = vadd.f32 %v7184_v34, %v11886_v36  ;;  %v7186_v3 = vadd.f32 %v5137_v54, %v10949_v41  ;;  %v11897_v54 = vld [vmem:[#allocation48_spill] sm:$0xff] }
 0x9f3   : > { %v11002_v57 = vadd.f32 %v7185_v25, %v11887_v22 }
 0x9f4   : > { %v11005_v52 = vadd.f32 %v7186_v3, %v11888_v28  ;;  %v5236_v6 = vadd.f32 %v10998_v23, %v10994_v19  ;;  %v11898_v28 = vld [vmem:[#allocation46_spill] sm:$0xff] }
 0x9f6   : > { %v5141_v7 = vpop.f32.mrb[124].mxu1  ;;  %5237 = vadd.xlane.f32.xlu0 %v5236_v6  ;;  %v5239_v42 = vadd.f32 %v11005_v52, %v11002_v57 }
 0x9f7   : > { %v7187_v50 = vadd.f32 %v5141_v7, %v10946_v32  ;;  %v5143_v21 = vpop.f32.mrb[125].mxu1 }
 0x9f8   : > { %v7188_v11 = vadd.f32 %v5143_v21, %v10949_v41  ;;  %v5145_v13 = vpop.f32.mrb[126].mxu1  ;;  %5240 = vadd.xlane.f32.xlu1 %v5239_v42  ;;  %v11899_v42 = vld [vmem:[#allocation49_spill] sm:$0xff]  ;;  %v11900_v21 = vld [vmem:[#allocation47_spill] sm:$0xff] }
 0x9f9   : > { %v11014_v5 = vadd.f32 %v7187_v50, %v11889_v55  ;;  %v7189_v59 = vadd.f32 %v5145_v13, %v10946_v32  ;;  %v5147_v45 = vpop.f32.mrb[127].mxu1 }
 0x9fa   : > { %v11018_v26 = vadd.f32 %v7188_v11, %v11890_v62  ;;  %v7190_v39 = vadd.f32 %v5147_v45, %v10949_v41 }
 0x9fb   : > { %v11022_v12 = vadd.f32 %v7189_v59, %v11891_v49 }
 0x9fc   : > { %v11025_v1 = vadd.f32 %v7190_v39, %v11892_v4  ;;  %v5242_v2 = vadd.f32 %v11018_v26, %v11014_v5  ;;  %v11901_v4 = vld [vmem:[#allocation52_spill] sm:$0xff] }
 0x9fe   : > { %v5151_v35 = vpop.f32.mrb[128].mxu1  ;;  %5243 = vadd.xlane.f32.xlu0 %v5242_v2  ;;  %v5245_v9 = vadd.f32 %v11025_v1, %v11022_v12 }
 0x9ff   : > { %v7191_v15 = vadd.f32 %v5151_v35, %v10946_v32  ;;  %v5153_v29 = vpop.f32.mrb[129].mxu1 }
 0xa00   : > { %v7192_v20 = vadd.f32 %v5153_v29, %v10949_v41  ;;  %v5155_v0 = vpop.f32.mrb[130].mxu1  ;;  %5246 = vadd.xlane.f32.xlu1 %v5245_v9 }
 0xa01   : > { %v11034_v60 = vadd.f32 %v7191_v15, %v11893_v33  ;;  %v7193_v61 = vadd.f32 %v5155_v0, %v10946_v32  ;;  %v5157_v63 = vpop.f32.mrb[131].mxu1  ;;  %v11902_v15 = vld [vmem:[#allocation50_spill] sm:$0xff]  ;;  %v11903_v0 = vld [vmem:[#allocation53_spill] sm:$0xff] }
 0xa02   : > { %v11038_v16 = vadd.f32 %v7192_v20, %v11894_v14  ;;  %v7194_v56 = vadd.f32 %v5157_v63, %v10949_v41 }
 0xa03   : > { %v11042_v38 = vadd.f32 %v7193_v61, %v11895_v51  ;;  %v11904_v61 = vld [vmem:[#allocation51_spill] sm:$0xff] }
 0xa04   : > { %v11045_v58 = vadd.f32 %v7194_v56, %v11896_v27  ;;  %v5248_v47 = vadd.f32 %v11038_v16, %v11034_v60 }
 0xa06   : > { %v5161_v30 = vpop.f32.mrb[132].mxu1  ;;  %5249 = vadd.xlane.f32.xlu0 %v5248_v47  ;;  %v5251_v53 = vadd.f32 %v11045_v58, %v11042_v38 }
 0xa07   : > { %v7195_v34 = vadd.f32 %v5161_v30, %v10946_v32  ;;  %v5163_v46 = vpop.f32.mrb[133].mxu1 }
 0xa08   : > { %v7196_v17 = vadd.f32 %v5163_v46, %v10949_v41  ;;  %v5165_v25 = vpop.f32.mrb[134].mxu1  ;;  %5252 = vadd.xlane.f32.xlu1 %v5251_v53 }
 0xa09   : > { %v11054_v36 = vadd.f32 %v7195_v34, %v11897_v54  ;;  %v7197_v3 = vadd.f32 %v5165_v25, %v10946_v32  ;;  %v5167_v22 = vpop.f32.mrb[135].mxu1  ;;  %v7753_v25 = vld [vmem:[#allocation15] ss:$12 sps:$4 sm:$0xff]   ;;  %v7755_v54 = vld [vmem:[#allocation15 + $0x4] ss:$12 sps:$4 sm:$0xff]  }
 0xa0a   : > { %v11058_v6 = vadd.f32 %v7196_v17, %v11898_v28  ;;  %v7198_v7 = vadd.f32 %v5167_v22, %v10949_v41  ;;  %5919 = vmatprep.subr.bf16.mxu0 %v7755_v54  ;;  %7143 = vmatprep.subr.bf16.mxu1 %v7755_v54  ;;  %v7756_v22 = vld [vmem:[#allocation15 + $0x18] ss:$12 sps:$4 sm:$0xff]   ;;  %v7761_v28 = vld [vmem:[#allocation15 + $0x34] ss:$12 sps:$4 sm:$0xff]  }
 0xa0b   : > { %v11062_v50 = vadd.f32 %v7197_v3, %v11899_v42  ;;  %v7758_v3 = vld [vmem:[#allocation15 + $0x1c] ss:$12 sps:$4 sm:$0xff]   ;;  %5920 = vmatpush1.bf16.msra.mxu0 %v7753_v25  ;;  %7159 = vmatpush1.bf16.msra.mxu1 %v7753_v25  ;;  %v7767_v42 = vld [vmem:[#allocation15 + $0x64] ss:$12 sps:$4 sm:$0xff]  }
 0xa0c   : > { %v11065_v11 = vadd.f32 %v7198_v7, %v11900_v21  ;;  %v5254_v13 = vadd.f32 %v11058_v6, %v11054_v36  ;;  %5921 = vmatprep.subr.bf16.mxu0 %v7758_v3  ;;  %7144 = vmatprep.subr.bf16.mxu1 %v7758_v3  ;;  %v7759_v7 = vld [vmem:[#allocation15 + $0x30] ss:$12 sps:$4 sm:$0xff]   ;;  %v7765_v21 = vld [vmem:[#allocation15 + $0x60] ss:$12 sps:$4 sm:$0xff]  }
 0xa0d   : > { %v11905_v25 = vld [vmem:[#allocation56_spill] sm:$0xff]  ;;  %v11906_v54 = vld [vmem:[#allocation54_spill] sm:$0xff] }
 0xa0e   : > { %v5171_v55 = vpop.f32.mrb[136].mxu1  ;;  %5255 = vadd.xlane.f32.xlu0 %v5254_v13  ;;  %v5257_v59 = vadd.f32 %v11065_v11, %v11062_v50  ;;  %v7770_v13 = vld [vmem:[#allocation15 + $0x7c] ss:$12 sps:$4 sm:$0xff]  }
 0xa0f   : > { %v7199_v45 = vadd.f32 %v5171_v55, %v10946_v32  ;;  %v5173_v62 = vpop.f32.mrb[137].mxu1  ;;  %5922 = vmatpush1.bf16.msra.mxu0 %v7756_v22  ;;  %7160 = vmatpush1.bf16.msra.mxu1 %v7756_v22  ;;  %v7768_v55 = vld [vmem:[#allocation15 + $0x78] ss:$12 sps:$4 sm:$0xff]  }
 0xa10   : > { %v7200_v39 = vadd.f32 %v5173_v62, %v10949_v41  ;;  %v5175_v49 = vpop.f32.mrb[138].mxu1  ;;  %5258 = vadd.xlane.f32.xlu1 %v5257_v59  ;;  %5923 = vmatprep.subr.bf16.mxu0 %v7761_v28  ;;  %v7773_v59 = vld [vmem:[#allocation15 + $0x94] ss:$12 sps:$4 sm:$0xff]   ;;  %v7776_v62 = vld [vmem:[#allocation15 + $0xac] ss:$12 sps:$4 sm:$0xff]  }
 0xa11   : > { %v11074_v2 = vadd.f32 %v7199_v45, %v11901_v4  ;;  %v7201_v35 = vadd.f32 %v5175_v49, %v10946_v32  ;;  %v5177_v9 = vpop.f32.mrb[139].mxu1  ;;  %7145 = vmatprep.subr.bf16.mxu1 %v7761_v28  ;;  %v7771_v45 = vld [vmem:[#allocation15 + $0x90] ss:$12 sps:$4 sm:$0xff]   ;;  %v7777_v4 = vld [vmem:[#allocation15 + $0xc0] ss:$12 sps:$4 sm:$0xff]  }
 0xa12   : > { %v11078_v29 = vadd.f32 %v7200_v39, %v11902_v15  ;;  %v7202_v20 = vadd.f32 %v5177_v9, %v10949_v41  ;;  %v7774_v39 = vld [vmem:[#allocation15 + $0xa8] ss:$12 sps:$4 sm:$0xff]   ;;  %v7779_v49 = vld [vmem:[#allocation15 + $0xc4] ss:$12 sps:$4 sm:$0xff]  }
 0xa13   : > { %v11082_v33 = vadd.f32 %v7201_v35, %v11903_v0  ;;  %5924 = vmatpush1.bf16.msra.mxu0 %v7759_v7  ;;  %7161 = vmatpush1.bf16.msra.mxu1 %v7759_v7  ;;  %v7782_v35 = vld [vmem:[#allocation15 + $0xdc] ss:$12 sps:$4 sm:$0xff]   ;;  %v7780_v9 = vld [vmem:[#allocation15 + $0xd8] ss:$12 sps:$4 sm:$0xff]  }
 0xa14   : > { %v11085_v63 = vadd.f32 %v7202_v20, %v11904_v61  ;;  %v5260_v14 = vadd.f32 %v11078_v29, %v11074_v2 }
 0xa16   : > { %v5181_v56 = vpop.f32.mrb[140].mxu1  ;;  %5261 = vadd.xlane.f32.xlu0 %v5260_v14  ;;  %v5263_v51 = vadd.f32 %v11085_v63, %v11082_v33 }
 0xa17   : > { %v11092_v27 = vadd.f32 %v5181_v56, %v10946_v32  ;;  %v5183_v47 = vpop.f32.mrb[141].mxu1 }
 0xa18   : > { %v11095_v30 = vadd.f32 %v5183_v47, %v10949_v41  ;;  %v5185_v53 = vpop.f32.mrb[142].mxu1  ;;  %5264 = vadd.xlane.f32.xlu1 %v5263_v51 }
 0xa19   : > { %v11098_v34 = vadd.f32 %v5185_v53, %v10946_v32  ;;  %v5187_v46 = vpop.f32.mrb[143].mxu1  ;;  %v7764_v32 = vld [vmem:[#allocation15 + $0x4c] ss:$12 sps:$4 sm:$0xff]  }
 0xa1a   : > { %v11101_v17 = vadd.f32 %v5187_v46, %v10949_v41  ;;  %v7762_v41 = vld [vmem:[#allocation15 + $0x48] ss:$12 sps:$4 sm:$0xff]   ;;  %5925 = vmatprep.subr.bf16.mxu0 %v7764_v32  ;;  %7146 = vmatprep.subr.bf16.mxu1 %v7764_v32 }
 0xa1b   : > { %5926 = vmatpush1.bf16.msra.mxu0 %v7762_v41  ;;  %7162 = vmatpush1.bf16.msra.mxu1 %v7762_v41 }
 0xa1c   : > { %5927 = vmatprep.subr.bf16.mxu0 %v7767_v42  ;;  %7147 = vmatprep.subr.bf16.mxu1 %v7767_v42 }
 0xa1f   : > { %5928 = vmatpush1.bf16.msra.mxu0 %v7765_v21  ;;  %7163 = vmatpush1.bf16.msra.mxu1 %v7765_v21 }
 0xa20   : > { %5929 = vmatprep.subr.bf16.mxu0 %v7770_v13  ;;  %7148 = vmatprep.subr.bf16.mxu1 %v7770_v13 }
 0xa23   : > { %5930 = vmatpush1.bf16.msra.mxu0 %v7768_v55  ;;  %7164 = vmatpush1.bf16.msra.mxu1 %v7768_v55 }
 0xa24   : > { %5931 = vmatprep.subr.bf16.mxu0 %v7773_v59  ;;  %7149 = vmatprep.subr.bf16.mxu1 %v7773_v59 }
 0xa27   : > { %5932 = vmatpush1.bf16.msra.mxu0 %v7771_v45  ;;  %7165 = vmatpush1.bf16.msra.mxu1 %v7771_v45 }
 0xa28   : > { %5933 = vmatprep.subr.bf16.mxu0 %v7776_v62  ;;  %7150 = vmatprep.subr.bf16.mxu1 %v7776_v62 }
 0xa2b   : > { %5934 = vmatpush1.bf16.msra.mxu0 %v7774_v39  ;;  %7166 = vmatpush1.bf16.msra.mxu1 %v7774_v39 }
 0xa2c   : > { %5935 = vmatprep.subr.bf16.mxu0 %v7779_v49  ;;  %7151 = vmatprep.subr.bf16.mxu1 %v7779_v49 }
 0xa2f   : > { %5936 = vmatpush1.bf16.msra.mxu0 %v7777_v4  ;;  %7167 = vmatpush1.bf16.msra.mxu1 %v7777_v4 }
 0xa30   : > { %5937 = vmatprep.subr.bf16.mxu0 %v7782_v35  ;;  %7152 = vmatprep.subr.bf16.mxu1 %v7782_v35 }
 0xa33   : > { %5938 = vmatpush1.bf16.msra.mxu0 %v7780_v9  ;;  %7168 = vmatpush1.bf16.msra.mxu1 %v7780_v9 }
 0xa73   : > { %v5226_v15 = vpop.xlane.xlu0 %5225 }
 0xa74   : > { %v5272_v20 = vmul.f32 0.00390625, %v5226_v15 }
 0xa75   : > { %v5229_v0 = vpop.xlane.xlu1 %5228 }
 0xa76   : > { %v11104_v61 = vsub.f32 %v10954_v8, %v5272_v20  ;;  %v11107_v14 = vsub.f32 %v10958_v31, %v5272_v20  ;;  %v5273_v56 = vmul.f32 0.00390625, %v5229_v0  ;;  %v11121_v8 = vadd.f32 %v11092_v27, %v11905_v25 }
 0xa77   : > { %v11125_v31 = vadd.f32 %v11095_v30, %v11906_v54 }
 0xa78   : > { %v5320_v51 = vmul.f32 %v11104_v61, %v11104_v61  ;;  %v5321_v47 = vmul.f32 %v11107_v14, %v11107_v14  ;;  %v11114_v53 = vsub.f32 %v10962_v43, %v5273_v56  ;;  %v11117_v46 = vsub.f32 %v10965_v44, %v5273_v56  ;;  %v11907_v43 = vld [vmem:[#allocation57_spill] sm:$0xff]  ;;  %v11908_v44 = vld [vmem:[#allocation55_spill] sm:$0xff] }
 0xa79   : > { %v11133_v7 = vadd.f32 %v11098_v34, %v11907_v43  ;;  %v11137_v32 = vadd.f32 %v11101_v17, %v11908_v44  ;;  %v5266_v34 = vadd.f32 %v11125_v31, %v11121_v8 }
 0xa7a   : > { %v5322_v3 = vmul.f32 %v11114_v53, %v11114_v53  ;;  %v5323_v22 = vmul.f32 %v11117_v46, %v11117_v46  ;;  %v5352_v28 = vadd.f32 %v5321_v47, %v5320_v51 }
 0xa7b   : > { %v5232_v27 = vpop.xlane.xlu0 %5231  ;;  %v5269_v17 = vadd.f32 %v11137_v32, %v11133_v7 }
 0xa7c   : > { %v5274_v41 = vmul.f32 0.00390625, %v5232_v27  ;;  %5353 = vadd.xlane.f32.xlu0 %v5352_v28  ;;  %v5355_v30 = vadd.f32 %v5323_v22, %v5322_v3 }
 0xa7d   : > { %v5235_v42 = vpop.xlane.xlu1 %5234 }
 0xa7e   : > { %v11140_v21 = vsub.f32 %v10974_v48, %v5274_v41  ;;  %v11143_v13 = vsub.f32 %v10978_v24, %v5274_v41  ;;  %v5275_v55 = vmul.f32 0.00390625, %v5235_v42  ;;  %5356 = vadd.xlane.f32.xlu1 %v5355_v30 }
 0xa80   : > { %v5324_v59 = vmul.f32 %v11140_v21, %v11140_v21  ;;  %v5325_v45 = vmul.f32 %v11143_v13, %v11143_v13  ;;  %v11154_v48 = vsub.f32 %v10982_v10, %v5275_v55  ;;  %v11157_v24 = vsub.f32 %v10985_v40, %v5275_v55  ;;  %5267 = vadd.xlane.f32.xlu0 %v5266_v34 }
 0xa82   : > { %v5326_v62 = vmul.f32 %v11154_v48, %v11154_v48  ;;  %v5327_v39 = vmul.f32 %v11157_v24, %v11157_v24  ;;  %5270 = vadd.xlane.f32.xlu1 %v5269_v17  ;;  %v5358_v49 = vadd.f32 %v5325_v45, %v5324_v59 }
 0xa83   : > { %v5238_v4 = vpop.xlane.xlu0 %5237 }
 0xa84   : > { %v5276_v35 = vmul.f32 0.00390625, %v5238_v4  ;;  %5359 = vadd.xlane.f32.xlu0 %v5358_v49  ;;  %v5361_v9 = vadd.f32 %v5327_v39, %v5326_v62 }
 0xa85   : > { %v5241_v15 = vpop.xlane.xlu1 %5240 }
 0xa86   : > { %v11164_v10 = vsub.f32 %v10994_v19, %v5276_v35  ;;  %v11167_v40 = vsub.f32 %v10998_v23, %v5276_v35  ;;  %v5277_v20 = vmul.f32 0.00390625, %v5241_v15  ;;  %5362 = vadd.xlane.f32.xlu1 %v5361_v9 }
 0xa88   : > { %v5328_v0 = vmul.f32 %v11164_v10, %v11164_v10  ;;  %v5329_v56 = vmul.f32 %v11167_v40, %v11167_v40  ;;  %v11174_v51 = vsub.f32 %v11002_v57, %v5277_v20  ;;  %v11177_v47 = vsub.f32 %v11005_v52, %v5277_v20 }
 0xa8a   : > { %v5330_v19 = vmul.f32 %v11174_v51, %v11174_v51  ;;  %v5331_v23 = vmul.f32 %v11177_v47, %v11177_v47  ;;  %v5364_v25 = vadd.f32 %v5329_v56, %v5328_v0  ;;  %v7783_v56 = vld [vmem:[#allocation15 + $0xf0] ss:$12 sps:$4 sm:$0xff]  }
 0xa8b   : > { %v5244_v54 = vpop.xlane.xlu0 %5243 }
 0xa8c   : > { %v5278_v3 = vmul.f32 0.00390625, %v5244_v54  ;;  %5365 = vadd.xlane.f32.xlu0 %v5364_v25  ;;  %v5367_v22 = vadd.f32 %v5331_v23, %v5330_v19  ;;  %v7785_v19 = vld [vmem:[#allocation15 + $0xf4] ss:$12 sps:$4 sm:$0xff]   ;;  %v7788_v25 = vld [vmem:[#allocation15 + $0x10c] ss:$12 sps:$4 sm:$0xff]  }
 0xa8d   : > { %v5247_v28 = vpop.xlane.xlu1 %5246  ;;  %5939 = vmatprep.subr.bf16.mxu0 %v7785_v19  ;;  %7153 = vmatprep.subr.bf16.mxu1 %v7785_v19 }
 0xa8e   : > { %v11184_v43 = vsub.f32 %v11014_v5, %v5278_v3  ;;  %v11187_v57 = vsub.f32 %v11018_v26, %v5278_v3  ;;  %v5279_v52 = vmul.f32 0.00390625, %v5247_v28  ;;  %5368 = vadd.xlane.f32.xlu1 %v5367_v22  ;;  %5940 = vmatpush1.bf16.msra.mxu0 %v7783_v56  ;;  %v7791_v28 = vld [vmem:[#allocation15 + $0x124] ss:$12 sps:$4 sm:$0xff]  }
 0xa8f   : > { %5941 = vmatprep.subr.bf16.mxu0 %v7788_v25  ;;  %7169 = vmatpush1.bf16.msra.mxu1 %v7783_v56 }
 0xa90   : > { %v5332_v44 = vmul.f32 %v11184_v43, %v11184_v43  ;;  %v5333_v27 = vmul.f32 %v11187_v57, %v11187_v57  ;;  %v11194_v41 = vsub.f32 %v11022_v12, %v5279_v52  ;;  %v11197_v30 = vsub.f32 %v11025_v1, %v5279_v52  ;;  %7154 = vmatprep.subr.bf16.mxu1 %v7788_v25 }
 0xa92   : > { %v5334_v5 = vmul.f32 %v11194_v41, %v11194_v41  ;;  %v5335_v26 = vmul.f32 %v11197_v30, %v11197_v30  ;;  %v5370_v42 = vadd.f32 %v5333_v27, %v5332_v44 }
 0xa93   : > { %v5250_v55 = vpop.xlane.xlu0 %5249 }
 0xa94   : > { %v5280_v34 = vmul.f32 0.00390625, %v5250_v55  ;;  %5371 = vadd.xlane.f32.xlu0 %v5370_v42  ;;  %v5373_v17 = vadd.f32 %v5335_v26, %v5334_v5  ;;  %v7794_v55 = vld [vmem:[#allocation15 + $0x13c] ss:$12 sps:$4 sm:$0xff]  }
 0xa95   : > { %v5253_v59 = vpop.xlane.xlu1 %5252 }
 0xa96   : > { %v11204_v45 = vsub.f32 %v11034_v60, %v5280_v34  ;;  %v11207_v12 = vsub.f32 %v11038_v16, %v5280_v34  ;;  %v5281_v1 = vmul.f32 0.00390625, %v5253_v59  ;;  %5374 = vadd.xlane.f32.xlu1 %v5373_v17 }
 0xa98   : > { %v5336_v62 = vmul.f32 %v11204_v45, %v11204_v45  ;;  %v5337_v39 = vmul.f32 %v11207_v12, %v11207_v12  ;;  %v11214_v49 = vsub.f32 %v11042_v38, %v5281_v1  ;;  %v11217_v4 = vsub.f32 %v11045_v58, %v5281_v1 }
 0xa9a   : > { %v5338_v60 = vmul.f32 %v11214_v49, %v11214_v49  ;;  %v5339_v16 = vmul.f32 %v11217_v4, %v11217_v4  ;;  %v5376_v35 = vadd.f32 %v5337_v39, %v5336_v62 }
 0xa9b   : > { %v5256_v9 = vpop.xlane.xlu0 %5255 }
 0xa9c   : > { %v5282_v15 = vmul.f32 0.00390625, %v5256_v9  ;;  %5377 = vadd.xlane.f32.xlu0 %v5376_v35  ;;  %v5379_v20 = vadd.f32 %v5339_v16, %v5338_v60 }
 0xa9d   : > { %v5259_v0 = vpop.xlane.xlu1 %5258 }
 0xa9e   : > { %v11224_v38 = vsub.f32 %v11054_v36, %v5282_v15  ;;  %v11227_v58 = vsub.f32 %v11058_v6, %v5282_v15  ;;  %v5283_v23 = vmul.f32 0.00390625, %v5259_v0  ;;  %5380 = vadd.xlane.f32.xlu1 %v5379_v20  ;;  %v7786_v6 = vld [vmem:[#allocation15 + $0x108] ss:$12 sps:$4 sm:$0xff]  }
 0xa9f   : > { %5942 = vmatpush1.bf16.msra.mxu0 %v7786_v6  ;;  %7170 = vmatpush1.bf16.msra.mxu1 %v7786_v6  ;;  %v7798_v20 = vld [vmem:[#allocation15 + $0x168] ss:$12 sps:$4 sm:$0xff]  }
 0xaa0   : > { %v5340_v54 = vmul.f32 %v11224_v38, %v11224_v38  ;;  %v5341_v3 = vmul.f32 %v11227_v58, %v11227_v58  ;;  %v11234_v22 = vsub.f32 %v11062_v50, %v5283_v23  ;;  %v11237_v36 = vsub.f32 %v11065_v11, %v5283_v23  ;;  %v7789_v11 = vld [vmem:[#allocation15 + $0x120] ss:$12 sps:$4 sm:$0xff]   ;;  %5943 = vmatprep.subr.bf16.mxu0 %v7791_v28  ;;  %v7801_v0 = vld [vmem:[#allocation15 + $0xc8] ss:$12 sps:$4 sm:$0xff]  }
 0xaa1   : > { %7155 = vmatprep.subr.bf16.mxu1 %v7791_v28 }
 0xaa2   : > { %v5342_v52 = vmul.f32 %v11234_v22, %v11234_v22  ;;  %v5343_v44 = vmul.f32 %v11237_v36, %v11237_v36  ;;  %v5382_v27 = vadd.f32 %v5341_v3, %v5340_v54 }
 0xaa3   : > { %v5262_v5 = vpop.xlane.xlu0 %5261  ;;  %5944 = vmatpush1.bf16.msra.mxu0 %v7789_v11  ;;  %7171 = vmatpush1.bf16.msra.mxu1 %v7789_v11 }
 0xaa4   : > { %v5284_v26 = vmul.f32 0.00390625, %v5262_v5  ;;  %5383 = vadd.xlane.f32.xlu0 %v5382_v27  ;;  %v5385_v50 = vadd.f32 %v5343_v44, %v5342_v52  ;;  %5945 = vmatprep.subr.bf16.mxu0 %v7794_v55 }
 0xaa5   : > { %v5265_v42 = vpop.xlane.xlu1 %5264  ;;  %7156 = vmatprep.subr.bf16.mxu1 %v7794_v55 }
 0xaa6   : > { %v11244_v34 = vsub.f32 %v11074_v2, %v5284_v26  ;;  %v11247_v17 = vsub.f32 %v11078_v29, %v5284_v26  ;;  %v5285_v59 = vmul.f32 0.00390625, %v5265_v42  ;;  %5386 = vadd.xlane.f32.xlu1 %v5385_v50  ;;  %v7792_v2 = vld [vmem:[#allocation15 + $0x138] ss:$12 sps:$4 sm:$0xff]   ;;  %v7797_v29 = vld [vmem:[#allocation15 + $0x154] ss:$12 sps:$4 sm:$0xff]  }
 0xaa7   : > { %5946 = vmatpush1.bf16.msra.mxu0 %v7792_v2  ;;  %7172 = vmatpush1.bf16.msra.mxu1 %v7792_v2 }
 0xaa8   : > { %v5344_v1 = vmul.f32 %v11244_v34, %v11244_v34  ;;  %v5345_v62 = vmul.f32 %v11247_v17, %v11247_v17  ;;  %v11254_v39 = vsub.f32 %v11082_v33, %v5285_v59  ;;  %v11257_v60 = vsub.f32 %v11085_v63, %v5285_v59  ;;  %v7795_v33 = vld [vmem:[#allocation15 + $0x150] ss:$12 sps:$4 sm:$0xff]   ;;  %5947 = vmatprep.subr.bf16.mxu0 %v7797_v29  ;;  %v7800_v63 = vld [vmem:[#allocation15 + $0x16c] ss:$12 sps:$4 sm:$0xff]  }
 0xaa9   : > { %7157 = vmatprep.subr.bf16.mxu1 %v7797_v29 }
 0xaaa   : > { %v5346_v16 = vmul.f32 %v11254_v39, %v11254_v39  ;;  %v5347_v35 = vmul.f32 %v11257_v60, %v11257_v60  ;;  %v5388_v9 = vadd.f32 %v5345_v62, %v5344_v1 }
 0xaab   : > { %5948 = vmatpush1.bf16.msra.mxu0 %v7795_v33  ;;  %7173 = vmatpush1.bf16.msra.mxu1 %v7795_v33 }
 0xaac   : > { %5389 = vadd.xlane.f32.xlu0 %v5388_v9  ;;  %v5391_v15 = vadd.f32 %v5347_v35, %v5346_v16  ;;  %5949 = vmatprep.subr.bf16.mxu0 %v7800_v63  ;;  %v5223_v9 = vld [vmem:[%s11910_s8] sm:$0x3] }
 0xaad   : > { %7158 = vmatprep.subr.bf16.mxu1 %v7800_v63 }
 0xaae   : > { %5392 = vadd.xlane.f32.xlu1 %v5391_v15 }
 0xaaf   : > { %5950 = vmatpush1.bf16.msra.mxu0 %v7798_v20  ;;  %7174 = vmatpush1.bf16.msra.mxu1 %v7798_v20 }
 0xab0   : > { %6951 = vmatprep.subr.bf16.mxu0 %v7801_v0 }
 0xb09   : > { %v5354_v56 = vpop.xlane.xlu0 %5353 }
 0xb0a   : > { %v5400_v19 = vmul.f32 0.00390625, %v5354_v56 }
 0xb0b   : > { %v5357_v23 = vpop.xlane.xlu1 %5356 }
 0xb0c   : > { %v5416_v25 = vadd.f32 1e-05, %v5400_v19  ;;  %v5401_v54 = vmul.f32 0.00390625, %v5357_v23  ;;  %v11298_v23 = vrot.slane %v5223_v9, %v11875_v18 }
 0xb0d   : > { %v5268_v3 = vpop.xlane.xlu0 %5267 }
 0xb0e   : > { %8105 = vrsqrt.f32 %v5416_v25  ;;  %v5417_v6 = vadd.f32 1e-05, %v5401_v54  ;;  %v5286_v28 = vmul.f32 0.00390625, %v5268_v3  ;;  %v11301_v25 = vrot.slane %v5223_v9, %v11876_v37 }
 0xb0f   : > { %v5271_v52 = vpop.xlane.xlu1 %5270 }
 0xb10   : > { %8107 = vrsqrt.f32 %v5417_v6  ;;  %v11264_v44 = vsub.f32 %v11121_v8, %v5286_v28  ;;  %v11267_v27 = vsub.f32 %v11125_v31, %v5286_v28  ;;  %v5287_v5 = vmul.f32 0.00390625, %v5271_v52  ;;  %v5222_v31 = vld [vmem:[%s11909_s16] sm:$0x3]  ;;  %s8452_s16 = smov [#allocation16]  }
 0xb11   : > { %v5360_v26 = vpop.xlane.xlu0 %5359  ;;  %v11293_v15 = vrot.slane %v5222_v31, %v11876_v37  ;;  %s8357_s7 = sshll.u32 %s8452_s16, 4  ;;  %s8358_s7 = int_to_ptr.vmem [resolvable:$false] %s8357_s7 }
 0xb12   : > { %v5348_v50 = vmul.f32 %v11264_v44, %v11264_v44  ;;  %v5349_v11 = vmul.f32 %v11267_v27, %v11267_v27  ;;  %v11274_v42 = vsub.f32 %v11133_v7, %v5287_v5  ;;  %v11277_v55 = vsub.f32 %v11137_v32, %v5287_v5  ;;  %s8359_s13 = scalar_lea.vmem %s8358_s7, 6144  ;;  %p8360_p0 = scmp.lt.s32.totalorder %s11530_s29, %s8358_s7 }
 0xb13   : > { %v5402_v59 = vmul.f32 0.00390625, %v5360_v26  ;;  %v5363_v8 = vpop.xlane.xlu1 %5362  ;;  %v11287_v32 = vrot.slane %v5222_v31, %v11875_v18  ;;  %p8361_p5 = scmp.lt.s32.totalorder %s8359_s13, %s8353_s20 }
 0xb14   : > { %v5350_v1 = vmul.f32 %v11274_v42, %v11274_v42  ;;  %v5351_v62 = vmul.f32 %v11277_v55, %v11277_v55  ;;  %v5403_v2 = vmul.f32 0.00390625, %v5363_v8  ;;  %v5394_v29 = vadd.f32 %v5349_v11, %v5348_v50 }
 0xb15   : > { %v5418_v16 = vadd.f32 1e-05, %v5402_v59  ;;  %p8362_p7 = por %p8361_p5, %p8360_p0 }
 0xb16   : > { %v5419_v7 = vadd.f32 1e-05, %v5403_v2  ;;  %5395 = vadd.xlane.f32.xlu0 %v5394_v29  ;;  %v5397_v35 = vadd.f32 %v5351_v62, %v5350_v1  ;;  %v7802_v2 = vld [vmem:[#allocation15 + $0x8] ss:$12 sps:$4 sm:$0xff]  }
 0xb17   : > { %8109 = vrsqrt.f32 %v5418_v16  ;;  %p8363_p8 = pnand %p8362_p7, %p8356_p9 }
 0xb18   : > { %v8106_v33 = vpop.eup %8105  ;;  %8111 = vrsqrt.f32 %v5419_v7  ;;  %5398 = vadd.xlane.f32.xlu1 %v5397_v35  ;;  %v7803_v7 = vld [vmem:[#allocation15 + $0xe0] ss:$12 sps:$4 sm:$0xff]  }
 0xb19   : > { %v5448_v63 = vmul.f32 %v8106_v33, %v11104_v61  ;;  %v5366_v20 = vpop.xlane.xlu0 %5365  ;;  %v5449_v0 = vmul.f32 %v8106_v33, %v11107_v14 }
 0xb1a   : > { %v8108_v56 = vpop.eup %8107  ;;  %v5404_v19 = vmul.f32 0.00390625, %v5366_v20 }
 0xb1b   : > { %v5491_v54 = vmul.f32 %v11287_v32, %v5448_v63  ;;  %v5450_v3 = vmul.f32 %v8108_v56, %v11114_v53  ;;  %v5369_v6 = vpop.xlane.xlu1 %5368  ;;  %v5451_v28 = vmul.f32 %v8108_v56, %v11117_v46  ;;  %v5492_v61 = vmul.f32 %v11293_v15, %v5449_v0 }
 0xb1c   : > { %v5420_v52 = vadd.f32 1e-05, %v5404_v19  ;;  %v5405_v5 = vmul.f32 0.00390625, %v5369_v6 }
 0xb1d   : > { %v5493_v14 = vmul.f32 %v11287_v32, %v5450_v3  ;;  %v5494_v26 = vmul.f32 %v11293_v15, %v5451_v28  ;;  %v5535_v11 = vadd.f32 %v11301_v25, %v5492_v61  ;;  %v5534_v8 = vadd.f32 %v11298_v23, %v5491_v54  ;;  %v7804_v3 = vld [vmem:[#allocation15 + $0x20] ss:$12 sps:$4 sm:$0xff]  }
 0xb1e   : > { %8113 = vrsqrt.f32 %v5420_v52  ;;  %v5421_v50 = vadd.f32 1e-05, %v5405_v5 }
 0xb1f   : > { %v5537_v59 = vadd.f32 %v11301_v25, %v5494_v26  ;;  %v5536_v53 = vadd.f32 %v11298_v23, %v5493_v14 }
 0xb20   : > { %8115 = vrsqrt.f32 %v5421_v50 }
 0xb21   : > { %v8110_v46 = vpop.eup %8109  ;;  %v5372_v31 = vpop.xlane.xlu0 %5371  ;;  %v11313_v1 = vpack.c.bf16 %v5537_v59, %v5535_v11  ;;  %v11315_v62 = vpack.c.bf16 %v5536_v53, %v5534_v8  ;;  %v7806_v11 = vld [vmem:[#allocation15 + $0x38] ss:$12 sps:$4 sm:$0xff]  }
 0xb22   : > { %v8112_v29 = vpop.eup %8111  ;;  %v5406_v16 = vmul.f32 0.00390625, %v5372_v31  ;;  %v5453_v35 = vmul.f32 %v8110_v46, %v11143_v13  ;;  %v5452_v9 = vmul.f32 %v8110_v46, %v11140_v21  ;;  %v7807_v31 = vld [vmem:[#allocation15 + $0x110] ss:$12 sps:$4 sm:$0xff]  }
 0xb23   : > { %v5375_v33 = vpop.xlane.xlu1 %5374  ;;  %5951 = vmatprep.mubr.bf16.mxu0 %v11313_v1  ;;  %v5455_v63 = vmul.f32 %v8112_v29, %v11157_v24  ;;  %v5454_v20 = vmul.f32 %v8112_v29, %v11154_v48  ;;  %v7805_v24 = vld [vmem:[#allocation15 + $0xf8] ss:$12 sps:$4 sm:$0xff]  }
 0xb24   : > { %v5422_v0 = vadd.f32 1e-05, %v5406_v16  ;;  %v5407_v56 = vmul.f32 0.00390625, %v5375_v33  ;;  %5952 = vmatmul.mubr.bf16.vlgmr.msra.gmra.mrb[144].mxu0 %v11315_v62  ;;  %v5496_v19 = vmul.f32 %v11293_v15, %v5453_v35  ;;  %v5495_v54 = vmul.f32 %v11287_v32, %v5452_v9 }
 0xb25   : > { %6952 = vmatpush3.bf16.msra.mxu0 %v7802_v2  ;;  %v5498_v13 = vmul.f32 %v11293_v15, %v5455_v63  ;;  %v5497_v21 = vmul.f32 %v11287_v32, %v5454_v20 }
 0xb26   : > { %8117 = vrsqrt.f32 %v5422_v0  ;;  %v5423_v6 = vadd.f32 1e-05, %v5407_v56  ;;  %6953 = vmatprep.subr.bf16.mxu0 %v7803_v7  ;;  %v5539_v48 = vadd.f32 %v11301_v25, %v5496_v19  ;;  %v5538_v61 = vadd.f32 %v11298_v23, %v5495_v54 }
 0xb27   : > { %v5541_v28 = vadd.f32 %v11301_v25, %v5498_v13  ;;  %v5540_v52 = vadd.f32 %v11298_v23, %v5497_v21 }
 0xb28   : > { %v8114_v5 = vpop.eup %8113  ;;  %8119 = vrsqrt.f32 %v5423_v6  ;;  %v7810_v6 = vld [vmem:[#allocation15 + $0x68] ss:$12 sps:$4 sm:$0xff]  }
 0xb29   : > { %6954 = vmatpush3.bf16.msra.mxu0 %v7804_v3  ;;  %v5378_v14 = vpop.xlane.xlu0 %5377  ;;  %v11331_v26 = vpack.c.bf16 %v5541_v28, %v5539_v48  ;;  %v11333_v50 = vpack.c.bf16 %v5540_v52, %v5538_v61  ;;  %v5457_v59 = vmul.f32 %v8114_v5, %v11167_v40  ;;  %v5456_v8 = vmul.f32 %v8114_v5, %v11164_v10  ;;  %v7808_v10 = vld [vmem:[#allocation15 + $0x50] ss:$12 sps:$4 sm:$0xff]   ;;  %v7811_v52 = vld [vmem:[#allocation15 + $0x140] ss:$12 sps:$4 sm:$0xff]  }
 0xb2a   : > { %v8116_v53 = vpop.eup %8115  ;;  %v5408_v46 = vmul.f32 0.00390625, %v5378_v14  ;;  %6955 = vmatprep.subr.bf16.mxu0 %v7805_v24 }
 0xb2b   : > { %v5381_v2 = vpop.xlane.xlu1 %5380  ;;  %5961 = vmatprep.mubr.bf16.mxu0 %v11331_v26  ;;  %v5459_v29 = vmul.f32 %v8116_v53, %v11177_v47  ;;  %v5500_v16 = vmul.f32 %v11293_v15, %v5457_v59  ;;  %v5458_v7 = vmul.f32 %v8116_v53, %v11174_v51  ;;  %v5499_v35 = vmul.f32 %v11287_v32, %v5456_v8  ;;  %v7809_v47 = vld [vmem:[#allocation15 + $0x128] ss:$12 sps:$4 sm:$0xff]  }
 0xb2c   : > { %v5424_v9 = vadd.f32 1e-05, %v5408_v46  ;;  %v5409_v33 = vmul.f32 0.00390625, %v5381_v2  ;;  %5962 = vmatmul.mubr.bf16.gmra.mrb[148].mxu0 %v11333_v50 }
 0xb2d   : > { %6956 = vmatpush3.bf16.msra.mxu0 %v7806_v11  ;;  %v5502_v40 = vmul.f32 %v11293_v15, %v5459_v29  ;;  %v5501_v63 = vmul.f32 %v11287_v32, %v5458_v7  ;;  %v5543_v0 = vadd.f32 %v11301_v25, %v5500_v16  ;;  %v5542_v56 = vadd.f32 %v11298_v23, %v5499_v35 }
 0xb2e   : > { %8121 = vrsqrt.f32 %v5424_v9  ;;  %v5425_v20 = vadd.f32 1e-05, %v5409_v33  ;;  %6957 = vmatprep.subr.bf16.mxu0 %v7807_v31 }
 0xb2f   : > { %v5545_v51 = vadd.f32 %v11301_v25, %v5502_v40  ;;  %v5544_v19 = vadd.f32 %v11298_v23, %v5501_v63  ;;  %v7814_v63 = vld [vmem:[#allocation15 + $0x98] ss:$12 sps:$4 sm:$0xff]  }
 0xb30   : > { %v8118_v54 = vpop.eup %8117  ;;  %8123 = vrsqrt.f32 %v5425_v20 }
 0xb31   : > { %6958 = vmatpush3.bf16.msra.mxu0 %v7808_v10  ;;  %v5384_v3 = vpop.xlane.xlu0 %5383  ;;  %v11349_v13 = vpack.c.bf16 %v5545_v51, %v5543_v0  ;;  %v11351_v21 = vpack.c.bf16 %v5544_v19, %v5542_v56  ;;  %v5461_v24 = vmul.f32 %v8118_v54, %v11187_v57  ;;  %v5460_v48 = vmul.f32 %v8118_v54, %v11184_v43  ;;  %v7812_v43 = vld [vmem:[#allocation15 + $0x80] ss:$12 sps:$4 sm:$0xff]   ;;  %v7815_v51 = vld [vmem:[#allocation15 + $0x170] ss:$12 sps:$4 sm:$0xff]  }
 0xb32   : > { %v8120_v28 = vpop.eup %8119  ;;  %v5410_v61 = vmul.f32 0.00390625, %v5384_v3  ;;  %6959 = vmatprep.subr.bf16.mxu0 %v7809_v47 }
 0xb33   : > { %v5387_v5 = vpop.xlane.xlu1 %5386  ;;  %5971 = vmatprep.mubr.bf16.mxu0 %v11349_v13  ;;  %v5463_v14 = vmul.f32 %v8120_v28, %v11197_v30  ;;  %v5504_v11 = vmul.f32 %v11293_v15, %v5461_v24  ;;  %v5462_v59 = vmul.f32 %v8120_v28, %v11194_v41  ;;  %v5503_v8 = vmul.f32 %v11287_v32, %v5460_v48  ;;  %v7813_v30 = vld [vmem:[#allocation15 + $0x158] ss:$12 sps:$4 sm:$0xff]   ;;  %v7816_v48 = vld [vmem:[#allocation15 + $0xb0] ss:$12 sps:$4 sm:$0xff]  }
 0xb34   : > { %v5426_v53 = vadd.f32 1e-05, %v5410_v61  ;;  %v5411_v46 = vmul.f32 0.00390625, %v5387_v5  ;;  %5972 = vmatmul.mubr.bf16.gmra.mrb[152].mxu0 %v11351_v21 }
 0xb35   : > { %6960 = vmatpush3.bf16.msra.mxu0 %v7810_v6  ;;  %v5506_v57 = vmul.f32 %v11293_v15, %v5463_v14  ;;  %v5505_v31 = vmul.f32 %v11287_v32, %v5462_v59  ;;  %v5547_v29 = vadd.f32 %v11301_v25, %v5504_v11  ;;  %v5546_v16 = vadd.f32 %v11298_v23, %v5503_v8 }
 0xb36   : > { %8125 = vrsqrt.f32 %v5426_v53  ;;  %v5427_v2 = vadd.f32 1e-05, %v5411_v46  ;;  %6961 = vmatprep.subr.bf16.mxu0 %v7811_v52 }
 0xb37   : > { %v5549_v41 = vadd.f32 %v11301_v25, %v5506_v57  ;;  %v5548_v7 = vadd.f32 %v11298_v23, %v5505_v31 }
 0xb38   : > { %v8122_v35 = vpop.eup %8121  ;;  %8127 = vrsqrt.f32 %v5427_v2 }
 0xb39   : > { %v5464_v9 = vmul.f32 %v8122_v35, %v11204_v45  ;;  %6962 = vmatpush3.bf16.msra.mxu0 %v7812_v43  ;;  %v5390_v33 = vpop.xlane.xlu0 %5389  ;;  %v11368_v10 = vpack.c.bf16 %v5549_v41, %v5547_v29  ;;  %v11370_v40 = vpack.c.bf16 %v5548_v7, %v5546_v16  ;;  %v5465_v20 = vmul.f32 %v8122_v35, %v11207_v12 }
 0xb3a   : > { %v8124_v47 = vpop.eup %8123  ;;  %v5412_v0 = vmul.f32 0.00390625, %v5390_v33  ;;  %6963 = vmatprep.subr.bf16.mxu0 %v7813_v30 }
 0xb3b   : > { %v5507_v56 = vmul.f32 %v11287_v32, %v5464_v9  ;;  %v5466_v19 = vmul.f32 %v8124_v47, %v11214_v49  ;;  %v5393_v54 = vpop.xlane.xlu1 %5392  ;;  %5981 = vmatprep.mubr.bf16.mxu0 %v11368_v10  ;;  %v5467_v45 = vmul.f32 %v8124_v47, %v11217_v4  ;;  %v5508_v3 = vmul.f32 %v11293_v15, %v5465_v20 }
 0xb3c   : > { %v5428_v6 = vadd.f32 1e-05, %v5412_v0  ;;  %v5413_v24 = vmul.f32 0.00390625, %v5393_v54  ;;  %5982 = vmatmul.mubr.bf16.gmra.mrb[156].mxu0 %v11370_v40 }
 0xb3d   : > { %v5509_v12 = vmul.f32 %v11287_v32, %v5466_v19  ;;  %6964 = vmatpush3.bf16.msra.mxu0 %v7814_v63  ;;  %6064 = vmatprep.mubr.bf16.mxu0 %v11313_v1  ;;  %v5510_v28 = vmul.f32 %v11293_v15, %v5467_v45  ;;  %v5551_v61 = vadd.f32 %v11301_v25, %v5508_v3 }
 0xb3e   : > { %8129 = vrsqrt.f32 %v5428_v6  ;;  %v5429_v49 = vadd.f32 1e-05, %v5413_v24  ;;  %6965 = vmatprep.subr.bf16.mxu0 %v7815_v51  ;;  %v5550_v52 = vadd.f32 %v11298_v23, %v5507_v56 }
 0xb3f   : > { %v5553_v4 = vadd.f32 %v11301_v25, %v5510_v28  ;;  %v5552_v5 = vadd.f32 %v11298_v23, %v5509_v12 }
 0xb40   : > { %v8126_v14 = vpop.eup %8125  ;;  %8131 = vrsqrt.f32 %v5429_v49 }
 0xb41   : > { %6966 = vmatpush3.bf16.msra.mxu0 %v7816_v48  ;;  %v5575_v11 = vpack.c.bf16 %v5553_v4, %v5551_v61  ;;  %v5574_v59 = vpack.c.bf16 %v5552_v5, %v5550_v52  ;;  %v5469_v1 = vmul.f32 %v8126_v14, %v11227_v58  ;;  %v5468_v8 = vmul.f32 %v8126_v14, %v11224_v38 }
 0xb42   : > { %v8128_v53 = vpop.eup %8127 }
 0xb43   : > { %5991 = vmatprep.mubr.bf16.mxu1 %v5575_v11  ;;  %v5471_v46 = vmul.f32 %v8128_v53, %v11237_v36  ;;  %v5512_v43 = vmul.f32 %v11293_v15, %v5469_v1  ;;  %v5470_v57 = vmul.f32 %v8128_v53, %v11234_v22  ;;  %v5511_v31 = vmul.f32 %v11287_v32, %v5468_v8 }
 0xb44   : > { %5992 = vmatmul.mubr.bf16.vlgmr.msra.gmra.mrb[144].mxu1 %v5574_v59  ;;  %6065 = vmatmul.mubr.bf16.vlgmr.msra.gmra.mrb[160].mxu0 %v11315_v62 }
 0xb45   : > { %6072 = vmatprep.mubr.bf16.mxu0 %v11331_v26  ;;  %v5514_v2 = vmul.f32 %v11293_v15, %v5471_v46  ;;  %v5513_v58 = vmul.f32 %v11287_v32, %v5470_v57  ;;  %v5555_v38 = vadd.f32 %v11301_v25, %v5512_v43  ;;  %v5554_v36 = vadd.f32 %v11298_v23, %v5511_v31 }
 0xb47   : > { %v5557_v30 = vadd.f32 %v11301_v25, %v5514_v2  ;;  %v5556_v29 = vadd.f32 %v11298_v23, %v5513_v58 }
 0xb48   : > { %v8130_v22 = vpop.eup %8129 }
 0xb49   : > { %v5577_v41 = vpack.c.bf16 %v5557_v30, %v5555_v38  ;;  %v5576_v16 = vpack.c.bf16 %v5556_v29, %v5554_v36  ;;  %v5473_v7 = vmul.f32 %v8130_v22, %v11247_v17  ;;  %v5472_v62 = vmul.f32 %v8130_v22, %v11244_v34 }
 0xb4a   : > { %v8132_v26 = vpop.eup %8131 }
 0xb4b   : > { %6001 = vmatprep.mubr.bf16.mxu1 %v5577_v41  ;;  %v5475_v35 = vmul.f32 %v8132_v26, %v11257_v60  ;;  %v5516_v9 = vmul.f32 %v11293_v15, %v5473_v7  ;;  %v5474_v33 = vmul.f32 %v8132_v26, %v11254_v39  ;;  %v5515_v63 = vmul.f32 %v11287_v32, %v5472_v62 }
 0xb4c   : > { %6002 = vmatmul.mubr.bf16.gmra.mrb[148].mxu1 %v5576_v16  ;;  %6073 = vmatmul.mubr.bf16.gmra.mrb[164].mxu0 %v11333_v50 }
 0xb4d   : > { %6080 = vmatprep.mubr.bf16.mxu0 %v11349_v13  ;;  %v5518_v20 = vmul.f32 %v11293_v15, %v5475_v35  ;;  %v5517_v17 = vmul.f32 %v11287_v32, %v5474_v33  ;;  %v5559_v34 = vadd.f32 %v11301_v25, %v5516_v9  ;;  %v5558_v60 = vadd.f32 %v11298_v23, %v5515_v63 }
 0xb4f   : > { %v5561_v47 = vadd.f32 %v11301_v25, %v5518_v20  ;;  %v5560_v0 = vadd.f32 %v11298_v23, %v5517_v17 }
 0xb51   : > { %v5579_v39 = vpack.c.bf16 %v5561_v47, %v5559_v34  ;;  %v5578_v51 = vpack.c.bf16 %v5560_v0, %v5558_v60 }
 0xb53   : > { %6011 = vmatprep.mubr.bf16.mxu1 %v5579_v39 }
 0xb54   : > { %6012 = vmatmul.mubr.bf16.gmra.mrb[152].mxu1 %v5578_v51  ;;  %6081 = vmatmul.mubr.bf16.gmra.mrb[168].mxu0 %v11351_v21 }
 0xb55   : > { %6088 = vmatprep.mubr.bf16.mxu0 %v11368_v10 }
 0xb5c   : > { %6089 = vmatmul.mubr.bf16.gmra.mrb[172].mxu0 %v11370_v40 }
 0xb5d   : > { %6096 = vmatprep.mubr.bf16.mxu0 %v5575_v11 }
 0xb64   : > { %6097 = vmatmul.mubr.bf16.gmra.mrb[176].mxu0 %v5574_v59 }
 0xb65   : > { %6104 = vmatprep.mubr.bf16.mxu0 %v5577_v41 }
 0xb6c   : > { %6105 = vmatmul.mubr.bf16.gmra.mrb[180].mxu0 %v5576_v16 }
 0xb6d   : > { %6112 = vmatprep.mubr.bf16.mxu0 %v5579_v39 }
 0xb74   : > { %6113 = vmatmul.mubr.bf16.gmra.mrb[184].mxu0 %v5578_v51 }
 0xba3   : > { %v5396_v50 = vpop.xlane.xlu0 %5395 }
 0xba4   : > { %v5414_v13 = vmul.f32 0.00390625, %v5396_v50 }
 0xba5   : > { %v5399_v56 = vpop.xlane.xlu1 %5398 }
 0xba6   : > { %v5430_v19 = vadd.f32 1e-05, %v5414_v13  ;;  %v5415_v54 = vmul.f32 0.00390625, %v5399_v56 }
 0xba8   : > { %8133 = vrsqrt.f32 %v5430_v19  ;;  %v5431_v45 = vadd.f32 1e-05, %v5415_v54  ;;  %v11912_v19 = vld [vmem:[#allocation23_spill] sm:$0xff] }
 0xbaa   : > { %8135 = vrsqrt.f32 %v5431_v45 }
 0xbb2   : > { %v8134_v3 = vpop.eup %8133 }
 0xbb3   : > { %v5477_v21 = vmul.f32 %v8134_v3, %v11267_v27  ;;  %v5476_v10 = vmul.f32 %v8134_v3, %v11264_v44 }
 0xbb4   : > { %v8136_v40 = vpop.eup %8135 }
 0xbb5   : > { %v5479_v6 = vmul.f32 %v8136_v40, %v11277_v55  ;;  %v5520_v24 = vmul.f32 %v11293_v15, %v5477_v21  ;;  %v5478_v12 = vmul.f32 %v8136_v40, %v11274_v42  ;;  %v5519_v48 = vmul.f32 %v11287_v32, %v5476_v10  ;;  %v5646_v42 = vld [vmem:[%s11911_s19] sm:$0x7] }
 0xbb6   : > { %v11466_v54 = vrot.slane %v5646_v42, %v11912_v19 }
 0xbb7   : > { %v5522_v28 = vmul.f32 %v11293_v15, %v5479_v6  ;;  %v5521_v49 = vmul.f32 %v11287_v32, %v5478_v12  ;;  %v5563_v61 = vadd.f32 %v11301_v25, %v5520_v24  ;;  %v5562_v44 = vadd.f32 %v11298_v23, %v5519_v48 }
 0xbb8   : > { %v11433_v32 = vrot.slane %v5646_v42, %v11875_v18  ;;  %v11436_v15 = vrot.slane %v5646_v42, %v11876_v37 }
 0xbb9   : > { %v5565_v27 = vadd.f32 %v11301_v25, %v5522_v28  ;;  %v5564_v4 = vadd.f32 %v11298_v23, %v5521_v49 }
 0xbbb   : > { %v5581_v55 = vpack.c.bf16 %v5565_v27, %v5563_v61  ;;  %v5580_v52 = vpack.c.bf16 %v5564_v4, %v5562_v44 }
 0xbbd   : > { %6021 = vmatprep.mubr.bf16.mxu1 %v5581_v55  ;;  %6120 = vmatprep.mubr.bf16.mxu0 %v5581_v55 }
 0xbbe   : > { %6022 = vmatmul.mubr.bf16.gmra.mrb[156].mxu1 %v5580_v52  ;;  %6121 = vmatmul.mubr.bf16.gmra.mrb[188].mxu0 %v5580_v52 }
 0xbf7   : > { %v5953_v25 = vpop.f32.mrb[144].mxu0 }
 0xbf8   : > { %v5954_v23 = vadd.f32 %v5953_v25, %v11433_v32  ;;  %v5955_v5 = vpop.f32.mrb[145].mxu0 }
 0xbf9   : > { %v5956_v14 = vadd.f32 %v5955_v5, %v11436_v15  ;;  %v5957_v11 = vpop.f32.mrb[146].mxu0 }
 0xbfa   : > { %v5958_v59 = vadd.f32 %v5957_v11, %v11433_v32  ;;  %v5959_v1 = vpop.f32.mrb[147].mxu0 }
 0xbfb   : > { %v6855_v8 = vpack.c.bf16 %v5956_v14, %v5954_v23  ;;  %v5960_v53 = vadd.f32 %v5959_v1, %v11436_v15 }
 0xbfd   : > { %6289 = vst [vmem:[%s11443_s4] sm:$0xff] %v6855_v8  ;;  %v6857_v18 = vpack.c.bf16 %v5960_v53, %v5958_v59 }
 0xbff   : > { %6291 = vst [vmem:[%s11443_s4 + $0xc] sm:$0xff] %v6857_v18  ;;  %v5963_v37 = vpop.f32.mrb[148].mxu0 }
 0xc00   : > { %v5964_v46 = vadd.f32 %v5963_v37, %v11433_v32  ;;  %v5965_v43 = vpop.f32.mrb[149].mxu0 }
 0xc01   : > { %v5966_v57 = vadd.f32 %v5965_v43, %v11436_v15  ;;  %v5967_v31 = vpop.f32.mrb[150].mxu0 }
 0xc02   : > { %v5968_v2 = vadd.f32 %v5967_v31, %v11433_v32  ;;  %v5969_v58 = vpop.f32.mrb[151].mxu0 }
 0xc03   : > { %v6859_v38 = vpack.c.bf16 %v5966_v57, %v5964_v46  ;;  %v5970_v30 = vadd.f32 %v5969_v58, %v11436_v15 }
 0xc05   : > { %6293 = vst [vmem:[%s11443_s4 + $0x18] sm:$0xff] %v6859_v38  ;;  %v6861_v36 = vpack.c.bf16 %v5970_v30, %v5968_v2 }
 0xc07   : > { %6295 = vst [vmem:[%s11443_s4 + $0x24] sm:$0xff] %v6861_v36  ;;  %v5973_v29 = vpop.f32.mrb[152].mxu0 }
 0xc08   : > { %v5974_v22 = vadd.f32 %v5973_v29, %v11433_v32  ;;  %v5975_v41 = vpop.f32.mrb[153].mxu0 }
 0xc09   : > { %v5976_v16 = vadd.f32 %v5975_v41, %v11436_v15  ;;  %v5977_v7 = vpop.f32.mrb[154].mxu0 }
 0xc0a   : > { %v5978_v62 = vadd.f32 %v5977_v7, %v11433_v32  ;;  %v5979_v26 = vpop.f32.mrb[155].mxu0 }
 0xc0b   : > { %v6863_v35 = vpack.c.bf16 %v5976_v16, %v5974_v22  ;;  %v5980_v9 = vadd.f32 %v5979_v26, %v11436_v15 }
 0xc0d   : > { %6297 = vst [vmem:[%s11443_s4 + $0x30] sm:$0xff] %v6863_v35  ;;  %v6865_v33 = vpack.c.bf16 %v5980_v9, %v5978_v62 }
 0xc0f   : > { %6299 = vst [vmem:[%s11443_s4 + $0x3c] sm:$0xff] %v6865_v33  ;;  %v5983_v63 = vpop.f32.mrb[156].mxu0 }
 0xc10   : > { %v5984_v20 = vadd.f32 %v5983_v63, %v11433_v32  ;;  %v5985_v17 = vpop.f32.mrb[157].mxu0 }
 0xc11   : > { %v5986_v34 = vadd.f32 %v5985_v17, %v11436_v15  ;;  %v5987_v47 = vpop.f32.mrb[158].mxu0 }
 0xc12   : > { %v5988_v60 = vadd.f32 %v5987_v47, %v11433_v32  ;;  %v5989_v0 = vpop.f32.mrb[159].mxu0 }
 0xc13   : > { %v6867_v39 = vpack.c.bf16 %v5986_v34, %v5984_v20  ;;  %v5990_v51 = vadd.f32 %v5989_v0, %v11436_v15 }
 0xc15   : > { %6301 = vst [vmem:[%s11443_s4 + $0x48] sm:$0xff] %v6867_v39  ;;  %v6869_v50 = vpack.c.bf16 %v5990_v51, %v5988_v60 }
 0xc17   : > { %6303 = vst [vmem:[%s11443_s4 + $0x54] sm:$0xff] %v6869_v50  ;;  %v5993_v13 = vpop.f32.mrb[144].mxu1  ;;  %v6967_v56 = vpop.f32.mrb[160].mxu0 }
 0xc18   : > { %v5994_v45 = vadd.f32 %v5993_v13, %v11433_v32  ;;  %v5995_v3 = vpop.f32.mrb[145].mxu1  ;;  %v6968_v21 = vpop.f32.mrb[161].mxu0 }
 0xc19   : > { %v5996_v10 = vadd.f32 %v5995_v3, %v11436_v15  ;;  %v6969_v40 = vadd.f32 %v6968_v21, %v6967_v56  ;;  %v5997_v6 = vpop.f32.mrb[146].mxu1  ;;  %v6970_v24 = vpop.f32.mrb[162].mxu0 }
 0xc1a   : > { %v5998_v12 = vadd.f32 %v5997_v6, %v11433_v32  ;;  %v5999_v48 = vpop.f32.mrb[147].mxu1  ;;  %v6971_v28 = vpop.f32.mrb[163].mxu0 }
 0xc1b   : > { %v6871_v49 = vpack.c.bf16 %v5996_v10, %v5994_v45  ;;  %v6067_v61 = vadd.f32 %v6969_v40, %v11466_v54  ;;  %v6000_v27 = vadd.f32 %v5999_v48, %v11436_v15  ;;  %v6972_v44 = vadd.f32 %v6971_v28, %v6970_v24 }
 0xc1d   : > { %6305 = vst [vmem:[%s11443_s4 + $0x60] sm:$0xff] %v6871_v49  ;;  %v6856_v4 = vpack.c.bf16 %v6067_v61, %v6067_v61  ;;  %v6873_v55 = vpack.c.bf16 %v6000_v27, %v5998_v12  ;;  %v6070_v52 = vadd.f32 %v6972_v44, %v11466_v54 }
 0xc1f   : > { %6290 = vst [vmem:[%s11443_s4 + $0x8] sm:$0xf] %v6856_v4  ;;  %6307 = vst [vmem:[%s11443_s4 + $0x6c] sm:$0xff] %v6873_v55  ;;  %v6858_v42 = vpack.c.bf16 %v6070_v52, %v6070_v52  ;;  %v6003_v25 = vpop.f32.mrb[148].mxu1  ;;  %v6973_v23 = vpop.f32.mrb[164].mxu0 }
 0xc20   : > { %v6004_v5 = vadd.f32 %v6003_v25, %v11433_v32  ;;  %v6005_v14 = vpop.f32.mrb[149].mxu1  ;;  %v6974_v11 = vpop.f32.mrb[165].mxu0 }
 0xc21   : > { %6292 = vst [vmem:[%s11443_s4 + $0x14] sm:$0xf] %v6858_v42  ;;  %v6006_v59 = vadd.f32 %v6005_v14, %v11436_v15  ;;  %v6975_v1 = vadd.f32 %v6974_v11, %v6973_v23  ;;  %v6007_v8 = vpop.f32.mrb[150].mxu1  ;;  %v6976_v53 = vpop.f32.mrb[166].mxu0 }
 0xc22   : > { %v6008_v18 = vadd.f32 %v6007_v8, %v11433_v32  ;;  %v6009_v37 = vpop.f32.mrb[151].mxu1  ;;  %v6977_v46 = vpop.f32.mrb[167].mxu0 }
 0xc23   : > { %v6875_v43 = vpack.c.bf16 %v6006_v59, %v6004_v5  ;;  %v6075_v57 = vadd.f32 %v6975_v1, %v11466_v54  ;;  %v6010_v31 = vadd.f32 %v6009_v37, %v11436_v15  ;;  %v6978_v2 = vadd.f32 %v6977_v46, %v6976_v53 }
 0xc25   : > { %6309 = vst [vmem:[%s11443_s4 + $0x78] sm:$0xff] %v6875_v43  ;;  %v6860_v58 = vpack.c.bf16 %v6075_v57, %v6075_v57  ;;  %v6877_v38 = vpack.c.bf16 %v6010_v31, %v6008_v18  ;;  %v6078_v30 = vadd.f32 %v6978_v2, %v11466_v54 }
 0xc27   : > { %6294 = vst [vmem:[%s11443_s4 + $0x20] sm:$0xf] %v6860_v58  ;;  %6311 = vst [vmem:[%s11443_s4 + $0x84] sm:$0xff] %v6877_v38  ;;  %v6862_v36 = vpack.c.bf16 %v6078_v30, %v6078_v30  ;;  %v6013_v29 = vpop.f32.mrb[152].mxu1  ;;  %v6979_v22 = vpop.f32.mrb[168].mxu0 }
 0xc28   : > { %v6014_v41 = vadd.f32 %v6013_v29, %v11433_v32  ;;  %v6015_v16 = vpop.f32.mrb[153].mxu1  ;;  %v6980_v7 = vpop.f32.mrb[169].mxu0 }
 0xc29   : > { %6296 = vst [vmem:[%s11443_s4 + $0x2c] sm:$0xf] %v6862_v36  ;;  %v6016_v62 = vadd.f32 %v6015_v16, %v11436_v15  ;;  %v6981_v26 = vadd.f32 %v6980_v7, %v6979_v22  ;;  %v6017_v35 = vpop.f32.mrb[154].mxu1  ;;  %v6982_v9 = vpop.f32.mrb[170].mxu0 }
 0xc2a   : > { %v6018_v33 = vadd.f32 %v6017_v35, %v11433_v32  ;;  %v6019_v63 = vpop.f32.mrb[155].mxu1  ;;  %v6983_v20 = vpop.f32.mrb[171].mxu0 }
 0xc2b   : > { %v6879_v17 = vpack.c.bf16 %v6016_v62, %v6014_v41  ;;  %v6083_v34 = vadd.f32 %v6981_v26, %v11466_v54  ;;  %v6020_v47 = vadd.f32 %v6019_v63, %v11436_v15  ;;  %v6984_v60 = vadd.f32 %v6983_v20, %v6982_v9 }
 0xc2d   : > { %6313 = vst [vmem:[%s11443_s4 + $0x90] sm:$0xff] %v6879_v17  ;;  %v6864_v0 = vpack.c.bf16 %v6083_v34, %v6083_v34  ;;  %v6881_v39 = vpack.c.bf16 %v6020_v47, %v6018_v33  ;;  %v6086_v51 = vadd.f32 %v6984_v60, %v11466_v54 }
 0xc2f   : > { %6298 = vst [vmem:[%s11443_s4 + $0x38] sm:$0xf] %v6864_v0  ;;  %6315 = vst [vmem:[%s11443_s4 + $0x9c] sm:$0xff] %v6881_v39  ;;  %v6866_v50 = vpack.c.bf16 %v6086_v51, %v6086_v51  ;;  %v6985_v13 = vpop.f32.mrb[172].mxu0 }
 0xc30   : > { %v6986_v56 = vpop.f32.mrb[173].mxu0 }
 0xc31   : > { %6300 = vst [vmem:[%s11443_s4 + $0x44] sm:$0xf] %v6866_v50  ;;  %v6987_v19 = vadd.f32 %v6986_v56, %v6985_v13  ;;  %v6988_v45 = vpop.f32.mrb[174].mxu0 }
 0xc32   : > { %v6989_v3 = vpop.f32.mrb[175].mxu0 }
 0xc33   : > { %v6091_v21 = vadd.f32 %v6987_v19, %v11466_v54  ;;  %v6990_v10 = vadd.f32 %v6989_v3, %v6988_v45 }
 0xc35   : > { %v6868_v40 = vpack.c.bf16 %v6091_v21, %v6091_v21  ;;  %v6094_v6 = vadd.f32 %v6990_v10, %v11466_v54 }
 0xc37   : > { %6302 = vst [vmem:[%s11443_s4 + $0x50] sm:$0xf] %v6868_v40  ;;  %v6870_v24 = vpack.c.bf16 %v6094_v6, %v6094_v6  ;;  %v6991_v12 = vpop.f32.mrb[176].mxu0 }
 0xc38   : > { %v6992_v48 = vpop.f32.mrb[177].mxu0 }
 0xc39   : > { %6304 = vst [vmem:[%s11443_s4 + $0x5c] sm:$0xf] %v6870_v24  ;;  %v6993_v28 = vadd.f32 %v6992_v48, %v6991_v12  ;;  %v6994_v49 = vpop.f32.mrb[178].mxu0 }
 0xc3a   : > { %v6995_v61 = vpop.f32.mrb[179].mxu0 }
 0xc3b   : > { %v6099_v27 = vadd.f32 %v6993_v28, %v11466_v54  ;;  %v6996_v44 = vadd.f32 %v6995_v61, %v6994_v49 }
 0xc3d   : > { %v6872_v4 = vpack.c.bf16 %v6099_v27, %v6099_v27  ;;  %v6102_v55 = vadd.f32 %v6996_v44, %v11466_v54 }
 0xc3f   : > { %6306 = vst [vmem:[%s11443_s4 + $0x68] sm:$0xf] %v6872_v4  ;;  %v6874_v52 = vpack.c.bf16 %v6102_v55, %v6102_v55  ;;  %v6997_v42 = vpop.f32.mrb[180].mxu0 }
 0xc40   : > { %v6998_v25 = vpop.f32.mrb[181].mxu0 }
 0xc41   : > { %6308 = vst [vmem:[%s11443_s4 + $0x74] sm:$0xf] %v6874_v52  ;;  %v6999_v23 = vadd.f32 %v6998_v25, %v6997_v42  ;;  %v7000_v5 = vpop.f32.mrb[182].mxu0 }
 0xc42   : > { %v7001_v14 = vpop.f32.mrb[183].mxu0 }
 0xc43   : > { %v6107_v11 = vadd.f32 %v6999_v23, %v11466_v54  ;;  %v7002_v59 = vadd.f32 %v7001_v14, %v7000_v5 }
 0xc45   : > { %v6876_v1 = vpack.c.bf16 %v6107_v11, %v6107_v11  ;;  %v6110_v8 = vadd.f32 %v7002_v59, %v11466_v54 }
 0xc47   : > { %6310 = vst [vmem:[%s11443_s4 + $0x80] sm:$0xf] %v6876_v1  ;;  %v6878_v53 = vpack.c.bf16 %v6110_v8, %v6110_v8  ;;  %v7003_v18 = vpop.f32.mrb[184].mxu0 }
 0xc48   : > { %v7004_v37 = vpop.f32.mrb[185].mxu0 }
 0xc49   : > { %6312 = vst [vmem:[%s11443_s4 + $0x8c] sm:$0xf] %v6878_v53  ;;  %v7005_v46 = vadd.f32 %v7004_v37, %v7003_v18  ;;  %v7006_v43 = vpop.f32.mrb[186].mxu0 }
 0xc4a   : > { %v7007_v57 = vpop.f32.mrb[187].mxu0 }
 0xc4b   : > { %v6115_v31 = vadd.f32 %v7005_v46, %v11466_v54  ;;  %v7008_v2 = vadd.f32 %v7007_v57, %v7006_v43 }
 0xc4d   : > { %v6880_v58 = vpack.c.bf16 %v6115_v31, %v6115_v31  ;;  %v6118_v38 = vadd.f32 %v7008_v2, %v11466_v54 }
 0xc4f   : > { %6314 = vst [vmem:[%s11443_s4 + $0x98] sm:$0xf] %v6880_v58  ;;  %v6882_v30 = vpack.c.bf16 %v6118_v38, %v6118_v38 }
 0xc51   : > { %6316 = vst [vmem:[%s11443_s4 + $0xa4] sm:$0xf] %v6882_v30 }
 0xc91   : > { %v6023_v36 = vpop.f32.mrb[156].mxu1  ;;  %v7009_v29 = vpop.f32.mrb[188].mxu0 }
 0xc92   : > { %v6024_v22 = vadd.f32 %v6023_v36, %v11433_v32  ;;  %v6025_v41 = vpop.f32.mrb[157].mxu1  ;;  %v7010_v16 = vpop.f32.mrb[189].mxu0 }
 0xc93   : > { %v6026_v7 = vadd.f32 %v6025_v41, %v11436_v15  ;;  %v7011_v62 = vadd.f32 %v7010_v16, %v7009_v29  ;;  %v6027_v26 = vpop.f32.mrb[158].mxu1  ;;  %v7012_v35 = vpop.f32.mrb[190].mxu0 }
 0xc94   : > { %v6028_v9 = vadd.f32 %v6027_v26, %v11433_v32  ;;  %v6029_v33 = vpop.f32.mrb[159].mxu1  ;;  %v7013_v63 = vpop.f32.mrb[191].mxu0 }
 0xc95   : > { %v6883_v20 = vpack.c.bf16 %v6026_v7, %v6024_v22  ;;  %v6123_v17 = vadd.f32 %v7011_v62, %v11466_v54  ;;  %v6030_v34 = vadd.f32 %v6029_v33, %v11436_v15  ;;  %v7014_v47 = vadd.f32 %v7013_v63, %v7012_v35 }
 0xc97   : > { %6317 = vst [vmem:[%s11443_s4 + $0xa8] sm:$0xff] %v6883_v20  ;;  %v6884_v60 = vpack.c.bf16 %v6123_v17, %v6123_v17  ;;  %v6885_v0 = vpack.c.bf16 %v6030_v34, %v6028_v9  ;;  %v6126_v39 = vadd.f32 %v7014_v47, %v11466_v54 }
 0xc99   : > { %6318 = vst [vmem:[%s11443_s4 + $0xb0] sm:$0xf] %v6884_v60  ;;  %6319 = vst [vmem:[%s11443_s4 + $0xb4] sm:$0xff] %v6885_v0  ;;  %v6886_v32 = vpack.c.bf16 %v6126_v39, %v6126_v39 }
 0xc9b   : > { %6320 = vst [vmem:[%s11443_s4 + $0xbc] sm:$0xf] %v6886_v32 }
 0xc9c   : > { %8366 = shalt.err (!%p8363_p8)
}
 0xc9d   : > { %s8367_s8 = scalar_lea.hbm %s11526_s18, 3072  ;;  %s8371_s19 = scalar_lea.hbm %s11913_s28, 6144 }
 0xc9e   : > { %p8368_p4 = scmp.ne.s32.totalorder %s11526_s18, %s8367_s8  ;;  %p8372_p1 = scmp.lt.u32.totalorder %s11526_s18, %s11913_s28 }
 0xc9f   : > { %p8373_p11 = scmp.lt.u32.totalorder %s8371_s19, %s8367_s8  ;;  %p8375_p2 = scmp.lt.u32.totalorder %s8367_s8, %s11526_s18 }
 0xca0   : > { %p8369_p3 = pnand %p8368_p4, %p11914_p13 }
 0xca1   : > { %p8374_p12 = por %p8373_p11, %p8372_p1 }
 0xca2   : > { %p8370_p10 = pneg %p8369_p3 }
 0xca3   : > { %p8376_p6 = por %p8375_p2, %p8374_p12 }
 0xca5   : > { %p8377_p9 = pnand %p8376_p6, %p8370_p10 }
 0xca7   : > { %8380 = shalt.err (!%p8377_p9)
}
 0xca8   : > { %s8453_s17 = smov 192   ;;  %s8454_s10 = smov 12  }
 0xca9   : > { %7265 = dma.vmem_to_hbm [thread:$0]  (%p11914_p13), %s11530_s29, 3072, %s11526_s18, %s6322_s27, %s8453_s17, %s8453_s17, %s8454_s10  }
 0xcaa PF: > { %s6351_s11 = sand.u32 1, %s8423_s21   ;;  %p11915_p0 = scmp.ne.s32.totalorder %s11698_s15, 0 }
 0xcab   : > { %p11916_p5 = scmp.ge.s32.totalorder %s8435_s24, 2  ;;  %s6352_s20 = scalar_lea.sflag [#allocation6], %s6351_s11 }
 0xcad   : > { %p7291_p7 = pnand %p11916_p5, %p11915_p0 }
 0xcaf   : > { %8418 = dma.done.wait (!%p7291_p7), %s6352_s20, 3072  }
 0xcb0   : > { %8420 = vsyncadd (!%p7291_p7), %s6352_s20, 4294964224  ;;  %p34_p8 = scmp.ge.s32.totalorder %s8700_s12, 4   ;;  %s11917_s21 = smov %s8427_s22 }
 0xcb1   : > { %s11918_s22 = smov %s8431_s23  ;;  %s11919_s23 = smov %s8712_s0 }
 0xcb2   : > { %s11920_s24 = smov %s8700_s12  ;;  %36 = sbr.rel (!%p34_p8) target bundleno = 23 (0x17), region = 162 }
 0xcb9   :  { %6357 = vsyncpa [#allocation5], 1 }
 0xcba   :  { %6359 = vsyncpa [#allocation5 + $0x1], 1 }
 0xcbb   :  { %6360 = vsyncpa [#allocation8], 1 }
 0xcbc   :  { %6362 = vsyncpa [#allocation8 + $0x1], 1 }
 0xcbd   :  { %6363 = vsyncpa [#allocation11], 1 }
 0xcbe   :  { %6364 = vsyncpa [#allocation14], 1 }
 0xcbf   :  { %6365 = vsyncpa [#allocation6], 1 }
 0xcc0   :  { %6367 = vsyncpa [#allocation6 + $0x1], 1 }

</bundles_post_ra>
